<compile_context>
chip_gen: v5e
topology: v5e:2x2
jax: 0.10.0
libtpu: 0.0.40
codegen_flags: <defaults>
</compile_context>

<pallas_src>
import functools

import jax
import jax.numpy as jnp
from jax.experimental import pallas as pl
from jax.experimental.pallas import tpu as pltpu  # noqa: F401  (kept for TPU-specific extensions)

# ----------------------------- model config ---------------------------------
IMG = 32        # resize target (stands in for 224)
PATCH = 8       # stands in for 16
HIDDEN = 64     # stands in for 768
LAYERS = 2      # stands in for 12
HEADS = 4       # stands in for 12
MLP = 128       # stands in for 3072
FEAT = 32       # stands in for 512 (rgb_fc / dsm_fc output width)
LN_EPS = 1e-12  # HF ViT layer_norm_eps


# ----------------------------- in-kernel helpers ------------------------------
def _ln(x, g, b, eps):
    """Row-wise layernorm on a value (not a ref)."""
    mu = jnp.mean(x, axis=-1, keepdims=True)
    var = jnp.mean(jnp.square(x - mu), axis=-1, keepdims=True)
    return (x - mu) * jax.lax.rsqrt(var + eps) * g + b


# ----------------------------- fused ViT kernel -------------------------------
def _vit_kernel(patches_ref, base_ref, pw_ref,
                ln1g_ref, ln1b_ref, wqkv_ref, bqkv_ref, wo_ref, bo_ref,
                ln2g_ref, ln2b_ref, w1_ref, b1_ref, w2_ref, b2_ref,
                lnfg_ref, lnfb_ref, o_ref,
                *, batch, t_pad, t_real, heads, dh, hidden, layers, eps):
    f32 = jnp.float32
    scale = 1.0 / (dh ** 0.5)

    # patch embedding; cls/pos/patch-bias pre-folded into `base` (pad rows are zero)
    x = jnp.dot(patches_ref[...], pw_ref[...], preferred_element_type=f32)
    x = x + base_ref[...].astype(f32)                     # (batch*t_pad, hidden)

    # pad tokens (index >= t_real) must never contribute as attention keys
    key_ids = jax.lax.broadcasted_iota(jnp.int32, (t_pad, t_pad), 1)
    key_mask = jnp.where(key_ids < t_real, 0.0, -1e30).astype(f32)

    for l in range(layers):                               # LAYERS=2: static unroll
        # ---- attention block ----
        h = _ln(x, ln1g_ref[l], ln1b_ref[l], eps)
        qkv = jnp.dot(h, wqkv_ref[l], preferred_element_type=f32) + bqkv_ref[l]
        ctx_batches = []
        for b in range(batch):
            r0 = b * t_pad
            head_outs = []
            for hh in range(heads):
                c0 = hh * dh
                q = qkv[r0:r0 + t_pad, c0:c0 + dh]
                k = qkv[r0:r0 + t_pad, hidden + c0:hidden + c0 + dh]
                v = qkv[r0:r0 + t_pad, 2 * hidden + c0:2 * hidden + c0 + dh]
                s = jax.lax.dot_general(q, k, (((1,), (1,)), ((), ())),
                                        preferred_element_type=f32)
                s = s * scale + key_mask
                m = jnp.max(s, axis=-1, keepdims=True)
                p = jnp.exp(s - m)
                p = p * pl.reciprocal(jnp.sum(p, axis=-1, keepdims=True), approx=True)
                head_outs.append(jnp.dot(p, v, preferred_element_type=f32))
            ctx_batches.append(jnp.concatenate(head_outs, axis=-1))    # (t_pad, hidden)
        ctx = jnp.concatenate(ctx_batches, axis=0)                     # (batch*t_pad, hidden)
        x = jnp.dot(ctx, wo_ref[l], preferred_element_type=f32) + bo_ref[l] + x

        # ---- MLP block ----
        h2 = _ln(x, ln2g_ref[l], ln2b_ref[l], eps)
        # TODO(synk): HF ViT uses exact erf-GELU; tanh approximation used for robust lowering.
        mm = jax.nn.gelu(jnp.dot(h2, w1_ref[l], preferred_element_type=f32) + b1_ref[l],
                         approximate=True)
        x = jnp.dot(mm, w2_ref[l], preferred_element_type=f32) + b2_ref[l] + x

    x = _ln(x, lnfg_ref[...], lnfb_ref[...], eps)
    o_ref[...] = x.astype(o_ref.dtype)


# ------------------- fused conv3x3 + ReLU + 2x2 maxpool kernel -----------------
def _conv_relu_pool_kernel(p00_ref, p01_ref, p10_ref, p11_ref, w_ref, b_ref, o_ref):
    w = w_ref[...]
    b = b_ref[...]

    def tap(p_ref):
        y = jnp.dot(p_ref[...], w, preferred_element_type=jnp.float32) + b
        return jnp.maximum(y, 0.0)

    o = jnp.maximum(jnp.maximum(tap(p00_ref), tap(p01_ref)),
                    jnp.maximum(tap(p10_ref), tap(p11_ref)))
    o_ref[...] = o.astype(o_ref.dtype)


def conv3x3_relu_pool(x_nhwc, w, b):
    """Fused 3x3 conv (stride 1, pad 1) + ReLU + 2x2/stride-2 max-pool.
    Building the 4 pool-tap im2col matrices is layout glue; the 4 matmuls, bias,
    ReLU and the max all run inside ONE Pallas kernel (no intermediate conv map in HBM).
    Weight layout: (9*Cin, Cout) with rows ordered (kh, kw, cin)."""
    N, H, W, C = x_nhwc.shape
    Ho, Wo = H // 2, W // 2
    Cout = w.shape[1]
    xp = jnp.pad(x_nhwc, ((0, 0), (1, 1), (1, 1), (0, 0)))
    mats = []
    for a in range(2):
        for bb in range(2):
            cols = [xp[:, a + di: a + di + 2 * Ho - 1: 2,
                       bb + dj: bb + dj + 2 * Wo - 1: 2, :]
                    for di in range(3) for dj in range(3)]
            mats.append(jnp.concatenate(cols, axis=-1).reshape(N * Ho * Wo, 9 * C))
    out = pl.pallas_call(
        _conv_relu_pool_kernel,
        out_shape=jax.ShapeDtypeStruct((N * Ho * Wo, Cout), x_nhwc.dtype),
    )(mats[0], mats[1], mats[2], mats[3], w, b.reshape(1, Cout))
    return out.reshape(N, Ho, Wo, Cout)


# ------------------------------- fused head kernel -----------------------------
def _head_kernel(cls_ref, dsm_ref, rw_ref, rb_ref, dw_ref, db_ref,
                 w1_ref, b1_ref, w2_ref, b2_ref, w3_ref, b3_ref, o_ref):
    f32 = jnp.float32
    rgb_feat = jnp.dot(cls_ref[...], rw_ref[...], preferred_element_type=f32) + rb_ref[...]
    dsm_feat = jnp.dot(dsm_ref[...], dw_ref[...], preferred_element_type=f32) + db_ref[...]
    h = jnp.concatenate([rgb_feat, dsm_feat], axis=-1)
    h = jnp.maximum(jnp.dot(h, w1_ref[...], preferred_element_type=f32) + b1_ref[...], 0.0)
    h = jnp.maximum(jnp.dot(h, w2_ref[...], preferred_element_type=f32) + b2_ref[...], 0.0)
    y = jnp.dot(h, w3_ref[...], preferred_element_type=f32) + b3_ref[...]
    o_ref[...] = y.astype(o_ref.dtype)


# ----------------------------- full forward ----------------------------------
def vit_wheat_forward(params, rgb, dsm):
    """rgb: (B, 3, h, w), dsm: (B, 1, h, w)  (NCHW, like PyTorch).  Returns (B, 1)."""
    B = rgb.shape[0]

    # transforms.Resize (bilinear) -- JAX glue.
    # TODO(synk): torchvision antialias semantics not replicated exactly.
    rgb = jax.image.resize(rgb, (B, 3, IMG, IMG), method="bilinear")
    dsm = jax.image.resize(dsm, (B, 1, IMG, IMG), method="bilinear")

    npatch = IMG // PATCH
    np2 = npatch * npatch
    T = np2 + 1
    TPAD = ((T + 7) // 8) * 8          # sublane-aligned token count (17 -> 24)
    dh = HIDDEN // HEADS

    # ---- ViT branch: one fused pallas_call (patch embed + transformer + final LN) ----
    # patch extraction + token padding (layout-only glue)
    patches = rgb.reshape(B, 3, npatch, PATCH, npatch, PATCH)
    patches = patches.transpose(0, 2, 4, 1, 3, 5).reshape(B, np2, 3 * PATCH * PATCH)
    patches = jnp.pad(patches, ((0, 0), (1, TPAD - T), (0, 0)))       # CLS + pad rows = 0
    patches = patches.reshape(B * TPAD, 3 * PATCH * PATCH)

    # additive token base: row0 = cls + pos0; patch rows = pos + patch_b; pad rows = 0
    cls_row = params["cls"][0] + params["pos"][0, :1]                 # (1, HIDDEN)
    tok_rows = params["pos"][0, 1:T] + params["patch_b"][None, :]     # (np2, HIDDEN)
    base = jnp.concatenate(
        [cls_row, tok_rows, jnp.zeros((TPAD - T, HIDDEN), jnp.float32)], axis=0)
    base = jnp.tile(base, (B, 1))                                     # (B*TPAD, HIDDEN)

    vit_fn = pl.pallas_call(
        functools.partial(_vit_kernel, batch=B, t_pad=TPAD, t_real=T,
                          heads=HEADS, dh=dh, hidden=HIDDEN, layers=LAYERS, eps=LN_EPS),
        out_shape=jax.ShapeDtypeStruct((B * TPAD, HIDDEN), jnp.float32),
    )
    last_hidden = vit_fn(patches, base, params["patch_w"],
                         params["ln1_g"], params["ln1_b"],
                         params["wqkv"], params["bqkv"],
                         params["wo"], params["bo"],
                         params["ln2_g"], params["ln2_b"],
                         params["w1"], params["b1"],
                         params["w2"], params["b2"],
                         params["ln_f_g"].reshape(1, HIDDEN),
                         params["ln_f_b"].reshape(1, HIDDEN))
    cls_hidden = last_hidden.reshape(B, TPAD, HIDDEN)[:, 0, :]        # (B, HIDDEN)

    # ---- DSM conv branch (NHWC inside): conv+ReLU+pool fused per stage ----
    d = dsm.transpose(0, 2, 3, 1)                                     # NCHW -> NHWC
    d = conv3x3_relu_pool(d, params["conv1_w"], params["conv1_b"])    # (B, 16, 16, 16)
    d = conv3x3_relu_pool(d, params["conv2_w"], params["conv2_b"])    # (B, 8, 8, 32)
    dsm_flat = d.transpose(0, 3, 1, 2).reshape(B, -1)                 # PyTorch NCHW flatten

    # ---- fused head: rgb_fc, dsm_fc, concat, fc1+relu, fc2+relu, fc3 ----
    head_fn = pl.pallas_call(
        _head_kernel, out_shape=jax.ShapeDtypeStruct((B, 1), jnp.float32))
    out = head_fn(cls_hidden, dsm_flat,
                  params["rgb_fc_w"], params["rgb_fc_b"].reshape(1, -1),
                  params["dsm_fc_w"], params["dsm_fc_b"].reshape(1, -1),
                  params["fc1_w"], params["fc1_b"].reshape(1, -1),
                  params["fc2_w"], params["fc2_b"].reshape(1, -1),
                  params["fc3_w"], params["fc3_b"].reshape(1, -1))
    return out                                                        # (B, 1)


# ----------------------------- parameters ------------------------------------
def init_params(key):
    keys = jax.random.split(key, 24)
    kit = iter(keys)

    def w(shape, scale=0.02):
        return jax.random.normal(next(kit), shape, jnp.float32) * scale

    z = lambda *s: jnp.zeros(s, jnp.float32)
    o = lambda *s: jnp.ones(s, jnp.float32)

    npatch = IMG // PATCH
    T = npatch * npatch + 1

    dsm_spatial = IMG // 4                                 # two 2x2 max-pools
    dsm_feature_size = 32 * dsm_spatial * dsm_spatial      # matches _get_dsm_feature_size()

    return dict(
        patch_w=w((3 * PATCH * PATCH, HIDDEN)), patch_b=z(HIDDEN),
        cls=w((1, 1, HIDDEN)), pos=w((1, T, HIDDEN)),
        # per-layer weights stacked on a leading layer axis; q|k|v fused into one matmul
        ln1_g=o(LAYERS, 1, HIDDEN), ln1_b=z(LAYERS, 1, HIDDEN),
        wqkv=w((LAYERS, HIDDEN, 3 * HIDDEN)), bqkv=z(LAYERS, 1, 3 * HIDDEN),
        wo=w((LAYERS, HIDDEN, HIDDEN)), bo=z(LAYERS, 1, HIDDEN),
        ln2_g=o(LAYERS, 1, HIDDEN), ln2_b=z(LAYERS, 1, HIDDEN),
        w1=w((LAYERS, HIDDEN, MLP)), b1=z(LAYERS, 1, MLP),
        w2=w((LAYERS, MLP, HIDDEN)), b2=z(LAYERS, 1, HIDDEN),
        ln_f_g=o(HIDDEN), ln_f_b=z(HIDDEN),
        rgb_fc_w=w((HIDDEN, FEAT)), rgb_fc_b=z(FEAT),
        conv1_w=w((9 * 1, 16)), conv1_b=z(16),
        conv2_w=w((9 * 16, 32)), conv2_b=z(32),
        dsm_fc_w=w((dsm_feature_size, FEAT)), dsm_fc_b=z(FEAT),
        fc1_w=w((2 * FEAT, FEAT)), fc1_b=z(FEAT),
        fc2_w=w((FEAT, FEAT // 2)), fc2_b=z(FEAT // 2),
        fc3_w=w((FEAT // 2, 1)), fc3_b=z(1),
    )


# --------------------------------- main ---------------------------------------
if __name__ == "__main__":
    key = jax.random.PRNGKey(0)
    pkey, rkey, dkey = jax.random.split(key, 3)
    params = init_params(pkey)

    # Small inputs (NCHW, like the PyTorch module); resized to IMG x IMG inside forward.
    rgb = jax.random.normal(rkey, (2, 3, 48, 48), jnp.float32)
    dsm = jax.random.normal(dkey, (2, 1, 48, 48), jnp.float32)

    out = jax.jit(vit_wheat_forward)(params, rgb, dsm)
    out = jax.block_until_ready(out)
    assert out.shape == (2, 1) and out.dtype == jnp.float32
    print("KERNEL_OK")
</pallas_src>

<mosaic_0001>
module attributes {stable_mosaic.version = 11 : i64} {
  func.func @_vit_kernel(%arg0: memref<48x192xf32, #tpu.memory_space<vmem>>, %arg1: memref<48x64xf32, #tpu.memory_space<vmem>>, %arg2: memref<192x64xf32, #tpu.memory_space<vmem>>, %arg3: memref<2x1x64xf32, #tpu.memory_space<vmem>>, %arg4: memref<2x1x64xf32, #tpu.memory_space<vmem>>, %arg5: memref<2x64x192xf32, #tpu.memory_space<vmem>>, %arg6: memref<2x1x192xf32, #tpu.memory_space<vmem>>, %arg7: memref<2x64x64xf32, #tpu.memory_space<vmem>>, %arg8: memref<2x1x64xf32, #tpu.memory_space<vmem>>, %arg9: memref<2x1x64xf32, #tpu.memory_space<vmem>>, %arg10: memref<2x1x64xf32, #tpu.memory_space<vmem>>, %arg11: memref<2x64x128xf32, #tpu.memory_space<vmem>>, %arg12: memref<2x1x128xf32, #tpu.memory_space<vmem>>, %arg13: memref<2x128x64xf32, #tpu.memory_space<vmem>>, %arg14: memref<2x1x64xf32, #tpu.memory_space<vmem>>, %arg15: memref<1x64xf32, #tpu.memory_space<vmem>>, %arg16: memref<1x64xf32, #tpu.memory_space<vmem>>, %arg17: memref<48x64xf32, #tpu.memory_space<vmem>>) attributes {dimension_semantics = [], scalar_prefetch = 0 : i64, scratch_operands = 0 : i64, tpu.core_type = #tpu.core_type<tc>} {
    %c0 = arith.constant 0 : index
    %c0_0 = arith.constant 0 : index
    %0 = vector.load %arg0[%c0, %c0_0] : memref<48x192xf32, #tpu.memory_space<vmem>>, vector<48x192xf32>
    %c0_1 = arith.constant 0 : index
    %c0_2 = arith.constant 0 : index
    %1 = vector.load %arg2[%c0_1, %c0_2] : memref<192x64xf32, #tpu.memory_space<vmem>>, vector<192x64xf32>
    %cst = arith.constant dense<0.000000e+00> : vector<48x64xf32>
    %2 = tpu.matmul %0, %1, %cst {dimension_numbers = #tpu.dot_dimension_numbers<[1], [0], [0], [1], [0, 0, 1, 1], [], []>} : vector<48x192xf32>, vector<192x64xf32>, vector<48x64xf32> -> vector<48x64xf32>
    %c0_3 = arith.constant 0 : index
    %c0_4 = arith.constant 0 : index
    %3 = vector.load %arg1[%c0_3, %c0_4] : memref<48x64xf32, #tpu.memory_space<vmem>>, vector<48x64xf32>
    %4 = arith.addf %2, %3 : vector<48x64xf32>
    %5 = tpu.iota {dimensions = array<i32: 1>} : vector<24x24xi32>
    %c17_i32 = arith.constant 17 : i32
    %6 = vector.broadcast %c17_i32 : i32 to vector<24x24xi32>
    %7 = arith.cmpi slt, %5, %6 : vector<24x24xi32>
    %cst_5 = arith.constant 0.000000e+00 : f32
    %cst_6 = arith.constant -1.000000e+30 : f32
    %8 = vector.broadcast %cst_5 : f32 to vector<24x24xf32>
    %9 = vector.broadcast %cst_6 : f32 to vector<24x24xf32>
    %10 = arith.select %7, %8, %9 : vector<24x24xi1>, vector<24x24xf32>
    %c0_7 = arith.constant 0 : index
    %c0_8 = arith.constant 0 : index
    %c0_9 = arith.constant 0 : index
    %11 = vector.load %arg3[%c0_7, %c0_8, %c0_9] : memref<2x1x64xf32, #tpu.memory_space<vmem>>, vector<1x1x64xf32>
    %12 = vector.shape_cast %11 : vector<1x1x64xf32> to vector<1x64xf32>
    %c0_10 = arith.constant 0 : index
    %c0_11 = arith.constant 0 : index
    %c0_12 = arith.constant 0 : index
    %13 = vector.load %arg4[%c0_10, %c0_11, %c0_12] : memref<2x1x64xf32, #tpu.memory_space<vmem>>, vector<1x1x64xf32>
    %14 = vector.shape_cast %13 : vector<1x1x64xf32> to vector<1x64xf32>
    %cst_13 = arith.constant dense<0.000000e+00> : vector<48xf32>
    %15 = vector.multi_reduction <add>, %4, %cst_13 [1] : vector<48x64xf32> to vector<48xf32>
    %16 = vector.shape_cast %15 : vector<48xf32> to vector<48x1xf32>
    %cst_14 = arith.constant 6.400000e+01 : f32
    %17 = vector.broadcast %cst_14 : f32 to vector<48x1xf32>
    %18 = arith.divf %16, %17 : vector<48x1xf32>
    %19 = vector.broadcast %18 : vector<48x1xf32> to vector<48x64xf32>
    %20 = arith.subf %4, %19 : vector<48x64xf32>
    %21 = arith.mulf %20, %20 : vector<48x64xf32>
    %cst_15 = arith.constant dense<0.000000e+00> : vector<48xf32>
    %22 = vector.multi_reduction <add>, %21, %cst_15 [1] : vector<48x64xf32> to vector<48xf32>
    %23 = vector.shape_cast %22 : vector<48xf32> to vector<48x1xf32>
    %cst_16 = arith.constant 6.400000e+01 : f32
    %24 = vector.broadcast %cst_16 : f32 to vector<48x1xf32>
    %25 = arith.divf %23, %24 : vector<48x1xf32>
    %26 = vector.broadcast %18 : vector<48x1xf32> to vector<48x64xf32>
    %27 = arith.subf %4, %26 : vector<48x64xf32>
    %cst_17 = arith.constant 9.99999996E-13 : f32
    %28 = vector.broadcast %cst_17 : f32 to vector<48x1xf32>
    %29 = arith.addf %25, %28 : vector<48x1xf32>
    %30 = math.rsqrt %29 : vector<48x1xf32>
    %31 = vector.broadcast %30 : vector<48x1xf32> to vector<48x64xf32>
    %32 = arith.mulf %27, %31 : vector<48x64xf32>
    %33 = vector.broadcast %12 : vector<1x64xf32> to vector<48x64xf32>
    %34 = arith.mulf %32, %33 : vector<48x64xf32>
    %35 = vector.broadcast %14 : vector<1x64xf32> to vector<48x64xf32>
    %36 = arith.addf %34, %35 : vector<48x64xf32>
    %c0_18 = arith.constant 0 : index
    %c0_19 = arith.constant 0 : index
    %c0_20 = arith.constant 0 : index
    %37 = vector.load %arg5[%c0_18, %c0_19, %c0_20] : memref<2x64x192xf32, #tpu.memory_space<vmem>>, vector<1x64x192xf32>
    %38 = vector.shape_cast %37 : vector<1x64x192xf32> to vector<64x192xf32>
    %cst_21 = arith.constant dense<0.000000e+00> : vector<48x192xf32>
    %39 = tpu.matmul %36, %38, %cst_21 {dimension_numbers = #tpu.dot_dimension_numbers<[1], [0], [0], [1], [0, 0, 1, 1], [], []>} : vector<48x64xf32>, vector<64x192xf32>, vector<48x192xf32> -> vector<48x192xf32>
    %c0_22 = arith.constant 0 : index
    %c0_23 = arith.constant 0 : index
    %c0_24 = arith.constant 0 : index
    %40 = vector.load %arg6[%c0_22, %c0_23, %c0_24] : memref<2x1x192xf32, #tpu.memory_space<vmem>>, vector<1x1x192xf32>
    %41 = vector.shape_cast %40 : vector<1x1x192xf32> to vector<1x192xf32>
    %42 = vector.broadcast %41 : vector<1x192xf32> to vector<48x192xf32>
    %43 = arith.addf %39, %42 : vector<48x192xf32>
    %44 = vector.extract_strided_slice %43 {offsets = [0, 0], sizes = [24, 16], strides = [1, 1]} : vector<48x192xf32> to vector<24x16xf32>
    %45 = vector.extract_strided_slice %43 {offsets = [0, 64], sizes = [24, 16], strides = [1, 1]} : vector<48x192xf32> to vector<24x16xf32>
    %46 = vector.extract_strided_slice %43 {offsets = [0, 128], sizes = [24, 16], strides = [1, 1]} : vector<48x192xf32> to vector<24x16xf32>
    %cst_25 = arith.constant dense<0.000000e+00> : vector<24x24xf32>
    %47 = tpu.matmul %44, %45, %cst_25 {dimension_numbers = #tpu.dot_dimension_numbers<[1], [1], [0], [0], [0, 0, 1, 0], [], []>} : vector<24x16xf32>, vector<24x16xf32>, vector<24x24xf32> -> vector<24x24xf32>
    %cst_26 = arith.constant 2.500000e-01 : f32
    %48 = vector.broadcast %cst_26 : f32 to vector<24x24xf32>
    %49 = arith.mulf %47, %48 : vector<24x24xf32>
    %50 = arith.addf %49, %10 : vector<24x24xf32>
    %cst_27 = arith.constant dense<0xFF800000> : vector<24xf32>
    %51 = vector.multi_reduction <maximumf>, %50, %cst_27 [1] : vector<24x24xf32> to vector<24xf32>
    %52 = vector.shape_cast %51 : vector<24xf32> to vector<24x1xf32>
    %53 = vector.broadcast %52 : vector<24x1xf32> to vector<24x24xf32>
    %54 = arith.subf %50, %53 : vector<24x24xf32>
    %55 = math.exp %54 : vector<24x24xf32>
    %cst_28 = arith.constant dense<0.000000e+00> : vector<24xf32>
    %56 = vector.multi_reduction <add>, %55, %cst_28 [1] : vector<24x24xf32> to vector<24xf32>
    %57 = vector.shape_cast %56 : vector<24xf32> to vector<24x1xf32>
    %58 = tpu.reciprocal %57 {approx = true} : vector<24x1xf32> -> vector<24x1xf32>
    %59 = vector.broadcast %58 : vector<24x1xf32> to vector<24x24xf32>
    %60 = arith.mulf %55, %59 : vector<24x24xf32>
    %cst_29 = arith.constant dense<0.000000e+00> : vector<24x16xf32>
    %61 = tpu.matmul %60, %46, %cst_29 {dimension_numbers = #tpu.dot_dimension_numbers<[1], [0], [0], [1], [0, 0, 1, 1], [], []>} : vector<24x24xf32>, vector<24x16xf32>, vector<24x16xf32> -> vector<24x16xf32>
    %62 = vector.extract_strided_slice %43 {offsets = [0, 16], sizes = [24, 16], strides = [1, 1]} : vector<48x192xf32> to vector<24x16xf32>
    %63 = vector.extract_strided_slice %43 {offsets = [0, 80], sizes = [24, 16], strides = [1, 1]} : vector<48x192xf32> to vector<24x16xf32>
    %64 = vector.extract_strided_slice %43 {offsets = [0, 144], sizes = [24, 16], strides = [1, 1]} : vector<48x192xf32> to vector<24x16xf32>
    %cst_30 = arith.constant dense<0.000000e+00> : vector<24x24xf32>
    %65 = tpu.matmul %62, %63, %cst_30 {dimension_numbers = #tpu.dot_dimension_numbers<[1], [1], [0], [0], [0, 0, 1, 0], [], []>} : vector<24x16xf32>, vector<24x16xf32>, vector<24x24xf32> -> vector<24x24xf32>
    %cst_31 = arith.constant 2.500000e-01 : f32
    %66 = vector.broadcast %cst_31 : f32 to vector<24x24xf32>
    %67 = arith.mulf %65, %66 : vector<24x24xf32>
    %68 = arith.addf %67, %10 : vector<24x24xf32>
    %cst_32 = arith.constant dense<0xFF800000> : vector<24xf32>
    %69 = vector.multi_reduction <maximumf>, %68, %cst_32 [1] : vector<24x24xf32> to vector<24xf32>
    %70 = vector.shape_cast %69 : vector<24xf32> to vector<24x1xf32>
    %71 = vector.broadcast %70 : vector<24x1xf32> to vector<24x24xf32>
    %72 = arith.subf %68, %71 : vector<24x24xf32>
    %73 = math.exp %72 : vector<24x24xf32>
    %cst_33 = arith.constant dense<0.000000e+00> : vector<24xf32>
    %74 = vector.multi_reduction <add>, %73, %cst_33 [1] : vector<24x24xf32> to vector<24xf32>
    %75 = vector.shape_cast %74 : vector<24xf32> to vector<24x1xf32>
    %76 = tpu.reciprocal %75 {approx = true} : vector<24x1xf32> -> vector<24x1xf32>
    %77 = vector.broadcast %76 : vector<24x1xf32> to vector<24x24xf32>
    %78 = arith.mulf %73, %77 : vector<24x24xf32>
    %cst_34 = arith.constant dense<0.000000e+00> : vector<24x16xf32>
    %79 = tpu.matmul %78, %64, %cst_34 {dimension_numbers = #tpu.dot_dimension_numbers<[1], [0], [0], [1], [0, 0, 1, 1], [], []>} : vector<24x24xf32>, vector<24x16xf32>, vector<24x16xf32> -> vector<24x16xf32>
    %80 = vector.extract_strided_slice %43 {offsets = [0, 32], sizes = [24, 16], strides = [1, 1]} : vector<48x192xf32> to vector<24x16xf32>
    %81 = vector.extract_strided_slice %43 {offsets = [0, 96], sizes = [24, 16], strides = [1, 1]} : vector<48x192xf32> to vector<24x16xf32>
    %82 = vector.extract_strided_slice %43 {offsets = [0, 160], sizes = [24, 16], strides = [1, 1]} : vector<48x192xf32> to vector<24x16xf32>
    %cst_35 = arith.constant dense<0.000000e+00> : vector<24x24xf32>
    %83 = tpu.matmul %80, %81, %cst_35 {dimension_numbers = #tpu.dot_dimension_numbers<[1], [1], [0], [0], [0, 0, 1, 0], [], []>} : vector<24x16xf32>, vector<24x16xf32>, vector<24x24xf32> -> vector<24x24xf32>
    %cst_36 = arith.constant 2.500000e-01 : f32
    %84 = vector.broadcast %cst_36 : f32 to vector<24x24xf32>
    %85 = arith.mulf %83, %84 : vector<24x24xf32>
    %86 = arith.addf %85, %10 : vector<24x24xf32>
    %cst_37 = arith.constant dense<0xFF800000> : vector<24xf32>
    %87 = vector.multi_reduction <maximumf>, %86, %cst_37 [1] : vector<24x24xf32> to vector<24xf32>
    %88 = vector.shape_cast %87 : vector<24xf32> to vector<24x1xf32>
    %89 = vector.broadcast %88 : vector<24x1xf32> to vector<24x24xf32>
    %90 = arith.subf %86, %89 : vector<24x24xf32>
    %91 = math.exp %90 : vector<24x24xf32>
    %cst_38 = arith.constant dense<0.000000e+00> : vector<24xf32>
    %92 = vector.multi_reduction <add>, %91, %cst_38 [1] : vector<24x24xf32> to vector<24xf32>
    %93 = vector.shape_cast %92 : vector<24xf32> to vector<24x1xf32>
    %94 = tpu.reciprocal %93 {approx = true} : vector<24x1xf32> -> vector<24x1xf32>
    %95 = vector.broadcast %94 : vector<24x1xf32> to vector<24x24xf32>
    %96 = arith.mulf %91, %95 : vector<24x24xf32>
    %cst_39 = arith.constant dense<0.000000e+00> : vector<24x16xf32>
    %97 = tpu.matmul %96, %82, %cst_39 {dimension_numbers = #tpu.dot_dimension_numbers<[1], [0], [0], [1], [0, 0, 1, 1], [], []>} : vector<24x24xf32>, vector<24x16xf32>, vector<24x16xf32> -> vector<24x16xf32>
    %98 = vector.extract_strided_slice %43 {offsets = [0, 48], sizes = [24, 16], strides = [1, 1]} : vector<48x192xf32> to vector<24x16xf32>
    %99 = vector.extract_strided_slice %43 {offsets = [0, 112], sizes = [24, 16], strides = [1, 1]} : vector<48x192xf32> to vector<24x16xf32>
    %100 = vector.extract_strided_slice %43 {offsets = [0, 176], sizes = [24, 16], strides = [1, 1]} : vector<48x192xf32> to vector<24x16xf32>
    %cst_40 = arith.constant dense<0.000000e+00> : vector<24x24xf32>
    %101 = tpu.matmul %98, %99, %cst_40 {dimension_numbers = #tpu.dot_dimension_numbers<[1], [1], [0], [0], [0, 0, 1, 0], [], []>} : vector<24x16xf32>, vector<24x16xf32>, vector<24x24xf32> -> vector<24x24xf32>
    %cst_41 = arith.constant 2.500000e-01 : f32
    %102 = vector.broadcast %cst_41 : f32 to vector<24x24xf32>
    %103 = arith.mulf %101, %102 : vector<24x24xf32>
    %104 = arith.addf %103, %10 : vector<24x24xf32>
    %cst_42 = arith.constant dense<0xFF800000> : vector<24xf32>
    %105 = vector.multi_reduction <maximumf>, %104, %cst_42 [1] : vector<24x24xf32> to vector<24xf32>
    %106 = vector.shape_cast %105 : vector<24xf32> to vector<24x1xf32>
    %107 = vector.broadcast %106 : vector<24x1xf32> to vector<24x24xf32>
    %108 = arith.subf %104, %107 : vector<24x24xf32>
    %109 = math.exp %108 : vector<24x24xf32>
    %cst_43 = arith.constant dense<0.000000e+00> : vector<24xf32>
    %110 = vector.multi_reduction <add>, %109, %cst_43 [1] : vector<24x24xf32> to vector<24xf32>
    %111 = vector.shape_cast %110 : vector<24xf32> to vector<24x1xf32>
    %112 = tpu.reciprocal %111 {approx = true} : vector<24x1xf32> -> vector<24x1xf32>
    %113 = vector.broadcast %112 : vector<24x1xf32> to vector<24x24xf32>
    %114 = arith.mulf %109, %113 : vector<24x24xf32>
    %cst_44 = arith.constant dense<0.000000e+00> : vector<24x16xf32>
    %115 = tpu.matmul %114, %100, %cst_44 {dimension_numbers = #tpu.dot_dimension_numbers<[1], [0], [0], [1], [0, 0, 1, 1], [], []>} : vector<24x24xf32>, vector<24x16xf32>, vector<24x16xf32> -> vector<24x16xf32>
    %116 = tpu.concatenate %61, %79, %97, %115 in 1 : vector<24x16xf32>, vector<24x16xf32>, vector<24x16xf32>, vector<24x16xf32> -> vector<24x64xf32>
    %117 = vector.extract_strided_slice %43 {offsets = [24, 0], sizes = [24, 16], strides = [1, 1]} : vector<48x192xf32> to vector<24x16xf32>
    %118 = vector.extract_strided_slice %43 {offsets = [24, 64], sizes = [24, 16], strides = [1, 1]} : vector<48x192xf32> to vector<24x16xf32>
    %119 = vector.extract_strided_slice %43 {offsets = [24, 128], sizes = [24, 16], strides = [1, 1]} : vector<48x192xf32> to vector<24x16xf32>
    %cst_45 = arith.constant dense<0.000000e+00> : vector<24x24xf32>
    %120 = tpu.matmul %117, %118, %cst_45 {dimension_numbers = #tpu.dot_dimension_numbers<[1], [1], [0], [0], [0, 0, 1, 0], [], []>} : vector<24x16xf32>, vector<24x16xf32>, vector<24x24xf32> -> vector<24x24xf32>
    %cst_46 = arith.constant 2.500000e-01 : f32
    %121 = vector.broadcast %cst_46 : f32 to vector<24x24xf32>
    %122 = arith.mulf %120, %121 : vector<24x24xf32>
    %123 = arith.addf %122, %10 : vector<24x24xf32>
    %cst_47 = arith.constant dense<0xFF800000> : vector<24xf32>
    %124 = vector.multi_reduction <maximumf>, %123, %cst_47 [1] : vector<24x24xf32> to vector<24xf32>
    %125 = vector.shape_cast %124 : vector<24xf32> to vector<24x1xf32>
    %126 = vector.broadcast %125 : vector<24x1xf32> to vector<24x24xf32>
    %127 = arith.subf %123, %126 : vector<24x24xf32>
    %128 = math.exp %127 : vector<24x24xf32>
    %cst_48 = arith.constant dense<0.000000e+00> : vector<24xf32>
    %129 = vector.multi_reduction <add>, %128, %cst_48 [1] : vector<24x24xf32> to vector<24xf32>
    %130 = vector.shape_cast %129 : vector<24xf32> to vector<24x1xf32>
    %131 = tpu.reciprocal %130 {approx = true} : vector<24x1xf32> -> vector<24x1xf32>
    %132 = vector.broadcast %131 : vector<24x1xf32> to vector<24x24xf32>
    %133 = arith.mulf %128, %132 : vector<24x24xf32>
    %cst_49 = arith.constant dense<0.000000e+00> : vector<24x16xf32>
    %134 = tpu.matmul %133, %119, %cst_49 {dimension_numbers = #tpu.dot_dimension_numbers<[1], [0], [0], [1], [0, 0, 1, 1], [], []>} : vector<24x24xf32>, vector<24x16xf32>, vector<24x16xf32> -> vector<24x16xf32>
    %135 = vector.extract_strided_slice %43 {offsets = [24, 16], sizes = [24, 16], strides = [1, 1]} : vector<48x192xf32> to vector<24x16xf32>
    %136 = vector.extract_strided_slice %43 {offsets = [24, 80], sizes = [24, 16], strides = [1, 1]} : vector<48x192xf32> to vector<24x16xf32>
    %137 = vector.extract_strided_slice %43 {offsets = [24, 144], sizes = [24, 16], strides = [1, 1]} : vector<48x192xf32> to vector<24x16xf32>
    %cst_50 = arith.constant dense<0.000000e+00> : vector<24x24xf32>
    %138 = tpu.matmul %135, %136, %cst_50 {dimension_numbers = #tpu.dot_dimension_numbers<[1], [1], [0], [0], [0, 0, 1, 0], [], []>} : vector<24x16xf32>, vector<24x16xf32>, vector<24x24xf32> -> vector<24x24xf32>
    %cst_51 = arith.constant 2.500000e-01 : f32
    %139 = vector.broadcast %cst_51 : f32 to vector<24x24xf32>
    %140 = arith.mulf %138, %139 : vector<24x24xf32>
    %141 = arith.addf %140, %10 : vector<24x24xf32>
    %cst_52 = arith.constant dense<0xFF800000> : vector<24xf32>
    %142 = vector.multi_reduction <maximumf>, %141, %cst_52 [1] : vector<24x24xf32> to vector<24xf32>
    %143 = vector.shape_cast %142 : vector<24xf32> to vector<24x1xf32>
    %144 = vector.broadcast %143 : vector<24x1xf32> to vector<24x24xf32>
    %145 = arith.subf %141, %144 : vector<24x24xf32>
    %146 = math.exp %145 : vector<24x24xf32>
    %cst_53 = arith.constant dense<0.000000e+00> : vector<24xf32>
    %147 = vector.multi_reduction <add>, %146, %cst_53 [1] : vector<24x24xf32> to vector<24xf32>
    %148 = vector.shape_cast %147 : vector<24xf32> to vector<24x1xf32>
    %149 = tpu.reciprocal %148 {approx = true} : vector<24x1xf32> -> vector<24x1xf32>
    %150 = vector.broadcast %149 : vector<24x1xf32> to vector<24x24xf32>
    %151 = arith.mulf %146, %150 : vector<24x24xf32>
    %cst_54 = arith.constant dense<0.000000e+00> : vector<24x16xf32>
    %152 = tpu.matmul %151, %137, %cst_54 {dimension_numbers = #tpu.dot_dimension_numbers<[1], [0], [0], [1], [0, 0, 1, 1], [], []>} : vector<24x24xf32>, vector<24x16xf32>, vector<24x16xf32> -> vector<24x16xf32>
    %153 = vector.extract_strided_slice %43 {offsets = [24, 32], sizes = [24, 16], strides = [1, 1]} : vector<48x192xf32> to vector<24x16xf32>
    %154 = vector.extract_strided_slice %43 {offsets = [24, 96], sizes = [24, 16], strides = [1, 1]} : vector<48x192xf32> to vector<24x16xf32>
    %155 = vector.extract_strided_slice %43 {offsets = [24, 160], sizes = [24, 16], strides = [1, 1]} : vector<48x192xf32> to vector<24x16xf32>
    %cst_55 = arith.constant dense<0.000000e+00> : vector<24x24xf32>
    %156 = tpu.matmul %153, %154, %cst_55 {dimension_numbers = #tpu.dot_dimension_numbers<[1], [1], [0], [0], [0, 0, 1, 0], [], []>} : vector<24x16xf32>, vector<24x16xf32>, vector<24x24xf32> -> vector<24x24xf32>
    %cst_56 = arith.constant 2.500000e-01 : f32
    %157 = vector.broadcast %cst_56 : f32 to vector<24x24xf32>
    %158 = arith.mulf %156, %157 : vector<24x24xf32>
    %159 = arith.addf %158, %10 : vector<24x24xf32>
    %cst_57 = arith.constant dense<0xFF800000> : vector<24xf32>
    %160 = vector.multi_reduction <maximumf>, %159, %cst_57 [1] : vector<24x24xf32> to vector<24xf32>
    %161 = vector.shape_cast %160 : vector<24xf32> to vector<24x1xf32>
    %162 = vector.broadcast %161 : vector<24x1xf32> to vector<24x24xf32>
    %163 = arith.subf %159, %162 : vector<24x24xf32>
    %164 = math.exp %163 : vector<24x24xf32>
    %cst_58 = arith.constant dense<0.000000e+00> : vector<24xf32>
    %165 = vector.multi_reduction <add>, %164, %cst_58 [1] : vector<24x24xf32> to vector<24xf32>
    %166 = vector.shape_cast %165 : vector<24xf32> to vector<24x1xf32>
    %167 = tpu.reciprocal %166 {approx = true} : vector<24x1xf32> -> vector<24x1xf32>
    %168 = vector.broadcast %167 : vector<24x1xf32> to vector<24x24xf32>
    %169 = arith.mulf %164, %168 : vector<24x24xf32>
    %cst_59 = arith.constant dense<0.000000e+00> : vector<24x16xf32>
    %170 = tpu.matmul %169, %155, %cst_59 {dimension_numbers = #tpu.dot_dimension_numbers<[1], [0], [0], [1], [0, 0, 1, 1], [], []>} : vector<24x24xf32>, vector<24x16xf32>, vector<24x16xf32> -> vector<24x16xf32>
    %171 = vector.extract_strided_slice %43 {offsets = [24, 48], sizes = [24, 16], strides = [1, 1]} : vector<48x192xf32> to vector<24x16xf32>
    %172 = vector.extract_strided_slice %43 {offsets = [24, 112], sizes = [24, 16], strides = [1, 1]} : vector<48x192xf32> to vector<24x16xf32>
    %173 = vector.extract_strided_slice %43 {offsets = [24, 176], sizes = [24, 16], strides = [1, 1]} : vector<48x192xf32> to vector<24x16xf32>
    %cst_60 = arith.constant dense<0.000000e+00> : vector<24x24xf32>
    %174 = tpu.matmul %171, %172, %cst_60 {dimension_numbers = #tpu.dot_dimension_numbers<[1], [1], [0], [0], [0, 0, 1, 0], [], []>} : vector<24x16xf32>, vector<24x16xf32>, vector<24x24xf32> -> vector<24x24xf32>
    %cst_61 = arith.constant 2.500000e-01 : f32
    %175 = vector.broadcast %cst_61 : f32 to vector<24x24xf32>
    %176 = arith.mulf %174, %175 : vector<24x24xf32>
    %177 = arith.addf %176, %10 : vector<24x24xf32>
    %cst_62 = arith.constant dense<0xFF800000> : vector<24xf32>
    %178 = vector.multi_reduction <maximumf>, %177, %cst_62 [1] : vector<24x24xf32> to vector<24xf32>
    %179 = vector.shape_cast %178 : vector<24xf32> to vector<24x1xf32>
    %180 = vector.broadcast %179 : vector<24x1xf32> to vector<24x24xf32>
    %181 = arith.subf %177, %180 : vector<24x24xf32>
    %182 = math.exp %181 : vector<24x24xf32>
    %cst_63 = arith.constant dense<0.000000e+00> : vector<24xf32>
    %183 = vector.multi_reduction <add>, %182, %cst_63 [1] : vector<24x24xf32> to vector<24xf32>
    %184 = vector.shape_cast %183 : vector<24xf32> to vector<24x1xf32>
    %185 = tpu.reciprocal %184 {approx = true} : vector<24x1xf32> -> vector<24x1xf32>
    %186 = vector.broadcast %185 : vector<24x1xf32> to vector<24x24xf32>
    %187 = arith.mulf %182, %186 : vector<24x24xf32>
    %cst_64 = arith.constant dense<0.000000e+00> : vector<24x16xf32>
    %188 = tpu.matmul %187, %173, %cst_64 {dimension_numbers = #tpu.dot_dimension_numbers<[1], [0], [0], [1], [0, 0, 1, 1], [], []>} : vector<24x24xf32>, vector<24x16xf32>, vector<24x16xf32> -> vector<24x16xf32>
    %189 = tpu.concatenate %134, %152, %170, %188 in 1 : vector<24x16xf32>, vector<24x16xf32>, vector<24x16xf32>, vector<24x16xf32> -> vector<24x64xf32>
    %190 = tpu.concatenate %116, %189 in 0 : vector<24x64xf32>, vector<24x64xf32> -> vector<48x64xf32>
    %c0_65 = arith.constant 0 : index
    %c0_66 = arith.constant 0 : index
    %c0_67 = arith.constant 0 : index
    %191 = vector.load %arg7[%c0_65, %c0_66, %c0_67] : memref<2x64x64xf32, #tpu.memory_space<vmem>>, vector<1x64x64xf32>
    %192 = vector.shape_cast %191 : vector<1x64x64xf32> to vector<64x64xf32>
    %cst_68 = arith.constant dense<0.000000e+00> : vector<48x64xf32>
    %193 = tpu.matmul %190, %192, %cst_68 {dimension_numbers = #tpu.dot_dimension_numbers<[1], [0], [0], [1], [0, 0, 1, 1], [], []>} : vector<48x64xf32>, vector<64x64xf32>, vector<48x64xf32> -> vector<48x64xf32>
    %c0_69 = arith.constant 0 : index
    %c0_70 = arith.constant 0 : index
    %c0_71 = arith.constant 0 : index
    %194 = vector.load %arg8[%c0_69, %c0_70, %c0_71] : memref<2x1x64xf32, #tpu.memory_space<vmem>>, vector<1x1x64xf32>
    %195 = vector.shape_cast %194 : vector<1x1x64xf32> to vector<1x64xf32>
    %196 = vector.broadcast %195 : vector<1x64xf32> to vector<48x64xf32>
    %197 = arith.addf %193, %196 : vector<48x64xf32>
    %198 = arith.addf %197, %4 : vector<48x64xf32>
    %c0_72 = arith.constant 0 : index
    %c0_73 = arith.constant 0 : index
    %c0_74 = arith.constant 0 : index
    %199 = vector.load %arg9[%c0_72, %c0_73, %c0_74] : memref<2x1x64xf32, #tpu.memory_space<vmem>>, vector<1x1x64xf32>
    %200 = vector.shape_cast %199 : vector<1x1x64xf32> to vector<1x64xf32>
    %c0_75 = arith.constant 0 : index
    %c0_76 = arith.constant 0 : index
    %c0_77 = arith.constant 0 : index
    %201 = vector.load %arg10[%c0_75, %c0_76, %c0_77] : memref<2x1x64xf32, #tpu.memory_space<vmem>>, vector<1x1x64xf32>
    %202 = vector.shape_cast %201 : vector<1x1x64xf32> to vector<1x64xf32>
    %cst_78 = arith.constant dense<0.000000e+00> : vector<48xf32>
    %203 = vector.multi_reduction <add>, %198, %cst_78 [1] : vector<48x64xf32> to vector<48xf32>
    %204 = vector.shape_cast %203 : vector<48xf32> to vector<48x1xf32>
    %cst_79 = arith.constant 6.400000e+01 : f32
    %205 = vector.broadcast %cst_79 : f32 to vector<48x1xf32>
    %206 = arith.divf %204, %205 : vector<48x1xf32>
    %207 = vector.broadcast %206 : vector<48x1xf32> to vector<48x64xf32>
    %208 = arith.subf %198, %207 : vector<48x64xf32>
    %209 = arith.mulf %208, %208 : vector<48x64xf32>
    %cst_80 = arith.constant dense<0.000000e+00> : vector<48xf32>
    %210 = vector.multi_reduction <add>, %209, %cst_80 [1] : vector<48x64xf32> to vector<48xf32>
    %211 = vector.shape_cast %210 : vector<48xf32> to vector<48x1xf32>
    %cst_81 = arith.constant 6.400000e+01 : f32
    %212 = vector.broadcast %cst_81 : f32 to vector<48x1xf32>
    %213 = arith.divf %211, %212 : vector<48x1xf32>
    %214 = vector.broadcast %206 : vector<48x1xf32> to vector<48x64xf32>
    %215 = arith.subf %198, %214 : vector<48x64xf32>
    %cst_82 = arith.constant 9.99999996E-13 : f32
    %216 = vector.broadcast %cst_82 : f32 to vector<48x1xf32>
    %217 = arith.addf %213, %216 : vector<48x1xf32>
    %218 = math.rsqrt %217 : vector<48x1xf32>
    %219 = vector.broadcast %218 : vector<48x1xf32> to vector<48x64xf32>
    %220 = arith.mulf %215, %219 : vector<48x64xf32>
    %221 = vector.broadcast %200 : vector<1x64xf32> to vector<48x64xf32>
    %222 = arith.mulf %220, %221 : vector<48x64xf32>
    %223 = vector.broadcast %202 : vector<1x64xf32> to vector<48x64xf32>
    %224 = arith.addf %222, %223 : vector<48x64xf32>
    %c0_83 = arith.constant 0 : index
    %c0_84 = arith.constant 0 : index
    %c0_85 = arith.constant 0 : index
    %225 = vector.load %arg11[%c0_83, %c0_84, %c0_85] : memref<2x64x128xf32, #tpu.memory_space<vmem>>, vector<1x64x128xf32>
    %226 = vector.shape_cast %225 : vector<1x64x128xf32> to vector<64x128xf32>
    %cst_86 = arith.constant dense<0.000000e+00> : vector<48x128xf32>
    %227 = tpu.matmul %224, %226, %cst_86 {dimension_numbers = #tpu.dot_dimension_numbers<[1], [0], [0], [1], [0, 0, 1, 1], [], []>} : vector<48x64xf32>, vector<64x128xf32>, vector<48x128xf32> -> vector<48x128xf32>
    %c0_87 = arith.constant 0 : index
    %c0_88 = arith.constant 0 : index
    %c0_89 = arith.constant 0 : index
    %228 = vector.load %arg12[%c0_87, %c0_88, %c0_89] : memref<2x1x128xf32, #tpu.memory_space<vmem>>, vector<1x1x128xf32>
    %229 = vector.shape_cast %228 : vector<1x1x128xf32> to vector<1x128xf32>
    %230 = vector.broadcast %229 : vector<1x128xf32> to vector<48x128xf32>
    %231 = arith.addf %227, %230 : vector<48x128xf32>
    %232 = arith.mulf %231, %231 : vector<48x128xf32>
    %233 = arith.mulf %231, %232 : vector<48x128xf32>
    %cst_90 = arith.constant 4.471500e-02 : f32
    %234 = vector.broadcast %cst_90 : f32 to vector<48x128xf32>
    %235 = arith.mulf %234, %233 : vector<48x128xf32>
    %236 = arith.addf %231, %235 : vector<48x128xf32>
    %cst_91 = arith.constant 0.797884583 : f32
    %237 = vector.broadcast %cst_91 : f32 to vector<48x128xf32>
    %238 = arith.mulf %237, %236 : vector<48x128xf32>
    %239 = math.tanh %238 : vector<48x128xf32>
    %cst_92 = arith.constant 1.000000e+00 : f32
    %240 = vector.broadcast %cst_92 : f32 to vector<48x128xf32>
    %241 = arith.addf %240, %239 : vector<48x128xf32>
    %cst_93 = arith.constant 5.000000e-01 : f32
    %242 = vector.broadcast %cst_93 : f32 to vector<48x128xf32>
    %243 = arith.mulf %242, %241 : vector<48x128xf32>
    %244 = arith.mulf %231, %243 : vector<48x128xf32>
    %c0_94 = arith.constant 0 : index
    %c0_95 = arith.constant 0 : index
    %c0_96 = arith.constant 0 : index
    %245 = vector.load %arg13[%c0_94, %c0_95, %c0_96] : memref<2x128x64xf32, #tpu.memory_space<vmem>>, vector<1x128x64xf32>
    %246 = vector.shape_cast %245 : vector<1x128x64xf32> to vector<128x64xf32>
    %cst_97 = arith.constant dense<0.000000e+00> : vector<48x64xf32>
    %247 = tpu.matmul %244, %246, %cst_97 {dimension_numbers = #tpu.dot_dimension_numbers<[1], [0], [0], [1], [0, 0, 1, 1], [], []>} : vector<48x128xf32>, vector<128x64xf32>, vector<48x64xf32> -> vector<48x64xf32>
    %c0_98 = arith.constant 0 : index
    %c0_99 = arith.constant 0 : index
    %c0_100 = arith.constant 0 : index
    %248 = vector.load %arg14[%c0_98, %c0_99, %c0_100] : memref<2x1x64xf32, #tpu.memory_space<vmem>>, vector<1x1x64xf32>
    %249 = vector.shape_cast %248 : vector<1x1x64xf32> to vector<1x64xf32>
    %250 = vector.broadcast %249 : vector<1x64xf32> to vector<48x64xf32>
    %251 = arith.addf %247, %250 : vector<48x64xf32>
    %252 = arith.addf %251, %198 : vector<48x64xf32>
    %c1 = arith.constant 1 : index
    %c0_101 = arith.constant 0 : index
    %c0_102 = arith.constant 0 : index
    %253 = vector.load %arg3[%c1, %c0_101, %c0_102] : memref<2x1x64xf32, #tpu.memory_space<vmem>>, vector<1x1x64xf32>
    %254 = vector.shape_cast %253 : vector<1x1x64xf32> to vector<1x64xf32>
    %c1_103 = arith.constant 1 : index
    %c0_104 = arith.constant 0 : index
    %c0_105 = arith.constant 0 : index
    %255 = vector.load %arg4[%c1_103, %c0_104, %c0_105] : memref<2x1x64xf32, #tpu.memory_space<vmem>>, vector<1x1x64xf32>
    %256 = vector.shape_cast %255 : vector<1x1x64xf32> to vector<1x64xf32>
    %cst_106 = arith.constant dense<0.000000e+00> : vector<48xf32>
    %257 = vector.multi_reduction <add>, %252, %cst_106 [1] : vector<48x64xf32> to vector<48xf32>
    %258 = vector.shape_cast %257 : vector<48xf32> to vector<48x1xf32>
    %cst_107 = arith.constant 6.400000e+01 : f32
    %259 = vector.broadcast %cst_107 : f32 to vector<48x1xf32>
    %260 = arith.divf %258, %259 : vector<48x1xf32>
    %261 = vector.broadcast %260 : vector<48x1xf32> to vector<48x64xf32>
    %262 = arith.subf %252, %261 : vector<48x64xf32>
    %263 = arith.mulf %262, %262 : vector<48x64xf32>
    %cst_108 = arith.constant dense<0.000000e+00> : vector<48xf32>
    %264 = vector.multi_reduction <add>, %263, %cst_108 [1] : vector<48x64xf32> to vector<48xf32>
    %265 = vector.shape_cast %264 : vector<48xf32> to vector<48x1xf32>
    %cst_109 = arith.constant 6.400000e+01 : f32
    %266 = vector.broadcast %cst_109 : f32 to vector<48x1xf32>
    %267 = arith.divf %265, %266 : vector<48x1xf32>
    %268 = vector.broadcast %260 : vector<48x1xf32> to vector<48x64xf32>
    %269 = arith.subf %252, %268 : vector<48x64xf32>
    %cst_110 = arith.constant 9.99999996E-13 : f32
    %270 = vector.broadcast %cst_110 : f32 to vector<48x1xf32>
    %271 = arith.addf %267, %270 : vector<48x1xf32>
    %272 = math.rsqrt %271 : vector<48x1xf32>
    %273 = vector.broadcast %272 : vector<48x1xf32> to vector<48x64xf32>
    %274 = arith.mulf %269, %273 : vector<48x64xf32>
    %275 = vector.broadcast %254 : vector<1x64xf32> to vector<48x64xf32>
    %276 = arith.mulf %274, %275 : vector<48x64xf32>
    %277 = vector.broadcast %256 : vector<1x64xf32> to vector<48x64xf32>
    %278 = arith.addf %276, %277 : vector<48x64xf32>
    %c1_111 = arith.constant 1 : index
    %c0_112 = arith.constant 0 : index
    %c0_113 = arith.constant 0 : index
    %279 = vector.load %arg5[%c1_111, %c0_112, %c0_113] : memref<2x64x192xf32, #tpu.memory_space<vmem>>, vector<1x64x192xf32>
    %280 = vector.shape_cast %279 : vector<1x64x192xf32> to vector<64x192xf32>
    %cst_114 = arith.constant dense<0.000000e+00> : vector<48x192xf32>
    %281 = tpu.matmul %278, %280, %cst_114 {dimension_numbers = #tpu.dot_dimension_numbers<[1], [0], [0], [1], [0, 0, 1, 1], [], []>} : vector<48x64xf32>, vector<64x192xf32>, vector<48x192xf32> -> vector<48x192xf32>
    %c1_115 = arith.constant 1 : index
    %c0_116 = arith.constant 0 : index
    %c0_117 = arith.constant 0 : index
    %282 = vector.load %arg6[%c1_115, %c0_116, %c0_117] : memref<2x1x192xf32, #tpu.memory_space<vmem>>, vector<1x1x192xf32>
    %283 = vector.shape_cast %282 : vector<1x1x192xf32> to vector<1x192xf32>
    %284 = vector.broadcast %283 : vector<1x192xf32> to vector<48x192xf32>
    %285 = arith.addf %281, %284 : vector<48x192xf32>
    %286 = vector.extract_strided_slice %285 {offsets = [0, 0], sizes = [24, 16], strides = [1, 1]} : vector<48x192xf32> to vector<24x16xf32>
    %287 = vector.extract_strided_slice %285 {offsets = [0, 64], sizes = [24, 16], strides = [1, 1]} : vector<48x192xf32> to vector<24x16xf32>
    %288 = vector.extract_strided_slice %285 {offsets = [0, 128], sizes = [24, 16], strides = [1, 1]} : vector<48x192xf32> to vector<24x16xf32>
    %cst_118 = arith.constant dense<0.000000e+00> : vector<24x24xf32>
    %289 = tpu.matmul %286, %287, %cst_118 {dimension_numbers = #tpu.dot_dimension_numbers<[1], [1], [0], [0], [0, 0, 1, 0], [], []>} : vector<24x16xf32>, vector<24x16xf32>, vector<24x24xf32> -> vector<24x24xf32>
    %cst_119 = arith.constant 2.500000e-01 : f32
    %290 = vector.broadcast %cst_119 : f32 to vector<24x24xf32>
    %291 = arith.mulf %289, %290 : vector<24x24xf32>
    %292 = arith.addf %291, %10 : vector<24x24xf32>
    %cst_120 = arith.constant dense<0xFF800000> : vector<24xf32>
    %293 = vector.multi_reduction <maximumf>, %292, %cst_120 [1] : vector<24x24xf32> to vector<24xf32>
    %294 = vector.shape_cast %293 : vector<24xf32> to vector<24x1xf32>
    %295 = vector.broadcast %294 : vector<24x1xf32> to vector<24x24xf32>
    %296 = arith.subf %292, %295 : vector<24x24xf32>
    %297 = math.exp %296 : vector<24x24xf32>
    %cst_121 = arith.constant dense<0.000000e+00> : vector<24xf32>
    %298 = vector.multi_reduction <add>, %297, %cst_121 [1] : vector<24x24xf32> to vector<24xf32>
    %299 = vector.shape_cast %298 : vector<24xf32> to vector<24x1xf32>
    %300 = tpu.reciprocal %299 {approx = true} : vector<24x1xf32> -> vector<24x1xf32>
    %301 = vector.broadcast %300 : vector<24x1xf32> to vector<24x24xf32>
    %302 = arith.mulf %297, %301 : vector<24x24xf32>
    %cst_122 = arith.constant dense<0.000000e+00> : vector<24x16xf32>
    %303 = tpu.matmul %302, %288, %cst_122 {dimension_numbers = #tpu.dot_dimension_numbers<[1], [0], [0], [1], [0, 0, 1, 1], [], []>} : vector<24x24xf32>, vector<24x16xf32>, vector<24x16xf32> -> vector<24x16xf32>
    %304 = vector.extract_strided_slice %285 {offsets = [0, 16], sizes = [24, 16], strides = [1, 1]} : vector<48x192xf32> to vector<24x16xf32>
    %305 = vector.extract_strided_slice %285 {offsets = [0, 80], sizes = [24, 16], strides = [1, 1]} : vector<48x192xf32> to vector<24x16xf32>
    %306 = vector.extract_strided_slice %285 {offsets = [0, 144], sizes = [24, 16], strides = [1, 1]} : vector<48x192xf32> to vector<24x16xf32>
    %cst_123 = arith.constant dense<0.000000e+00> : vector<24x24xf32>
    %307 = tpu.matmul %304, %305, %cst_123 {dimension_numbers = #tpu.dot_dimension_numbers<[1], [1], [0], [0], [0, 0, 1, 0], [], []>} : vector<24x16xf32>, vector<24x16xf32>, vector<24x24xf32> -> vector<24x24xf32>
    %cst_124 = arith.constant 2.500000e-01 : f32
    %308 = vector.broadcast %cst_124 : f32 to vector<24x24xf32>
    %309 = arith.mulf %307, %308 : vector<24x24xf32>
    %310 = arith.addf %309, %10 : vector<24x24xf32>
    %cst_125 = arith.constant dense<0xFF800000> : vector<24xf32>
    %311 = vector.multi_reduction <maximumf>, %310, %cst_125 [1] : vector<24x24xf32> to vector<24xf32>
    %312 = vector.shape_cast %311 : vector<24xf32> to vector<24x1xf32>
    %313 = vector.broadcast %312 : vector<24x1xf32> to vector<24x24xf32>
    %314 = arith.subf %310, %313 : vector<24x24xf32>
    %315 = math.exp %314 : vector<24x24xf32>
    %cst_126 = arith.constant dense<0.000000e+00> : vector<24xf32>
    %316 = vector.multi_reduction <add>, %315, %cst_126 [1] : vector<24x24xf32> to vector<24xf32>
    %317 = vector.shape_cast %316 : vector<24xf32> to vector<24x1xf32>
    %318 = tpu.reciprocal %317 {approx = true} : vector<24x1xf32> -> vector<24x1xf32>
    %319 = vector.broadcast %318 : vector<24x1xf32> to vector<24x24xf32>
    %320 = arith.mulf %315, %319 : vector<24x24xf32>
    %cst_127 = arith.constant dense<0.000000e+00> : vector<24x16xf32>
    %321 = tpu.matmul %320, %306, %cst_127 {dimension_numbers = #tpu.dot_dimension_numbers<[1], [0], [0], [1], [0, 0, 1, 1], [], []>} : vector<24x24xf32>, vector<24x16xf32>, vector<24x16xf32> -> vector<24x16xf32>
    %322 = vector.extract_strided_slice %285 {offsets = [0, 32], sizes = [24, 16], strides = [1, 1]} : vector<48x192xf32> to vector<24x16xf32>
    %323 = vector.extract_strided_slice %285 {offsets = [0, 96], sizes = [24, 16], strides = [1, 1]} : vector<48x192xf32> to vector<24x16xf32>
    %324 = vector.extract_strided_slice %285 {offsets = [0, 160], sizes = [24, 16], strides = [1, 1]} : vector<48x192xf32> to vector<24x16xf32>
    %cst_128 = arith.constant dense<0.000000e+00> : vector<24x24xf32>
    %325 = tpu.matmul %322, %323, %cst_128 {dimension_numbers = #tpu.dot_dimension_numbers<[1], [1], [0], [0], [0, 0, 1, 0], [], []>} : vector<24x16xf32>, vector<24x16xf32>, vector<24x24xf32> -> vector<24x24xf32>
    %cst_129 = arith.constant 2.500000e-01 : f32
    %326 = vector.broadcast %cst_129 : f32 to vector<24x24xf32>
    %327 = arith.mulf %325, %326 : vector<24x24xf32>
    %328 = arith.addf %327, %10 : vector<24x24xf32>
    %cst_130 = arith.constant dense<0xFF800000> : vector<24xf32>
    %329 = vector.multi_reduction <maximumf>, %328, %cst_130 [1] : vector<24x24xf32> to vector<24xf32>
    %330 = vector.shape_cast %329 : vector<24xf32> to vector<24x1xf32>
    %331 = vector.broadcast %330 : vector<24x1xf32> to vector<24x24xf32>
    %332 = arith.subf %328, %331 : vector<24x24xf32>
    %333 = math.exp %332 : vector<24x24xf32>
    %cst_131 = arith.constant dense<0.000000e+00> : vector<24xf32>
    %334 = vector.multi_reduction <add>, %333, %cst_131 [1] : vector<24x24xf32> to vector<24xf32>
    %335 = vector.shape_cast %334 : vector<24xf32> to vector<24x1xf32>
    %336 = tpu.reciprocal %335 {approx = true} : vector<24x1xf32> -> vector<24x1xf32>
    %337 = vector.broadcast %336 : vector<24x1xf32> to vector<24x24xf32>
    %338 = arith.mulf %333, %337 : vector<24x24xf32>
    %cst_132 = arith.constant dense<0.000000e+00> : vector<24x16xf32>
    %339 = tpu.matmul %338, %324, %cst_132 {dimension_numbers = #tpu.dot_dimension_numbers<[1], [0], [0], [1], [0, 0, 1, 1], [], []>} : vector<24x24xf32>, vector<24x16xf32>, vector<24x16xf32> -> vector<24x16xf32>
    %340 = vector.extract_strided_slice %285 {offsets = [0, 48], sizes = [24, 16], strides = [1, 1]} : vector<48x192xf32> to vector<24x16xf32>
    %341 = vector.extract_strided_slice %285 {offsets = [0, 112], sizes = [24, 16], strides = [1, 1]} : vector<48x192xf32> to vector<24x16xf32>
    %342 = vector.extract_strided_slice %285 {offsets = [0, 176], sizes = [24, 16], strides = [1, 1]} : vector<48x192xf32> to vector<24x16xf32>
    %cst_133 = arith.constant dense<0.000000e+00> : vector<24x24xf32>
    %343 = tpu.matmul %340, %341, %cst_133 {dimension_numbers = #tpu.dot_dimension_numbers<[1], [1], [0], [0], [0, 0, 1, 0], [], []>} : vector<24x16xf32>, vector<24x16xf32>, vector<24x24xf32> -> vector<24x24xf32>
    %cst_134 = arith.constant 2.500000e-01 : f32
    %344 = vector.broadcast %cst_134 : f32 to vector<24x24xf32>
    %345 = arith.mulf %343, %344 : vector<24x24xf32>
    %346 = arith.addf %345, %10 : vector<24x24xf32>
    %cst_135 = arith.constant dense<0xFF800000> : vector<24xf32>
    %347 = vector.multi_reduction <maximumf>, %346, %cst_135 [1] : vector<24x24xf32> to vector<24xf32>
    %348 = vector.shape_cast %347 : vector<24xf32> to vector<24x1xf32>
    %349 = vector.broadcast %348 : vector<24x1xf32> to vector<24x24xf32>
    %350 = arith.subf %346, %349 : vector<24x24xf32>
    %351 = math.exp %350 : vector<24x24xf32>
    %cst_136 = arith.constant dense<0.000000e+00> : vector<24xf32>
    %352 = vector.multi_reduction <add>, %351, %cst_136 [1] : vector<24x24xf32> to vector<24xf32>
    %353 = vector.shape_cast %352 : vector<24xf32> to vector<24x1xf32>
    %354 = tpu.reciprocal %353 {approx = true} : vector<24x1xf32> -> vector<24x1xf32>
    %355 = vector.broadcast %354 : vector<24x1xf32> to vector<24x24xf32>
    %356 = arith.mulf %351, %355 : vector<24x24xf32>
    %cst_137 = arith.constant dense<0.000000e+00> : vector<24x16xf32>
    %357 = tpu.matmul %356, %342, %cst_137 {dimension_numbers = #tpu.dot_dimension_numbers<[1], [0], [0], [1], [0, 0, 1, 1], [], []>} : vector<24x24xf32>, vector<24x16xf32>, vector<24x16xf32> -> vector<24x16xf32>
    %358 = tpu.concatenate %303, %321, %339, %357 in 1 : vector<24x16xf32>, vector<24x16xf32>, vector<24x16xf32>, vector<24x16xf32> -> vector<24x64xf32>
    %359 = vector.extract_strided_slice %285 {offsets = [24, 0], sizes = [24, 16], strides = [1, 1]} : vector<48x192xf32> to vector<24x16xf32>
    %360 = vector.extract_strided_slice %285 {offsets = [24, 64], sizes = [24, 16], strides = [1, 1]} : vector<48x192xf32> to vector<24x16xf32>
    %361 = vector.extract_strided_slice %285 {offsets = [24, 128], sizes = [24, 16], strides = [1, 1]} : vector<48x192xf32> to vector<24x16xf32>
    %cst_138 = arith.constant dense<0.000000e+00> : vector<24x24xf32>
    %362 = tpu.matmul %359, %360, %cst_138 {dimension_numbers = #tpu.dot_dimension_numbers<[1], [1], [0], [0], [0, 0, 1, 0], [], []>} : vector<24x16xf32>, vector<24x16xf32>, vector<24x24xf32> -> vector<24x24xf32>
    %cst_139 = arith.constant 2.500000e-01 : f32
    %363 = vector.broadcast %cst_139 : f32 to vector<24x24xf32>
    %364 = arith.mulf %362, %363 : vector<24x24xf32>
    %365 = arith.addf %364, %10 : vector<24x24xf32>
    %cst_140 = arith.constant dense<0xFF800000> : vector<24xf32>
    %366 = vector.multi_reduction <maximumf>, %365, %cst_140 [1] : vector<24x24xf32> to vector<24xf32>
    %367 = vector.shape_cast %366 : vector<24xf32> to vector<24x1xf32>
    %368 = vector.broadcast %367 : vector<24x1xf32> to vector<24x24xf32>
    %369 = arith.subf %365, %368 : vector<24x24xf32>
    %370 = math.exp %369 : vector<24x24xf32>
    %cst_141 = arith.constant dense<0.000000e+00> : vector<24xf32>
    %371 = vector.multi_reduction <add>, %370, %cst_141 [1] : vector<24x24xf32> to vector<24xf32>
    %372 = vector.shape_cast %371 : vector<24xf32> to vector<24x1xf32>
    %373 = tpu.reciprocal %372 {approx = true} : vector<24x1xf32> -> vector<24x1xf32>
    %374 = vector.broadcast %373 : vector<24x1xf32> to vector<24x24xf32>
    %375 = arith.mulf %370, %374 : vector<24x24xf32>
    %cst_142 = arith.constant dense<0.000000e+00> : vector<24x16xf32>
    %376 = tpu.matmul %375, %361, %cst_142 {dimension_numbers = #tpu.dot_dimension_numbers<[1], [0], [0], [1], [0, 0, 1, 1], [], []>} : vector<24x24xf32>, vector<24x16xf32>, vector<24x16xf32> -> vector<24x16xf32>
    %377 = vector.extract_strided_slice %285 {offsets = [24, 16], sizes = [24, 16], strides = [1, 1]} : vector<48x192xf32> to vector<24x16xf32>
    %378 = vector.extract_strided_slice %285 {offsets = [24, 80], sizes = [24, 16], strides = [1, 1]} : vector<48x192xf32> to vector<24x16xf32>
    %379 = vector.extract_strided_slice %285 {offsets = [24, 144], sizes = [24, 16], strides = [1, 1]} : vector<48x192xf32> to vector<24x16xf32>
    %cst_143 = arith.constant dense<0.000000e+00> : vector<24x24xf32>
    %380 = tpu.matmul %377, %378, %cst_143 {dimension_numbers = #tpu.dot_dimension_numbers<[1], [1], [0], [0], [0, 0, 1, 0], [], []>} : vector<24x16xf32>, vector<24x16xf32>, vector<24x24xf32> -> vector<24x24xf32>
    %cst_144 = arith.constant 2.500000e-01 : f32
    %381 = vector.broadcast %cst_144 : f32 to vector<24x24xf32>
    %382 = arith.mulf %380, %381 : vector<24x24xf32>
    %383 = arith.addf %382, %10 : vector<24x24xf32>
    %cst_145 = arith.constant dense<0xFF800000> : vector<24xf32>
    %384 = vector.multi_reduction <maximumf>, %383, %cst_145 [1] : vector<24x24xf32> to vector<24xf32>
    %385 = vector.shape_cast %384 : vector<24xf32> to vector<24x1xf32>
    %386 = vector.broadcast %385 : vector<24x1xf32> to vector<24x24xf32>
    %387 = arith.subf %383, %386 : vector<24x24xf32>
    %388 = math.exp %387 : vector<24x24xf32>
    %cst_146 = arith.constant dense<0.000000e+00> : vector<24xf32>
    %389 = vector.multi_reduction <add>, %388, %cst_146 [1] : vector<24x24xf32> to vector<24xf32>
    %390 = vector.shape_cast %389 : vector<24xf32> to vector<24x1xf32>
    %391 = tpu.reciprocal %390 {approx = true} : vector<24x1xf32> -> vector<24x1xf32>
    %392 = vector.broadcast %391 : vector<24x1xf32> to vector<24x24xf32>
    %393 = arith.mulf %388, %392 : vector<24x24xf32>
    %cst_147 = arith.constant dense<0.000000e+00> : vector<24x16xf32>
    %394 = tpu.matmul %393, %379, %cst_147 {dimension_numbers = #tpu.dot_dimension_numbers<[1], [0], [0], [1], [0, 0, 1, 1], [], []>} : vector<24x24xf32>, vector<24x16xf32>, vector<24x16xf32> -> vector<24x16xf32>
    %395 = vector.extract_strided_slice %285 {offsets = [24, 32], sizes = [24, 16], strides = [1, 1]} : vector<48x192xf32> to vector<24x16xf32>
    %396 = vector.extract_strided_slice %285 {offsets = [24, 96], sizes = [24, 16], strides = [1, 1]} : vector<48x192xf32> to vector<24x16xf32>
    %397 = vector.extract_strided_slice %285 {offsets = [24, 160], sizes = [24, 16], strides = [1, 1]} : vector<48x192xf32> to vector<24x16xf32>
    %cst_148 = arith.constant dense<0.000000e+00> : vector<24x24xf32>
    %398 = tpu.matmul %395, %396, %cst_148 {dimension_numbers = #tpu.dot_dimension_numbers<[1], [1], [0], [0], [0, 0, 1, 0], [], []>} : vector<24x16xf32>, vector<24x16xf32>, vector<24x24xf32> -> vector<24x24xf32>
    %cst_149 = arith.constant 2.500000e-01 : f32
    %399 = vector.broadcast %cst_149 : f32 to vector<24x24xf32>
    %400 = arith.mulf %398, %399 : vector<24x24xf32>
    %401 = arith.addf %400, %10 : vector<24x24xf32>
    %cst_150 = arith.constant dense<0xFF800000> : vector<24xf32>
    %402 = vector.multi_reduction <maximumf>, %401, %cst_150 [1] : vector<24x24xf32> to vector<24xf32>
    %403 = vector.shape_cast %402 : vector<24xf32> to vector<24x1xf32>
    %404 = vector.broadcast %403 : vector<24x1xf32> to vector<24x24xf32>
    %405 = arith.subf %401, %404 : vector<24x24xf32>
    %406 = math.exp %405 : vector<24x24xf32>
    %cst_151 = arith.constant dense<0.000000e+00> : vector<24xf32>
    %407 = vector.multi_reduction <add>, %406, %cst_151 [1] : vector<24x24xf32> to vector<24xf32>
    %408 = vector.shape_cast %407 : vector<24xf32> to vector<24x1xf32>
    %409 = tpu.reciprocal %408 {approx = true} : vector<24x1xf32> -> vector<24x1xf32>
    %410 = vector.broadcast %409 : vector<24x1xf32> to vector<24x24xf32>
    %411 = arith.mulf %406, %410 : vector<24x24xf32>
    %cst_152 = arith.constant dense<0.000000e+00> : vector<24x16xf32>
    %412 = tpu.matmul %411, %397, %cst_152 {dimension_numbers = #tpu.dot_dimension_numbers<[1], [0], [0], [1], [0, 0, 1, 1], [], []>} : vector<24x24xf32>, vector<24x16xf32>, vector<24x16xf32> -> vector<24x16xf32>
    %413 = vector.extract_strided_slice %285 {offsets = [24, 48], sizes = [24, 16], strides = [1, 1]} : vector<48x192xf32> to vector<24x16xf32>
    %414 = vector.extract_strided_slice %285 {offsets = [24, 112], sizes = [24, 16], strides = [1, 1]} : vector<48x192xf32> to vector<24x16xf32>
    %415 = vector.extract_strided_slice %285 {offsets = [24, 176], sizes = [24, 16], strides = [1, 1]} : vector<48x192xf32> to vector<24x16xf32>
    %cst_153 = arith.constant dense<0.000000e+00> : vector<24x24xf32>
    %416 = tpu.matmul %413, %414, %cst_153 {dimension_numbers = #tpu.dot_dimension_numbers<[1], [1], [0], [0], [0, 0, 1, 0], [], []>} : vector<24x16xf32>, vector<24x16xf32>, vector<24x24xf32> -> vector<24x24xf32>
    %cst_154 = arith.constant 2.500000e-01 : f32
    %417 = vector.broadcast %cst_154 : f32 to vector<24x24xf32>
    %418 = arith.mulf %416, %417 : vector<24x24xf32>
    %419 = arith.addf %418, %10 : vector<24x24xf32>
    %cst_155 = arith.constant dense<0xFF800000> : vector<24xf32>
    %420 = vector.multi_reduction <maximumf>, %419, %cst_155 [1] : vector<24x24xf32> to vector<24xf32>
    %421 = vector.shape_cast %420 : vector<24xf32> to vector<24x1xf32>
    %422 = vector.broadcast %421 : vector<24x1xf32> to vector<24x24xf32>
    %423 = arith.subf %419, %422 : vector<24x24xf32>
    %424 = math.exp %423 : vector<24x24xf32>
    %cst_156 = arith.constant dense<0.000000e+00> : vector<24xf32>
    %425 = vector.multi_reduction <add>, %424, %cst_156 [1] : vector<24x24xf32> to vector<24xf32>
    %426 = vector.shape_cast %425 : vector<24xf32> to vector<24x1xf32>
    %427 = tpu.reciprocal %426 {approx = true} : vector<24x1xf32> -> vector<24x1xf32>
    %428 = vector.broadcast %427 : vector<24x1xf32> to vector<24x24xf32>
    %429 = arith.mulf %424, %428 : vector<24x24xf32>
    %cst_157 = arith.constant dense<0.000000e+00> : vector<24x16xf32>
    %430 = tpu.matmul %429, %415, %cst_157 {dimension_numbers = #tpu.dot_dimension_numbers<[1], [0], [0], [1], [0, 0, 1, 1], [], []>} : vector<24x24xf32>, vector<24x16xf32>, vector<24x16xf32> -> vector<24x16xf32>
    %431 = tpu.concatenate %376, %394, %412, %430 in 1 : vector<24x16xf32>, vector<24x16xf32>, vector<24x16xf32>, vector<24x16xf32> -> vector<24x64xf32>
    %432 = tpu.concatenate %358, %431 in 0 : vector<24x64xf32>, vector<24x64xf32> -> vector<48x64xf32>
    %c1_158 = arith.constant 1 : index
    %c0_159 = arith.constant 0 : index
    %c0_160 = arith.constant 0 : index
    %433 = vector.load %arg7[%c1_158, %c0_159, %c0_160] : memref<2x64x64xf32, #tpu.memory_space<vmem>>, vector<1x64x64xf32>
    %434 = vector.shape_cast %433 : vector<1x64x64xf32> to vector<64x64xf32>
    %cst_161 = arith.constant dense<0.000000e+00> : vector<48x64xf32>
    %435 = tpu.matmul %432, %434, %cst_161 {dimension_numbers = #tpu.dot_dimension_numbers<[1], [0], [0], [1], [0, 0, 1, 1], [], []>} : vector<48x64xf32>, vector<64x64xf32>, vector<48x64xf32> -> vector<48x64xf32>
    %c1_162 = arith.constant 1 : index
    %c0_163 = arith.constant 0 : index
    %c0_164 = arith.constant 0 : index
    %436 = vector.load %arg8[%c1_162, %c0_163, %c0_164] : memref<2x1x64xf32, #tpu.memory_space<vmem>>, vector<1x1x64xf32>
    %437 = vector.shape_cast %436 : vector<1x1x64xf32> to vector<1x64xf32>
    %438 = vector.broadcast %437 : vector<1x64xf32> to vector<48x64xf32>
    %439 = arith.addf %435, %438 : vector<48x64xf32>
    %440 = arith.addf %439, %252 : vector<48x64xf32>
    %c1_165 = arith.constant 1 : index
    %c0_166 = arith.constant 0 : index
    %c0_167 = arith.constant 0 : index
    %441 = vector.load %arg9[%c1_165, %c0_166, %c0_167] : memref<2x1x64xf32, #tpu.memory_space<vmem>>, vector<1x1x64xf32>
    %442 = vector.shape_cast %441 : vector<1x1x64xf32> to vector<1x64xf32>
    %c1_168 = arith.constant 1 : index
    %c0_169 = arith.constant 0 : index
    %c0_170 = arith.constant 0 : index
    %443 = vector.load %arg10[%c1_168, %c0_169, %c0_170] : memref<2x1x64xf32, #tpu.memory_space<vmem>>, vector<1x1x64xf32>
    %444 = vector.shape_cast %443 : vector<1x1x64xf32> to vector<1x64xf32>
    %cst_171 = arith.constant dense<0.000000e+00> : vector<48xf32>
    %445 = vector.multi_reduction <add>, %440, %cst_171 [1] : vector<48x64xf32> to vector<48xf32>
    %446 = vector.shape_cast %445 : vector<48xf32> to vector<48x1xf32>
    %cst_172 = arith.constant 6.400000e+01 : f32
    %447 = vector.broadcast %cst_172 : f32 to vector<48x1xf32>
    %448 = arith.divf %446, %447 : vector<48x1xf32>
    %449 = vector.broadcast %448 : vector<48x1xf32> to vector<48x64xf32>
    %450 = arith.subf %440, %449 : vector<48x64xf32>
    %451 = arith.mulf %450, %450 : vector<48x64xf32>
    %cst_173 = arith.constant dense<0.000000e+00> : vector<48xf32>
    %452 = vector.multi_reduction <add>, %451, %cst_173 [1] : vector<48x64xf32> to vector<48xf32>
    %453 = vector.shape_cast %452 : vector<48xf32> to vector<48x1xf32>
    %cst_174 = arith.constant 6.400000e+01 : f32
    %454 = vector.broadcast %cst_174 : f32 to vector<48x1xf32>
    %455 = arith.divf %453, %454 : vector<48x1xf32>
    %456 = vector.broadcast %448 : vector<48x1xf32> to vector<48x64xf32>
    %457 = arith.subf %440, %456 : vector<48x64xf32>
    %cst_175 = arith.constant 9.99999996E-13 : f32
    %458 = vector.broadcast %cst_175 : f32 to vector<48x1xf32>
    %459 = arith.addf %455, %458 : vector<48x1xf32>
    %460 = math.rsqrt %459 : vector<48x1xf32>
    %461 = vector.broadcast %460 : vector<48x1xf32> to vector<48x64xf32>
    %462 = arith.mulf %457, %461 : vector<48x64xf32>
    %463 = vector.broadcast %442 : vector<1x64xf32> to vector<48x64xf32>
    %464 = arith.mulf %462, %463 : vector<48x64xf32>
    %465 = vector.broadcast %444 : vector<1x64xf32> to vector<48x64xf32>
    %466 = arith.addf %464, %465 : vector<48x64xf32>
    %c1_176 = arith.constant 1 : index
    %c0_177 = arith.constant 0 : index
    %c0_178 = arith.constant 0 : index
    %467 = vector.load %arg11[%c1_176, %c0_177, %c0_178] : memref<2x64x128xf32, #tpu.memory_space<vmem>>, vector<1x64x128xf32>
    %468 = vector.shape_cast %467 : vector<1x64x128xf32> to vector<64x128xf32>
    %cst_179 = arith.constant dense<0.000000e+00> : vector<48x128xf32>
    %469 = tpu.matmul %466, %468, %cst_179 {dimension_numbers = #tpu.dot_dimension_numbers<[1], [0], [0], [1], [0, 0, 1, 1], [], []>} : vector<48x64xf32>, vector<64x128xf32>, vector<48x128xf32> -> vector<48x128xf32>
    %c1_180 = arith.constant 1 : index
    %c0_181 = arith.constant 0 : index
    %c0_182 = arith.constant 0 : index
    %470 = vector.load %arg12[%c1_180, %c0_181, %c0_182] : memref<2x1x128xf32, #tpu.memory_space<vmem>>, vector<1x1x128xf32>
    %471 = vector.shape_cast %470 : vector<1x1x128xf32> to vector<1x128xf32>
    %472 = vector.broadcast %471 : vector<1x128xf32> to vector<48x128xf32>
    %473 = arith.addf %469, %472 : vector<48x128xf32>
    %474 = arith.mulf %473, %473 : vector<48x128xf32>
    %475 = arith.mulf %473, %474 : vector<48x128xf32>
    %cst_183 = arith.constant 4.471500e-02 : f32
    %476 = vector.broadcast %cst_183 : f32 to vector<48x128xf32>
    %477 = arith.mulf %476, %475 : vector<48x128xf32>
    %478 = arith.addf %473, %477 : vector<48x128xf32>
    %cst_184 = arith.constant 0.797884583 : f32
    %479 = vector.broadcast %cst_184 : f32 to vector<48x128xf32>
    %480 = arith.mulf %479, %478 : vector<48x128xf32>
    %481 = math.tanh %480 : vector<48x128xf32>
    %cst_185 = arith.constant 1.000000e+00 : f32
    %482 = vector.broadcast %cst_185 : f32 to vector<48x128xf32>
    %483 = arith.addf %482, %481 : vector<48x128xf32>
    %cst_186 = arith.constant 5.000000e-01 : f32
    %484 = vector.broadcast %cst_186 : f32 to vector<48x128xf32>
    %485 = arith.mulf %484, %483 : vector<48x128xf32>
    %486 = arith.mulf %473, %485 : vector<48x128xf32>
    %c1_187 = arith.constant 1 : index
    %c0_188 = arith.constant 0 : index
    %c0_189 = arith.constant 0 : index
    %487 = vector.load %arg13[%c1_187, %c0_188, %c0_189] : memref<2x128x64xf32, #tpu.memory_space<vmem>>, vector<1x128x64xf32>
    %488 = vector.shape_cast %487 : vector<1x128x64xf32> to vector<128x64xf32>
    %cst_190 = arith.constant dense<0.000000e+00> : vector<48x64xf32>
    %489 = tpu.matmul %486, %488, %cst_190 {dimension_numbers = #tpu.dot_dimension_numbers<[1], [0], [0], [1], [0, 0, 1, 1], [], []>} : vector<48x128xf32>, vector<128x64xf32>, vector<48x64xf32> -> vector<48x64xf32>
    %c1_191 = arith.constant 1 : index
    %c0_192 = arith.constant 0 : index
    %c0_193 = arith.constant 0 : index
    %490 = vector.load %arg14[%c1_191, %c0_192, %c0_193] : memref<2x1x64xf32, #tpu.memory_space<vmem>>, vector<1x1x64xf32>
    %491 = vector.shape_cast %490 : vector<1x1x64xf32> to vector<1x64xf32>
    %492 = vector.broadcast %491 : vector<1x64xf32> to vector<48x64xf32>
    %493 = arith.addf %489, %492 : vector<48x64xf32>
    %494 = arith.addf %493, %440 : vector<48x64xf32>
    %c0_194 = arith.constant 0 : index
    %c0_195 = arith.constant 0 : index
    %495 = vector.load %arg15[%c0_194, %c0_195] : memref<1x64xf32, #tpu.memory_space<vmem>>, vector<1x64xf32>
    %c0_196 = arith.constant 0 : index
    %c0_197 = arith.constant 0 : index
    %496 = vector.load %arg16[%c0_196, %c0_197] : memref<1x64xf32, #tpu.memory_space<vmem>>, vector<1x64xf32>
    %cst_198 = arith.constant dense<0.000000e+00> : vector<48xf32>
    %497 = vector.multi_reduction <add>, %494, %cst_198 [1] : vector<48x64xf32> to vector<48xf32>
    %498 = vector.shape_cast %497 : vector<48xf32> to vector<48x1xf32>
    %cst_199 = arith.constant 6.400000e+01 : f32
    %499 = vector.broadcast %cst_199 : f32 to vector<48x1xf32>
    %500 = arith.divf %498, %499 : vector<48x1xf32>
    %501 = vector.broadcast %500 : vector<48x1xf32> to vector<48x64xf32>
    %502 = arith.subf %494, %501 : vector<48x64xf32>
    %503 = arith.mulf %502, %502 : vector<48x64xf32>
    %cst_200 = arith.constant dense<0.000000e+00> : vector<48xf32>
    %504 = vector.multi_reduction <add>, %503, %cst_200 [1] : vector<48x64xf32> to vector<48xf32>
    %505 = vector.shape_cast %504 : vector<48xf32> to vector<48x1xf32>
    %cst_201 = arith.constant 6.400000e+01 : f32
    %506 = vector.broadcast %cst_201 : f32 to vector<48x1xf32>
    %507 = arith.divf %505, %506 : vector<48x1xf32>
    %508 = vector.broadcast %500 : vector<48x1xf32> to vector<48x64xf32>
    %509 = arith.subf %494, %508 : vector<48x64xf32>
    %cst_202 = arith.constant 9.99999996E-13 : f32
    %510 = vector.broadcast %cst_202 : f32 to vector<48x1xf32>
    %511 = arith.addf %507, %510 : vector<48x1xf32>
    %512 = math.rsqrt %511 : vector<48x1xf32>
    %513 = vector.broadcast %512 : vector<48x1xf32> to vector<48x64xf32>
    %514 = arith.mulf %509, %513 : vector<48x64xf32>
    %515 = vector.broadcast %495 : vector<1x64xf32> to vector<48x64xf32>
    %516 = arith.mulf %514, %515 : vector<48x64xf32>
    %517 = vector.broadcast %496 : vector<1x64xf32> to vector<48x64xf32>
    %518 = arith.addf %516, %517 : vector<48x64xf32>
    %c0_203 = arith.constant 0 : index
    %c0_204 = arith.constant 0 : index
    %519 = vector.load %arg17[%c0_203, %c0_204] : memref<48x64xf32, #tpu.memory_space<vmem>>, vector<48x64xf32>
    tpu.vector_store %arg17[%c0_203, %c0_204], %518 {strides = array<i32>} : memref<48x64xf32, #tpu.memory_space<vmem>>, vector<48x64xf32>,
    return
  }
}

module attributes {stable_mosaic.version = 11 : i64} {
  func.func @_conv_relu_pool_kernel(%arg0: memref<512x9xf32, #tpu.memory_space<vmem>>, %arg1: memref<512x9xf32, #tpu.memory_space<vmem>>, %arg2: memref<512x9xf32, #tpu.memory_space<vmem>>, %arg3: memref<512x9xf32, #tpu.memory_space<vmem>>, %arg4: memref<9x16xf32, #tpu.memory_space<vmem>>, %arg5: memref<1x16xf32, #tpu.memory_space<vmem>>, %arg6: memref<512x16xf32, #tpu.memory_space<vmem>>) attributes {dimension_semantics = [], scalar_prefetch = 0 : i64, scratch_operands = 0 : i64, tpu.core_type = #tpu.core_type<tc>} {
    %c0 = arith.constant 0 : index
    %c0_0 = arith.constant 0 : index
    %0 = vector.load %arg4[%c0, %c0_0] : memref<9x16xf32, #tpu.memory_space<vmem>>, vector<9x16xf32>
    %c0_1 = arith.constant 0 : index
    %c0_2 = arith.constant 0 : index
    %1 = vector.load %arg5[%c0_1, %c0_2] : memref<1x16xf32, #tpu.memory_space<vmem>>, vector<1x16xf32>
    %c0_3 = arith.constant 0 : index
    %c0_4 = arith.constant 0 : index
    %2 = vector.load %arg0[%c0_3, %c0_4] : memref<512x9xf32, #tpu.memory_space<vmem>>, vector<512x9xf32>
    %cst = arith.constant dense<0.000000e+00> : vector<512x16xf32>
    %3 = tpu.matmul %2, %0, %cst {dimension_numbers = #tpu.dot_dimension_numbers<[1], [0], [0], [1], [0, 0, 1, 1], [], []>} : vector<512x9xf32>, vector<9x16xf32>, vector<512x16xf32> -> vector<512x16xf32>
    %4 = vector.broadcast %1 : vector<1x16xf32> to vector<512x16xf32>
    %5 = arith.addf %3, %4 : vector<512x16xf32>
    %cst_5 = arith.constant 0.000000e+00 : f32
    %6 = vector.broadcast %cst_5 : f32 to vector<512x16xf32>
    %7 = arith.maximumf %5, %6 : vector<512x16xf32>
    %c0_6 = arith.constant 0 : index
    %c0_7 = arith.constant 0 : index
    %8 = vector.load %arg1[%c0_6, %c0_7] : memref<512x9xf32, #tpu.memory_space<vmem>>, vector<512x9xf32>
    %cst_8 = arith.constant dense<0.000000e+00> : vector<512x16xf32>
    %9 = tpu.matmul %8, %0, %cst_8 {dimension_numbers = #tpu.dot_dimension_numbers<[1], [0], [0], [1], [0, 0, 1, 1], [], []>} : vector<512x9xf32>, vector<9x16xf32>, vector<512x16xf32> -> vector<512x16xf32>
    %10 = vector.broadcast %1 : vector<1x16xf32> to vector<512x16xf32>
    %11 = arith.addf %9, %10 : vector<512x16xf32>
    %cst_9 = arith.constant 0.000000e+00 : f32
    %12 = vector.broadcast %cst_9 : f32 to vector<512x16xf32>
    %13 = arith.maximumf %11, %12 : vector<512x16xf32>
    %14 = arith.maximumf %7, %13 : vector<512x16xf32>
    %c0_10 = arith.constant 0 : index
    %c0_11 = arith.constant 0 : index
    %15 = vector.load %arg2[%c0_10, %c0_11] : memref<512x9xf32, #tpu.memory_space<vmem>>, vector<512x9xf32>
    %cst_12 = arith.constant dense<0.000000e+00> : vector<512x16xf32>
    %16 = tpu.matmul %15, %0, %cst_12 {dimension_numbers = #tpu.dot_dimension_numbers<[1], [0], [0], [1], [0, 0, 1, 1], [], []>} : vector<512x9xf32>, vector<9x16xf32>, vector<512x16xf32> -> vector<512x16xf32>
    %17 = vector.broadcast %1 : vector<1x16xf32> to vector<512x16xf32>
    %18 = arith.addf %16, %17 : vector<512x16xf32>
    %cst_13 = arith.constant 0.000000e+00 : f32
    %19 = vector.broadcast %cst_13 : f32 to vector<512x16xf32>
    %20 = arith.maximumf %18, %19 : vector<512x16xf32>
    %c0_14 = arith.constant 0 : index
    %c0_15 = arith.constant 0 : index
    %21 = vector.load %arg3[%c0_14, %c0_15] : memref<512x9xf32, #tpu.memory_space<vmem>>, vector<512x9xf32>
    %cst_16 = arith.constant dense<0.000000e+00> : vector<512x16xf32>
    %22 = tpu.matmul %21, %0, %cst_16 {dimension_numbers = #tpu.dot_dimension_numbers<[1], [0], [0], [1], [0, 0, 1, 1], [], []>} : vector<512x9xf32>, vector<9x16xf32>, vector<512x16xf32> -> vector<512x16xf32>
    %23 = vector.broadcast %1 : vector<1x16xf32> to vector<512x16xf32>
    %24 = arith.addf %22, %23 : vector<512x16xf32>
    %cst_17 = arith.constant 0.000000e+00 : f32
    %25 = vector.broadcast %cst_17 : f32 to vector<512x16xf32>
    %26 = arith.maximumf %24, %25 : vector<512x16xf32>
    %27 = arith.maximumf %20, %26 : vector<512x16xf32>
    %28 = arith.maximumf %14, %27 : vector<512x16xf32>
    %c0_18 = arith.constant 0 : index
    %c0_19 = arith.constant 0 : index
    %29 = vector.load %arg6[%c0_18, %c0_19] : memref<512x16xf32, #tpu.memory_space<vmem>>, vector<512x16xf32>
    tpu.vector_store %arg6[%c0_18, %c0_19], %28 {strides = array<i32>} : memref<512x16xf32, #tpu.memory_space<vmem>>, vector<512x16xf32>,
    return
  }
}

module attributes {stable_mosaic.version = 11 : i64} {
  func.func @_conv_relu_pool_kernel(%arg0: memref<128x144xf32, #tpu.memory_space<vmem>>, %arg1: memref<128x144xf32, #tpu.memory_space<vmem>>, %arg2: memref<128x144xf32, #tpu.memory_space<vmem>>, %arg3: memref<128x144xf32, #tpu.memory_space<vmem>>, %arg4: memref<144x32xf32, #tpu.memory_space<vmem>>, %arg5: memref<1x32xf32, #tpu.memory_space<vmem>>, %arg6: memref<128x32xf32, #tpu.memory_space<vmem>>) attributes {dimension_semantics = [], scalar_prefetch = 0 : i64, scratch_operands = 0 : i64, tpu.core_type = #tpu.core_type<tc>} {
    %c0 = arith.constant 0 : index
    %c0_0 = arith.constant 0 : index
    %0 = vector.load %arg4[%c0, %c0_0] : memref<144x32xf32, #tpu.memory_space<vmem>>, vector<144x32xf32>
    %c0_1 = arith.constant 0 : index
    %c0_2 = arith.constant 0 : index
    %1 = vector.load %arg5[%c0_1, %c0_2] : memref<1x32xf32, #tpu.memory_space<vmem>>, vector<1x32xf32>
    %c0_3 = arith.constant 0 : index
    %c0_4 = arith.constant 0 : index
    %2 = vector.load %arg0[%c0_3, %c0_4] : memref<128x144xf32, #tpu.memory_space<vmem>>, vector<128x144xf32>
    %cst = arith.constant dense<0.000000e+00> : vector<128x32xf32>
    %3 = tpu.matmul %2, %0, %cst {dimension_numbers = #tpu.dot_dimension_numbers<[1], [0], [0], [1], [0, 0, 1, 1], [], []>} : vector<128x144xf32>, vector<144x32xf32>, vector<128x32xf32> -> vector<128x32xf32>
    %4 = vector.broadcast %1 : vector<1x32xf32> to vector<128x32xf32>
    %5 = arith.addf %3, %4 : vector<128x32xf32>
    %cst_5 = arith.constant 0.000000e+00 : f32
    %6 = vector.broadcast %cst_5 : f32 to vector<128x32xf32>
    %7 = arith.maximumf %5, %6 : vector<128x32xf32>
    %c0_6 = arith.constant 0 : index
    %c0_7 = arith.constant 0 : index
    %8 = vector.load %arg1[%c0_6, %c0_7] : memref<128x144xf32, #tpu.memory_space<vmem>>, vector<128x144xf32>
    %cst_8 = arith.constant dense<0.000000e+00> : vector<128x32xf32>
    %9 = tpu.matmul %8, %0, %cst_8 {dimension_numbers = #tpu.dot_dimension_numbers<[1], [0], [0], [1], [0, 0, 1, 1], [], []>} : vector<128x144xf32>, vector<144x32xf32>, vector<128x32xf32> -> vector<128x32xf32>
    %10 = vector.broadcast %1 : vector<1x32xf32> to vector<128x32xf32>
    %11 = arith.addf %9, %10 : vector<128x32xf32>
    %cst_9 = arith.constant 0.000000e+00 : f32
    %12 = vector.broadcast %cst_9 : f32 to vector<128x32xf32>
    %13 = arith.maximumf %11, %12 : vector<128x32xf32>
    %14 = arith.maximumf %7, %13 : vector<128x32xf32>
    %c0_10 = arith.constant 0 : index
    %c0_11 = arith.constant 0 : index
    %15 = vector.load %arg2[%c0_10, %c0_11] : memref<128x144xf32, #tpu.memory_space<vmem>>, vector<128x144xf32>
    %cst_12 = arith.constant dense<0.000000e+00> : vector<128x32xf32>
    %16 = tpu.matmul %15, %0, %cst_12 {dimension_numbers = #tpu.dot_dimension_numbers<[1], [0], [0], [1], [0, 0, 1, 1], [], []>} : vector<128x144xf32>, vector<144x32xf32>, vector<128x32xf32> -> vector<128x32xf32>
    %17 = vector.broadcast %1 : vector<1x32xf32> to vector<128x32xf32>
    %18 = arith.addf %16, %17 : vector<128x32xf32>
    %cst_13 = arith.constant 0.000000e+00 : f32
    %19 = vector.broadcast %cst_13 : f32 to vector<128x32xf32>
    %20 = arith.maximumf %18, %19 : vector<128x32xf32>
    %c0_14 = arith.constant 0 : index
    %c0_15 = arith.constant 0 : index
    %21 = vector.load %arg3[%c0_14, %c0_15] : memref<128x144xf32, #tpu.memory_space<vmem>>, vector<128x144xf32>
    %cst_16 = arith.constant dense<0.000000e+00> : vector<128x32xf32>
    %22 = tpu.matmul %21, %0, %cst_16 {dimension_numbers = #tpu.dot_dimension_numbers<[1], [0], [0], [1], [0, 0, 1, 1], [], []>} : vector<128x144xf32>, vector<144x32xf32>, vector<128x32xf32> -> vector<128x32xf32>
    %23 = vector.broadcast %1 : vector<1x32xf32> to vector<128x32xf32>
    %24 = arith.addf %22, %23 : vector<128x32xf32>
    %cst_17 = arith.constant 0.000000e+00 : f32
    %25 = vector.broadcast %cst_17 : f32 to vector<128x32xf32>
    %26 = arith.maximumf %24, %25 : vector<128x32xf32>
    %27 = arith.maximumf %20, %26 : vector<128x32xf32>
    %28 = arith.maximumf %14, %27 : vector<128x32xf32>
    %c0_18 = arith.constant 0 : index
    %c0_19 = arith.constant 0 : index
    %29 = vector.load %arg6[%c0_18, %c0_19] : memref<128x32xf32, #tpu.memory_space<vmem>>, vector<128x32xf32>
    tpu.vector_store %arg6[%c0_18, %c0_19], %28 {strides = array<i32>} : memref<128x32xf32, #tpu.memory_space<vmem>>, vector<128x32xf32>,
    return
  }
}

module attributes {stable_mosaic.version = 11 : i64} {
  func.func @_head_kernel(%arg0: memref<2x64xf32, #tpu.memory_space<vmem>>, %arg1: memref<2x2048xf32, #tpu.memory_space<vmem>>, %arg2: memref<64x32xf32, #tpu.memory_space<vmem>>, %arg3: memref<1x32xf32, #tpu.memory_space<vmem>>, %arg4: memref<2048x32xf32, #tpu.memory_space<vmem>>, %arg5: memref<1x32xf32, #tpu.memory_space<vmem>>, %arg6: memref<64x32xf32, #tpu.memory_space<vmem>>, %arg7: memref<1x32xf32, #tpu.memory_space<vmem>>, %arg8: memref<32x16xf32, #tpu.memory_space<vmem>>, %arg9: memref<1x16xf32, #tpu.memory_space<vmem>>, %arg10: memref<16x1xf32, #tpu.memory_space<vmem>>, %arg11: memref<1x1xf32, #tpu.memory_space<vmem>>, %arg12: memref<2x1xf32, #tpu.memory_space<vmem>>) attributes {dimension_semantics = [], scalar_prefetch = 0 : i64, scratch_operands = 0 : i64, tpu.core_type = #tpu.core_type<tc>} {
    %c0 = arith.constant 0 : index
    %c0_0 = arith.constant 0 : index
    %0 = vector.load %arg0[%c0, %c0_0] : memref<2x64xf32, #tpu.memory_space<vmem>>, vector<2x64xf32>
    %c0_1 = arith.constant 0 : index
    %c0_2 = arith.constant 0 : index
    %1 = vector.load %arg2[%c0_1, %c0_2] : memref<64x32xf32, #tpu.memory_space<vmem>>, vector<64x32xf32>
    %cst = arith.constant dense<0.000000e+00> : vector<2x32xf32>
    %2 = tpu.matmul %0, %1, %cst {dimension_numbers = #tpu.dot_dimension_numbers<[1], [0], [0], [1], [0, 0, 1, 1], [], []>} : vector<2x64xf32>, vector<64x32xf32>, vector<2x32xf32> -> vector<2x32xf32>
    %c0_3 = arith.constant 0 : index
    %c0_4 = arith.constant 0 : index
    %3 = vector.load %arg3[%c0_3, %c0_4] : memref<1x32xf32, #tpu.memory_space<vmem>>, vector<1x32xf32>
    %4 = vector.broadcast %3 : vector<1x32xf32> to vector<2x32xf32>
    %5 = arith.addf %2, %4 : vector<2x32xf32>
    %c0_5 = arith.constant 0 : index
    %c0_6 = arith.constant 0 : index
    %6 = vector.load %arg1[%c0_5, %c0_6] : memref<2x2048xf32, #tpu.memory_space<vmem>>, vector<2x2048xf32>
    %c0_7 = arith.constant 0 : index
    %c0_8 = arith.constant 0 : index
    %7 = vector.load %arg4[%c0_7, %c0_8] : memref<2048x32xf32, #tpu.memory_space<vmem>>, vector<2048x32xf32>
    %cst_9 = arith.constant dense<0.000000e+00> : vector<2x32xf32>
    %8 = tpu.matmul %6, %7, %cst_9 {dimension_numbers = #tpu.dot_dimension_numbers<[1], [0], [0], [1], [0, 0, 1, 1], [], []>} : vector<2x2048xf32>, vector<2048x32xf32>, vector<2x32xf32> -> vector<2x32xf32>
    %c0_10 = arith.constant 0 : index
    %c0_11 = arith.constant 0 : index
    %9 = vector.load %arg5[%c0_10, %c0_11] : memref<1x32xf32, #tpu.memory_space<vmem>>, vector<1x32xf32>
    %10 = vector.broadcast %9 : vector<1x32xf32> to vector<2x32xf32>
    %11 = arith.addf %8, %10 : vector<2x32xf32>
    %12 = tpu.concatenate %5, %11 in 1 : vector<2x32xf32>, vector<2x32xf32> -> vector<2x64xf32>
    %c0_12 = arith.constant 0 : index
    %c0_13 = arith.constant 0 : index
    %13 = vector.load %arg6[%c0_12, %c0_13] : memref<64x32xf32, #tpu.memory_space<vmem>>, vector<64x32xf32>
    %cst_14 = arith.constant dense<0.000000e+00> : vector<2x32xf32>
    %14 = tpu.matmul %12, %13, %cst_14 {dimension_numbers = #tpu.dot_dimension_numbers<[1], [0], [0], [1], [0, 0, 1, 1], [], []>} : vector<2x64xf32>, vector<64x32xf32>, vector<2x32xf32> -> vector<2x32xf32>
    %c0_15 = arith.constant 0 : index
    %c0_16 = arith.constant 0 : index
    %15 = vector.load %arg7[%c0_15, %c0_16] : memref<1x32xf32, #tpu.memory_space<vmem>>, vector<1x32xf32>
    %16 = vector.broadcast %15 : vector<1x32xf32> to vector<2x32xf32>
    %17 = arith.addf %14, %16 : vector<2x32xf32>
    %cst_17 = arith.constant 0.000000e+00 : f32
    %18 = vector.broadcast %cst_17 : f32 to vector<2x32xf32>
    %19 = arith.maximumf %17, %18 : vector<2x32xf32>
    %c0_18 = arith.constant 0 : index
    %c0_19 = arith.constant 0 : index
    %20 = vector.load %arg8[%c0_18, %c0_19] : memref<32x16xf32, #tpu.memory_space<vmem>>, vector<32x16xf32>
    %cst_20 = arith.constant dense<0.000000e+00> : vector<2x16xf32>
    %21 = tpu.matmul %19, %20, %cst_20 {dimension_numbers = #tpu.dot_dimension_numbers<[1], [0], [0], [1], [0, 0, 1, 1], [], []>} : vector<2x32xf32>, vector<32x16xf32>, vector<2x16xf32> -> vector<2x16xf32>
    %c0_21 = arith.constant 0 : index
    %c0_22 = arith.constant 0 : index
    %22 = vector.load %arg9[%c0_21, %c0_22] : memref<1x16xf32, #tpu.memory_space<vmem>>, vector<1x16xf32>
    %23 = vector.broadcast %22 : vector<1x16xf32> to vector<2x16xf32>
    %24 = arith.addf %21, %23 : vector<2x16xf32>
    %cst_23 = arith.constant 0.000000e+00 : f32
    %25 = vector.broadcast %cst_23 : f32 to vector<2x16xf32>
    %26 = arith.maximumf %24, %25 : vector<2x16xf32>
    %c0_24 = arith.constant 0 : index
    %c0_25 = arith.constant 0 : index
    %27 = vector.load %arg10[%c0_24, %c0_25] : memref<16x1xf32, #tpu.memory_space<vmem>>, vector<16x1xf32>
    %cst_26 = arith.constant dense<0.000000e+00> : vector<2x1xf32>
    %28 = tpu.matmul %26, %27, %cst_26 {dimension_numbers = #tpu.dot_dimension_numbers<[1], [0], [0], [1], [0, 0, 1, 1], [], []>} : vector<2x16xf32>, vector<16x1xf32>, vector<2x1xf32> -> vector<2x1xf32>
    %c0_27 = arith.constant 0 : index
    %c0_28 = arith.constant 0 : index
    %29 = vector.load %arg11[%c0_27, %c0_28] : memref<1x1xf32, #tpu.memory_space<vmem>>, vector<1x1xf32>
    %30 = vector.broadcast %29 : vector<1x1xf32> to vector<2x1xf32>
    %31 = arith.addf %28, %30 : vector<2x1xf32>
    %c0_29 = arith.constant 0 : index
    %c0_30 = arith.constant 0 : index
    %32 = vector.load %arg12[%c0_29, %c0_30] : memref<2x1xf32, #tpu.memory_space<vmem>>, vector<2x1xf32>
    tpu.vector_store %arg12[%c0_29, %c0_30], %31 {strides = array<i32>} : memref<2x1xf32, #tpu.memory_space<vmem>>, vector<2x1xf32>,
    return
  }
}

</mosaic_0001>

<bundles_post_ra>
// kernel: vit_wheat_forward.4
= control target key start
LH: loop header
LB: loop body
LE: loop exit
PB: predicated region body
PF: predicated region fallthrough
CT: control target
= control target key end

     0   :  { %vm98_vm0 = vcmask 523264   ;;  %v4611_v60 = vmov 64.0   ;;  %s4612_s30 = smov 48   ;;  %s4613_s18 = smov 32   ;;  %s6852_s2 = inlined_call_operand.vmem [shape: f32[192,64], index: 2, kind: input, shape index: {}]   ;;  %s6853_s0 = inlined_call_operand.vmem [shape: f32[48,192], index: 0, kind: input, shape index: {}]   ;;  %s6854_s1 = inlined_call_operand.vmem [shape: f32[48,64], index: 1, kind: input, shape index: {}]   ;;  %s6855_s3 = inlined_call_operand.vmem [shape: f32[2,1,64], index: 3, kind: input, shape index: {}]   ;;  %s6856_s4 = inlined_call_operand.vmem [shape: f32[2,1,64], index: 4, kind: input, shape index: {}]   ;;  %s6857_s5 = inlined_call_operand.vmem [shape: f32[2,64,192], index: 5, kind: input, shape index: {}]   ;;  %s6858_s6 = inlined_call_operand.vmem [shape: f32[2,1,192], index: 6, kind: input, shape index: {}]   ;;  %s6859_s7 = inlined_call_operand.vmem [shape: f32[2,64,64], index: 7, kind: input, shape index: {}]   ;;  %s6860_s8 = inlined_call_operand.vmem [shape: f32[2,1,64], index: 8, kind: input, shape index: {}]   ;;  %s6861_s9 = inlined_call_operand.vmem [shape: f32[2,1,64], index: 9, kind: input, shape index: {}]   ;;  %s6862_s10 = inlined_call_operand.vmem [shape: f32[2,1,64], index: 10, kind: input, shape index: {}]   ;;  %s6863_s12 = inlined_call_operand.vmem [shape: f32[2,1,128], index: 12, kind: input, shape index: {}]   ;;  %s6864_s11 = inlined_call_operand.vmem [shape: f32[2,64,128], index: 11, kind: input, shape index: {}]   ;;  %s6865_s13 = inlined_call_operand.vmem [shape: f32[2,128,64], index: 13, kind: input, shape index: {}]   ;;  %s6866_s14 = inlined_call_operand.vmem [shape: f32[2,1,64], index: 14, kind: input, shape index: {}]   ;;  %s6867_s15 = inlined_call_operand.vmem [shape: f32[1,64], index: 15, kind: input, shape index: {}]   ;;  %s6868_s16 = inlined_call_operand.vmem [shape: f32[1,64], index: 16, kind: input, shape index: {}]   ;;  %s6869_s17 = inlined_call_operand.vmem [shape: f32[48,64], index: 17, kind: output, shape index: {}]  }
   0x1   :  { %6874 = sst [smem:[#allocation2_spill]] %s6852_s2  ;;  %v92_v36 = vld [vmem:[%s6854_s1] sm:$0xff]  ;;  %v93_v42 = vld [vmem:[%s6854_s1 + $0x8] sm:$0xff]  ;;  %v94_v48 = vld [vmem:[%s6854_s1 + $0x10] sm:$0xff]  ;;  %4333 = vrcp.f32 %v4611_v60  ;;  %s4616_s19 = smov 16  }
   0x2   :  { %6875 = sst [smem:[#allocation3_spill]] %s6853_s0  ;;  %v95_v54 = vld [vmem:[%s6854_s1 + $0x18] sm:$0xff]  ;;  %s4617_s0 = smov 96  }
   0x3   :  { %s6876_s26 = sld [smem:[#allocation2_spill]]  ;;  %s6872_s21 = smov 80  }
   0x4   :  { %s6877_s20 = sld [smem:[#allocation3_spill]] }
   0x7   :  { %v4334_v61 = vpop.eup %4333 }
   0x8   :  { %v212_v62 = vmul.f32 64.0, %v4334_v61  ;;  %vm216_vm1 = vweird.f32 %v4334_v61 }
   0x9   :  { %v83_v0 = vld [vmem:[%s6876_s26 + $0x78] sm:$0xff]  ;;  %v82_v1 = vld [vmem:[%s6876_s26 + $0x70] sm:$0xff]  ;;  %v81_v2 = vld [vmem:[%s6876_s26 + $0x68] sm:$0xff] }
   0xa   :  { %117 = vmatpush.msra.mxu0 %v83_v0  ;;  %v91_v3 = vld [vmem:[%s6876_s26 + $0xb8] sm:$0xff]  ;;  %v80_v4 = vld [vmem:[%s6876_s26 + $0x60] sm:$0xff]  ;;  %v90_v5 = vld [vmem:[%s6876_s26 + $0xb0] sm:$0xff]  ;;  %v213_v63 = vsub.f32 1.0, %v212_v62 }
   0xb   :  { %160 = vmatpush.msra.mxu1 %v91_v3  ;;  %4232 = vmatpush.msra.mxu2 %v91_v3  ;;  %v89_v6 = vld [vmem:[%s6876_s26 + $0xa8] sm:$0xff]  ;;  %v79_v7 = vld [vmem:[%s6876_s26 + $0x58] sm:$0xff]  ;;  %v88_v8 = vld [vmem:[%s6876_s26 + $0xa0] sm:$0xff] }
   0xc   :  { %118 = vmatpush.msra.mxu0 %v82_v1  ;;  %v78_v9 = vld [vmem:[%s6876_s26 + $0x50] sm:$0xff]  ;;  %v87_v10 = vld [vmem:[%s6876_s26 + $0x98] sm:$0xff]  ;;  %v77_v11 = vld [vmem:[%s6876_s26 + $0x48] sm:$0xff]  ;;  %v214_v0 = vmul.f32 %v4334_v61, %v213_v63 }
   0xd   :  { %161 = vmatpush.msra.mxu1 %v90_v5  ;;  %4233 = vmatpush.msra.mxu2 %v90_v5  ;;  %v86_v12 = vld [vmem:[%s6876_s26 + $0x90] sm:$0xff]  ;;  %v76_v13 = vld [vmem:[%s6876_s26 + $0x40] sm:$0xff]  ;;  %v85_v14 = vld [vmem:[%s6876_s26 + $0x88] sm:$0xff] }
   0xe   :  { %119 = vmatpush.msra.mxu0 %v81_v2  ;;  %v75_v15 = vld [vmem:[%s6876_s26 + $0x38] sm:$0xff]  ;;  %v84_v16 = vld [vmem:[%s6876_s26 + $0x80] sm:$0xff]  ;;  %v74_v17 = vld [vmem:[%s6876_s26 + $0x30] sm:$0xff]  ;;  %v215_v1 = vadd.f32 %v4334_v61, %v214_v0 }
   0xf   :  { %162 = vmatpush.msra.mxu1 %v89_v6  ;;  %4234 = vmatpush.msra.mxu2 %v89_v6  ;;  %v57_v18 = vld [vmem:[%s6877_s20 + $0x8] sm:$0xff]  ;;  %v72_v21 = vld [vmem:[%s6876_s26 + $0x20] sm:$0xff]  ;;  %v71_v22 = vld [vmem:[%s6876_s26 + $0x18] sm:$0xff] }
  0x10   :  { %120 = vmatpush.msra.mxu0 %v80_v4  ;;  %v61_v19 = vld [vmem:[%s6877_s20 + $0x28] sm:$0xff]  ;;  %v70_v23 = vld [vmem:[%s6876_s26 + $0x10] sm:$0xff]  ;;  %v59_v24 = vld [vmem:[%s6877_s20 + $0x18] sm:$0xff]  ;;  %v4852_v2 = vsel %vm216_vm1, %v4334_v61, %v215_v1 }
  0x11   :  { %163 = vmatpush.msra.mxu1 %v88_v8  ;;  %4235 = vmatpush.msra.mxu2 %v88_v8  ;;  %v73_v20 = vld [vmem:[%s6876_s26 + $0x28] sm:$0xff]  ;;  %v63_v25 = vld [vmem:[%s6877_s20 + $0x38] sm:$0xff]  ;;  %v68_v27 = vld [vmem:[%s6876_s26] sm:$0xff] }
  0x12   :  { %121 = vmatpush.msra.mxu0 %v79_v7  ;;  %v69_v26 = vld [vmem:[%s6876_s26 + $0x8] sm:$0xff]  ;;  %v56_v28 = vld [vmem:[%s6877_s20] sm:$0xff]  ;;  %v58_v29 = vld [vmem:[%s6877_s20 + $0x10] sm:$0xff]  ;;  %s4615_s26 = smov 112  }
  0x13   :  { %164 = vmatpush.msra.mxu1 %v87_v10  ;;  %4236 = vmatpush.msra.mxu2 %v87_v10  ;;  %v60_v30 = vld [vmem:[%s6877_s20 + $0x20] sm:$0xff]  ;;  %v62_v31 = vld [vmem:[%s6877_s20 + $0x30] sm:$0xff]  ;;  %v65_v32 = vld [vmem:[%s6877_s20 + $0x48] sm:$0xff] }
  0x14   :  { %122 = vmatpush.msra.mxu0 %v78_v9  ;;  %v64_v33 = vld [vmem:[%s6877_s20 + $0x40] sm:$0xff]  ;;  %v67_v34 = vld [vmem:[%s6877_s20 + $0x58] sm:$0xff]  ;;  %v66_v35 = vld [vmem:[%s6877_s20 + $0x50] sm:$0xff]  ;;  %s4614_s20 = smov 64  }
  0x15   :  { %165 = vmatpush.msra.mxu1 %v86_v12  ;;  %4237 = vmatpush.msra.mxu2 %v86_v12  ;;  %v96_v5 = vld [vmem:[%s6854_s1 + $0x20] sm:$0xff] }
  0x16   :  { %123 = vmatpush.msra.mxu0 %v77_v11 }
  0x17   :  { %166 = vmatpush.msra.mxu1 %v85_v14  ;;  %4238 = vmatpush.msra.mxu2 %v85_v14 }
  0x18   :  { %124 = vmatpush.msra.mxu0 %v76_v13 }
  0x19   :  { %167 = vmatpush.msra.mxu1 %v84_v16  ;;  %4239 = vmatpush.msra.mxu2 %v84_v16 }
  0x1a   :  { %125 = vmatpush.msra.mxu0 %v75_v15  ;;  %3978 = vmatmul.msk.f32.vlgmr.msra.gmra.mxu1 %vm98_vm0, %v57_v18 }
  0x1b   :  { %3980 = vmatmul.msk.f32.vlgmr.msra.gmra.mxu2 %vm98_vm0, %v61_v19 }
  0x1c   :  { %126 = vmatpush.msra.mxu0 %v74_v17 }
  0x1e   :  { %127 = vmatpush.msra.mxu0 %v73_v20 }
  0x20   :  { %128 = vmatpush.msra.mxu0 %v72_v21  ;;  %v97_v21 = vld [vmem:[%s6854_s1 + $0x28] sm:$0xff] }
  0x22   :  { %129 = vmatpush.msra.mxu0 %v71_v22  ;;  %3979 = vmatmul.msk.f32.gmra.mxu1 %vm98_vm0, %v59_v24 }
  0x23   :  { %3981 = vmatmul.msk.f32.gmra.mxu2 %vm98_vm0, %v63_v25 }
  0x24   :  { %130 = vmatpush.msra.mxu0 %v70_v23 }
  0x26   :  { %131 = vmatpush.msra.mxu0 %v69_v26 }
  0x28   :  { %132 = vmatpush.msra.mxu0 %v68_v27 }
  0x29   :  { %133 = vmatmul.f32.vlgmr.msra.gmra.mxu0 %v56_v28 }
  0x2b   :  { %3982 = vmatmul.msk.f32.gmra.mxu2 %vm98_vm0, %v65_v32 }
  0x31   :  { %136 = vmatmul.f32.gmra.mxu0 %v58_v29 }
  0x33   :  { %3983 = vmatmul.msk.f32.gmra.mxu2 %vm98_vm0, %v67_v34 }
  0x39   :  { %139 = vmatmul.f32.gmra.mxu0 %v60_v30 }
  0x41   :  { %142 = vmatmul.f32.gmra.mxu0 %v62_v31 }
  0x49   :  { %145 = vmatmul.f32.gmra.mxu0 %v64_v33 }
  0x51   :  { %148 = vmatmul.f32.gmra.mxu0 %v66_v35  ;;  %v364_v35 = vld [vmem:[%s6857_s5 + $0x70] sm:$0xff] }
  0x52   :  { %398 = vmatpush.msrb.mxu2 %v364_v35 }
  0x97   :  { %v169_v37 = vpop.f32.mrf.mxu1 }
  0x9e   :  { %v175_v49 = vpop.f32.mrf.mxu2 }
  0x9f   :  { %v172_v44 = vpop.f32.mrf.mxu1 }
  0xa6   :  { %v134_v38 = vpop.f32.mrf.mxu0  ;;  %v178_v56 = vpop.f32.mrf.mxu2 }
  0xa7   :  { %v135_v39 = vadd.f32 %v134_v38, %v92_v36  ;;  %v365_v36 = vld [vmem:[%s6857_s5 + $0x78] sm:$0xff]  ;;  %v363_v38 = vld [vmem:[%s6857_s5 + $0x68] sm:$0xff] }
  0xa8   :  { %433 = vmatpush.msra.mxu3 %v365_v36 }
  0xa9   :  { %v4827_v40 = vadd.f32 %v169_v37, %v135_v39  ;;  %v362_v37 = vld [vmem:[%s6857_s5 + $0x60] sm:$0xff]  ;;  %v360_v39 = vld [vmem:[%s6857_s5 + $0x50] sm:$0xff] }
  0xaa   :  { %399 = vmatpush.msrb.mxu2 %v362_v37  ;;  %434 = vmatpush.msra.mxu3 %v363_v38 }
  0xab   :  { %v193_v41 = vsel %vm98_vm0, %v4827_v40, 0.0 }
  0xac   :  { %194 = vadd.xlane.f32.xlu0 %v193_v41  ;;  %v361_v41 = vld [vmem:[%s6857_s5 + $0x58] sm:$0xff]  ;;  %400 = vmatpush.msrb.mxu2 %v360_v39 }
  0xad   :  { %435 = vmatpush.msra.mxu3 %v361_v41 }
  0xae   :  { %v137_v43 = vpop.f32.mrf.mxu0  ;;  %v181_v10 = vpop.f32.mrf.mxu2 }
  0xaf   :  { %v138_v45 = vadd.f32 %v137_v43, %v93_v42  ;;  %v358_v42 = vld [vmem:[%s6857_s5 + $0x40] sm:$0xff]  ;;  %v359_v43 = vld [vmem:[%s6857_s5 + $0x48] sm:$0xff] }
  0xb0   :  { %401 = vmatpush.msrb.mxu2 %v358_v42  ;;  %436 = vmatpush.msra.mxu3 %v359_v43 }
  0xb1   :  { %v4834_v46 = vadd.f32 %v172_v44, %v138_v45  ;;  %v356_v44 = vld [vmem:[%s6857_s5 + $0x30] sm:$0xff]  ;;  %v357_v45 = vld [vmem:[%s6857_s5 + $0x38] sm:$0xff] }
  0xb2   :  { %402 = vmatpush.msrb.mxu2 %v356_v44  ;;  %437 = vmatpush.msra.mxu3 %v357_v45 }
  0xb3   :  { %v196_v47 = vsel %vm98_vm0, %v4834_v46, 0.0 }
  0xb4   :  { %197 = vadd.xlane.f32.xlu0 %v196_v47  ;;  %v354_v47 = vld [vmem:[%s6857_s5 + $0x20] sm:$0xff] }
  0xb5   :  { %403 = vmatpush.msrb.mxu2 %v354_v47 }
  0xb6   :  { %v140_v50 = vpop.f32.mrf.mxu0  ;;  %v184_v26 = vpop.f32.mrf.mxu2 }
  0xb7   :  { %v141_v51 = vadd.f32 %v140_v50, %v94_v48  ;;  %v355_v48 = vld [vmem:[%s6857_s5 + $0x28] sm:$0xff]  ;;  %v353_v50 = vld [vmem:[%s6857_s5 + $0x18] sm:$0xff] }
  0xb8   :  { %438 = vmatpush.msra.mxu3 %v355_v48 }
  0xb9   :  { %v4841_v52 = vadd.f32 %v175_v49, %v141_v51  ;;  %v352_v49 = vld [vmem:[%s6857_s5 + $0x10] sm:$0xff]  ;;  %v350_v51 = vld [vmem:[%s6857_s5] sm:$0xff] }
  0xba   :  { %404 = vmatpush.msrb.mxu2 %v352_v49  ;;  %439 = vmatpush.msra.mxu3 %v353_v50 }
  0xbb   :  { %v199_v53 = vsel %vm98_vm0, %v4841_v52, 0.0 }
  0xbc   :  { %200 = vadd.xlane.f32.xlu1 %v199_v53  ;;  %v351_v53 = vld [vmem:[%s6857_s5 + $0x8] sm:$0xff]  ;;  %405 = vmatpush.msrb.mxu2 %v350_v51 }
  0xbd   :  { %440 = vmatpush.msra.mxu3 %v351_v53 }
  0xbe   :  { %v143_v55 = vpop.f32.mrf.mxu0 }
  0xbf   :  { %v144_v57 = vadd.f32 %v143_v55, %v95_v54 }
  0xc1   :  { %v4848_v58 = vadd.f32 %v178_v56, %v144_v57 }
  0xc3   :  { %v202_v59 = vsel %vm98_vm0, %v4848_v58, 0.0 }
  0xc4   :  { %203 = vadd.xlane.f32.xlu0 %v202_v59 }
  0xc6   :  { %v146_v6 = vpop.f32.mrf.mxu0 }
  0xc7   :  { %v147_v9 = vadd.f32 %v146_v6, %v96_v5 }
  0xc9   :  { %v4865_v14 = vadd.f32 %v181_v10, %v147_v9 }
  0xcb   :  { %v205_v16 = vsel %vm98_vm0, %v4865_v14, 0.0 }
  0xce   :  { %v149_v22 = vpop.f32.mrf.mxu0 }
  0xcf   :  { %v150_v25 = vadd.f32 %v149_v22, %v97_v21  ;;  %v4963_v21 = vld [vmem:[%s6856_s4] ss:$0 sm:$0xff] }
  0xd1   :  { %v4886_v30 = vadd.f32 %v184_v26, %v150_v25 }
  0xd3   :  { %v208_v32 = vsel %vm98_vm0, %v4886_v30, 0.0 }
 0x11f   :  { %v195_v3 = vpop.xlane.xlu0 %194 }
 0x120   :  { %v218_v4 = vmul.f32 %v4852_v2, %v195_v3 }
 0x122   :  { %v4859_v7 = vsub.f32 %v4827_v40, %v218_v4 }
 0x124   :  { %v230_v8 = vmul.f32 %v4859_v7, %v4859_v7 }
 0x126   :  { %v236_v11 = vsel %vm98_vm0, %v230_v8, 0.0 }
 0x127   :  { %237 = vadd.xlane.f32.xlu1 %v236_v11  ;;  %v198_v12 = vpop.xlane.xlu0 %197 }
 0x128   :  { %v219_v13 = vmul.f32 %v4852_v2, %v198_v12 }
 0x12a   :  { %v4868_v15 = vsub.f32 %v4834_v46, %v219_v13 }
 0x12c   :  { %v231_v17 = vmul.f32 %v4868_v15, %v4868_v15 }
 0x12e   :  { %v239_v18 = vsel %vm98_vm0, %v231_v17, 0.0  ;;  %v4957_v17 = vld [vmem:[%s6855_s3] ss:$0 sm:$0xff] }
 0x12f   :  { %v201_v19 = vpop.xlane.xlu1 %200  ;;  %206 = vadd.xlane.f32.xlu1 %v205_v16  ;;  %240 = vadd.xlane.f32.xlu2 %v239_v18 }
 0x130   :  { %v220_v20 = vmul.f32 %v4852_v2, %v201_v19 }
 0x132   :  { %v4880_v23 = vsub.f32 %v4841_v52, %v220_v20 }
 0x134   :  { %v232_v24 = vmul.f32 %v4880_v23, %v4880_v23 }
 0x136   :  { %v242_v27 = vsel %vm98_vm0, %v232_v24, 0.0 }
 0x137   :  { %243 = vadd.xlane.f32.xlu2 %v242_v27  ;;  %v204_v28 = vpop.xlane.xlu0 %203 }
 0x138   :  { %v221_v29 = vmul.f32 %v4852_v2, %v204_v28 }
 0x13a   :  { %v4889_v31 = vsub.f32 %v4848_v58, %v221_v29 }
 0x13c   :  { %v233_v33 = vmul.f32 %v4889_v31, %v4889_v31 }
 0x13e   :  { %v245_v34 = vsel %vm98_vm0, %v233_v33, 0.0 }
 0x13f   :  { %209 = vadd.xlane.f32.xlu2 %v208_v32  ;;  %246 = vadd.xlane.f32.xlu0 %v245_v34 }
 0x19a   :  { %v238_v54 = vpop.xlane.xlu1 %237 }
 0x19b   :  { %v254_v55 = vmul.f32 %v238_v54, %v4852_v2 }
 0x19d   :  { %v260_v56 = vadd.f32 1e-12, %v254_v55 }
 0x19f   :  { %4335 = vrsqrt.f32 %v260_v56  ;;  %vm272_vm3 = vweird.f32 %v260_v56 }
 0x1a2   :  { %v207_v57 = vpop.xlane.xlu1 %206  ;;  %v241_v59 = vpop.xlane.xlu2 %240 }
 0x1a3   :  { %v222_v60 = vmul.f32 %v4852_v2, %v207_v57  ;;  %v255_v61 = vmul.f32 %v241_v59, %v4852_v2 }
 0x1a5   :  { %v4336_v62 = vpop.eup %4335  ;;  %v4948_v63 = vsub.f32 %v4865_v14, %v222_v60  ;;  %v261_v0 = vadd.f32 1e-12, %v255_v61 }
 0x1a6   :  { %v267_v1 = vmul.f32 %v4336_v62, %v260_v56  ;;  %vm273_vm2 = vweird.f32 %v4336_v62 }
 0x1a7   :  { %4337 = vrsqrt.f32 %v261_v0  ;;  %v234_v3 = vmul.f32 %v4948_v63, %v4948_v63  ;;  %vm274_vm4 = vmor %vm272_vm3, %vm273_vm2  ;;  %vm282_vm6 = vweird.f32 %v261_v0 }
 0x1a8   :  { %v268_v4 = vmul.f32 %v4336_v62, %v267_v1 }
 0x1a9   :  { %v248_v5 = vsel %vm98_vm0, %v234_v3, 0.0 }
 0x1aa   :  { %v269_v6 = vmul.f32 0.5, %v268_v4  ;;  %249 = vadd.xlane.f32.xlu1 %v248_v5  ;;  %v244_v8 = vpop.xlane.xlu2 %243 }
 0x1ab   :  { %v256_v9 = vmul.f32 %v244_v8, %v4852_v2 }
 0x1ac   :  { %v270_v10 = vsub.f32 1.5, %v269_v6 }
 0x1ad   :  { %v4338_v11 = vpop.eup %4337  ;;  %v262_v12 = vadd.f32 1e-12, %v256_v9 }
 0x1ae   :  { %v271_v13 = vmul.f32 %v4336_v62, %v270_v10  ;;  %v277_v16 = vmul.f32 %v4338_v11, %v261_v0  ;;  %vm283_vm5 = vweird.f32 %v4338_v11 }
 0x1af   :  { %4339 = vrsqrt.f32 %v262_v12  ;;  %vm284_vm7 = vmor %vm282_vm6, %vm283_vm5  ;;  %vm292_vm9 = vweird.f32 %v262_v12  ;;  %vm469_vm5 = vcmask 130048  }
 0x1b0   :  { %v275_v18 = vsel %vm274_vm4, %v4336_v62, %v271_v13  ;;  %v278_v19 = vmul.f32 %v4338_v11, %v277_v16  ;;  %v366_v16 = vld [vmem:[%s6858_s6] sm:$0x3] }
 0x1b1   :  { %v326_v20 = vmul.f32 %v275_v18, %v4859_v7 }
 0x1b2   :  { %v279_v22 = vmul.f32 0.5, %v278_v19  ;;  %v210_v24 = vpop.xlane.xlu2 %209  ;;  %v247_v25 = vpop.xlane.xlu0 %246 }
 0x1b3   :  { %v223_v26 = vmul.f32 %v4852_v2, %v210_v24  ;;  %v257_v27 = vmul.f32 %v247_v25, %v4852_v2  ;;  %v335_v28 = vmul.f32 %v4957_v17, %v326_v20  ;;  %v4999_v20 = vperm.slane %v366_v16, 0 }
 0x1b4   :  { %v280_v29 = vsub.f32 1.5, %v279_v22 }
 0x1b5   :  { %v4340_v32 = vpop.eup %4339  ;;  %v4969_v33 = vsub.f32 %v4886_v30, %v223_v26  ;;  %v263_v7 = vadd.f32 1e-12, %v257_v27  ;;  %v344_v34 = vadd.f32 %v4963_v21, %v335_v28 }
 0x1b6   :  { %v281_v35 = vmul.f32 %v4338_v11, %v280_v29  ;;  %v287_v36 = vmul.f32 %v4340_v32, %v262_v12  ;;  %vm293_vm8 = vweird.f32 %v4340_v32 }
 0x1b7   :  { %4341 = vrsqrt.f32 %v263_v7  ;;  %3984 = vmatmul.msk.f32.vlgmr.msrb.gmra.mxu2 %vm98_vm0, %v344_v34  ;;  %3990 = vmatmul.msk.f32.vlgmr.msra.gmra.mxu3 %vm98_vm0, %v344_v34  ;;  %v235_v37 = vmul.f32 %v4969_v33, %v4969_v33  ;;  %vm294_vm10 = vmor %vm292_vm9, %vm293_vm8  ;;  %vm302_vm11 = vweird.f32 %v263_v7  ;;  %vm1024_vm8 = vcmask 261120  }
 0x1b8   :  { %v288_v38 = vmul.f32 %v4340_v32, %v287_v36  ;;  %v285_v39 = vsel %vm284_vm7, %v4338_v11, %v281_v35  ;;  %vm514_vm7 = vcmask 195584   ;;  %vm1028_vm9 = vcmask 392192  }
 0x1b9   :  { %v251_v41 = vsel %vm98_vm0, %v235_v37, 0.0  ;;  %v327_v42 = vmul.f32 %v285_v39, %v4868_v15 }
 0x1ba   :  { %v289_v43 = vmul.f32 0.5, %v288_v38  ;;  %252 = vadd.xlane.f32.xlu2 %v251_v41 }
 0x1bb   :  { %v336_v44 = vmul.f32 %v4957_v17, %v327_v42  ;;  %v5019_v42 = vperm.slane %v366_v16, 1 }
 0x1bc   :  { %v290_v45 = vsub.f32 1.5, %v289_v43 }
 0x1bd   :  { %v4342_v47 = vpop.eup %4341  ;;  %v345_v48 = vadd.f32 %v4963_v21, %v336_v44 }
 0x1be   :  { %v291_v49 = vmul.f32 %v4340_v32, %v290_v45  ;;  %v297_v50 = vmul.f32 %v4342_v47, %v263_v7  ;;  %vm303_vm12 = vweird.f32 %v4342_v47 }
 0x1bf   :  { %3985 = vmatmul.msk.f32.gmra.mxu2 %vm98_vm0, %v345_v48  ;;  %3991 = vmatmul.msk.f32.gmra.mxu3 %vm98_vm0, %v345_v48  ;;  %vm304_vm13 = vmor %vm302_vm11, %vm303_vm12 }
 0x1c0   :  { %v298_v51 = vmul.f32 %v4342_v47, %v297_v50  ;;  %v295_v53 = vsel %vm294_vm10, %v4340_v32, %v291_v49 }
 0x1c1   :  { %v328_v15 = vmul.f32 %v295_v53, %v4880_v23 }
 0x1c2   :  { %v299_v54 = vmul.f32 0.5, %v298_v51 }
 0x1c3   :  { %v337_v55 = vmul.f32 %v4957_v17, %v328_v15 }
 0x1c4   :  { %v300_v56 = vsub.f32 1.5, %v299_v54 }
 0x1c5   :  { %v346_v57 = vadd.f32 %v4963_v21, %v337_v55 }
 0x1c6   :  { %v301_v59 = vmul.f32 %v4342_v47, %v300_v56 }
 0x1c7   :  { %3986 = vmatmul.msk.f32.gmra.mxu2 %vm98_vm0, %v346_v57  ;;  %3992 = vmatmul.msk.f32.gmra.mxu3 %vm98_vm0, %v346_v57 }
 0x1c8   :  { %v305_v60 = vsel %vm304_vm13, %v4342_v47, %v301_v59 }
 0x1c9   :  { %v329_v61 = vmul.f32 %v305_v60, %v4889_v31 }
 0x1cb   :  { %v338_v62 = vmul.f32 %v4957_v17, %v329_v61 }
 0x1cd   :  { %v347_v23 = vadd.f32 %v4963_v21, %v338_v62 }
 0x1cf   :  { %3987 = vmatmul.msk.f32.gmra.mxu2 %vm98_vm0, %v347_v23  ;;  %3993 = vmatmul.msk.f32.gmra.mxu3 %vm98_vm0, %v347_v23 }
 0x21d   :  { %v250_v0 = vpop.xlane.xlu1 %249 }
 0x21e   :  { %v258_v1 = vmul.f32 %v250_v0, %v4852_v2 }
 0x220   :  { %v264_v3 = vadd.f32 1e-12, %v258_v1 }
 0x222   :  { %4343 = vrsqrt.f32 %v264_v3  ;;  %vm312_vm15 = vweird.f32 %v264_v3 }
 0x228   :  { %v4344_v4 = vpop.eup %4343 }
 0x229   :  { %v307_v5 = vmul.f32 %v4344_v4, %v264_v3  ;;  %vm313_vm14 = vweird.f32 %v4344_v4 }
 0x22a   :  { %vm314_vm1 = vmor %vm312_vm15, %vm313_vm14 }
 0x22b   :  { %v308_v6 = vmul.f32 %v4344_v4, %v307_v5 }
 0x22d   :  { %v309_v8 = vmul.f32 0.5, %v308_v6  ;;  %v253_v9 = vpop.xlane.xlu2 %252 }
 0x22e   :  { %v259_v31 = vmul.f32 %v253_v9, %v4852_v2 }
 0x22f   :  { %v310_v10 = vsub.f32 1.5, %v309_v8 }
 0x230   :  { %v265_v11 = vadd.f32 1e-12, %v259_v31 }
 0x231   :  { %v311_v12 = vmul.f32 %v4344_v4, %v310_v10 }
 0x232   :  { %4345 = vrsqrt.f32 %v265_v11  ;;  %vm322_vm3 = vweird.f32 %v265_v11 }
 0x233   :  { %v315_v13 = vsel %vm314_vm1, %v4344_v4, %v311_v12 }
 0x234   :  { %v330_v18 = vmul.f32 %v315_v13, %v4948_v63 }
 0x236   :  { %v339_v19 = vmul.f32 %v4957_v17, %v330_v18 }
 0x238   :  { %v4346_v22 = vpop.eup %4345  ;;  %v348_v24 = vadd.f32 %v4963_v21, %v339_v19 }
 0x239   :  { %v317_v25 = vmul.f32 %v4346_v22, %v265_v11  ;;  %vm323_vm2 = vweird.f32 %v4346_v22 }
 0x23a   :  { %v407_v26 = vpop.f32.mrf.mxu2  ;;  %3988 = vmatmul.msk.f32.gmra.mxu2 %vm98_vm0, %v348_v24  ;;  %v442_v27 = vpop.f32.mrf.mxu3  ;;  %3994 = vmatmul.msk.f32.gmra.mxu3 %vm98_vm0, %v348_v24  ;;  %vm324_vm4 = vmor %vm322_vm3, %vm323_vm2 }
 0x23b   :  { %v318_v28 = vmul.f32 %v4346_v22, %v317_v25  ;;  %v5005_v29 = vadd.f32 %v407_v26, %v4999_v20 }
 0x23d   :  { %v319_v32 = vmul.f32 0.5, %v318_v28  ;;  %589 = vrot.lane.b32.xlu1 %v5005_v29, %s4612_s30 }
 0x23f   :  { %v320_v63 = vsub.f32 1.5, %v319_v32 }
 0x241   :  { %v321_v7 = vmul.f32 %v4346_v22, %v320_v63 }
 0x242   :  { %v410_v34 = vpop.f32.mrf.mxu2  ;;  %v445_v35 = vpop.f32.mrf.mxu3 }
 0x243   :  { %v5010_v36 = vadd.f32 %v410_v34, %v4999_v20  ;;  %v325_v37 = vsel %vm324_vm4, %v4346_v22, %v321_v7  ;;  %v446_v47 = vadd.f32 %v445_v35, %v5019_v42 }
 0x244   :  { %v331_v38 = vmul.f32 %v325_v37, %v4969_v33 }
 0x245   :  { %727 = vrot.lane.b32.xlu1 %v5010_v36, %s4613_s18  ;;  %465 = vrot.lane.b32.xlu2 %v5010_v36, %s4614_s20 }
 0x246   :  { %v340_v39 = vmul.f32 %v4957_v17, %v331_v38  ;;  %v443_v17 = vadd.f32 %v442_v27, %v5019_v42 }
 0x248   :  { %v349_v41 = vadd.f32 %v4963_v21, %v340_v39 }
 0x24a   :  { %v413_v43 = vpop.f32.mrf.mxu2  ;;  %3989 = vmatmul.msk.f32.gmra.mxu2 %vm98_vm0, %v349_v41  ;;  %v448_v44 = vpop.f32.mrf.mxu3  ;;  %3995 = vmatmul.msk.f32.gmra.mxu3 %vm98_vm0, %v349_v41  ;;  %v187_v41 = vlaneseq }
 0x24b   :  { %v5024_v33 = vadd.f32 %v413_v43, %v4999_v20  ;;  %v449_v45 = vadd.f32 %v448_v44, %v5019_v42 }
 0x24d   :  { %570 = vmatpush.msra.mxu2 %v449_v45  ;;  %593 = vrot.lane.b32.xlu1 %v5024_v33, %s4612_s30  ;;  %v4257_v21 = vpack.i.bf16 %v446_v47, %v449_v45 }
 0x24e   :  { %463 = vrot.lane.b32.xlu2 %v5005_v29, %s4614_s20  ;;  %467 = vrot.lane.b32.xlu0 %v5024_v33, %s4614_s20 }
 0x24f   :  { %571 = vmatpush.msra.mxu2 %v446_v47 }
 0x251   :  { %572 = vmatpush.msra.mxu2 %v443_v17 }
 0x252   :  { %v416_v48 = vpop.f32.mrf.mxu2  ;;  %v5137_v38 = vpop.f32.mrf.mxu3 }
 0x253   :  { %v5069_v49 = vadd.f32 %v416_v48, %v4999_v20  ;;  %v4619_v48 = vmov -1e+30  }
 0x255   :  { %729 = vrot.lane.b32.xlu1 %v5024_v33, %s4613_s18 }
 0x256   :  { %585 = vrot.lane.b32.xlu2 %v5010_v36, %s4615_s26  ;;  %591 = vrot.lane.b32.xlu0 %v5010_v36, %s4612_s30 }
 0x25d   :  { %858 = vrot.lane.b32.xlu1 %v5005_v29, %s4616_s19 }
 0x25e   :  { %725 = vrot.lane.b32.xlu2 %v5005_v29, %s4613_s18  ;;  %583 = vrot.lane.b32.xlu0 %v5005_v29, %s4615_s26 }
 0x265   :  { %721 = vrot.lane.b32.xlu1 %v5010_v36, %s4617_s0 }
 0x266   :  { %852 = vrot.lane.b32.xlu2 %v5005_v29, %s6872_s21  ;;  %862 = vrot.lane.b32.xlu0 %v5024_v33, %s4616_s19 }
 0x26d   :  { %941 = vrot.lane.b32.xlu1 %v443_v17, %s6872_s21 }
 0x26e   :  { %587 = vrot.lane.b32.xlu2 %v5024_v33, %s4615_s26  ;;  %860 = vrot.lane.b32.xlu0 %v5010_v36, %s4616_s19 }
 0x275   :  { %856 = vrot.lane.b32.xlu1 %v5024_v33, %s6872_s21 }
 0x276   :  { %675 = vrot.lane.b32.xlu2 %v443_v17, %s4615_s26  ;;  %719 = vrot.lane.b32.xlu0 %v5005_v29, %s4617_s0 }
 0x27d   :  { %4258 = vrot.lane.b32.xlu1 %v4257_v21, %s4617_s0 }
 0x27e   :  { %723 = vrot.lane.b32.xlu2 %v5024_v33, %s4617_s0  ;;  %854 = vrot.lane.b32.xlu0 %v5010_v36, %s6872_s21 }
 0x285   :  { %1153 = vrot.lane.b32.xlu1 %v5069_v49, %s4615_s26 }
 0x286   :  { %4263 = vrot.lane.b32.xlu2 %v4257_v21, %s6872_s21  ;;  %808 = vrot.lane.b32.xlu0 %v443_v17, %s4617_s0 }
 0x28d   :  { %1295 = vrot.lane.b32.xlu1 %v5069_v49, %s4613_s18 }
 0x28e   :  { %4253 = vrot.lane.b32.xlu0 %v4257_v21, %s4615_s26  ;;  %1035 = vrot.lane.b32.xlu2 %v5069_v49, %s4614_s20 }
 0x296   :  { %1159 = vrot.lane.b32.xlu0 %v5069_v49, %s4612_s30  ;;  %1428 = vrot.lane.b32.xlu2 %v5069_v49, %s4616_s19 }
 0x29f   :  { %v466_v50 = vpop.permute.xlu2 %465 }
 0x2a8   :  { %v464_v15 = vpop.permute.xlu2 %463 }
 0x2af   :  { %v590_v51 = vpop.permute.xlu1 %589 }
 0x2b0   :  { %v586_v59 = vpop.permute.xlu2 %585 }
 0x2b7   :  { %v728_v53 = vpop.permute.xlu1 %727 }
 0x2b8   :  { %v726_v62 = vpop.permute.xlu2 %725 }
 0x2bd   :  { %v419_v54 = vpop.f32.mrf.mxu2  ;;  %v5140_v45 = vpop.f32.mrf.mxu3 }
 0x2be   :  { %v5085_v55 = vadd.f32 %v419_v54, %v4999_v20 }
 0x2bf   :  { %v594_v56 = vpop.permute.xlu1 %593 }
 0x2c0   :  { %v468_v57 = vpop.permute.xlu0 %467  ;;  %4005 = vmatpush.xpose.msk.msrb.mxu3 %vm469_vm5, %v594_v56  ;;  %1037 = vrot.lane.b32.xlu1 %v5085_v55, %s4614_s20  ;;  %v853_v4 = vpop.permute.xlu2 %852 }
 0x2c1   :  { %1155 = vrot.lane.b32.xlu0 %v5085_v55, %s4615_s26  ;;  %1297 = vrot.lane.b32.xlu2 %v5085_v55, %s4613_s18 }
 0x2c2   :  { %3996 = vmatpush.xpose.msk.msrb.mxu1 %vm469_vm5, %v468_v57 }
 0x2c6   :  { %3997 = vmatpush.xpose.msk.msrb.mxu1 %vm469_vm5, %v466_v50 }
 0x2c7   :  { %v730_v60 = vpop.permute.xlu1 %729 }
 0x2c8   :  { %v592_v61 = vpop.permute.xlu0 %591  ;;  %1161 = vrot.lane.b32.xlu1 %v5085_v55, %s4612_s30  ;;  %v588_v9 = vpop.permute.xlu2 %587 }
 0x2c9   :  { %1430 = vrot.lane.b32.xlu0 %v5085_v55, %s4616_s19  ;;  %4006 = vmatpush.xpose.msk.msrb.mxu3 %vm469_vm5, %v592_v61 }
 0x2ca   :  { %3998 = vmatpush.xpose.msk.msrb.mxu1 %vm469_vm5, %v464_v15 }
 0x2cd   :  { %3999 = vmatmul.msk.f32.vlgmr.msrb.gmra.mxu1 %vm469_vm5, %v5005_v29  ;;  %4007 = vmatpush.xpose.msk.msrb.mxu3 %vm469_vm5, %v590_v51  ;;  %v422_v23 = vpop.f32.mrf.mxu2  ;;  %v5148_v15 = vpop.f32.mrf.mxu3 }
 0x2ce   :  { %4014 = vmatpush.xpose.msk.msra.mxu1 %vm469_vm5, %v730_v60  ;;  %v5107_v0 = vadd.f32 %v422_v23, %v4999_v20 }
 0x2cf   :  { %v859_v1 = vpop.permute.xlu1 %858 }
 0x2d0   :  { %v584_v3 = vpop.permute.xlu0 %583  ;;  %1039 = vrot.lane.b32.xlu1 %v5107_v0, %s4614_s20  ;;  %v676_v12 = vpop.permute.xlu2 %675 }
 0x2d1   :  { %1163 = vrot.lane.b32.xlu0 %v5107_v0, %s4612_s30  ;;  %4008 = vmatmul.msk.f32.vlgmr.msrb.gmra.mxu3 %vm469_vm5, %v584_v3 }
 0x2d2   :  { %4015 = vmatpush.xpose.msk.msra.mxu1 %vm469_vm5, %v728_v53 }
 0x2d5   :  { %4000 = vmatmul.msk.f32.gmra.mxu1 %vm469_vm5, %v5010_v36 }
 0x2d6   :  { %4016 = vmatpush.xpose.msk.msra.mxu1 %vm469_vm5, %v726_v62 }
 0x2d7   :  { %v722_v5 = vpop.permute.xlu1 %721 }
 0x2d8   :  { %v863_v6 = vpop.permute.xlu0 %862  ;;  %1299 = vrot.lane.b32.xlu1 %v5107_v0, %s4613_s18  ;;  %v724_v20 = vpop.permute.xlu2 %723 }
 0x2d9   :  { %1432 = vrot.lane.b32.xlu0 %v5107_v0, %s4616_s19  ;;  %4009 = vmatmul.msk.f32.gmra.mxu3 %vm469_vm5, %v586_v59 }
 0x2da   :  { %4023 = vmatpush.xpose.msk.msra.mxu3 %vm469_vm5, %v863_v6 }
 0x2dd   :  { %4001 = vmatmul.msk.f32.gmra.mxu1 %vm469_vm5, %v5024_v33  ;;  %v188_v33 = vand.u32 127, %v187_v41 }
 0x2df   :  { %v942_v8 = vpop.permute.xlu1 %941  ;;  %vm189_vm6 = vcmp.lt.s32.totalorder %v188_v33, 17 }
 0x2e0   :  { %v861_v31 = vpop.permute.xlu0 %860  ;;  %1157 = vrot.lane.b32.xlu1 %v5107_v0, %s4615_s26  ;;  %v4264_v26 = vpop.permute.xlu2 %4263  ;;  %v5145_v50 = vsel %vm189_vm6, 0.0, %v4619_v48 }
 0x2e1   :  { %4010 = vmatmul.msk.f32.gmra.mxu3 %vm469_vm5, %v588_v9  ;;  %v4265_v28 = vunpack.i.l.bf16 %v4264_v26  ;;  %v4266_v29 = vunpack.i.h.bf16 %v4264_v26 }
 0x2e2   :  { %4024 = vmatpush.xpose.msk.msra.mxu3 %vm469_vm5, %v861_v31 }
 0x2e6   :  { %4025 = vmatpush.xpose.msk.msra.mxu3 %vm469_vm5, %v859_v1 }
 0x2e7   :  { %v857_v10 = vpop.permute.xlu1 %856 }
 0x2e8   :  { %v720_v11 = vpop.permute.xlu0 %719  ;;  %v1036_v39 = vpop.permute.xlu2 %1035 }
 0x2e9   :  { %4017 = vmatmul.msk.f32.vlgmr.msra.gmra.mxu1 %vm469_vm5, %v720_v11  ;;  %4026 = vmatmul.msk.f32.vlgmr.msra.gmra.mxu3 %vm469_vm5, %v853_v4 }
 0x2ef   :  { %v4259_v13 = vpop.permute.xlu1 %4258 }
 0x2f0   :  { %v4260_v16 = vunpack.i.l.bf16 %v4259_v13  ;;  %v855_v18 = vpop.permute.xlu0 %854  ;;  %v4261_v19 = vunpack.i.h.bf16 %v4259_v13  ;;  %v1429_v47 = vpop.permute.xlu2 %1428 }
 0x2f1   :  { %4018 = vmatmul.msk.f32.gmra.mxu1 %vm469_vm5, %v722_v5  ;;  %4027 = vmatmul.msk.f32.gmra.mxu3 %vm469_vm5, %v855_v18 }
 0x2f2   :  { %839 = vmatpush.msrb.mxu2 %v4260_v16 }
 0x2f4   :  { %840 = vmatpush.msrb.mxu2 %v4261_v19 }
 0x2f7   :  { %v1154_v32 = vpop.permute.xlu1 %1153 }
 0x2f8   :  { %v809_v22 = vpop.permute.xlu0 %808 }
 0x2f9   :  { %4019 = vmatmul.msk.f32.gmra.mxu1 %vm469_vm5, %v724_v20  ;;  %841 = vmatpush.msrb.mxu2 %v809_v22 }
 0x2fa   :  { %4028 = vmatmul.msk.f32.gmra.mxu3 %vm469_vm5, %v857_v10 }
 0x2ff   :  { %v1296_v63 = vpop.permute.xlu1 %1295 }
 0x300   :  { %v4254_v24 = vpop.permute.xlu0 %4253 }
 0x301   :  { %v4255_v25 = vunpack.i.l.bf16 %v4254_v24  ;;  %v4256_v27 = vunpack.i.h.bf16 %v4254_v24 }
 0x303   :  { %706 = vmatpush.msrb.mxu0 %v4255_v25 }
 0x305   :  { %707 = vmatpush.msrb.mxu0 %v4256_v27 }
 0x307   :  { %708 = vmatpush.msrb.mxu0 %v676_v12 }
 0x308   :  { %v1160_v7 = vpop.permute.xlu0 %1159 }
 0x309   :  { %972 = vmatpush.msra.mxu0 %v4265_v28 }
 0x30b   :  { %973 = vmatpush.msra.mxu0 %v4266_v29 }
 0x30d   :  { %974 = vmatpush.msra.mxu0 %v942_v8 }
 0x31b   :  { %v1298_v56 = vpop.permute.xlu2 %1297 }
 0x332   :  { %v1038_v34 = vpop.permute.xlu1 %1037 }
 0x333   :  { %v1156_v35 = vpop.permute.xlu0 %1155 }
 0x33a   :  { %v1162_v36 = vpop.permute.xlu1 %1161 }
 0x33b   :  { %v1431_v37 = vpop.permute.xlu0 %1430 }
 0x342   :  { %v1040_v43 = vpop.permute.xlu1 %1039 }
 0x343   :  { %v1164_v44 = vpop.permute.xlu0 %1163  ;;  %4032 = vmatpush.xpose.msk.msrb.mxu1 %vm469_vm5, %v1040_v43 }
 0x344   :  { %4041 = vmatpush.xpose.msk.msrb.mxu3 %vm469_vm5, %v1164_v44 }
 0x347   :  { %4033 = vmatpush.xpose.msk.msrb.mxu1 %vm469_vm5, %v1038_v34 }
 0x348   :  { %4042 = vmatpush.xpose.msk.msrb.mxu3 %vm469_vm5, %v1162_v36 }
 0x34a   :  { %v499_v17 = vpop.f32.mrf.mxu1  ;;  %v1300_v21 = vpop.permute.xlu1 %1299 }
 0x34b   :  { %v508_v51 = vmul.f32 0.25, %v499_v17  ;;  %v1433_v53 = vpop.permute.xlu0 %1432  ;;  %4034 = vmatpush.xpose.msk.msrb.mxu1 %vm469_vm5, %v1036_v39 }
 0x34c   :  { %4043 = vmatpush.xpose.msk.msrb.mxu3 %vm469_vm5, %v1160_v7 }
 0x34d   :  { %v5154_v54 = vadd.f32 %v508_v51, %v5145_v50 }
 0x34e   :  { %4035 = vmatmul.msk.f32.vlgmr.msrb.gmra.mxu1 %vm469_vm5, %v5069_v49 }
 0x34f   :  { %4050 = vmatpush.xpose.msk.msra.mxu1 %vm469_vm5, %v1300_v21  ;;  %v515_v57 = vsel %vm514_vm7, %v5154_v54, -inf  ;;  %4044 = vmatmul.msk.f32.vlgmr.msrb.gmra.mxu3 %vm469_vm5, %v1154_v32 }
 0x350   :  { %4059 = vmatpush.xpose.msk.msra.mxu3 %vm469_vm5, %v1433_v53  ;;  %516 = vmax.xlane.f32.xlu0 %v515_v57 }
 0x352   :  { %v502_v59 = vpop.f32.mrf.mxu1  ;;  %v1158_v10 = vpop.permute.xlu1 %1157 }
 0x353   :  { %4051 = vmatpush.xpose.msk.msra.mxu1 %vm469_vm5, %v1298_v56  ;;  %v509_v60 = vmul.f32 0.25, %v502_v59 }
 0x354   :  { %4060 = vmatpush.xpose.msk.msra.mxu3 %vm469_vm5, %v1431_v37  ;;  %v624_v61 = vpop.f32.mrf.mxu3 }
 0x355   :  { %v633_v62 = vmul.f32 0.25, %v624_v61  ;;  %v5166_v23 = vadd.f32 %v509_v60, %v5145_v50 }
 0x356   :  { %4036 = vmatmul.msk.f32.gmra.mxu1 %vm469_vm5, %v5085_v55 }
 0x357   :  { %4052 = vmatpush.xpose.msk.msra.mxu1 %vm469_vm5, %v1296_v63  ;;  %v518_v1 = vsel %vm514_vm7, %v5166_v23, -inf  ;;  %4045 = vmatmul.msk.f32.gmra.mxu3 %vm469_vm5, %v1156_v35  ;;  %v5174_v3 = vadd.f32 %v633_v62, %v5145_v50 }
 0x358   :  { %4061 = vmatpush.xpose.msk.msra.mxu3 %vm469_vm5, %v1429_v47  ;;  %519 = vmax.xlane.f32.xlu1 %v518_v1 }
 0x359   :  { %v639_v4 = vsel %vm514_vm7, %v5174_v3, -inf }
 0x35a   :  { %v505_v5 = vpop.f32.mrf.mxu1  ;;  %640 = vmax.xlane.f32.xlu2 %v639_v4 }
 0x35b   :  { %v510_v6 = vmul.f32 0.25, %v505_v5 }
 0x35c   :  { %v627_v8 = vpop.f32.mrf.mxu3 }
 0x35d   :  { %v634_v9 = vmul.f32 0.25, %v627_v8  ;;  %v5179_v31 = vadd.f32 %v510_v6, %v5145_v50 }
 0x35e   :  { %4037 = vmatmul.msk.f32.gmra.mxu1 %vm469_vm5, %v5107_v0 }
 0x35f   :  { %4046 = vmatmul.msk.f32.gmra.mxu3 %vm469_vm5, %v1158_v10  ;;  %v5185_v11 = vadd.f32 %v634_v9, %v5145_v50  ;;  %v521_v12 = vsel %vm514_vm7, %v5179_v31, -inf }
 0x361   :  { %v642_v13 = vsel %vm514_vm7, %v5185_v11, -inf }
 0x362   :  { %522 = vmax.xlane.f32.xlu2 %v521_v12  ;;  %643 = vmax.xlane.f32.xlu0 %v642_v13 }
 0x364   :  { %v630_v16 = vpop.f32.mrf.mxu3 }
 0x365   :  { %v635_v18 = vmul.f32 0.25, %v630_v16 }
 0x366   :  { %v760_v19 = vpop.f32.mrf.mxu1 }
 0x367   :  { %v769_v20 = vmul.f32 0.25, %v760_v19  ;;  %v5192_v22 = vadd.f32 %v635_v18, %v5145_v50 }
 0x369   :  { %v645_v24 = vsel %vm514_vm7, %v5192_v22, -inf  ;;  %v5197_v25 = vadd.f32 %v769_v20, %v5145_v50 }
 0x36a   :  { %646 = vmax.xlane.f32.xlu1 %v645_v24 }
 0x36b   :  { %v775_v26 = vsel %vm514_vm7, %v5197_v25, -inf }
 0x36c   :  { %v893_v27 = vpop.f32.mrf.mxu3  ;;  %776 = vmax.xlane.f32.xlu0 %v775_v26 }
 0x36d   :  { %v902_v28 = vmul.f32 0.25, %v893_v27 }
 0x36e   :  { %v763_v29 = vpop.f32.mrf.mxu1 }
 0x36f   :  { %v770_v32 = vmul.f32 0.25, %v763_v29  ;;  %v5202_v63 = vadd.f32 %v902_v28, %v5145_v50 }
 0x371   :  { %v908_v7 = vsel %vm514_vm7, %v5202_v63, -inf  ;;  %v5207_v34 = vadd.f32 %v770_v32, %v5145_v50 }
 0x372   :  { %909 = vmax.xlane.f32.xlu2 %v908_v7 }
 0x373   :  { %v778_v35 = vsel %vm514_vm7, %v5207_v34, -inf }
 0x374   :  { %779 = vmax.xlane.f32.xlu1 %v778_v35  ;;  %v896_v36 = vpop.f32.mrf.mxu3 }
 0x375   :  { %v903_v37 = vmul.f32 0.25, %v896_v36 }
 0x376   :  { %v766_v39 = vpop.f32.mrf.mxu1 }
 0x377   :  { %v771_v41 = vmul.f32 0.25, %v766_v39  ;;  %v5212_v43 = vadd.f32 %v903_v37, %v5145_v50 }
 0x379   :  { %v911_v44 = vsel %vm514_vm7, %v5212_v43, -inf  ;;  %v5217_v33 = vadd.f32 %v771_v41, %v5145_v50 }
 0x37a   :  { %912 = vmax.xlane.f32.xlu0 %v911_v44 }
 0x37b   :  { %v781_v47 = vsel %vm514_vm7, %v5217_v33, -inf }
 0x37c   :  { %782 = vmax.xlane.f32.xlu2 %v781_v47 }
 0x37d   :  { %v899_v17 = vpop.f32.mrf.mxu3 }
 0x37e   :  { %v904_v21 = vmul.f32 0.25, %v899_v17 }
 0x380   :  { %v5222_v48 = vadd.f32 %v904_v21, %v5145_v50 }
 0x382   :  { %v914_v51 = vsel %vm514_vm7, %v5222_v48, -inf }
 0x383   :  { %915 = vmax.xlane.f32.xlu1 %v914_v51 }
 0x3c3   :  { %v517_v53 = vpop.xlane.xlu0 %516 }
 0x3c4   :  { %v524_v56 = vsub.f32 %v5154_v54, %v517_v53 }
 0x3c6   :  { %v527_v57 = vmul.f32 1.442695, %v524_v56 }
 0x3c8   :  { %4347 = vpow2.f32 %v527_v57 }
 0x3cb   :  { %v520_v59 = vpop.xlane.xlu1 %519 }
 0x3cc   :  { %v525_v60 = vsub.f32 %v5166_v23, %v520_v59 }
 0x3cd   :  { %v641_v61 = vpop.xlane.xlu2 %640 }
 0x3ce   :  { %v5228_v62 = vpop.eup %4347  ;;  %v529_v1 = vmul.f32 1.442695, %v525_v60  ;;  %v648_v4 = vsub.f32 %v5174_v3, %v641_v61 }
 0x3cf   :  { %v533_v5 = vsel %vm514_vm7, %v5228_v62, 0.0 }
 0x3d0   :  { %4349 = vpow2.f32 %v529_v1  ;;  %v651_v6 = vmul.f32 1.442695, %v648_v4  ;;  %534 = vadd.xlane.f32.xlu0 %v533_v5 }
 0x3d2   :  { %4351 = vpow2.f32 %v651_v6 }
 0x3d5   :  { %v523_v8 = vpop.xlane.xlu2 %522  ;;  %v644_v54 = vpop.xlane.xlu0 %643 }
 0x3d6   :  { %v5233_v9 = vpop.eup %4349  ;;  %v526_v10 = vsub.f32 %v5179_v31, %v523_v8  ;;  %v649_v23 = vsub.f32 %v5185_v11, %v644_v54  ;;  %v5294_v54 = vadd.f32 %v5148_v15, %v5019_v42 }
 0x3d7   :  { %v536_v12 = vsel %vm514_vm7, %v5233_v9, 0.0 }
 0x3d8   :  { %v5239_v13 = vpop.eup %4351  ;;  %v531_v3 = vmul.f32 1.442695, %v526_v10  ;;  %v653_v16 = vmul.f32 1.442695, %v649_v23  ;;  %537 = vadd.xlane.f32.xlu1 %v536_v12  ;;  %v5299_v23 = vadd.f32 %v5140_v45, %v5019_v42 }
 0x3d9   :  { %v657_v18 = vsel %vm514_vm7, %v5239_v13, 0.0 }
 0x3da   :  { %4353 = vpow2.f32 %v531_v3  ;;  %658 = vadd.xlane.f32.xlu2 %v657_v18  ;;  %v1194_v3 = vpop.f32.mrf.mxu3 }
 0x3db   :  { %4355 = vpow2.f32 %v653_v16 }
 0x3dd   :  { %v647_v19 = vpop.xlane.xlu1 %646 }
 0x3de   :  { %v650_v20 = vsub.f32 %v5192_v22, %v647_v19 }
 0x3df   :  { %v777_v31 = vpop.xlane.xlu0 %776 }
 0x3e0   :  { %v5244_v24 = vpop.eup %4353  ;;  %v655_v11 = vmul.f32 1.442695, %v650_v20  ;;  %v784_v26 = vsub.f32 %v5197_v25, %v777_v31 }
 0x3e1   :  { %v5247_v27 = vpop.eup %4355  ;;  %v539_v28 = vsel %vm514_vm7, %v5244_v24, 0.0 }
 0x3e2   :  { %4357 = vpow2.f32 %v655_v11  ;;  %v787_v29 = vmul.f32 1.442695, %v784_v26  ;;  %540 = vadd.xlane.f32.xlu1 %v539_v28  ;;  %v660_v32 = vsel %vm514_vm7, %v5247_v27, 0.0 }
 0x3e3   :  { %661 = vadd.xlane.f32.xlu2 %v660_v32 }
 0x3e4   :  { %4359 = vpow2.f32 %v787_v29  ;;  %v1197_v29 = vpop.f32.mrf.mxu3 }
 0x3e5   :  { %v910_v36 = vpop.xlane.xlu2 %909 }
 0x3e6   :  { %v917_v37 = vsub.f32 %v5202_v63, %v910_v36 }
 0x3e7   :  { %v780_v44 = vpop.xlane.xlu1 %779 }
 0x3e8   :  { %v5253_v22 = vpop.eup %4357  ;;  %v920_v41 = vmul.f32 1.442695, %v917_v37  ;;  %v785_v17 = vsub.f32 %v5207_v34, %v780_v44  ;;  %v1204_v37 = vmul.f32 0.25, %v1197_v29 }
 0x3e9   :  { %v663_v7 = vsel %vm514_vm7, %v5253_v22, 0.0 }
 0x3ea   :  { %v5257_v35 = vpop.eup %4359  ;;  %664 = vadd.xlane.f32.xlu1 %v663_v7  ;;  %4361 = vpow2.f32 %v920_v41  ;;  %v789_v51 = vmul.f32 1.442695, %v785_v17  ;;  %v5334_v17 = vadd.f32 %v1204_v37, %v5145_v50 }
 0x3eb   :  { %v793_v25 = vsel %vm514_vm7, %v5257_v35, 0.0 }
 0x3ec   :  { %794 = vadd.xlane.f32.xlu0 %v793_v25 }
 0x3ed   :  { %v913_v39 = vpop.xlane.xlu0 %912 }
 0x3ee   :  { %v918_v47 = vsub.f32 %v5212_v43, %v913_v39 }
 0x3ef   :  { %v783_v56 = vpop.xlane.xlu2 %782 }
 0x3f0   :  { %v922_v21 = vmul.f32 1.442695, %v918_v47  ;;  %v5270_v53 = vpop.eup %4361  ;;  %v1200_v47 = vpop.f32.mrf.mxu3 }
 0x3f1   :  { %v926_v63 = vsel %vm514_vm7, %v5270_v53, 0.0 }
 0x3f2   :  { %4363 = vpow2.f32 %v922_v21  ;;  %v1205_v21 = vmul.f32 0.25, %v1200_v47 }
 0x3f3   :  { %4365 = vpow2.f32 %v789_v51  ;;  %v1203_v51 = vmul.f32 0.25, %v1194_v3 }
 0x3f6   :  { %v916_v1 = vpop.xlane.xlu1 %915 }
 0x3f8   :  { %v5275_v57 = vpop.eup %4363 }
 0x3f9   :  { %v5277_v43 = vpop.eup %4365  ;;  %v929_v34 = vsel %vm514_vm7, %v5275_v57, 0.0 }
 0x3fa   :  { %v796_v60 = vsel %vm514_vm7, %v5277_v43, 0.0 }
 0x3fb   :  { %1291 = vrot.lane.b32.xlu2 %v5085_v55, %s4617_s0 }
 0x400   :  { %1289 = vrot.lane.b32.xlu0 %v5069_v49, %s4617_s0 }
 0x403   :  { %1422 = vrot.lane.b32.xlu1 %v5069_v49, %s6872_s21  ;;  %v786_v49 = vsub.f32 %v5217_v33, %v783_v56  ;;  %v5340_v56 = vadd.f32 %v1205_v21, %v5145_v50 }
 0x405   :  { %v791_v59 = vmul.f32 1.442695, %v786_v49 }
 0x407   :  { %4367 = vpow2.f32 %v791_v59 }
 0x40d   :  { %v5283_v61 = vpop.eup %4367 }
 0x40e   :  { %v799_v33 = vsel %vm514_vm7, %v5283_v61, 0.0 }
 0x424   :  { %927 = vadd.xlane.f32.xlu2 %v926_v63  ;;  %v5344_v63 = vadd.f32 %v1203_v51, %v5145_v50 }
 0x42a   :  { %930 = vadd.xlane.f32.xlu0 %v929_v34  ;;  %v1215_v34 = vsel %vm514_vm7, %v5340_v56, -inf }
 0x42d   :  { %797 = vadd.xlane.f32.xlu1 %v796_v60 }
 0x435   :  { %800 = vadd.xlane.f32.xlu1 %v799_v33 }
 0x43c   :  { %1426 = vrot.lane.b32.xlu2 %v5107_v0, %s6872_s21 }
 0x43e   :  { %1424 = vrot.lane.b32.xlu0 %v5085_v55, %s6872_s21  ;;  %v1070_v55 = vpop.f32.mrf.mxu1 }
 0x43f   :  { %v1079_v28 = vmul.f32 0.25, %v1070_v55 }
 0x441   :  { %v5323_v7 = vadd.f32 %v1079_v28, %v5145_v50 }
 0x443   :  { %v535_v4 = vpop.xlane.xlu0 %534  ;;  %v1085_v41 = vsel %vm514_vm7, %v5323_v7, -inf }
 0x444   :  { %4369 = vrcp.f32 %v535_v4 }
 0x44a   :  { %v4370_v5 = vpop.eup %4369 }
 0x44b   :  { %v545_v6 = vmul.f32 %v4370_v5, %v5228_v62  ;;  %v538_v8 = vpop.xlane.xlu1 %537  ;;  %v5306_v62 = vadd.f32 %v5137_v38, %v5019_v42  ;;  %v1073_v42 = vpop.f32.mrf.mxu1  ;;  %v919_v38 = vsub.f32 %v5222_v48, %v916_v1  ;;  %v1209_v1 = vsel %vm514_vm7, %v5344_v63, -inf }
 0x44c   :  { %4371 = vrcp.f32 %v538_v8  ;;  %v1080_v20 = vmul.f32 0.25, %v1073_v42 }
 0x44d   :  { %4002 = vmatmul.msk.f32.vlgmr.msra.gmra.mxu2 %vm514_vm7, %v545_v6  ;;  %v659_v10 = vpop.xlane.xlu2 %658 }
 0x44e   :  { %1140 = vmatpush.msra.mxu2 %v5294_v54  ;;  %4373 = vrcp.f32 %v659_v10  ;;  %1293 = vrot.lane.b32.xlu1 %v5107_v0, %s4617_s0  ;;  %v5320_v48 = vadd.f32 %v1080_v20, %v5145_v50 }
 0x450   :  { %1141 = vmatpush.msra.mxu2 %v5299_v23 }
 0x452   :  { %v4372_v15 = vpop.eup %4371  ;;  %1142 = vmatpush.msra.mxu2 %v5306_v62 }
 0x453   :  { %v546_v12 = vmul.f32 %v4372_v15, %v5233_v9  ;;  %v1076_v59 = vpop.f32.mrf.mxu1 }
 0x454   :  { %v4374_v45 = vpop.eup %4373  ;;  %v1081_v33 = vmul.f32 0.25, %v1076_v59 }
 0x455   :  { %4003 = vmatmul.msk.f32.gmra.mxu2 %vm514_vm7, %v546_v12  ;;  %v541_v16 = vpop.xlane.xlu1 %540  ;;  %v669_v18 = vmul.f32 %v4374_v45, %v5239_v13  ;;  %v924_v13 = vmul.f32 1.442695, %v919_v38 }
 0x456   :  { %4375 = vrcp.f32 %v541_v16  ;;  %v662_v0 = vpop.xlane.xlu2 %661  ;;  %v5353_v5 = vadd.f32 %v1081_v33, %v5145_v50 }
 0x457   :  { %4377 = vrcp.f32 %v662_v0  ;;  %4011 = vmatmul.msk.f32.vlgmr.msrb.gmra.mxu0 %vm514_vm7, %v669_v18 }
 0x458   :  { %v1091_v6 = vsel %vm514_vm7, %v5353_v5, -inf }
 0x45c   :  { %v4376_v19 = vpop.eup %4375 }
 0x45d   :  { %v4378_v31 = vpop.eup %4377  ;;  %v665_v11 = vpop.xlane.xlu1 %664  ;;  %v547_v9 = vmul.f32 %v4376_v19, %v5244_v24 }
 0x45e   :  { %4379 = vrcp.f32 %v665_v11  ;;  %v670_v26 = vmul.f32 %v4378_v31, %v5247_v27  ;;  %v1088_v27 = vsel %vm514_vm7, %v5320_v48, -inf  ;;  %v1292_v4 = vpop.permute.xlu2 %1291 }
 0x45f   :  { %4004 = vmatmul.msk.f32.gmra.mxu2 %vm514_vm7, %v547_v9  ;;  %v795_v32 = vpop.xlane.xlu0 %794 }
 0x460   :  { %4381 = vrcp.f32 %v795_v32  ;;  %4012 = vmatmul.msk.f32.gmra.mxu0 %vm514_vm7, %v670_v26 }
 0x461   :  { %4383 = vpow2.f32 %v924_v13 }
 0x464   :  { %v4380_v24 = vpop.eup %4379 }
 0x465   :  { %1089 = vmax.xlane.f32.xlu2 %v1088_v27  ;;  %v671_v25 = vmul.f32 %v4380_v24, %v5253_v22 }
 0x466   :  { %v4382_v36 = vpop.eup %4381 }
 0x467   :  { %v805_v39 = vmul.f32 %v4382_v36, %v5257_v35  ;;  %v4384_v44 = vpop.eup %4383  ;;  %v1212_v35 = vsel %vm514_vm7, %v5334_v17, -inf }
 0x468   :  { %4013 = vmatmul.msk.f32.gmra.mxu0 %vm514_vm7, %v671_v25  ;;  %1086 = vmax.xlane.f32.xlu0 %v1085_v41  ;;  %v932_v22 = vsel %vm514_vm7, %v4384_v44, 0.0 }
 0x469   :  { %4020 = vmatmul.msk.f32.vlgmr.msrb.gmra.mxu2 %vm514_vm7, %v805_v39 }
 0x46d   :  { %933 = vadd.xlane.f32.xlu2 %v932_v22 }
 0x470   :  { %1213 = vmax.xlane.f32.xlu0 %v1212_v35 }
 0x472   :  { %v1290_v49 = vpop.permute.xlu0 %1289 }
 0x473   :  { %4053 = vmatmul.msk.f32.vlgmr.msra.gmra.mxu1 %vm469_vm5, %v1290_v49 }
 0x475   :  { %1216 = vmax.xlane.f32.xlu2 %v1215_v34  ;;  %v1423_v60 = vpop.permute.xlu1 %1422 }
 0x476   :  { %4062 = vmatmul.msk.f32.vlgmr.msra.gmra.mxu3 %vm469_vm5, %v1423_v60 }
 0x478   :  { %1210 = vmax.xlane.f32.xlu1 %v1209_v1 }
 0x47b   :  { %4054 = vmatmul.msk.f32.gmra.mxu1 %vm469_vm5, %v1292_v4 }
 0x480   :  { %1092 = vmax.xlane.f32.xlu1 %v1091_v6 }
 0x497   :  { %v928_v8 = vpop.xlane.xlu2 %927 }
 0x498   :  { %4385 = vrcp.f32 %v928_v8 }
 0x49d   :  { %v931_v10 = vpop.xlane.xlu0 %930 }
 0x49e   :  { %v4386_v55 = vpop.eup %4385  ;;  %4387 = vrcp.f32 %v931_v10 }
 0x49f   :  { %v938_v15 = vmul.f32 %v4386_v55, %v5270_v53  ;;  %v1427_v19 = vpop.permute.xlu2 %1426 }
 0x4a0   :  { %v798_v12 = vpop.xlane.xlu1 %797 }
 0x4a1   :  { %4389 = vrcp.f32 %v798_v12  ;;  %4029 = vmatmul.msk.f32.vlgmr.msra.gmra.mxu0 %vm514_vm7, %v938_v15 }
 0x4a4   :  { %v4388_v45 = vpop.eup %4387 }
 0x4a5   :  { %v939_v3 = vmul.f32 %v4388_v45, %v5275_v57 }
 0x4a7   :  { %v4390_v16 = vpop.eup %4389 }
 0x4a8   :  { %v801_v18 = vpop.xlane.xlu1 %800  ;;  %v806_v0 = vmul.f32 %v4390_v16, %v5277_v43 }
 0x4a9   :  { %4391 = vrcp.f32 %v801_v18  ;;  %4030 = vmatmul.msk.f32.gmra.mxu0 %vm514_vm7, %v939_v3 }
 0x4aa   :  { %4021 = vmatmul.msk.f32.gmra.mxu2 %vm514_vm7, %v806_v0 }
 0x4af   :  { %v4392_v42 = vpop.eup %4391 }
 0x4b0   :  { %v1425_v38 = vpop.permute.xlu0 %1424  ;;  %v807_v53 = vmul.f32 %v4392_v42, %v5283_v61 }
 0x4b1   :  { %4063 = vmatmul.msk.f32.gmra.mxu3 %vm469_vm5, %v1425_v38 }
 0x4b2   :  { %4022 = vmatmul.msk.f32.gmra.mxu2 %vm514_vm7, %v807_v53 }
 0x4b9   :  { %4064 = vmatmul.msk.f32.gmra.mxu3 %vm469_vm5, %v1427_v19 }
 0x4c0   :  { %v1294_v57 = vpop.permute.xlu1 %1293 }
 0x4c1   :  { %4055 = vmatmul.msk.f32.gmra.mxu1 %vm469_vm5, %v1294_v57 }
 0x4d0   :  { %v5405_v55 = vpop.f32.mrf.mxu2 }
 0x4d8   :  { %v1090_v43 = vpop.xlane.xlu2 %1089  ;;  %v5412_v3 = vpop.f32.mrf.mxu2 }
 0x4d9   :  { %v1095_v21 = vsub.f32 %v5320_v48, %v1090_v43 }
 0x4db   :  { %v1099_v35 = vmul.f32 1.442695, %v1095_v21  ;;  %v1087_v19 = vpop.xlane.xlu0 %1086  ;;  %v1603_v21 = vld [vmem:[%s6859_s7 + $0x18] sm:$0xff] }
 0x4dc   :  { %v1094_v43 = vsub.f32 %v5323_v7, %v1087_v19 }
 0x4e0   :  { %v934_v20 = vpop.xlane.xlu2 %933 }
 0x4e1   :  { %4393 = vrcp.f32 %v934_v20  ;;  %v1097_v20 = vmul.f32 1.442695, %v1094_v43 }
 0x4e2   :  { %4395 = vpow2.f32 %v1099_v35  ;;  %v5415_v18 = vpop.f32.mrf.mxu2  ;;  %v1602_v35 = vld [vmem:[%s6859_s7 + $0x10] sm:$0xff] }
 0x4e7   :  { %v4394_v31 = vpop.eup %4393 }
 0x4e8   :  { %v940_v11 = vmul.f32 %v4394_v31, %v4384_v44  ;;  %v5401_v8 = vpop.eup %4395 }
 0x4e9   :  { %v1106_v15 = vsel %vm514_vm7, %v5401_v8, 0.0 }
 0x4ea   :  { %4031 = vmatmul.msk.f32.gmra.mxu0 %vm514_vm7, %v940_v11 }
 0x4eb   :  { %v1211_v44 = vpop.xlane.xlu1 %1210 }
 0x4ec   :  { %v1218_v51 = vsub.f32 %v5344_v63, %v1211_v44  ;;  %v710_v63 = vpop.f32.mrf.mxu0  ;;  %v843_v42 = vpop.f32.mrf.mxu2  ;;  %v1604_v44 = vld [vmem:[%s6859_s7 + $0x20] sm:$0xff] }
 0x4ee   :  { %v1221_v34 = vmul.f32 1.442695, %v1218_v51 }
 0x4f0   :  { %v1330_v9 = vpop.f32.mrf.mxu1  ;;  %4397 = vpow2.f32 %v1221_v34  ;;  %v1600_v34 = vld [vmem:[%s6859_s7] sm:$0xff] }
 0x4f1   :  { %v1339_v26 = vmul.f32 0.25, %v1330_v9  ;;  %4399 = vpow2.f32 %v1097_v20 }
 0x4f3   :  { %v5370_v61 = vadd.f32 %v1339_v26, %v5145_v50  ;;  %v1093_v31 = vpop.xlane.xlu1 %1092 }
 0x4f4   :  { %v713_v45 = vpop.f32.mrf.mxu0  ;;  %v1096_v11 = vsub.f32 %v5353_v5, %v1093_v31  ;;  %v5436_v5 = vpack.i.bf16 %v5299_v23, %v5294_v54  ;;  %v1605_v54 = vld [vmem:[%s6859_s7 + $0x28] sm:$0xff] }
 0x4f5   :  { %v1345_v28 = vsel %vm514_vm7, %v5370_v61, -inf }
 0x4f6   :  { %1346 = vmax.xlane.f32.xlu0 %v1345_v28  ;;  %v5403_v10 = vpop.eup %4397  ;;  %v1101_v26 = vmul.f32 1.442695, %v1096_v11 }
 0x4f7   :  { %v1227_v12 = vsel %vm514_vm7, %v5403_v10, 0.0  ;;  %v5425_v9 = vpop.eup %4399 }
 0x4f8   :  { %v1333_v29 = vpop.f32.mrf.mxu1  ;;  %v1103_v28 = vsel %vm514_vm7, %v5425_v9, 0.0  ;;  %4401 = vpow2.f32 %v1101_v26 }
 0x4f9   :  { %v1340_v13 = vmul.f32 0.25, %v1333_v29  ;;  %v1463_v32 = vpop.f32.mrf.mxu3  ;;  %v1214_v29 = vpop.xlane.xlu0 %1213 }
 0x4fa   :  { %v1472_v24 = vmul.f32 0.25, %v1463_v32 }
 0x4fb   :  { %v5375_v27 = vadd.f32 %v1340_v13, %v5145_v50  ;;  %v1219_v13 = vsub.f32 %v5334_v17, %v1214_v29 }
 0x4fc   :  { %v5378_v25 = vadd.f32 %v1472_v24, %v5145_v50  ;;  %v716_v16 = vpop.f32.mrf.mxu0 }
 0x4fd   :  { %v1348_v36 = vsel %vm514_vm7, %v5375_v27, -inf  ;;  %v1223_v24 = vmul.f32 1.442695, %v1219_v13 }
 0x4fe   :  { %1349 = vmax.xlane.f32.xlu2 %v1348_v36  ;;  %v1478_v37 = vsel %vm514_vm7, %v5378_v25, -inf  ;;  %v5430_v32 = vpop.eup %4401 }
 0x4ff   :  { %1479 = vmax.xlane.f32.xlu1 %v1478_v37  ;;  %v1109_v7 = vsel %vm514_vm7, %v5430_v32, 0.0  ;;  %4403 = vpow2.f32 %v1223_v24  ;;  %v1607_v37 = vld [vmem:[%s6859_s7 + $0x38] sm:$0xff] }
 0x500   :  { %1638 = vmatpush.msrb.mxu1 %v1607_v37 }
 0x505   :  { %v5438_v36 = vpop.eup %4403 }
 0x506   :  { %v1230_v17 = vsel %vm514_vm7, %v5438_v36, 0.0 }
 0x51e   :  { %v976_v0 = vpop.f32.mrf.mxu0 }
 0x526   :  { %v979_v38 = vpop.f32.mrf.mxu0 }
 0x52d   :  { %v846_v53 = vpop.f32.mrf.mxu2 }
 0x534   :  { %v1466_v39 = vpop.f32.mrf.mxu3 }
 0x535   :  { %v1473_v41 = vmul.f32 0.25, %v1466_v39  ;;  %v849_v57 = vpop.f32.mrf.mxu2  ;;  %v1606_v39 = vld [vmem:[%s6859_s7 + $0x30] sm:$0xff] }
 0x536   :  { %1639 = vmatpush.msrb.mxu1 %v1606_v39 }
 0x537   :  { %v5385_v47 = vadd.f32 %v1473_v41, %v5145_v50 }
 0x538   :  { %1640 = vmatpush.msrb.mxu1 %v1605_v54 }
 0x539   :  { %v1481_v22 = vsel %vm514_vm7, %v5385_v47, -inf }
 0x53a   :  { %1482 = vmax.xlane.f32.xlu0 %v1481_v22  ;;  %v1217_v22 = vpop.xlane.xlu2 %1216  ;;  %1641 = vmatpush.msrb.mxu1 %v1604_v44 }
 0x53c   :  { %v1469_v49 = vpop.f32.mrf.mxu3  ;;  %1642 = vmatpush.msrb.mxu1 %v1603_v21 }
 0x53d   :  { %v1474_v59 = vmul.f32 0.25, %v1469_v49  ;;  %v1601_v49 = vld [vmem:[%s6859_s7 + $0x8] sm:$0xff] }
 0x53e   :  { %v1336_v60 = vpop.f32.mrf.mxu1  ;;  %1643 = vmatpush.msrb.mxu1 %v1602_v35 }
 0x53f   :  { %v1341_v33 = vmul.f32 0.25, %v1336_v60  ;;  %v5392_v1 = vadd.f32 %v1474_v59, %v5145_v50 }
 0x540   :  { %1644 = vmatpush.msrb.mxu1 %v1601_v49 }
 0x541   :  { %v1484_v4 = vsel %vm514_vm7, %v5392_v1, -inf  ;;  %v5397_v48 = vadd.f32 %v1341_v33, %v5145_v50 }
 0x542   :  { %1485 = vmax.xlane.f32.xlu2 %v1484_v4  ;;  %1645 = vmatpush.msrb.mxu1 %v1600_v34  ;;  %v1220_v4 = vsub.f32 %v5340_v56, %v1217_v22 }
 0x543   :  { %v1351_v6 = vsel %vm514_vm7, %v5397_v48, -inf }
 0x544   :  { %1352 = vmax.xlane.f32.xlu1 %v1351_v6 }
 0x54a   :  { %1107 = vadd.xlane.f32.xlu2 %v1106_v15 }
 0x54c   :  { %1228 = vadd.xlane.f32.xlu1 %v1227_v12  ;;  %v1225_v12 = vmul.f32 1.442695, %v1220_v4 }
 0x54e   :  { %988 = vrot.lane.b32.xlu0 %v710_v63, %s4616_s19 }
 0x556   :  { %990 = vrot.lane.b32.xlu0 %v713_v45, %s4616_s19 }
 0x55e   :  { %992 = vrot.lane.b32.xlu0 %v716_v16, %s4616_s19 }
 0x562   :  { %1012 = vrot.lane.b32.xlu2 %v976_v0, %s4612_s30 }
 0x565   :  { %1000 = vrot.lane.b32.xlu1 %v843_v42, %s4613_s18 }
 0x567   :  { %v982_v41 = vpop.f32.mrf.mxu0 }
 0x569   :  { %v1347_v23 = vpop.xlane.xlu0 %1346 }
 0x56a   :  { %1014 = vrot.lane.b32.xlu2 %v979_v38, %s4612_s30  ;;  %v1354_v51 = vsub.f32 %v5370_v61, %v1347_v23 }
 0x56c   :  { %v1357_v59 = vmul.f32 1.442695, %v1354_v51 }
 0x56d   :  { %1002 = vrot.lane.b32.xlu1 %v846_v53, %s4613_s18 }
 0x56e   :  { %4405 = vpow2.f32 %v1357_v59 }
 0x56f   :  { %4407 = vpow2.f32 %v1225_v12 }
 0x571   :  { %v1350_v61 = vpop.xlane.xlu2 %1349 }
 0x572   :  { %v1480_v60 = vpop.xlane.xlu1 %1479  ;;  %v1355_v23 = vsub.f32 %v5375_v27, %v1350_v61 }
 0x573   :  { %v1487_v38 = vsub.f32 %v5378_v25, %v1480_v60 }
 0x574   :  { %v5472_v33 = vpop.eup %4405  ;;  %v1359_v22 = vmul.f32 1.442695, %v1355_v23 }
 0x575   :  { %1004 = vrot.lane.b32.xlu1 %v849_v57, %s4613_s18  ;;  %v1363_v15 = vsel %vm514_vm7, %v5472_v33, 0.0  ;;  %v5483_v42 = vpop.eup %4407  ;;  %v1490_v19 = vmul.f32 1.442695, %v1487_v38 }
 0x576   :  { %v1233_v56 = vsel %vm514_vm7, %v5483_v42, 0.0 }
 0x577   :  { %4409 = vpow2.f32 %v1490_v19 }
 0x57d   :  { %v5495_v26 = vpop.eup %4409 }
 0x57e   :  { %v1496_v24 = vsel %vm514_vm7, %v5495_v26, 0.0 }
 0x588   :  { %1104 = vadd.xlane.f32.xlu0 %v1103_v28 }
 0x593   :  { %1110 = vadd.xlane.f32.xlu2 %v1109_v7 }
 0x59c   :  { %4268 = vrot.lane.b32.xlu0 %v5436_v5, %s4615_s26 }
 0x59f   :  { %1231 = vadd.xlane.f32.xlu1 %v1230_v17 }
 0x5ab   :  { %1016 = vrot.lane.b32.xlu2 %v982_v41, %s4612_s30 }
 0x5ad   :  { %v1483_v45 = vpop.xlane.xlu0 %1482 }
 0x5ae   :  { %v1488_v17 = vsub.f32 %v5385_v47, %v1483_v45 }
 0x5b0   :  { %v1492_v39 = vmul.f32 1.442695, %v1488_v17 }
 0x5b2   :  { %4411 = vpow2.f32 %v1492_v39 }
 0x5b5   :  { %v5475_v63 = vpop.xlane.xlu2 %1485 }
 0x5b7   :  { %v5477_v6 = vpop.xlane.xlu1 %1352 }
 0x5b8   :  { %1245 = vrot.lane.b32.xlu1 %v5306_v62, %s4615_s26  ;;  %v5509_v41 = vpop.eup %4411 }
 0x5b9   :  { %v1499_v21 = vsel %vm514_vm7, %v5509_v41, 0.0 }
 0x5bd   :  { %v1108_v16 = vpop.xlane.xlu2 %1107 }
 0x5bf   :  { %v5481_v0 = vpop.xlane.xlu1 %1228 }
 0x5c0   :  { %v989_v53 = vpop.permute.xlu0 %988 }
 0x5c1   :  { %v1021_v43 = vsel %vm469_vm5, %v5405_v55, %v989_v53 }
 0x5c5   :  { %v1013_v57 = vpop.permute.xlu2 %1012 }
 0x5c6   :  { %1364 = vadd.xlane.f32.xlu0 %v1363_v15 }
 0x5c8   :  { %v991_v25 = vpop.permute.xlu0 %990 }
 0x5c9   :  { %v1022_v28 = vsel %vm469_vm5, %v5412_v3, %v991_v25 }
 0x5cd   :  { %v1015_v13 = vpop.permute.xlu2 %1014 }
 0x5d0   :  { %v993_v37 = vpop.permute.xlu0 %992 }
 0x5d1   :  { %v1023_v27 = vsel %vm469_vm5, %v5415_v18, %v993_v37 }
 0x5d4   :  { %1234 = vadd.xlane.f32.xlu2 %v1233_v56 }
 0x5d7   :  { %v1001_v20 = vpop.permute.xlu1 %1000 }
 0x5d8   :  { %v1025_v31 = vsel %vm1024_vm8, %v1021_v43, %v1001_v20 }
 0x5d9   :  { %v1029_v11 = vsel %vm1028_vm9, %v1025_v31, %v1013_v57 }
 0x5da   :  { %1378 = vrot.lane.b32.xlu0 %v5306_v62, %s4617_s0  ;;  %4068 = vmatmul.msk.f32.vlgmr.msrb.gmra.mxu1 %vm98_vm0, %v1029_v11 }
 0x5df   :  { %v1003_v29 = vpop.permute.xlu1 %1002 }
 0x5e0   :  { %v1026_v55 = vsel %vm1024_vm8, %v1022_v28, %v1003_v29 }
 0x5e1   :  { %v1030_v7 = vsel %vm1028_vm9, %v1026_v55, %v1015_v13 }
 0x5e2   :  { %1497 = vadd.xlane.f32.xlu1 %v1496_v24  ;;  %4069 = vmatmul.msk.f32.gmra.mxu1 %vm98_vm0, %v1030_v7 }
 0x5e7   :  { %v1005_v35 = vpop.permute.xlu1 %1004 }
 0x5ec   :  { %4273 = vrot.lane.b32.xlu2 %v5436_v5, %s4617_s0 }
 0x5fb   :  { %4278 = vrot.lane.b32.xlu1 %v5436_v5, %s6872_s21  ;;  %v1105_v3 = vpop.xlane.xlu0 %1104  ;;  %v1356_v5 = vsub.f32 %v5397_v48, %v5477_v6 }
 0x5fc   :  { %4413 = vrcp.f32 %v1105_v3 }
 0x5fd   :  { %4415 = vrcp.f32 %v1108_v16  ;;  %v1361_v61 = vmul.f32 1.442695, %v1356_v5 }
 0x602   :  { %v4414_v54 = vpop.eup %4413 }
 0x603   :  { %v1115_v44 = vmul.f32 %v4414_v54, %v5425_v9  ;;  %v4416_v51 = vpop.eup %4415  ;;  %v1027_v9 = vsel %vm1024_vm8, %v1023_v27, %v1005_v35 }
 0x604   :  { %1500 = vadd.xlane.f32.xlu0 %v1499_v21  ;;  %v1116_v49 = vmul.f32 %v4416_v51, %v5401_v8  ;;  %v1489_v8 = vsub.f32 %v5392_v1, %v5475_v63 }
 0x605   :  { %4038 = vmatmul.msk.f32.vlgmr.msra.gmra.mxu2 %vm514_vm7, %v1115_v44 }
 0x606   :  { %v1111_v47 = vpop.xlane.xlu2 %1110  ;;  %v1494_v45 = vmul.f32 1.442695, %v1489_v8 }
 0x607   :  { %4417 = vrcp.f32 %v1111_v47 }
 0x608   :  { %4419 = vpow2.f32 %v1359_v22 }
 0x609   :  { %4421 = vpow2.f32 %v1361_v61 }
 0x60a   :  { %4423 = vpow2.f32 %v1494_v45 }
 0x60b   :  { %4425 = vrcp.f32 %v5481_v0 }
 0x60d   :  { %4039 = vmatmul.msk.f32.gmra.mxu2 %vm514_vm7, %v1116_v49  ;;  %v4418_v15 = vpop.eup %4417 }
 0x60e   :  { %v4269_v59 = vpop.permute.xlu0 %4268  ;;  %v1017_v34 = vpop.permute.xlu2 %1016  ;;  %v1117_v18 = vmul.f32 %v4418_v15, %v5430_v32 }
 0x60f   :  { %v4270_v60 = vunpack.i.l.bf16 %v4269_v59  ;;  %v1031_v4 = vsel %vm1028_vm9, %v1027_v9, %v1017_v34  ;;  %v5525_v48 = vpop.eup %4419  ;;  %v4271_v6 = vunpack.i.h.bf16 %v4269_v59 }
 0x610   :  { %4070 = vmatmul.msk.f32.gmra.mxu1 %vm98_vm0, %v1031_v4  ;;  %v1366_v12 = vsel %vm514_vm7, %v5525_v48, 0.0  ;;  %v5533_v16 = vpop.eup %4421 }
 0x611   :  { %1276 = vmatpush.msrb.mxu0 %v4270_v60  ;;  %v1369_v38 = vsel %vm514_vm7, %v5533_v16, 0.0  ;;  %v5537_v53 = vpop.eup %4423 }
 0x612   :  { %v1232_v1 = vpop.xlane.xlu1 %1231  ;;  %v1502_v32 = vsel %vm514_vm7, %v5537_v53, 0.0  ;;  %v4426_v63 = vpop.eup %4425 }
 0x613   :  { %1277 = vmatpush.msrb.mxu0 %v4271_v6  ;;  %4427 = vrcp.f32 %v1232_v1  ;;  %v1239_v56 = vmul.f32 %v4426_v63, %v5403_v10 }
 0x615   :  { %4040 = vmatmul.msk.f32.gmra.mxu2 %vm514_vm7, %v1117_v18  ;;  %1367 = vadd.xlane.f32.xlu2 %v1366_v12 }
 0x619   :  { %v4428_v57 = vpop.eup %4427 }
 0x61a   :  { %v1240_v43 = vmul.f32 %v4428_v57, %v5438_v36  ;;  %v5553_v36 = vld [vmem:[%s6860_s8] ss:$0 sm:$0xff] }
 0x61d   :  { %1370 = vadd.xlane.f32.xlu2 %v1369_v38 }
 0x625   :  { %1503 = vadd.xlane.f32.xlu1 %v1502_v32 }
 0x62a   :  { %v1246_v19 = vpop.permute.xlu1 %1245 }
 0x62b   :  { %1278 = vmatpush.msrb.mxu0 %v1246_v19 }
 0x62c   :  { %4047 = vmatmul.msk.f32.vlgmr.msrb.gmra.mxu0 %vm514_vm7, %v1239_v56 }
 0x634   :  { %4048 = vmatmul.msk.f32.gmra.mxu0 %vm514_vm7, %v1240_v43 }
 0x635   :  { %1511 = vrot.lane.b32.xlu2 %v5306_v62, %s6872_s21 }
 0x639   :  { %v1365_v20 = vpop.xlane.xlu0 %1364 }
 0x647   :  { %v1235_v0 = vpop.xlane.xlu2 %1234 }
 0x648   :  { %4429 = vrcp.f32 %v1235_v0 }
 0x649   :  { %4431 = vrcp.f32 %v1365_v20 }
 0x64c   :  { %v1379_v13 = vpop.permute.xlu0 %1378 }
 0x64e   :  { %v4430_v31 = vpop.eup %4429 }
 0x64f   :  { %v4274_v11 = vpop.permute.xlu2 %4273  ;;  %v1241_v10 = vmul.f32 %v4430_v31, %v5483_v42  ;;  %v4432_v28 = vpop.eup %4431 }
 0x650   :  { %v4275_v25 = vunpack.i.l.bf16 %v4274_v11  ;;  %v4276_v29 = vunpack.i.h.bf16 %v4274_v11  ;;  %v1375_v62 = vmul.f32 %v4432_v28, %v5472_v33 }
 0x651   :  { %4049 = vmatmul.msk.f32.gmra.mxu0 %vm514_vm7, %v1241_v10 }
 0x652   :  { %1409 = vmatpush.msrb.mxu2 %v4275_v25 }
 0x654   :  { %1410 = vmatpush.msrb.mxu2 %v4276_v29 }
 0x655   :  { %v1498_v3 = vpop.xlane.xlu1 %1497 }
 0x656   :  { %1411 = vmatpush.msrb.mxu2 %v1379_v13 }
 0x657   :  { %4056 = vmatmul.msk.f32.vlgmr.msrb.gmra.mxu2 %vm514_vm7, %v1375_v62  ;;  %v1647_v55 = vpop.f32.mrf.mxu1 }
 0x658   :  { %v1648_v42 = vadd.f32 %v5553_v36, %v1647_v55  ;;  %v1830_v55 = vld [vmem:[%s6864_s11 + $0x38] sm:$0xff] }
 0x659   :  { %1861 = vmatpush.msra.mxu2 %v1830_v55 }
 0x65a   :  { %v5559_v24 = vadd.f32 %v1648_v42, %v4827_v40  ;;  %v1829_v42 = vld [vmem:[%s6864_s11 + $0x30] sm:$0xff] }
 0x65b   :  { %1862 = vmatpush.msra.mxu2 %v1829_v42 }
 0x65c   :  { %v1673_v7 = vsel %vm98_vm0, %v5559_v24, 0.0 }
 0x65e   :  { %1674 = vadd.xlane.f32.xlu2 %v1673_v7  ;;  %v1828_v7 = vld [vmem:[%s6864_s11 + $0x28] sm:$0xff] }
 0x65f   :  { %v1650_v17 = vpop.f32.mrf.mxu1  ;;  %1863 = vmatpush.msra.mxu2 %v1828_v7 }
 0x660   :  { %v1651_v37 = vadd.f32 %v5553_v36, %v1650_v17  ;;  %v1827_v17 = vld [vmem:[%s6864_s11 + $0x20] sm:$0xff] }
 0x661   :  { %1864 = vmatpush.msra.mxu2 %v1827_v17 }
 0x662   :  { %v5565_v39 = vadd.f32 %v1651_v37, %v4834_v46  ;;  %v1826_v37 = vld [vmem:[%s6864_s11 + $0x18] sm:$0xff] }
 0x663   :  { %1865 = vmatpush.msra.mxu2 %v1826_v37 }
 0x664   :  { %v1676_v33 = vsel %vm98_vm0, %v5565_v39, 0.0 }
 0x665   :  { %1677 = vadd.xlane.f32.xlu0 %v1676_v33  ;;  %v1825_v33 = vld [vmem:[%s6864_s11 + $0x10] sm:$0xff] }
 0x666   :  { %1866 = vmatpush.msra.mxu2 %v1825_v33 }
 0x66d   :  { %v4279_v54 = vpop.permute.xlu1 %4278 }
 0x66e   :  { %v4280_v23 = vunpack.i.l.bf16 %v4279_v54  ;;  %v4281_v44 = vunpack.i.h.bf16 %v4279_v54  ;;  %v1823_v54 = vld [vmem:[%s6864_s11] sm:$0xff] }
 0x670   :  { %1542 = vmatpush.msra.mxu0 %v4280_v23 }
 0x672   :  { %1543 = vmatpush.msra.mxu0 %v4281_v44 }
 0x677   :  { %v1501_v49 = vpop.xlane.xlu0 %1500 }
 0x688   :  { %v1368_v40 = vpop.xlane.xlu2 %1367  ;;  %v5599_v1 = vpop.f32.mrf.mxu2 }
 0x689   :  { %4433 = vrcp.f32 %v1368_v40 }
 0x68a   :  { %4435 = vrcp.f32 %v1498_v3  ;;  %v1824_v3 = vld [vmem:[%s6864_s11 + $0x8] sm:$0xff] }
 0x68b   :  { %1867 = vmatpush.msra.mxu2 %v1824_v3 }
 0x68d   :  { %v1653_v21 = vpop.f32.mrf.mxu1  ;;  %1868 = vmatpush.msra.mxu2 %v1823_v54 }
 0x68e   :  { %v1654_v47 = vadd.f32 %v5553_v36, %v1653_v21 }
 0x68f   :  { %v4434_v22 = vpop.eup %4433 }
 0x690   :  { %v5571_v46 = vadd.f32 %v1654_v47, %v4841_v52  ;;  %v1371_v51 = vpop.xlane.xlu2 %1370  ;;  %v1376_v5 = vmul.f32 %v4434_v22, %v5525_v48  ;;  %v4436_v27 = vpop.eup %4435 }
 0x691   :  { %4437 = vrcp.f32 %v1371_v51  ;;  %v1508_v34 = vmul.f32 %v4436_v27, %v5495_v26  ;;  %v5602_v63 = vpop.f32.mrf.mxu2 }
 0x692   :  { %4057 = vmatmul.msk.f32.gmra.mxu2 %vm514_vm7, %v1376_v5  ;;  %v1679_v35 = vsel %vm98_vm0, %v5571_v46, 0.0  ;;  %4439 = vrcp.f32 %v1501_v49 }
 0x693   :  { %1680 = vadd.xlane.f32.xlu0 %v1679_v35 }
 0x697   :  { %v4438_v9 = vpop.eup %4437 }
 0x698   :  { %v1377_v59 = vmul.f32 %v4438_v9, %v5533_v16  ;;  %v1512_v52 = vpop.permute.xlu2 %1511  ;;  %v1504_v61 = vpop.xlane.xlu1 %1503 }
 0x699   :  { %1544 = vmatpush.msra.mxu0 %v1512_v52  ;;  %v4440_v60 = vpop.eup %4439  ;;  %4441 = vrcp.f32 %v1504_v61  ;;  %v5604_v56 = vpop.f32.mrf.mxu2  ;;  %v5650_v52 = vld [vmem:[%s6861_s9] ss:$0 sm:$0xff] }
 0x69a   :  { %4058 = vmatmul.msk.f32.gmra.mxu2 %vm514_vm7, %v1377_v59  ;;  %4065 = vmatmul.msk.f32.vlgmr.msra.gmra.mxu0 %vm514_vm7, %v1508_v34  ;;  %v1509_v4 = vmul.f32 %v4440_v60, %v5509_v41 }
 0x69f   :  { %v4442_v15 = vpop.eup %4441 }
 0x6a0   :  { %v1510_v48 = vmul.f32 %v4442_v15, %v5537_v53 }
 0x6a2   :  { %4066 = vmatmul.msk.f32.gmra.mxu0 %vm514_vm7, %v1509_v4 }
 0x6a9   :  { %v1280_v32 = vpop.f32.mrf.mxu0 }
 0x6aa   :  { %4067 = vmatmul.msk.f32.gmra.mxu0 %vm514_vm7, %v1510_v48  ;;  %v5656_v48 = vld [vmem:[%s6862_s10] ss:$0 sm:$0xff] }
 0x6b1   :  { %v1283_v43 = vpop.f32.mrf.mxu0 }
 0x6ce   :  { %v1286_v10 = vpop.f32.mrf.mxu0 }
 0x6d1   :  { %v1675_v6 = vpop.xlane.xlu2 %1674 }
 0x6d2   :  { %v1691_v26 = vmul.f32 %v1675_v6, %v4852_v2 }
 0x6d4   :  { %v5587_v8 = vsub.f32 %v5559_v24, %v1691_v26 }
 0x6d6   :  { %v1703_v18 = vmul.f32 %v5587_v8, %v5587_v8 }
 0x6d8   :  { %v1678_v12 = vpop.xlane.xlu0 %1677  ;;  %v1709_v45 = vsel %vm98_vm0, %v1703_v18, 0.0 }
 0x6d9   :  { %v1692_v41 = vmul.f32 %v1678_v12, %v4852_v2  ;;  %1710 = vadd.xlane.f32.xlu0 %v1709_v45 }
 0x6da   :  { %v1413_v31 = vpop.f32.mrf.mxu2 }
 0x6db   :  { %v5594_v16 = vsub.f32 %v5565_v39, %v1692_v41 }
 0x6dd   :  { %v1704_v38 = vmul.f32 %v5594_v16, %v5594_v16 }
 0x6df   :  { %v1712_v53 = vsel %vm98_vm0, %v1704_v38, 0.0 }
 0x6e0   :  { %1713 = vadd.xlane.f32.xlu1 %v1712_v53 }
 0x6f9   :  { %1558 = vrot.lane.b32.xlu1 %v1280_v32, %s4616_s19 }
 0x706   :  { %v1681_v19 = vpop.xlane.xlu0 %1680 }
 0x707   :  { %v1693_v57 = vmul.f32 %v1681_v19, %v4852_v2 }
 0x709   :  { %v5608_v0 = vsub.f32 %v5571_v46, %v1693_v57  ;;  %v1957_v57 = vld [vmem:[%s6865_s13 + $0x78] sm:$0xff] }
 0x70a   :  { %1962 = vmatpush.msrb.mxu3 %v1957_v57 }
 0x70b   :  { %v1705_v20 = vmul.f32 %v5608_v0, %v5608_v0 }
 0x70d   :  { %v1715_v11 = vsel %vm98_vm0, %v1705_v20, 0.0 }
 0x70e   :  { %1716 = vadd.xlane.f32.xlu0 %v1715_v11 }
 0x715   :  { %v1416_v25 = vpop.f32.mrf.mxu2 }
 0x716   :  { %1572 = vrot.lane.b32.xlu1 %v1416_v25, %s4613_s18 }
 0x717   :  { %v1546_v28 = vpop.f32.mrf.mxu0 }
 0x718   :  { %1582 = vrot.lane.b32.xlu2 %v1546_v28, %s4612_s30 }
 0x71d   :  { %v1419_v29 = vpop.f32.mrf.mxu2 }
 0x71e   :  { %1574 = vrot.lane.b32.xlu1 %v1419_v29, %s4613_s18 }
 0x71f   :  { %v1549_v62 = vpop.f32.mrf.mxu0 }
 0x720   :  { %1584 = vrot.lane.b32.xlu2 %v1549_v62, %s4612_s30 }
 0x722   :  { %1570 = vrot.lane.b32.xlu0 %v1413_v31, %s4613_s18 }
 0x727   :  { %v1552_v13 = vpop.f32.mrf.mxu0 }
 0x728   :  { %1586 = vrot.lane.b32.xlu2 %v1552_v13, %s4612_s30 }
 0x72a   :  { %1560 = vrot.lane.b32.xlu0 %v1283_v43, %s4616_s19  ;;  %v1956_v43 = vld [vmem:[%s6865_s13 + $0x70] sm:$0xff] }
 0x72b   :  { %1963 = vmatpush.msrb.mxu3 %v1956_v43 }
 0x732   :  { %1562 = vrot.lane.b32.xlu0 %v1286_v10, %s4616_s19 }
 0x74c   :  { %v1711_v23 = vpop.xlane.xlu0 %1710 }
 0x74d   :  { %v1727_v44 = vmul.f32 %v1711_v23, %v4852_v2 }
 0x74f   :  { %v1733_v40 = vadd.f32 1e-12, %v1727_v44 }
 0x751   :  { %4443 = vrsqrt.f32 %v1733_v40  ;;  %vm1745_vm11 = vweird.f32 %v1733_v40 }
 0x753   :  { %v1714_v21 = vpop.xlane.xlu1 %1713 }
 0x754   :  { %v1728_v47 = vmul.f32 %v1714_v21, %v4852_v2 }
 0x756   :  { %v1734_v22 = vadd.f32 1e-12, %v1728_v47 }
 0x757   :  { %v4444_v51 = vpop.eup %4443 }
 0x758   :  { %v1740_v5 = vmul.f32 %v4444_v51, %v1733_v40  ;;  %4445 = vrsqrt.f32 %v1734_v22  ;;  %vm1746_vm10 = vweird.f32 %v4444_v51  ;;  %vm1755_vm14 = vweird.f32 %v1734_v22 }
 0x759   :  { %vm1747_vm12 = vmor %vm1745_vm11, %vm1746_vm10 }
 0x75a   :  { %v1741_v35 = vmul.f32 %v4444_v51, %v1740_v5 }
 0x75c   :  { %v1742_v49 = vmul.f32 0.5, %v1741_v35 }
 0x75e   :  { %v4446_v27 = vpop.eup %4445  ;;  %v1743_v9 = vsub.f32 1.5, %v1742_v49  ;;  %v1953_v49 = vld [vmem:[%s6865_s13 + $0x58] sm:$0xff] }
 0x75f   :  { %v1750_v59 = vmul.f32 %v4446_v27, %v1734_v22  ;;  %vm1756_vm13 = vweird.f32 %v4446_v27 }
 0x760   :  { %v1744_v34 = vmul.f32 %v4444_v51, %v1743_v9  ;;  %vm1757_vm15 = vmor %vm1755_vm14, %vm1756_vm13  ;;  %v1950_v9 = vld [vmem:[%s6865_s13 + $0x40] sm:$0xff] }
 0x761   :  { %v1751_v61 = vmul.f32 %v4446_v27, %v1750_v59  ;;  %v1949_v59 = vld [vmem:[%s6865_s13 + $0x38] sm:$0xff] }
 0x762   :  { %v1748_v60 = vsel %vm1747_vm12, %v4444_v51, %v1744_v34  ;;  %v1948_v34 = vld [vmem:[%s6865_s13 + $0x30] sm:$0xff] }
 0x763   :  { %v1799_v4 = vmul.f32 %v1748_v60, %v5587_v8  ;;  %v1752_v15 = vmul.f32 0.5, %v1751_v61  ;;  %v1947_v61 = vld [vmem:[%s6865_s13 + $0x28] sm:$0xff]  ;;  %v1946_v60 = vld [vmem:[%s6865_s13 + $0x20] sm:$0xff] }
 0x765   :  { %v1808_v6 = vmul.f32 %v5650_v52, %v1799_v4  ;;  %v1753_v26 = vsub.f32 1.5, %v1752_v15  ;;  %v1945_v4 = vld [vmem:[%s6865_s13 + $0x18] sm:$0xff]  ;;  %v1944_v15 = vld [vmem:[%s6865_s13 + $0x10] sm:$0xff] }
 0x767   :  { %v1754_v18 = vmul.f32 %v4446_v27, %v1753_v26  ;;  %v1817_v12 = vadd.f32 %v5656_v48, %v1808_v6  ;;  %v1943_v6 = vld [vmem:[%s6865_s13 + $0x8] sm:$0xff]  ;;  %v1942_v26 = vld [vmem:[%s6865_s13] sm:$0xff] }
 0x769   :  { %4074 = vmatmul.msk.f32.vlgmr.msra.gmra.mxu2 %vm98_vm0, %v1817_v12  ;;  %v1758_v45 = vsel %vm1757_vm15, %v4446_v27, %v1754_v18  ;;  %v1951_v27 = vld [vmem:[%s6865_s13 + $0x48] sm:$0xff]  ;;  %v5736_v18 = vld [vmem:[%s6863_s12] ss:$0 sm:$0xff] }
 0x76a   :  { %v1800_v8 = vmul.f32 %v1758_v45, %v5594_v16  ;;  %v1955_v16 = vld [vmem:[%s6865_s13 + $0x68] sm:$0xff] }
 0x76b   :  { %1964 = vmatpush.msrb.mxu3 %v1955_v16  ;;  %v1559_v10 = vpop.permute.xlu1 %1558 }
 0x76c   :  { %v1809_v41 = vmul.f32 %v5650_v52, %v1800_v8  ;;  %v1591_v62 = vsel %vm469_vm5, %v5599_v1, %v1559_v10 }
 0x76e   :  { %v1818_v38 = vadd.f32 %v5656_v48, %v1809_v41 }
 0x771   :  { %4075 = vmatmul.msk.f32.gmra.mxu2 %vm98_vm0, %v1818_v38 }
 0x772   :  { %v1583_v28 = vpop.permute.xlu2 %1582 }
 0x77a   :  { %v1585_v54 = vpop.permute.xlu2 %1584 }
 0x781   :  { %v1717_v53 = vpop.xlane.xlu0 %1716 }
 0x782   :  { %v1729_v32 = vmul.f32 %v1717_v53, %v4852_v2  ;;  %v1587_v51 = vpop.permute.xlu2 %1586 }
 0x784   :  { %v1735_v19 = vadd.f32 1e-12, %v1729_v32 }
 0x786   :  { %4447 = vrsqrt.f32 %v1735_v19  ;;  %vm1765_vm2 = vweird.f32 %v1735_v19 }
 0x788   :  { %v1573_v3 = vpop.permute.xlu1 %1572 }
 0x78c   :  { %v4448_v20 = vpop.eup %4447 }
 0x78d   :  { %v1760_v31 = vmul.f32 %v4448_v20, %v1735_v19  ;;  %vm1766_vm1 = vweird.f32 %v4448_v20 }
 0x78e   :  { %vm1767_vm3 = vmor %vm1765_vm2, %vm1766_vm1 }
 0x78f   :  { %v1761_v11 = vmul.f32 %v4448_v20, %v1760_v31 }
 0x791   :  { %v1762_v25 = vmul.f32 0.5, %v1761_v11 }
 0x793   :  { %v1763_v29 = vsub.f32 1.5, %v1762_v25 }
 0x794   :  { %v1571_v13 = vpop.permute.xlu0 %1570 }
 0x795   :  { %v1764_v55 = vmul.f32 %v4448_v20, %v1763_v29  ;;  %v1594_v42 = vsel %vm1024_vm8, %v1591_v62, %v1571_v13 }
 0x796   :  { %v1597_v7 = vsel %vm1028_vm9, %v1594_v42, %v1583_v28 }
 0x797   :  { %v1768_v17 = vsel %vm1767_vm3, %v4448_v20, %v1764_v55  ;;  %4071 = vmatmul.msk.f32.gmra.mxu1 %vm98_vm0, %v1597_v7 }
 0x798   :  { %v1801_v37 = vmul.f32 %v1768_v17, %v5608_v0  ;;  %v1575_v0 = vpop.permute.xlu1 %1574 }
 0x79a   :  { %v1810_v33 = vmul.f32 %v5650_v52, %v1801_v37 }
 0x79c   :  { %v1561_v23 = vpop.permute.xlu0 %1560  ;;  %v1819_v1 = vadd.f32 %v5656_v48, %v1810_v33 }
 0x79d   :  { %v1592_v44 = vsel %vm469_vm5, %v5602_v63, %v1561_v23  ;;  %v1954_v63 = vld [vmem:[%s6865_s13 + $0x60] sm:$0xff] }
 0x79e   :  { %4076 = vmatmul.msk.f32.gmra.mxu2 %vm98_vm0, %v1819_v1  ;;  %v1595_v40 = vsel %vm1024_vm8, %v1592_v44, %v1573_v3  ;;  %1965 = vmatpush.msrb.mxu3 %v1954_v63 }
 0x79f   :  { %v1598_v21 = vsel %vm1028_vm9, %v1595_v40, %v1585_v54 }
 0x7a0   :  { %4072 = vmatmul.msk.f32.gmra.mxu1 %vm98_vm0, %v1598_v21  ;;  %1966 = vmatpush.msrb.mxu3 %v1953_v49 }
 0x7a4   :  { %v1563_v47 = vpop.permute.xlu0 %1562 }
 0x7a5   :  { %v1593_v22 = vsel %vm469_vm5, %v5604_v56, %v1563_v47  ;;  %v1952_v56 = vld [vmem:[%s6865_s13 + $0x50] sm:$0xff] }
 0x7a6   :  { %v1596_v5 = vsel %vm1024_vm8, %v1593_v22, %v1575_v0  ;;  %1967 = vmatpush.msrb.mxu3 %v1952_v56 }
 0x7a7   :  { %v1599_v35 = vsel %vm1028_vm9, %v1596_v5, %v1587_v51 }
 0x7a8   :  { %4073 = vmatmul.msk.f32.gmra.mxu1 %vm98_vm0, %v1599_v35  ;;  %1968 = vmatpush.msrb.mxu3 %v1951_v27 }
 0x7aa   :  { %1969 = vmatpush.msrb.mxu3 %v1950_v9 }
 0x7ac   :  { %1970 = vmatpush.msrb.mxu3 %v1949_v59 }
 0x7ae   :  { %1971 = vmatpush.msrb.mxu3 %v1948_v34 }
 0x7b0   :  { %1972 = vmatpush.msrb.mxu3 %v1947_v61 }
 0x7b2   :  { %1973 = vmatpush.msrb.mxu3 %v1946_v60 }
 0x7b4   :  { %1974 = vmatpush.msrb.mxu3 %v1945_v4 }
 0x7b6   :  { %1975 = vmatpush.msrb.mxu3 %v1944_v15 }
 0x7b8   :  { %1976 = vmatpush.msrb.mxu3 %v1943_v6 }
 0x7ba   :  { %1977 = vmatpush.msrb.mxu3 %v1942_v26 }
 0x7ec   :  { %v1870_v12 = vpop.f32.mrf.mxu2 }
 0x7ed   :  { %v1871_v45 = vadd.f32 %v5736_v18, %v1870_v12 }
 0x7ef   :  { %v1888_v8 = vmul.f32 %v1871_v45, %v1871_v45 }
 0x7f1   :  { %v1894_v41 = vmul.f32 %v1888_v8, %v1871_v45 }
 0x7f3   :  { %v1900_v38 = vmul.f32 0.044715, %v1894_v41 }
 0x7f4   :  { %v1873_v53 = vpop.f32.mrf.mxu2 }
 0x7f5   :  { %v1906_v32 = vadd.f32 %v1900_v38, %v1871_v45  ;;  %v1874_v19 = vadd.f32 %v5736_v18, %v1873_v53 }
 0x7f7   :  { %v1912_v57 = vmul.f32 0.7978846, %v1906_v32  ;;  %v1889_v43 = vmul.f32 %v1874_v19, %v1874_v19 }
 0x7f9   :  { %4449 = vtanh.f32 %v1912_v57  ;;  %v1895_v16 = vmul.f32 %v1889_v43, %v1874_v19 }
 0x7fb   :  { %v1901_v20 = vmul.f32 0.044715, %v1895_v16 }
 0x7fd   :  { %v1907_v31 = vadd.f32 %v1901_v20, %v1874_v19 }
 0x7ff   :  { %v4450_v11 = vpop.eup %4449  ;;  %v1913_v10 = vmul.f32 0.7978846, %v1907_v31 }
 0x800   :  { %v1924_v25 = vadd.f32 1.0, %v4450_v11 }
 0x801   :  { %4451 = vtanh.f32 %v1913_v10 }
 0x802   :  { %v1930_v28 = vmul.f32 0.5, %v1924_v25 }
 0x804   :  { %v1936_v29 = vmul.f32 %v1930_v28, %v1871_v45 }
 0x806   :  { %1978 = vmatmul.f32.vlgmr.msrb.gmra.mxu3 %v1936_v29 }
 0x807   :  { %v4452_v62 = vpop.eup %4451 }
 0x808   :  { %v1925_v13 = vadd.f32 1.0, %v4452_v62 }
 0x80a   :  { %v1931_v55 = vmul.f32 0.5, %v1925_v13 }
 0x80c   :  { %v1937_v42 = vmul.f32 %v1931_v55, %v1874_v19 }
 0x80e   :  { %1981 = vmatmul.f32.gmra.mxu3 %v1937_v42 }
 0x814   :  { %v1656_v7 = vpop.f32.mrf.mxu1 }
 0x815   :  { %v1657_v17 = vadd.f32 %v5553_v36, %v1656_v7 }
 0x817   :  { %v5742_v37 = vadd.f32 %v1657_v17, %v4848_v58 }
 0x819   :  { %v1682_v33 = vsel %vm98_vm0, %v5742_v37, 0.0 }
 0x81a   :  { %1683 = vadd.xlane.f32.xlu0 %v1682_v33 }
 0x81d   :  { %v1659_v3 = vpop.f32.mrf.mxu1 }
 0x81e   :  { %v1660_v54 = vadd.f32 %v5553_v36, %v1659_v3 }
 0x820   :  { %v5748_v23 = vadd.f32 %v1660_v54, %v4865_v14 }
 0x821   :  { %v1876_v1 = vpop.f32.mrf.mxu2 }
 0x822   :  { %v1877_v44 = vadd.f32 %v5736_v18, %v1876_v1  ;;  %v1685_v40 = vsel %vm98_vm0, %v5748_v23, 0.0 }
 0x823   :  { %1686 = vadd.xlane.f32.xlu1 %v1685_v40 }
 0x824   :  { %v1890_v21 = vmul.f32 %v1877_v44, %v1877_v44 }
 0x825   :  { %v1662_v58 = vpop.f32.mrf.mxu1 }
 0x826   :  { %v1896_v47 = vmul.f32 %v1890_v21, %v1877_v44  ;;  %v1663_v0 = vadd.f32 %v5553_v36, %v1662_v58 }
 0x828   :  { %v5755_v22 = vadd.f32 %v1663_v0, %v4886_v30  ;;  %v1902_v51 = vmul.f32 0.044715, %v1896_v47  ;;  %v5763_v30 = vld [vmem:[%s6866_s14] ss:$0 sm:$0xff] }
 0x82a   :  { %v1688_v14 = vsel %vm98_vm0, %v5755_v22, 0.0  ;;  %v1908_v5 = vadd.f32 %v1902_v51, %v1877_v44 }
 0x82b   :  { %1689 = vadd.xlane.f32.xlu2 %v1688_v14 }
 0x82c   :  { %v1914_v35 = vmul.f32 0.7978846, %v1908_v5 }
 0x82e   :  { %4453 = vtanh.f32 %v1914_v35 }
 0x834   :  { %v4454_v63 = vpop.eup %4453 }
 0x835   :  { %v1926_v49 = vadd.f32 1.0, %v4454_v63 }
 0x837   :  { %v1932_v56 = vmul.f32 0.5, %v1926_v49 }
 0x839   :  { %v1938_v27 = vmul.f32 %v1932_v56, %v1877_v44 }
 0x83b   :  { %1984 = vmatmul.f32.gmra.mxu3 %v1938_v27 }
 0x889   :  { %v1979_v36 = vpop.f32.mrf.mxu3 }
 0x88a   :  { %v1980_v60 = vadd.f32 %v5763_v30, %v1979_v36 }
 0x88c   :  { %v5774_v26 = vadd.f32 %v1980_v60, %v5559_v24 }
 0x88d   :  { %v1684_v9 = vpop.xlane.xlu0 %1683 }
 0x88e   :  { %v1694_v59 = vmul.f32 %v1684_v9, %v4852_v2  ;;  %v2007_v41 = vsel %vm98_vm0, %v5774_v26, 0.0 }
 0x890   :  { %v5766_v34 = vsub.f32 %v5742_v37, %v1694_v59 }
 0x891   :  { %v1982_v45 = vpop.f32.mrf.mxu3 }
 0x892   :  { %v1706_v61 = vmul.f32 %v5766_v34, %v5766_v34  ;;  %v1983_v38 = vadd.f32 %v5763_v30, %v1982_v45 }
 0x894   :  { %v1718_v4 = vsel %vm98_vm0, %v1706_v61, 0.0  ;;  %v5787_v19 = vadd.f32 %v1983_v38, %v5565_v39 }
 0x895   :  { %1719 = vadd.xlane.f32.xlu0 %v1718_v4 }
 0x896   :  { %v1687_v15 = vpop.xlane.xlu1 %1686  ;;  %v2010_v16 = vsel %vm98_vm0, %v5787_v19, 0.0 }
 0x897   :  { %v1695_v6 = vmul.f32 %v1687_v15, %v4852_v2 }
 0x899   :  { %v5777_v12 = vsub.f32 %v5748_v23, %v1695_v6 }
 0x89b   :  { %v1707_v8 = vmul.f32 %v5777_v12, %v5777_v12 }
 0x89d   :  { %2008 = vadd.xlane.f32.xlu0 %v2007_v41  ;;  %v1721_v53 = vsel %vm98_vm0, %v1707_v8, 0.0 }
 0x89e   :  { %1722 = vadd.xlane.f32.xlu1 %v1721_v53  ;;  %v1690_v32 = vpop.xlane.xlu2 %1689 }
 0x89f   :  { %v1696_v24 = vmul.f32 %v1690_v32, %v4852_v2 }
 0x8a1   :  { %v5790_v57 = vsub.f32 %v5755_v22, %v1696_v24 }
 0x8a3   :  { %v1708_v43 = vmul.f32 %v5790_v57, %v5790_v57 }
 0x8a5   :  { %v1724_v20 = vsel %vm98_vm0, %v1708_v43, 0.0 }
 0x8a6   :  { %2011 = vadd.xlane.f32.xlu1 %v2010_v16  ;;  %1725 = vadd.xlane.f32.xlu2 %v1724_v20 }
 0x8be   :  { %v1985_v31 = vpop.f32.mrf.mxu3 }
 0x8bf   :  { %v1986_v11 = vadd.f32 %v5763_v30, %v1985_v31 }
 0x8c1   :  { %v5799_v10 = vadd.f32 %v1986_v11, %v5571_v46 }
 0x8c3   :  { %v2013_v39 = vsel %vm98_vm0, %v5799_v10, 0.0 }
 0x8c4   :  { %2014 = vadd.xlane.f32.xlu2 %v2013_v39 }
 0x908   :  { %v1720_v25 = vpop.xlane.xlu0 %1719 }
 0x909   :  { %v1730_v28 = vmul.f32 %v1720_v25, %v4852_v2 }
 0x90b   :  { %v1736_v29 = vadd.f32 1e-12, %v1730_v28 }
 0x90d   :  { %4455 = vrsqrt.f32 %v1736_v29  ;;  %vm1775_vm6 = vweird.f32 %v1736_v29 }
 0x910   :  { %v2009_v62 = vpop.xlane.xlu0 %2008 }
 0x911   :  { %v2025_v13 = vmul.f32 %v2009_v62, %v4852_v2  ;;  %v1723_v55 = vpop.xlane.xlu1 %1722  ;;  %v4095_v62 = vld [vmem:[%s6857_s5 + $0xe8] sm:$0xff] }
 0x912   :  { %v1731_v42 = vmul.f32 %v1723_v55, %v4852_v2  ;;  %v4093_v55 = vld [vmem:[%s6857_s5 + $0xd8] sm:$0xff] }
 0x913   :  { %v4456_v7 = vpop.eup %4455  ;;  %v5807_v17 = vsub.f32 %v5774_v26, %v2025_v13  ;;  %v4092_v13 = vld [vmem:[%s6857_s5 + $0xd0] sm:$0xff] }
 0x914   :  { %v1770_v46 = vmul.f32 %v4456_v7, %v1736_v29  ;;  %v1737_v33 = vadd.f32 1e-12, %v1731_v42  ;;  %vm1776_vm4 = vweird.f32 %v4456_v7  ;;  %v4090_v42 = vld [vmem:[%s6857_s5 + $0xc0] sm:$0xff] }
 0x915   :  { %v2037_v3 = vmul.f32 %v5807_v17, %v5807_v17  ;;  %vm1777_vm10 = vmor %vm1775_vm6, %vm1776_vm4 }
 0x916   :  { %v1771_v54 = vmul.f32 %v4456_v7, %v1770_v46  ;;  %4457 = vrsqrt.f32 %v1737_v33  ;;  %vm1785_vm12 = vweird.f32 %v1737_v33  ;;  %v4088_v46 = vld [vmem:[%s6857_s5 + $0xb0] sm:$0xff] }
 0x917   :  { %v2043_v1 = vsel %vm98_vm0, %v2037_v3, 0.0  ;;  %v4086_v3 = vld [vmem:[%s6857_s5 + $0xa0] sm:$0xff] }
 0x918   :  { %v1772_v44 = vmul.f32 0.5, %v1771_v54  ;;  %2044 = vadd.xlane.f32.xlu0 %v2043_v1  ;;  %v4087_v54 = vld [vmem:[%s6857_s5 + $0xa8] sm:$0xff]  ;;  %v4084_v1 = vld [vmem:[%s6857_s5 + $0x90] sm:$0xff] }
 0x919   :  { %v2012_v40 = vpop.xlane.xlu1 %2011  ;;  %v1726_v21 = vpop.xlane.xlu2 %1725 }
 0x91a   :  { %v1773_v58 = vsub.f32 1.5, %v1772_v44  ;;  %v2026_v47 = vmul.f32 %v2012_v40, %v4852_v2  ;;  %v1732_v0 = vmul.f32 %v1726_v21, %v4852_v2  ;;  %v4085_v44 = vld [vmem:[%s6857_s5 + $0x98] sm:$0xff]  ;;  %v4082_v40 = vld [vmem:[%s6857_s5 + $0x80] sm:$0xff]  ;;  %v4083_v21 = vld [vmem:[%s6857_s5 + $0x88] sm:$0xff] }
 0x91c   :  { %v4458_v51 = vpop.eup %4457  ;;  %v1774_v14 = vmul.f32 %v4456_v7, %v1773_v58  ;;  %v5815_v5 = vsub.f32 %v5787_v19, %v2026_v47  ;;  %v1738_v35 = vadd.f32 1e-12, %v1732_v0 }
 0x91d   :  { %v1780_v63 = vmul.f32 %v4458_v51, %v1737_v33  ;;  %vm1786_vm11 = vweird.f32 %v4458_v51  ;;  %v4089_v33 = vld [vmem:[%s6857_s5 + $0xb8] sm:$0xff] }
 0x91e   :  { %v1778_v49 = vsel %vm1777_vm10, %v4456_v7, %v1774_v14  ;;  %4459 = vrsqrt.f32 %v1738_v35  ;;  %v2038_v56 = vmul.f32 %v5815_v5, %v5815_v5  ;;  %vm1787_vm13 = vmor %vm1785_vm12, %vm1786_vm11  ;;  %vm1795_vm15 = vweird.f32 %v1738_v35  ;;  %v4091_v7 = vld [vmem:[%s6857_s5 + $0xc8] sm:$0xff] }
 0x91f   :  { %v1802_v27 = vmul.f32 %v1778_v49, %v5766_v34  ;;  %v1781_v9 = vmul.f32 %v4458_v51, %v1780_v63 }
 0x920   :  { %v2046_v59 = vsel %vm98_vm0, %v2038_v56, 0.0 }
 0x921   :  { %v1782_v36 = vmul.f32 0.5, %v1781_v9  ;;  %2047 = vadd.xlane.f32.xlu1 %v2046_v59  ;;  %v1811_v61 = vmul.f32 %v5650_v52, %v1802_v27 }
 0x923   :  { %v1783_v60 = vsub.f32 1.5, %v1782_v36  ;;  %v1820_v4 = vadd.f32 %v5656_v48, %v1811_v61  ;;  %v5892_v61 = vld [vmem:[%s6855_s3 + $0x1] ss:$0 sm:$0xff] }
 0x924   :  { %v4460_v15 = vpop.eup %4459 }
 0x925   :  { %v1784_v6 = vmul.f32 %v4458_v51, %v1783_v60  ;;  %v1790_v45 = vmul.f32 %v4460_v15, %v1738_v35  ;;  %4077 = vmatmul.msk.f32.gmra.mxu2 %vm98_vm0, %v1820_v4  ;;  %vm1796_vm14 = vweird.f32 %v4460_v15 }
 0x926   :  { %vm1797_vm1 = vmor %vm1795_vm15, %vm1796_vm14 }
 0x927   :  { %v1788_v8 = vsel %vm1787_vm13, %v4458_v51, %v1784_v6  ;;  %v1791_v34 = vmul.f32 %v4460_v15, %v1790_v45 }
 0x928   :  { %v1803_v41 = vmul.f32 %v1788_v8, %v5777_v12 }
 0x929   :  { %v1792_v38 = vmul.f32 0.5, %v1791_v34 }
 0x92a   :  { %v1812_v53 = vmul.f32 %v5650_v52, %v1803_v41 }
 0x92b   :  { %v1793_v32 = vsub.f32 1.5, %v1792_v38 }
 0x92c   :  { %v1821_v24 = vadd.f32 %v5656_v48, %v1812_v53 }
 0x92d   :  { %v1794_v43 = vmul.f32 %v4460_v15, %v1793_v32 }
 0x92e   :  { %4078 = vmatmul.msk.f32.gmra.mxu2 %vm98_vm0, %v1821_v24 }
 0x92f   :  { %v1798_v16 = vsel %vm1797_vm1, %v4460_v15, %v1794_v43  ;;  %v5897_v15 = vld [vmem:[%s6856_s4 + $0x1] ss:$0 sm:$0xff] }
 0x930   :  { %v1804_v20 = vmul.f32 %v1798_v16, %v5790_v57  ;;  %v4094_v57 = vld [vmem:[%s6857_s5 + $0xe0] sm:$0xff] }
 0x932   :  { %v1813_v31 = vmul.f32 %v5650_v52, %v1804_v20  ;;  %v4096_v52 = vld [vmem:[%s6857_s5 + $0xf0] sm:$0xff] }
 0x933   :  { %2207 = vmatpush.msrb.mxu0 %v4096_v52 }
 0x934   :  { %v1822_v11 = vadd.f32 %v5656_v48, %v1813_v31  ;;  %v4097_v48 = vld [vmem:[%s6857_s5 + $0xf8] sm:$0xff] }
 0x935   :  { %2242 = vmatpush.msra.mxu1 %v4097_v48  ;;  %2208 = vmatpush.msrb.mxu0 %v4094_v57 }
 0x936   :  { %4079 = vmatmul.msk.f32.gmra.mxu2 %vm98_vm0, %v1822_v11 }
 0x937   :  { %v2015_v12 = vpop.xlane.xlu2 %2014  ;;  %2243 = vmatpush.msra.mxu1 %v4095_v62  ;;  %2209 = vmatpush.msrb.mxu0 %v4092_v13 }
 0x938   :  { %v2027_v39 = vmul.f32 %v2015_v12, %v4852_v2 }
 0x939   :  { %2244 = vmatpush.msra.mxu1 %v4093_v55  ;;  %2210 = vmatpush.msrb.mxu0 %v4090_v42 }
 0x93a   :  { %v5834_v25 = vsub.f32 %v5799_v10, %v2027_v39 }
 0x93b   :  { %2245 = vmatpush.msra.mxu1 %v4091_v7  ;;  %2211 = vmatpush.msrb.mxu0 %v4088_v46 }
 0x93c   :  { %v2039_v28 = vmul.f32 %v5834_v25, %v5834_v25 }
 0x93d   :  { %2246 = vmatpush.msra.mxu1 %v4089_v33  ;;  %2212 = vmatpush.msrb.mxu0 %v4086_v3 }
 0x93e   :  { %v2049_v29 = vsel %vm98_vm0, %v2039_v28, 0.0 }
 0x93f   :  { %2050 = vadd.xlane.f32.xlu2 %v2049_v29  ;;  %2247 = vmatpush.msra.mxu1 %v4087_v54 }
 0x940   :  { %2213 = vmatpush.msrb.mxu0 %v4084_v1 }
 0x941   :  { %2248 = vmatpush.msra.mxu1 %v4085_v44 }
 0x942   :  { %2214 = vmatpush.msrb.mxu0 %v4082_v40 }
 0x943   :  { %2249 = vmatpush.msra.mxu1 %v4083_v21 }
 0x98b   :  { %v2045_v58 = vpop.xlane.xlu0 %2044 }
 0x98c   :  { %v2061_v47 = vmul.f32 %v2045_v58, %v4852_v2 }
 0x98e   :  { %v2067_v0 = vadd.f32 1e-12, %v2061_v47 }
 0x990   :  { %4461 = vrsqrt.f32 %v2067_v0  ;;  %vm2079_vm3 = vweird.f32 %v2067_v0 }
 0x994   :  { %v2048_v51 = vpop.xlane.xlu1 %2047 }
 0x995   :  { %v2062_v14 = vmul.f32 %v2048_v51, %v4852_v2 }
 0x996   :  { %v4462_v35 = vpop.eup %4461 }
 0x997   :  { %v2074_v63 = vmul.f32 %v4462_v35, %v2067_v0  ;;  %v2068_v49 = vadd.f32 1e-12, %v2062_v14  ;;  %vm2080_vm2 = vweird.f32 %v4462_v35 }
 0x998   :  { %vm2081_vm4 = vmor %vm2079_vm3, %vm2080_vm2 }
 0x999   :  { %v2075_v56 = vmul.f32 %v4462_v35, %v2074_v63  ;;  %4463 = vrsqrt.f32 %v2068_v49  ;;  %vm2089_vm10 = vweird.f32 %v2068_v49 }
 0x99b   :  { %v2076_v27 = vmul.f32 0.5, %v2075_v56 }
 0x99d   :  { %v2077_v9 = vsub.f32 1.5, %v2076_v27 }
 0x99f   :  { %v4464_v59 = vpop.eup %4463  ;;  %v2078_v36 = vmul.f32 %v4462_v35, %v2077_v9 }
 0x9a0   :  { %v2084_v60 = vmul.f32 %v4464_v59, %v2068_v49  ;;  %vm2090_vm6 = vweird.f32 %v4464_v59 }
 0x9a1   :  { %v2082_v4 = vsel %vm2081_vm4, %v4462_v35, %v2078_v36  ;;  %vm2091_vm11 = vmor %vm2089_vm10, %vm2090_vm6 }
 0x9a2   :  { %v2133_v6 = vmul.f32 %v2082_v4, %v5807_v17  ;;  %v2085_v45 = vmul.f32 %v4464_v59, %v2084_v60 }
 0x9a4   :  { %v2142_v8 = vmul.f32 %v5892_v61, %v2133_v6  ;;  %v2086_v34 = vmul.f32 0.5, %v2085_v45 }
 0x9a6   :  { %v2087_v41 = vsub.f32 1.5, %v2086_v34  ;;  %v2151_v38 = vadd.f32 %v5897_v15, %v2142_v8 }
 0x9a8   :  { %v2088_v53 = vmul.f32 %v4464_v59, %v2087_v41  ;;  %v1879_v32 = vpop.f32.mrf.mxu2  ;;  %4099 = vmatmul.msk.f32.vlgmr.msrb.gmra.mxu0 %vm98_vm0, %v2151_v38  ;;  %4105 = vmatmul.msk.f32.vlgmr.msra.gmra.mxu1 %vm98_vm0, %v2151_v38  ;;  %v4098_v38 = vld [vmem:[%s6858_s6 + $0x2] sm:$0x3]  ;;  %s6878_s6 = smov 80  }
 0x9a9   :  { %v1880_v24 = vadd.f32 %v5736_v18, %v1879_v32 }
 0x9aa   :  { %v2092_v43 = vsel %vm2091_vm11, %v4464_v59, %v2088_v53 }
 0x9ab   :  { %v1891_v17 = vmul.f32 %v1880_v24, %v1880_v24  ;;  %v2134_v16 = vmul.f32 %v2092_v43, %v5815_v5 }
 0x9ad   :  { %v1897_v20 = vmul.f32 %v1891_v17, %v1880_v24  ;;  %v2143_v31 = vmul.f32 %v5892_v61, %v2134_v16 }
 0x9af   :  { %v2152_v11 = vadd.f32 %v5897_v15, %v2143_v31  ;;  %v1903_v12 = vmul.f32 0.044715, %v1897_v20  ;;  %v5933_v31 = vperm.slane %v4098_v38, 1 }
 0x9b1   :  { %v1882_v39 = vpop.f32.mrf.mxu2  ;;  %4100 = vmatmul.msk.f32.gmra.mxu0 %vm98_vm0, %v2152_v11  ;;  %4106 = vmatmul.msk.f32.gmra.mxu1 %vm98_vm0, %v2152_v11  ;;  %v1909_v28 = vadd.f32 %v1903_v12, %v1880_v24 }
 0x9b2   :  { %v1883_v29 = vadd.f32 %v5736_v18, %v1882_v39  ;;  %v2051_v52 = vpop.xlane.xlu2 %2050 }
 0x9b3   :  { %v2063_v48 = vmul.f32 %v2051_v52, %v4852_v2  ;;  %v1915_v57 = vmul.f32 0.7978846, %v1909_v28 }
 0x9b4   :  { %v1892_v62 = vmul.f32 %v1883_v29, %v1883_v29 }
 0x9b5   :  { %v2069_v5 = vadd.f32 1e-12, %v2063_v48  ;;  %4465 = vtanh.f32 %v1915_v57 }
 0x9b6   :  { %v1898_v13 = vmul.f32 %v1892_v62, %v1883_v29 }
 0x9b7   :  { %4467 = vrsqrt.f32 %v2069_v5  ;;  %vm2099_vm13 = vweird.f32 %v2069_v5 }
 0x9b8   :  { %v1904_v55 = vmul.f32 0.044715, %v1898_v13 }
 0x9b9   :  { %v1885_v42 = vpop.f32.mrf.mxu2 }
 0x9ba   :  { %v1886_v7 = vadd.f32 %v5736_v18, %v1885_v42  ;;  %v1910_v46 = vadd.f32 %v1904_v55, %v1883_v29 }
 0x9bb   :  { %v4466_v33 = vpop.eup %4465 }
 0x9bc   :  { %v1893_v3 = vmul.f32 %v1886_v7, %v1886_v7  ;;  %v1927_v54 = vadd.f32 1.0, %v4466_v33  ;;  %v1916_v1 = vmul.f32 0.7978846, %v1910_v46 }
 0x9bd   :  { %v4468_v44 = vpop.eup %4467 }
 0x9be   :  { %v2094_v40 = vmul.f32 %v4468_v44, %v2069_v5  ;;  %v1899_v21 = vmul.f32 %v1893_v3, %v1886_v7  ;;  %v1933_v58 = vmul.f32 0.5, %v1927_v54  ;;  %4469 = vtanh.f32 %v1916_v1 }
 0x9bf   :  { %vm2100_vm12 = vweird.f32 %v4468_v44 }
 0x9c0   :  { %v2095_v47 = vmul.f32 %v4468_v44, %v2094_v40  ;;  %v1939_v0 = vmul.f32 %v1933_v58, %v1880_v24  ;;  %v1905_v51 = vmul.f32 0.044715, %v1899_v21  ;;  %vm2101_vm14 = vmor %vm2099_vm13, %vm2100_vm12 }
 0x9c2   :  { %v2096_v14 = vmul.f32 0.5, %v2095_v47  ;;  %1987 = vmatmul.f32.gmra.mxu3 %v1939_v0  ;;  %v1911_v35 = vadd.f32 %v1905_v51, %v1886_v7 }
 0x9c4   :  { %v2097_v63 = vsub.f32 1.5, %v2096_v14  ;;  %v1917_v49 = vmul.f32 0.7978846, %v1911_v35  ;;  %v4470_v18 = vpop.eup %4469 }
 0x9c5   :  { %v1928_v27 = vadd.f32 1.0, %v4470_v18 }
 0x9c6   :  { %v2098_v56 = vmul.f32 %v4468_v44, %v2097_v63  ;;  %4471 = vtanh.f32 %v1917_v49 }
 0x9c7   :  { %v1934_v9 = vmul.f32 0.5, %v1928_v27 }
 0x9c8   :  { %v2102_v59 = vsel %vm2101_vm14, %v4468_v44, %v2098_v56 }
 0x9c9   :  { %v2135_v36 = vmul.f32 %v2102_v59, %v5834_v25  ;;  %v1940_v60 = vmul.f32 %v1934_v9, %v1883_v29  ;;  %v5921_v25 = vperm.slane %v4098_v38, 0 }
 0x9cb   :  { %v2144_v4 = vmul.f32 %v5892_v61, %v2135_v36  ;;  %1990 = vmatmul.f32.gmra.mxu3 %v1940_v60 }
 0x9cc   :  { %v4472_v6 = vpop.eup %4471 }
 0x9cd   :  { %v2153_v45 = vadd.f32 %v5897_v15, %v2144_v4  ;;  %v1929_v8 = vadd.f32 1.0, %v4472_v6 }
 0x9cf   :  { %4101 = vmatmul.msk.f32.gmra.mxu0 %vm98_vm0, %v2153_v45  ;;  %4107 = vmatmul.msk.f32.gmra.mxu1 %vm98_vm0, %v2153_v45  ;;  %v1935_v34 = vmul.f32 0.5, %v1929_v8 }
 0x9d1   :  { %v1941_v41 = vmul.f32 %v1935_v34, %v1886_v7 }
 0x9d3   :  { %1993 = vmatmul.f32.gmra.mxu3 %v1941_v41 }
 0xa25   :  { %v2216_v53 = vpop.f32.mrf.mxu0  ;;  %v2251_v17 = vpop.f32.mrf.mxu1 }
 0xa26   :  { %v5924_v32 = vadd.f32 %v2216_v53, %v5921_v25  ;;  %v5945_v57 = vadd.f32 %v2251_v17, %v5933_v31 }
 0xa28   :  { %2272 = vrot.lane.b32.xlu2 %v5924_v32, %s4614_s20 }
 0xa2e   :  { %v2219_v24 = vpop.f32.mrf.mxu0  ;;  %v2254_v16 = vpop.f32.mrf.mxu1 }
 0xa2f   :  { %v5929_v43 = vadd.f32 %v2219_v24, %v5921_v25  ;;  %v2255_v39 = vadd.f32 %v2254_v16, %v5933_v31 }
 0xa31   :  { %2274 = vrot.lane.b32.xlu1 %v5929_v43, %s4614_s20 }
 0xa45   :  { %v1988_v20 = vpop.f32.mrf.mxu3 }
 0xa46   :  { %v1989_v33 = vadd.f32 %v5763_v30, %v1988_v20 }
 0xa48   :  { %v5962_v3 = vadd.f32 %v1989_v33, %v5742_v37 }
 0xa4c   :  { %v2222_v11 = vpop.f32.mrf.mxu0  ;;  %v2257_v12 = vpop.f32.mrf.mxu1 }
 0xa4d   :  { %v5937_v28 = vadd.f32 %v2222_v11, %v5921_v25  ;;  %v2258_v29 = vadd.f32 %v2257_v12, %v5933_v31 }
 0xa4e   :  { %v1991_v52 = vpop.f32.mrf.mxu3 }
 0xa4f   :  { %2377 = vmatpush.msra.mxu3 %v2258_v29  ;;  %2276 = vrot.lane.b32.xlu0 %v5937_v28, %s4614_s20  ;;  %v5942_v48 = vpack.i.bf16 %v2255_v39, %v2258_v29  ;;  %v1992_v62 = vadd.f32 %v5763_v30, %v1991_v52 }
 0xa51   :  { %2378 = vmatpush.msra.mxu3 %v2255_v39  ;;  %v5950_v5 = vadd.f32 %v1992_v62, %v5748_v23  ;;  %v2016_v23 = vsel %vm98_vm0, %v5962_v3, 0.0 }
 0xa53   :  { %2379 = vmatpush.msra.mxu3 %v5945_v57  ;;  %v2019_v7 = vsel %vm98_vm0, %v5950_v5, 0.0 }
 0xa56   :  { %v1994_v13 = vpop.f32.mrf.mxu3 }
 0xa57   :  { %v1995_v55 = vadd.f32 %v5763_v30, %v1994_v13 }
 0xa59   :  { %v5954_v42 = vadd.f32 %v1995_v55, %v5755_v22 }
 0xa5b   :  { %2020 = vadd.xlane.f32.xlu1 %v2019_v7  ;;  %v2022_v46 = vsel %vm98_vm0, %v5954_v42, 0.0 }
 0xa5c   :  { %2023 = vadd.xlane.f32.xlu2 %v2022_v46 }
 0xa79   :  { %2017 = vadd.xlane.f32.xlu0 %v2016_v23 }
 0xa82   :  { %v2273_v1 = vpop.permute.xlu2 %2272 }
 0xaa3   :  { %v2275_v22 = vpop.permute.xlu1 %2274 }
 0xac1   :  { %v2277_v54 = vpop.permute.xlu0 %2276 }
 0xac2   :  { %4111 = vmatpush.xpose.msk.msrb.mxu2 %vm469_vm5, %v2277_v54 }
 0xac6   :  { %4112 = vmatpush.xpose.msk.msrb.mxu2 %vm469_vm5, %v2275_v22 }
 0xaca   :  { %4113 = vmatpush.xpose.msk.msrb.mxu2 %vm469_vm5, %v2273_v1 }
 0xacd   :  { %4114 = vmatmul.msk.f32.vlgmr.msrb.gmra.mxu2 %vm469_vm5, %v5924_v32 }
 0xace   :  { %v2021_v30 = vpop.xlane.xlu1 %2020 }
 0xacf   :  { %v2029_v37 = vmul.f32 %v2021_v30, %v4852_v2  ;;  %v2024_v58 = vpop.xlane.xlu2 %2023 }
 0xad0   :  { %v2030_v51 = vmul.f32 %v2024_v58, %v4852_v2 }
 0xad1   :  { %v5973_v44 = vsub.f32 %v5950_v5, %v2029_v37 }
 0xad2   :  { %v5986_v63 = vsub.f32 %v5954_v42, %v2030_v51 }
 0xad3   :  { %v2041_v40 = vmul.f32 %v5973_v44, %v5973_v44 }
 0xad4   :  { %v2042_v18 = vmul.f32 %v5986_v63, %v5986_v63 }
 0xad5   :  { %4115 = vmatmul.msk.f32.gmra.mxu2 %vm469_vm5, %v5929_v43  ;;  %v2055_v21 = vsel %vm98_vm0, %v2041_v40, 0.0 }
 0xad6   :  { %2056 = vadd.xlane.f32.xlu1 %v2055_v21  ;;  %v2058_v56 = vsel %vm98_vm0, %v2042_v18, 0.0 }
 0xadd   :  { %4116 = vmatmul.msk.f32.gmra.mxu2 %vm469_vm5, %v5937_v28 }
 0xaec   :  { %v2018_v47 = vpop.xlane.xlu0 %2017 }
 0xaed   :  { %v2028_v0 = vmul.f32 %v2018_v47, %v4852_v2 }
 0xaef   :  { %v2034_v14 = vsub.f32 %v5962_v3, %v2028_v0 }
 0xaf1   :  { %v2040_v35 = vmul.f32 %v2034_v14, %v2034_v14 }
 0xaf3   :  { %v2052_v49 = vsel %vm98_vm0, %v2040_v35, 0.0 }
 0xaf4   :  { %2053 = vadd.xlane.f32.xlu0 %v2052_v49 }
 0xafc   :  { %2059 = vadd.xlane.f32.xlu0 %v2058_v56 }
 0xb10   :  { %2532 = vrot.lane.b32.xlu0 %v5924_v32, %s4613_s18 }
 0xb49   :  { %v2057_v60 = vpop.xlane.xlu1 %2056 }
 0xb4a   :  { %v2065_v45 = vmul.f32 %v2057_v60, %v4852_v2 }
 0xb4c   :  { %v2071_v41 = vadd.f32 1e-12, %v2065_v45 }
 0xb4e   :  { %4473 = vrsqrt.f32 %v2071_v41  ;;  %vm2119_vm4 = vweird.f32 %v2071_v41 }
 0xb50   :  { %v2307_v27 = vpop.f32.mrf.mxu2 }
 0xb51   :  { %v2316_v9 = vmul.f32 0.25, %v2307_v27 }
 0xb53   :  { %v5995_v59 = vadd.f32 %v2316_v9, %v5145_v50 }
 0xb54   :  { %v4474_v20 = vpop.eup %4473 }
 0xb55   :  { %v2322_v36 = vsel %vm514_vm7, %v5995_v59, -inf  ;;  %v2114_v39 = vmul.f32 %v4474_v20, %v2071_v41  ;;  %vm2120_vm1 = vweird.f32 %v4474_v20 }
 0xb56   :  { %2323 = vmax.xlane.f32.xlu2 %v2322_v36  ;;  %vm2121_vm6 = vmor %vm2119_vm4, %vm2120_vm1 }
 0xb57   :  { %v2115_v29 = vmul.f32 %v4474_v20, %v2114_v39 }
 0xb58   :  { %v2310_v4 = vpop.f32.mrf.mxu2 }
 0xb59   :  { %v2317_v6 = vmul.f32 0.25, %v2310_v4  ;;  %v2116_v7 = vmul.f32 0.5, %v2115_v29 }
 0xb5b   :  { %v6001_v8 = vadd.f32 %v2317_v6, %v5145_v50  ;;  %v2117_v23 = vsub.f32 1.5, %v2116_v7 }
 0xb5d   :  { %v2325_v34 = vsel %vm514_vm7, %v6001_v8, -inf  ;;  %v2118_v30 = vmul.f32 %v4474_v20, %v2117_v23 }
 0xb5e   :  { %2326 = vmax.xlane.f32.xlu1 %v2325_v34 }
 0xb5f   :  { %v2122_v0 = vsel %vm2121_vm6, %v4474_v20, %v2118_v30 }
 0xb60   :  { %v2313_v38 = vpop.f32.mrf.mxu2  ;;  %v2137_v56 = vmul.f32 %v2122_v0, %v5973_v44 }
 0xb61   :  { %v2318_v53 = vmul.f32 0.25, %v2313_v38 }
 0xb62   :  { %v2146_v9 = vmul.f32 %v5892_v61, %v2137_v56 }
 0xb63   :  { %v6006_v24 = vadd.f32 %v2318_v53, %v5145_v50 }
 0xb64   :  { %v2155_v36 = vadd.f32 %v5897_v15, %v2146_v9 }
 0xb65   :  { %v2328_v17 = vsel %vm514_vm7, %v6006_v24, -inf }
 0xb66   :  { %2329 = vmax.xlane.f32.xlu0 %v2328_v17 }
 0xb67   :  { %v2054_v16 = vpop.xlane.xlu0 %2053 }
 0xb68   :  { %v2064_v11 = vmul.f32 %v2054_v16, %v4852_v2 }
 0xb6a   :  { %v2070_v12 = vadd.f32 1e-12, %v2064_v11 }
 0xb6c   :  { %4475 = vrsqrt.f32 %v2070_v12  ;;  %vm2109_vm2 = vweird.f32 %v2070_v12 }
 0xb6e   :  { %2536 = vrot.lane.b32.xlu2 %v5937_v28, %s4613_s18 }
 0xb6f   :  { %v2060_v52 = vpop.xlane.xlu0 %2059 }
 0xb70   :  { %v2066_v62 = vmul.f32 %v2060_v52, %v4852_v2 }
 0xb72   :  { %v4476_v13 = vpop.eup %4475  ;;  %v2072_v55 = vadd.f32 1e-12, %v2066_v62 }
 0xb73   :  { %v2104_v46 = vmul.f32 %v4476_v13, %v2070_v12  ;;  %vm2110_vm15 = vweird.f32 %v4476_v13 }
 0xb74   :  { %4477 = vrsqrt.f32 %v2072_v55  ;;  %vm2111_vm3 = vmor %vm2109_vm2, %vm2110_vm15  ;;  %vm2129_vm11 = vweird.f32 %v2072_v55 }
 0xb75   :  { %v2105_v33 = vmul.f32 %v4476_v13, %v2104_v46 }
 0xb77   :  { %v2106_v54 = vmul.f32 0.5, %v2105_v33  ;;  %2534 = vrot.lane.b32.xlu1 %v5929_v43, %s4613_s18 }
 0xb79   :  { %v2107_v22 = vsub.f32 1.5, %v2106_v54 }
 0xb7a   :  { %v4478_v1 = vpop.eup %4477  ;;  %2528 = vrot.lane.b32.xlu0 %v5929_v43, %s4617_s0 }
 0xb7b   :  { %v2108_v37 = vmul.f32 %v4476_v13, %v2107_v22  ;;  %v2124_v40 = vmul.f32 %v4478_v1, %v2072_v55  ;;  %vm2130_vm10 = vweird.f32 %v4478_v1 }
 0xb7c   :  { %vm2131_vm12 = vmor %vm2129_vm11, %vm2130_vm10 }
 0xb7d   :  { %v2112_v21 = vsel %vm2111_vm3, %v4476_v13, %v2108_v37  ;;  %v2125_v58 = vmul.f32 %v4478_v1, %v2124_v40 }
 0xb7e   :  { %v2136_v47 = vmul.f32 %v2112_v21, %v2034_v14 }
 0xb7f   :  { %v2126_v51 = vmul.f32 0.5, %v2125_v58 }
 0xb80   :  { %v2145_v35 = vmul.f32 %v5892_v61, %v2136_v47 }
 0xb81   :  { %v2127_v49 = vsub.f32 1.5, %v2126_v51 }
 0xb82   :  { %v2154_v18 = vadd.f32 %v5897_v15, %v2145_v35  ;;  %v2533_v41 = vpop.permute.xlu0 %2532 }
 0xb83   :  { %v2128_v27 = vmul.f32 %v4478_v1, %v2127_v49 }
 0xb84   :  { %4102 = vmatmul.msk.f32.gmra.mxu0 %vm98_vm0, %v2154_v18  ;;  %4108 = vmatmul.msk.f32.gmra.mxu1 %vm98_vm0, %v2154_v18 }
 0xb85   :  { %v2132_v14 = vsel %vm2131_vm12, %v4478_v1, %v2128_v27 }
 0xb86   :  { %v2138_v60 = vmul.f32 %v2132_v14, %v5986_v63 }
 0xb88   :  { %v2147_v44 = vmul.f32 %v5892_v61, %v2138_v60 }
 0xb8a   :  { %v2156_v4 = vadd.f32 %v5897_v15, %v2147_v44 }
 0xb8c   :  { %4103 = vmatmul.msk.f32.gmra.mxu0 %vm98_vm0, %v2155_v36  ;;  %4109 = vmatmul.msk.f32.gmra.mxu1 %vm98_vm0, %v2155_v36 }
 0xb94   :  { %4104 = vmatmul.msk.f32.gmra.mxu0 %vm98_vm0, %v2156_v4  ;;  %4110 = vmatmul.msk.f32.gmra.mxu1 %vm98_vm0, %v2156_v4 }
 0xbc9   :  { %v2324_v6 = vpop.xlane.xlu2 %2323 }
 0xbca   :  { %v2331_v45 = vsub.f32 %v5995_v59, %v2324_v6 }
 0xbcc   :  { %v2334_v34 = vmul.f32 1.442695, %v2331_v45 }
 0xbce   :  { %4479 = vpow2.f32 %v2334_v34 }
 0xbd1   :  { %v2327_v38 = vpop.xlane.xlu1 %2326  ;;  %v2537_v63 = vpop.permute.xlu2 %2536 }
 0xbd2   :  { %v2332_v53 = vsub.f32 %v6001_v8, %v2327_v38  ;;  %4129 = vmatpush.xpose.msk.msrb.mxu3 %vm469_vm5, %v2537_v63 }
 0xbd4   :  { %v4480_v17 = vpop.eup %4479  ;;  %v2336_v61 = vmul.f32 1.442695, %v2332_v53 }
 0xbd5   :  { %v2340_v15 = vsel %vm514_vm7, %v4480_v17, 0.0 }
 0xbd6   :  { %4481 = vpow2.f32 %v2336_v61  ;;  %2341 = vadd.xlane.f32.xlu2 %v2340_v15 }
 0xbd9   :  { %v2330_v16 = vpop.xlane.xlu0 %2329 }
 0xbda   :  { %v2333_v20 = vsub.f32 %v6006_v24, %v2330_v16 }
 0xbdc   :  { %v4482_v11 = vpop.eup %4481  ;;  %v2338_v59 = vmul.f32 1.442695, %v2333_v20 }
 0xbdd   :  { %v2343_v12 = vsel %vm514_vm7, %v4482_v11, 0.0 }
 0xbde   :  { %4483 = vpow2.f32 %v2338_v59  ;;  %2344 = vadd.xlane.f32.xlu1 %v2343_v12 }
 0xbe4   :  { %v4484_v39 = vpop.eup %4483 }
 0xbe5   :  { %v2346_v8 = vsel %vm514_vm7, %v4484_v39, 0.0 }
 0xbe6   :  { %2347 = vadd.xlane.f32.xlu0 %v2346_v8 }
 0xbe9   :  { %v2535_v29 = vpop.permute.xlu1 %2534 }
 0xbea   :  { %4130 = vmatpush.xpose.msk.msrb.mxu3 %vm469_vm5, %v2535_v29 }
 0xbec   :  { %v2529_v23 = vpop.permute.xlu0 %2528 }
 0xbee   :  { %2526 = vrot.lane.b32.xlu2 %v5924_v32, %s4617_s0  ;;  %4131 = vmatpush.xpose.msk.msrb.mxu3 %vm469_vm5, %v2533_v41 }
 0xbf6   :  { %2530 = vrot.lane.b32.xlu2 %v5937_v28, %s4617_s0 }
 0xc01   :  { %v2225_v24 = vpop.f32.mrf.mxu0  ;;  %v2260_v33 = vpop.f32.mrf.mxu1 }
 0xc02   :  { %v6060_v7 = vadd.f32 %v2225_v24, %v5921_v25  ;;  %v6129_v49 = vadd.f32 %v2260_v33, %v5933_v31 }
 0xc09   :  { %v2228_v52 = vpop.f32.mrf.mxu0  ;;  %v2263_v37 = vpop.f32.mrf.mxu1 }
 0xc0a   :  { %v6046_v62 = vadd.f32 %v2228_v52, %v5921_v25 }
 0xc0c   :  { %2842 = vrot.lane.b32.xlu0 %v6046_v62, %s4614_s20 }
 0xc11   :  { %v2231_v13 = vpop.f32.mrf.mxu0 }
 0xc12   :  { %v6051_v55 = vadd.f32 %v2231_v13, %v5921_v25 }
 0xc14   :  { %2844 = vrot.lane.b32.xlu1 %v6051_v55, %s4614_s20  ;;  %3102 = vrot.lane.b32.xlu0 %v6046_v62, %s4613_s18 }
 0xc15   :  { %3104 = vrot.lane.b32.xlu2 %v6051_v55, %s4613_s18 }
 0xc1c   :  { %2840 = vrot.lane.b32.xlu1 %v6060_v7, %s4614_s20  ;;  %3096 = vrot.lane.b32.xlu0 %v6046_v62, %s4617_s0 }
 0xc1d   :  { %3094 = vrot.lane.b32.xlu2 %v6060_v7, %s4617_s0 }
 0xc24   :  { %3100 = vrot.lane.b32.xlu1 %v6060_v7, %s4613_s18  ;;  %2398 = vrot.lane.b32.xlu0 %v5929_v43, %s4612_s30 }
 0xc25   :  { %2400 = vrot.lane.b32.xlu2 %v5937_v28, %s4612_s30 }
 0xc2c   :  { %3098 = vrot.lane.b32.xlu1 %v6051_v55, %s4617_s0  ;;  %2964 = vrot.lane.b32.xlu0 %v6060_v7, %s4612_s30 }
 0xc2d   :  { %2390 = vrot.lane.b32.xlu2 %v5924_v32, %s4615_s26 }
 0xc34   :  { %2396 = vrot.lane.b32.xlu1 %v5924_v32, %s4612_s30  ;;  %3237 = vrot.lane.b32.xlu0 %v6051_v55, %s4616_s19 }
 0xc35   :  { %2392 = vrot.lane.b32.xlu2 %v5929_v43, %s4615_s26 }
 0xc3c   :  { %2669 = vrot.lane.b32.xlu1 %v5937_v28, %s4616_s19  ;;  %3235 = vrot.lane.b32.xlu0 %v6046_v62, %s4616_s19 }
 0xc3d   :  { %2665 = vrot.lane.b32.xlu2 %v5924_v32, %s4616_s19 }
 0xc44   :  { %2667 = vrot.lane.b32.xlu1 %v5929_v43, %s4616_s19 }
 0xc45   :  { %2659 = vrot.lane.b32.xlu2 %v5924_v32, %s6878_s6 }
 0xc49   :  { %v2342_v25 = vpop.xlane.xlu2 %2341 }
 0xc4a   :  { %4485 = vrcp.f32 %v2342_v25 }
 0xc4c   :  { %2394 = vrot.lane.b32.xlu1 %v5937_v28, %s4615_s26 }
 0xc4d   :  { %2968 = vrot.lane.b32.xlu2 %v6051_v55, %s4612_s30 }
 0xc50   :  { %v4486_v46 = vpop.eup %4485 }
 0xc51   :  { %v2352_v54 = vmul.f32 %v4486_v46, %v4480_v17  ;;  %v2345_v22 = vpop.xlane.xlu1 %2344  ;;  %v2527_v40 = vpop.permute.xlu2 %2526 }
 0xc52   :  { %4487 = vrcp.f32 %v2345_v22 }
 0xc53   :  { %4117 = vmatmul.msk.f32.vlgmr.msra.gmra.mxu3 %vm514_vm7, %v2352_v54 }
 0xc54   :  { %2661 = vrot.lane.b32.xlu1 %v5929_v43, %s6878_s6  ;;  %v2266_v43 = vpop.f32.mrf.mxu1 }
 0xc55   :  { %2966 = vrot.lane.b32.xlu2 %v6046_v62, %s4612_s30  ;;  %v6116_v47 = vadd.f32 %v2266_v43, %v5933_v31 }
 0xc58   :  { %v4488_v32 = vpop.eup %4487 }
 0xc59   :  { %v2348_v1 = vpop.xlane.xlu0 %2347  ;;  %v2353_v30 = vmul.f32 %v4488_v32, %v4482_v11  ;;  %v2531_v0 = vpop.permute.xlu2 %2530 }
 0xc5a   :  { %4489 = vrcp.f32 %v2348_v1 }
 0xc5b   :  { %4118 = vmatmul.msk.f32.gmra.mxu3 %vm514_vm7, %v2353_v30 }
 0xc5c   :  { %2663 = vrot.lane.b32.xlu1 %v5937_v28, %s6878_s6  ;;  %v6119_v28 = vadd.f32 %v2263_v37, %v5933_v31 }
 0xc5d   :  { %2960 = vrot.lane.b32.xlu2 %v6046_v62, %s4615_s26 }
 0xc5e   :  { %v6124_v51 = vpack.i.bf16 %v6119_v28, %v6116_v47 }
 0xc60   :  { %v4490_v21 = vpop.eup %4489 }
 0xc61   :  { %v2354_v58 = vmul.f32 %v4490_v21, %v4484_v39 }
 0xc63   :  { %4119 = vmatmul.msk.f32.gmra.mxu3 %vm514_vm7, %v2354_v58 }
 0xc64   :  { %2958 = vrot.lane.b32.xlu1 %v6060_v7, %s4615_s26 }
 0xc65   :  { %2962 = vrot.lane.b32.xlu2 %v6051_v55, %s4615_s26 }
 0xc6b   :  { %4132 = vmatmul.msk.f32.vlgmr.msrb.gmra.mxu3 %vm469_vm5, %v2527_v40 }
 0xc6d   :  { %4283 = vrot.lane.b32.xlu2 %v6124_v51, %s4617_s0 }
 0xc6f   :  { %v3105_v35 = vpop.permute.xlu2 %3104 }
 0xc73   :  { %4133 = vmatmul.msk.f32.gmra.mxu3 %vm469_vm5, %v2529_v23 }
 0xc75   :  { %3183 = vrot.lane.b32.xlu2 %v6129_v49, %s4617_s0 }
 0xc77   :  { %v3095_v18 = vpop.permute.xlu2 %3094 }
 0xc7b   :  { %4134 = vmatmul.msk.f32.gmra.mxu3 %vm469_vm5, %v2531_v0 }
 0xc7d   :  { %3233 = vrot.lane.b32.xlu2 %v6060_v7, %s4616_s19 }
 0xc7e   :  { %v2843_v56 = vpop.permute.xlu0 %2842 }
 0xc7f   :  { %v2401_v27 = vpop.permute.xlu2 %2400 }
 0xc80   :  { %4120 = vmatpush.xpose.msk.msra.mxu0 %vm469_vm5, %v2401_v27 }
 0xc85   :  { %3229 = vrot.lane.b32.xlu2 %v6046_v62, %s6878_s6 }
 0xc86   :  { %v2845_v31 = vpop.permute.xlu1 %2844  ;;  %v3103_v9 = vpop.permute.xlu0 %3102 }
 0xc87   :  { %v2391_v14 = vpop.permute.xlu2 %2390  ;;  %4147 = vmatpush.xpose.msk.msra.mxu3 %vm469_vm5, %v2845_v31 }
 0xc8b   :  { %4148 = vmatpush.xpose.msk.msra.mxu3 %vm469_vm5, %v2843_v56 }
 0xc8e   :  { %v2841_v36 = vpop.permute.xlu1 %2840  ;;  %v3097_v60 = vpop.permute.xlu0 %3096 }
 0xc8f   :  { %v2393_v44 = vpop.permute.xlu2 %2392  ;;  %4149 = vmatpush.xpose.msk.msra.mxu3 %vm469_vm5, %v2841_v36 }
 0xc92   :  { %4150 = vmatmul.msk.f32.vlgmr.msra.gmra.mxu3 %vm469_vm5, %v6060_v7 }
 0xc93   :  { %4165 = vmatpush.xpose.msk.msrb.mxu3 %vm469_vm5, %v3105_v35 }
 0xc96   :  { %v3101_v4 = vpop.permute.xlu1 %3100  ;;  %v2399_v6 = vpop.permute.xlu0 %2398 }
 0xc97   :  { %4166 = vmatpush.xpose.msk.msrb.mxu3 %vm469_vm5, %v3103_v9  ;;  %v2666_v45 = vpop.permute.xlu2 %2665  ;;  %4121 = vmatpush.xpose.msk.msra.mxu0 %vm469_vm5, %v2399_v6 }
 0xc9a   :  { %4151 = vmatmul.msk.f32.gmra.mxu3 %vm469_vm5, %v6046_v62 }
 0xc9b   :  { %4167 = vmatpush.xpose.msk.msrb.mxu3 %vm469_vm5, %v3101_v4 }
 0xc9e   :  { %v3099_v34 = vpop.permute.xlu1 %3098  ;;  %v2965_v11 = vpop.permute.xlu0 %2964 }
 0xc9f   :  { %v2660_v41 = vpop.permute.xlu2 %2659 }
 0xca2   :  { %4152 = vmatmul.msk.f32.gmra.mxu3 %vm469_vm5, %v6051_v55 }
 0xca6   :  { %v2397_v38 = vpop.permute.xlu1 %2396  ;;  %v3238_v52 = vpop.permute.xlu0 %3237 }
 0xca7   :  { %v2969_v63 = vpop.permute.xlu2 %2968  ;;  %4122 = vmatpush.xpose.msk.msra.mxu0 %vm469_vm5, %v2397_v38 }
 0xcaa   :  { %4123 = vmatmul.msk.f32.vlgmr.msra.gmra.mxu0 %vm469_vm5, %v2391_v14  ;;  %4168 = vmatmul.msk.f32.vlgmr.msrb.gmra.mxu3 %vm469_vm5, %v3095_v18 }
 0xcae   :  { %v2670_v53 = vpop.permute.xlu1 %2669  ;;  %v3236_v13 = vpop.permute.xlu0 %3235 }
 0xcaf   :  { %v2967_v17 = vpop.permute.xlu2 %2966  ;;  %4138 = vmatpush.xpose.msk.msrb.mxu1 %vm469_vm5, %v2670_v53 }
 0xcb2   :  { %4124 = vmatmul.msk.f32.gmra.mxu0 %vm469_vm5, %v2393_v44  ;;  %4169 = vmatmul.msk.f32.gmra.mxu3 %vm469_vm5, %v3097_v60 }
 0xcb6   :  { %v2668_v61 = vpop.permute.xlu1 %2667 }
 0xcb7   :  { %v2961_v15 = vpop.permute.xlu2 %2960  ;;  %4139 = vmatpush.xpose.msk.msrb.mxu1 %vm469_vm5, %v2668_v61 }
 0xcba   :  { %4170 = vmatmul.msk.f32.gmra.mxu3 %vm469_vm5, %v3099_v34 }
 0xcbb   :  { %4140 = vmatpush.xpose.msk.msrb.mxu1 %vm469_vm5, %v2666_v45 }
 0xcbe   :  { %v2395_v16 = vpop.permute.xlu1 %2394  ;;  %4141 = vmatmul.msk.f32.vlgmr.msrb.gmra.mxu1 %vm469_vm5, %v2660_v41 }
 0xcbf   :  { %4156 = vmatpush.xpose.msk.msra.mxu1 %vm469_vm5, %v2969_v63  ;;  %v2963_v20 = vpop.permute.xlu2 %2962  ;;  %4125 = vmatmul.msk.f32.gmra.mxu0 %vm469_vm5, %v2395_v16 }
 0xcc3   :  { %4157 = vmatpush.xpose.msk.msra.mxu1 %vm469_vm5, %v2967_v17 }
 0xcc6   :  { %v2662_v59 = vpop.permute.xlu1 %2661 }
 0xcc7   :  { %4158 = vmatpush.xpose.msk.msra.mxu1 %vm469_vm5, %v2965_v11  ;;  %v6167_v12 = vpop.permute.xlu2 %4283 }
 0xcc8   :  { %4142 = vmatmul.msk.f32.gmra.mxu1 %vm469_vm5, %v2662_v59  ;;  %v4285_v39 = vunpack.i.l.bf16 %v6167_v12  ;;  %v4286_v8 = vunpack.i.h.bf16 %v6167_v12 }
 0xccb   :  { %4240 = vmatpush.msrb.mxu1 %v4285_v39 }
 0xccd   :  { %4241 = vmatpush.msrb.mxu1 %v4286_v8 }
 0xcce   :  { %v2664_v29 = vpop.permute.xlu1 %2663 }
 0xccf   :  { %v6176_v24 = vpop.permute.xlu2 %3183 }
 0xcd0   :  { %4143 = vmatmul.msk.f32.gmra.mxu1 %vm469_vm5, %v2664_v29 }
 0xcd1   :  { %4242 = vmatpush.msrb.mxu1 %v6176_v24 }
 0xcd6   :  { %v2959_v62 = vpop.permute.xlu1 %2958  ;;  %v6182_v25 = vpop.f32.mrf.mxu3 }
 0xcd7   :  { %v3234_v46 = vpop.permute.xlu2 %3233 }
 0xcd8   :  { %4159 = vmatmul.msk.f32.vlgmr.msra.gmra.mxu1 %vm469_vm5, %v2959_v62 }
 0xcd9   :  { %4174 = vmatpush.xpose.msk.msra.mxu1 %vm469_vm5, %v3238_v52 }
 0xcdd   :  { %4175 = vmatpush.xpose.msk.msra.mxu1 %vm469_vm5, %v3236_v13 }
 0xcde   :  { %v6187_v33 = vpop.f32.mrf.mxu3 }
 0xce0   :  { %4160 = vmatmul.msk.f32.gmra.mxu1 %vm469_vm5, %v2961_v15 }
 0xce1   :  { %4176 = vmatpush.xpose.msk.msra.mxu1 %vm469_vm5, %v3234_v46 }
 0xce6   :  { %v6190_v23 = vpop.f32.mrf.mxu3 }
 0xce8   :  { %4161 = vmatmul.msk.f32.gmra.mxu1 %vm469_vm5, %v2963_v20 }
 0xcee   :  { %v6192_v54 = vpop.f32.mrf.mxu3 }
 0xcf6   :  { %v6194_v22 = vpop.f32.mrf.mxu3 }
 0xcfe   :  { %v2573_v32 = vpop.f32.mrf.mxu3 }
 0xcff   :  { %v2578_v27 = vmul.f32 0.25, %v2573_v32 }
 0xd01   :  { %v6210_v14 = vadd.f32 %v2578_v27, %v5145_v50 }
 0xd03   :  { %v2588_v4 = vsel %vm514_vm7, %v6210_v14, -inf }
 0xd15   :  { %v2875_v1 = vpop.f32.mrf.mxu3 }
 0xd16   :  { %v2884_v60 = vmul.f32 0.25, %v2875_v1  ;;  %v6244_v1 = vpop.permute.xlu2 %3229 }
 0xd18   :  { %v6216_v41 = vadd.f32 %v2884_v60, %v5145_v50 }
 0xd1a   :  { %v2890_v17 = vsel %vm514_vm7, %v6216_v41, -inf }
 0xd1d   :  { %v2878_v30 = vpop.f32.mrf.mxu3 }
 0xd25   :  { %v6196_v37 = vpop.f32.mrf.mxu3 }
 0xd27   :  { %v2431_v40 = vpop.f32.mrf.mxu0 }
 0xd28   :  { %v2440_v21 = vmul.f32 0.25, %v2431_v40 }
 0xd2a   :  { %v6199_v58 = vadd.f32 %v2440_v21, %v5145_v50 }
 0xd2c   :  { %v2446_v43 = vsel %vm514_vm7, %v6199_v58, -inf }
 0xd2d   :  { %v6203_v0 = vpop.f32.mrf.mxu3  ;;  %2447 = vmax.xlane.f32.xlu1 %v2446_v43 }
 0xd2f   :  { %v2434_v35 = vpop.f32.mrf.mxu0 }
 0xd30   :  { %v2441_v18 = vmul.f32 0.25, %v2434_v35  ;;  %v4292_v35 = vpack.i.bf16 %v6116_v47, %v5945_v57 }
 0xd32   :  { %v2444_v56 = vadd.f32 %v2441_v18, %v5145_v50 }
 0xd34   :  { %v2449_v31 = vsel %vm514_vm7, %v2444_v56, -inf }
 0xd35   :  { %v6207_v9 = vpop.f32.mrf.mxu3  ;;  %2450 = vmax.xlane.f32.xlu2 %v2449_v31  ;;  %v2885_v31 = vmul.f32 0.25, %v2878_v30 }
 0xd3b   :  { %v2700_v36 = vpop.f32.mrf.mxu1 }
 0xd3c   :  { %v2709_v44 = vmul.f32 0.25, %v2700_v36  ;;  %v2437_v16 = vpop.f32.mrf.mxu0 }
 0xd3d   :  { %v3141_v6 = vpop.f32.mrf.mxu3  ;;  %2589 = vmax.xlane.f32.xlu2 %v2588_v4  ;;  %v2442_v20 = vmul.f32 0.25, %v2437_v16  ;;  %v6254_v4 = vadd.f32 %v2885_v31, %v5145_v50 }
 0xd3e   :  { %v2712_v45 = vadd.f32 %v2709_v44, %v5145_v50  ;;  %v3146_v34 = vmul.f32 0.25, %v3141_v6 }
 0xd3f   :  { %v6230_v59 = vadd.f32 %v2442_v20, %v5145_v50 }
 0xd40   :  { %v3149_v38 = vadd.f32 %v3146_v34, %v5145_v50  ;;  %v2715_v63 = vsel %vm514_vm7, %v2712_v45, -inf }
 0xd41   :  { %2716 = vmax.xlane.f32.xlu1 %v2715_v63  ;;  %v2452_v52 = vsel %vm514_vm7, %v6230_v59, -inf }
 0xd42   :  { %v3156_v53 = vsel %vm514_vm7, %v3149_v38, -inf }
 0xd43   :  { %3157 = vmax.xlane.f32.xlu0 %v3156_v53 }
 0xd45   :  { %2891 = vmax.xlane.f32.xlu2 %v2890_v17  ;;  %v2703_v61 = vpop.f32.mrf.mxu1  ;;  %v2893_v17 = vsel %vm514_vm7, %v6254_v4, -inf }
 0xd4d   :  { %v6227_v15 = vpop.f32.mrf.mxu1 }
 0xd4e   :  { %v2711_v31 = vmul.f32 0.25, %v6227_v15 }
 0xd55   :  { %v2999_v11 = vpop.f32.mrf.mxu1 }
 0xd56   :  { %v3008_v29 = vmul.f32 0.25, %v2999_v11 }
 0xd57   :  { %3227 = vrot.lane.b32.xlu0 %v6060_v7, %s6878_s6 }
 0xd58   :  { %v6235_v62 = vadd.f32 %v3008_v29, %v5145_v50 }
 0xd5d   :  { %v3002_v7 = vpop.f32.mrf.mxu1 }
 0xd5e   :  { %v3009_v13 = vmul.f32 0.25, %v3002_v7  ;;  %v2710_v7 = vmul.f32 0.25, %v2703_v61 }
 0xd5f   :  { %3231 = vrot.lane.b32.xlu0 %v6051_v55, %s6878_s6  ;;  %v3014_v55 = vsel %vm514_vm7, %v6235_v62, -inf }
 0xd60   :  { %v6240_v46 = vadd.f32 %v3009_v13, %v5145_v50 }
 0xd62   :  { %v3017_v32 = vsel %vm514_vm7, %v6240_v46, -inf }
 0xd65   :  { %v3005_v6 = vpop.f32.mrf.mxu1 }
 0xd66   :  { %v3010_v53 = vmul.f32 0.25, %v3005_v6 }
 0xd68   :  { %v6259_v16 = vadd.f32 %v3010_v53, %v5145_v50 }
 0xd89   :  { %2453 = vmax.xlane.f32.xlu0 %v2452_v52 }
 0xd91   :  { %3015 = vmax.xlane.f32.xlu0 %v3014_v55  ;;  %v3144_v55 = vmul.f32 0.25, %v6203_v0 }
 0xd99   :  { %3018 = vmax.xlane.f32.xlu0 %v3017_v32  ;;  %v2713_v32 = vadd.f32 %v2710_v7, %v5145_v50 }
 0xda0   :  { %v2448_v18 = vpop.xlane.xlu1 %2447 }
 0xda8   :  { %v2451_v40 = vpop.xlane.xlu2 %2450 }
 0xda9   :  { %v2456_v21 = vsub.f32 %v2444_v56, %v2451_v40  ;;  %v6274_v40 = vadd.f32 %v3144_v55, %v5145_v50 }
 0xdab   :  { %v2460_v43 = vmul.f32 1.442695, %v2456_v21  ;;  %v2577_v21 = vmul.f32 0.25, %v6194_v22  ;;  %v3150_v61 = vsel %vm514_vm7, %v6274_v40, -inf }
 0xdad   :  { %4491 = vpow2.f32 %v2460_v43  ;;  %4293 = vrot.lane.b32.xlu0 %v4292_v35, %s4615_s26  ;;  %v2718_v43 = vsel %vm514_vm7, %v2713_v32, -inf  ;;  %v2580_v0 = vadd.f32 %v2577_v21, %v5145_v50  ;;  %v2455_v35 = vsub.f32 %v6199_v58, %v2448_v18 }
 0xdb3   :  { %v6249_v27 = vpop.eup %4491 }
 0xdb4   :  { %v2467_v36 = vsel %vm514_vm7, %v6249_v27, 0.0  ;;  %v2717_v56 = vpop.xlane.xlu1 %2716 }
 0xdb5   :  { %2468 = vadd.xlane.f32.xlu2 %v2467_v36  ;;  %v2724_v63 = vsub.f32 %v2712_v45, %v2717_v56  ;;  %v3020_v45 = vsel %vm514_vm7, %v6259_v16, -inf  ;;  %v2585_v36 = vsel %vm514_vm7, %v2580_v0, -inf }
 0xdb6   :  { %v3158_v60 = vpop.xlane.xlu0 %3157 }
 0xdb7   :  { %v3161_v44 = vsub.f32 %v3149_v38, %v3158_v60  ;;  %v2727_v30 = vmul.f32 1.442695, %v2724_v63  ;;  %v2576_v38 = vmul.f32 0.25, %v6192_v54  ;;  %v2458_v60 = vmul.f32 1.442695, %v2455_v35 }
 0xdb9   :  { %v3166_v34 = vmul.f32 1.442695, %v3161_v44  ;;  %v2579_v29 = vadd.f32 %v2576_v38, %v5145_v50  ;;  %v6285_v44 = vadd.f32 %v2711_v31, %v5145_v50 }
 0xdbb   :  { %4493 = vpow2.f32 %v3166_v34  ;;  %v2582_v13 = vsel %vm514_vm7, %v2579_v29, -inf  ;;  %v2721_v22 = vsel %vm514_vm7, %v6285_v44, -inf }
 0xdbc   :  { %4495 = vpow2.f32 %v2727_v30  ;;  %v2886_v30 = vmul.f32 0.25, %v6196_v37 }
 0xdbd   :  { %2894 = vmax.xlane.f32.xlu2 %v2893_v17  ;;  %4497 = vpow2.f32 %v2458_v60 }
 0xdbe   :  { %v6302_v38 = vadd.f32 %v2886_v30, %v5145_v50 }
 0xdc1   :  { %v4494_v20 = vpop.eup %4493 }
 0xdc2   :  { %v3174_v11 = vsel %vm514_vm7, %v4494_v20, 0.0  ;;  %v6266_v52 = vpop.eup %4495 }
 0xdc3   :  { %3175 = vadd.xlane.f32.xlu1 %v3174_v11  ;;  %v2733_v54 = vsel %vm514_vm7, %v6266_v52, 0.0  ;;  %v6289_v56 = vpop.eup %4497  ;;  %v2896_v11 = vsel %vm514_vm7, %v6302_v38, -inf }
 0xdc4   :  { %v2464_v58 = vsel %vm514_vm7, %v6289_v56, 0.0 }
 0xdc5   :  { %3021 = vmax.xlane.f32.xlu2 %v3020_v45 }
 0xdc9   :  { %v3228_v6 = vpop.permute.xlu0 %3227 }
 0xdcb   :  { %2583 = vmax.xlane.f32.xlu1 %v2582_v13 }
 0xdcd   :  { %2734 = vadd.xlane.f32.xlu2 %v2733_v54 }
 0xdd1   :  { %v3232_v15 = vpop.permute.xlu0 %3231 }
 0xdd3   :  { %2719 = vmax.xlane.f32.xlu1 %v2718_v43 }
 0xdd5   :  { %3151 = vmax.xlane.f32.xlu2 %v3150_v61 }
 0xddb   :  { %2586 = vmax.xlane.f32.xlu1 %v2585_v36 }
 0xde3   :  { %2722 = vmax.xlane.f32.xlu1 %v2721_v22 }
 0xdeb   :  { %2465 = vadd.xlane.f32.xlu1 %v2464_v58  ;;  %v2590_v58 = vpop.xlane.xlu2 %2589 }
 0xdfc   :  { %v2454_v18 = vpop.xlane.xlu0 %2453 }
 0xdfd   :  { %v2457_v34 = vsub.f32 %v6230_v59, %v2454_v18 }
 0xdff   :  { %v2462_v63 = vmul.f32 1.442695, %v2457_v34 }
 0xe01   :  { %4499 = vpow2.f32 %v2462_v63 }
 0xe04   :  { %4288 = vrot.lane.b32.xlu1 %v5942_v48, %s4615_s26 }
 0xe07   :  { %v6296_v53 = vpop.eup %4499 }
 0xe08   :  { %v2470_v17 = vsel %vm514_vm7, %v6296_v53, 0.0 }
 0xe09   :  { %2471 = vadd.xlane.f32.xlu0 %v2470_v17  ;;  %v2892_v17 = vpop.xlane.xlu2 %2891 }
 0xe2e   :  { %2897 = vmax.xlane.f32.xlu1 %v2896_v11 }
 0xe36   :  { %v3176_v59 = vpop.xlane.xlu1 %3175 }
 0xe37   :  { %4501 = vrcp.f32 %v3176_v59 }
 0xe3d   :  { %v4502_v45 = vpop.eup %4501 }
 0xe3e   :  { %v3182_v7 = vmul.f32 %v4502_v45, %v4494_v20  ;;  %v2584_v13 = vpop.xlane.xlu1 %2583 }
 0xe3f   :  { %v2591_v55 = vsub.f32 %v2579_v29, %v2584_v13  ;;  %v3145_v29 = vmul.f32 0.25, %v6207_v9  ;;  %v3016_v9 = vpop.xlane.xlu0 %3015 }
 0xe40   :  { %4173 = vmatmul.msk.f32.vlgmr.msrb.gmra.mxu1 %vm514_vm7, %v3182_v7  ;;  %v3023_v18 = vsub.f32 %v6235_v62, %v3016_v9  ;;  %v2469_v7 = vpop.xlane.xlu2 %2468 }
 0xe41   :  { %v2594_v54 = vmul.f32 1.442695, %v2591_v55  ;;  %v6322_v31 = vadd.f32 %v3145_v29, %v5145_v50  ;;  %v2899_v29 = vsub.f32 %v6216_v41, %v2892_v17 }
 0xe42   :  { %v3026_v34 = vmul.f32 1.442695, %v3023_v18 }
 0xe43   :  { %4503 = vpow2.f32 %v2594_v54  ;;  %v3153_v60 = vsel %vm514_vm7, %v6322_v31, -inf  ;;  %v2593_v54 = vsub.f32 %v6210_v14, %v2590_v58  ;;  %v2902_v14 = vmul.f32 1.442695, %v2899_v29 }
 0xe46   :  { %v2720_v21 = vpop.xlane.xlu1 %2719 }
 0xe47   :  { %v2725_v43 = vsub.f32 %v2713_v32, %v2720_v21  ;;  %2748 = vrot.lane.b32.xlu1 %v5945_v57, %s6878_s6 }
 0xe48   :  { %4177 = vmatmul.msk.f32.vlgmr.msra.gmra.mxu1 %vm469_vm5, %v3228_v6 }
 0xe49   :  { %v6310_v37 = vpop.eup %4503  ;;  %v2729_v61 = vmul.f32 1.442695, %v2725_v43 }
 0xe4a   :  { %v2600_v35 = vsel %vm514_vm7, %v6310_v37, 0.0 }
 0xe4b   :  { %4505 = vpow2.f32 %v2729_v61  ;;  %2601 = vadd.xlane.f32.xlu2 %v2600_v35 }
 0xe4e   :  { %v2587_v36 = vpop.xlane.xlu1 %2586 }
 0xe4f   :  { %v2592_v22 = vsub.f32 %v2580_v0, %v2587_v36  ;;  %v3019_v0 = vpop.xlane.xlu0 %3018  ;;  %v2895_v36 = vpop.xlane.xlu2 %2894 }
 0xe50   :  { %4178 = vmatmul.msk.f32.gmra.mxu1 %vm469_vm5, %v6244_v1 }
 0xe51   :  { %v6316_v20 = vpop.eup %4505  ;;  %v2596_v1 = vmul.f32 1.442695, %v2592_v22 }
 0xe52   :  { %v2736_v32 = vsel %vm514_vm7, %v6316_v20, 0.0 }
 0xe53   :  { %2737 = vadd.xlane.f32.xlu0 %v2736_v32  ;;  %4507 = vpow2.f32 %v2596_v1 }
 0xe54   :  { %4509 = vpow2.f32 %v3026_v34  ;;  %v4307_v34 = vpack.i.bf16 %v6129_v49, %v6119_v28 }
 0xe56   :  { %v2723_v6 = vpop.xlane.xlu1 %2722 }
 0xe57   :  { %v6340_v45 = vpop.permute.xlu0 %4293  ;;  %v2726_v58 = vsub.f32 %v6285_v44, %v2723_v6 }
 0xe58   :  { %4179 = vmatmul.msk.f32.gmra.mxu1 %vm469_vm5, %v3232_v15  ;;  %v4295_v21 = vunpack.i.l.bf16 %v6340_v45 }
 0xe59   :  { %v6330_v63 = vpop.eup %4507 }
 0xe5a   :  { %v2603_v30 = vsel %vm514_vm7, %v6330_v63, 0.0  ;;  %v6336_v11 = vpop.eup %4509 }
 0xe5b   :  { %3154 = vmax.xlane.f32.xlu0 %v3153_v60 }
 0xe5e   :  { %v2466_v15 = vpop.xlane.xlu1 %2465 }
 0xe5f   :  { %4511 = vrcp.f32 %v2466_v15  ;;  %v2731_v15 = vmul.f32 1.442695, %v2726_v58 }
 0xe60   :  { %4513 = vrcp.f32 %v2469_v7 }
 0xe63   :  { %4298 = vrot.lane.b32.xlu2 %v5942_v48, %s6878_s6 }
 0xe65   :  { %v4512_v13 = vpop.eup %4511 }
 0xe66   :  { %v2476_v43 = vmul.f32 %v4512_v13, %v6289_v56  ;;  %v4514_v35 = vpop.eup %4513  ;;  %v3024_v56 = vsub.f32 %v6240_v46, %v3019_v0  ;;  %v2900_v0 = vsub.f32 %v6254_v4, %v2895_v36 }
 0xe67   :  { %v2477_v32 = vmul.f32 %v4514_v35, %v6249_v27  ;;  %v3022_v27 = vpop.xlane.xlu2 %3021 }
 0xe68   :  { %v3028_v41 = vmul.f32 1.442695, %v3024_v56  ;;  %v3025_v46 = vsub.f32 %v6259_v16, %v3022_v27  ;;  %v2904_v6 = vmul.f32 1.442695, %v2900_v0 }
 0xe6a   :  { %v3030_v17 = vmul.f32 1.442695, %v3025_v46 }
 0xe6f   :  { %4303 = vrot.lane.b32.xlu0 %v5942_v48, %s4617_s0  ;;  %v3032_v48 = vsel %vm514_vm7, %v6336_v11, 0.0 }
 0xe71   :  { %2604 = vadd.xlane.f32.xlu1 %v2603_v30 }
 0xe76   :  { %v4289_v59 = vpop.permute.xlu1 %4288 }
 0xe77   :  { %v4290_v62 = vunpack.i.l.bf16 %v4289_v59  ;;  %2615 = vrot.lane.b32.xlu0 %v5945_v57, %s4617_s0  ;;  %v4291_v55 = vunpack.i.h.bf16 %v4289_v59  ;;  %v2598_v57 = vmul.f32 1.442695, %v2593_v54  ;;  %v2735_v59 = vpop.xlane.xlu2 %2734 }
 0xe79   :  { %2513 = vmatpush.msra.mxu2 %v4290_v62  ;;  %3033 = vadd.xlane.f32.xlu1 %v3032_v48  ;;  %4515 = vpow2.f32 %v2598_v57 }
 0xe7b   :  { %2514 = vmatpush.msra.mxu2 %v4291_v55 }
 0xe7c   :  { %v2472_v61 = vpop.xlane.xlu0 %2471 }
 0xe7d   :  { %2515 = vmatpush.msra.mxu2 %v4295_v21  ;;  %4517 = vrcp.f32 %v2472_v61 }
 0xe7e   :  { %4126 = vmatmul.msk.f32.vlgmr.msra.gmra.mxu2 %vm514_vm7, %v2476_v43  ;;  %4519 = vpow2.f32 %v2902_v14 }
 0xe7f   :  { %v6351_v60 = vpop.eup %4515  ;;  %4521 = vpow2.f32 %v3028_v41  ;;  %v3152_v21 = vpop.xlane.xlu2 %3151 }
 0xe80   :  { %v2606_v1 = vsel %vm514_vm7, %v6351_v60, 0.0  ;;  %4523 = vpow2.f32 %v2731_v15  ;;  %v3159_v57 = vsub.f32 %v6274_v40, %v3152_v21  ;;  %v4296_v15 = vunpack.i.h.bf16 %v6340_v45 }
 0xe81   :  { %4525 = vpow2.f32 %v3030_v17 }
 0xe82   :  { %4527 = vpow2.f32 %v2904_v6  ;;  %v3162_v35 = vmul.f32 1.442695, %v3159_v57 }
 0xe83   :  { %v4518_v22 = vpop.eup %4517 }
 0xe84   :  { %v2478_v9 = vmul.f32 %v4518_v22, %v6296_v53  ;;  %v6359_v18 = vpop.eup %4519 }
 0xe85   :  { %v2908_v53 = vsel %vm514_vm7, %v6359_v18, 0.0  ;;  %v6368_v44 = vpop.eup %4521 }
 0xe86   :  { %4127 = vmatmul.msk.f32.gmra.mxu2 %vm514_vm7, %v2477_v32  ;;  %v3035_v30 = vsel %vm514_vm7, %v6368_v44, 0.0  ;;  %v6372_v16 = vpop.eup %4523 }
 0xe87   :  { %v6374_v62 = vpop.eup %4525  ;;  %v2739_v7 = vsel %vm514_vm7, %v6372_v16, 0.0 }
 0xe88   :  { %v3038_v13 = vsel %vm514_vm7, %v6374_v62, 0.0  ;;  %v6381_v54 = vpop.eup %4527 }
 0xe89   :  { %v2911_v43 = vsel %vm514_vm7, %v6381_v54, 0.0 }
 0xe8c   :  { %2607 = vadd.xlane.f32.xlu2 %v2606_v1 }
 0xe8e   :  { %4128 = vmatmul.msk.f32.gmra.mxu2 %vm514_vm7, %v2478_v9 }
 0xe92   :  { %4308 = vrot.lane.b32.xlu1 %v4307_v34, %s4615_s26 }
 0xe94   :  { %2909 = vadd.xlane.f32.xlu2 %v2908_v53 }
 0xe9c   :  { %3036 = vadd.xlane.f32.xlu2 %v3035_v30 }
 0xea1   :  { %v2898_v48 = vpop.xlane.xlu1 %2897  ;;  %2740 = vadd.xlane.f32.xlu0 %v2739_v7 }
 0xea2   :  { %v2901_v4 = vsub.f32 %v6302_v38, %v2898_v48 }
 0xea4   :  { %v2906_v55 = vmul.f32 1.442695, %v2901_v4  ;;  %3039 = vadd.xlane.f32.xlu2 %v3038_v13 }
 0xea6   :  { %4529 = vpow2.f32 %v2906_v55 }
 0xea7   :  { %4531 = vpow2.f32 %v3162_v35 }
 0xea8   :  { %4533 = vrcp.f32 %v2735_v59 }
 0xea9   :  { %2912 = vadd.xlane.f32.xlu0 %v2911_v43 }
 0xeac   :  { %v6386_v61 = vpop.eup %4529 }
 0xead   :  { %v2914_v38 = vsel %vm514_vm7, %v6386_v61, 0.0  ;;  %v6390_v29 = vpop.eup %4531 }
 0xeae   :  { %v3168_v32 = vsel %vm514_vm7, %v6390_v29, 0.0  ;;  %v4534_v27 = vpop.eup %4533 }
 0xeaf   :  { %v2745_v46 = vmul.f32 %v4534_v27, %v6266_v52 }
 0xeb1   :  { %2915 = vadd.xlane.f32.xlu0 %v2914_v38 }
 0xebc   :  { %3169 = vadd.xlane.f32.xlu1 %v3168_v32 }
 0xebd   :  { %v6394_v36 = vpop.f32.mrf.mxu1 }
 0xebe   :  { %v2602_v14 = vpop.xlane.xlu2 %2601 }
 0xec5   :  { %4313 = vrot.lane.b32.xlu0 %v6124_v51, %s6878_s6  ;;  %v3268_v40 = vpop.f32.mrf.mxu1  ;;  %v2749_v51 = vpop.permute.xlu1 %2748 }
 0xec6   :  { %v3277_v22 = vmul.f32 0.25, %v3268_v40  ;;  %v4299_v56 = vpop.permute.xlu2 %4298  ;;  %v2738_v41 = vpop.xlane.xlu0 %2737 }
 0xec7   :  { %v4300_v1 = vunpack.i.l.bf16 %v4299_v56  ;;  %v4301_v58 = vunpack.i.h.bf16 %v4299_v56  ;;  %4535 = vrcp.f32 %v2738_v41 }
 0xec8   :  { %v6399_v9 = vadd.f32 %v3277_v22, %v5145_v50  ;;  %4537 = vrcp.f32 %v2602_v14 }
 0xec9   :  { %2779 = vmatpush.msrb.mxu2 %v4300_v1 }
 0xeca   :  { %v3283_v34 = vsel %vm514_vm7, %v6399_v9, -inf }
 0xecb   :  { %2780 = vmatpush.msrb.mxu2 %v4301_v58  ;;  %3284 = vmax.xlane.f32.xlu2 %v3283_v34 }
 0xecd   :  { %2781 = vmatpush.msrb.mxu2 %v2749_v51  ;;  %v3271_v53 = vpop.f32.mrf.mxu1  ;;  %v4536_v6 = vpop.eup %4535 }
 0xece   :  { %v3278_v17 = vmul.f32 0.25, %v3271_v53  ;;  %4144 = vmatmul.msk.f32.vlgmr.msrb.gmra.mxu2 %vm514_vm7, %v2745_v46  ;;  %v2746_v59 = vmul.f32 %v4536_v6, %v6316_v20  ;;  %v3155_v48 = vpop.xlane.xlu0 %3154  ;;  %v4538_v20 = vpop.eup %4537 }
 0xecf   :  { %3081 = vmatpush.msra.mxu2 %v4296_v15  ;;  %v3160_v13 = vsub.f32 %v6322_v31, %v3155_v48 }
 0xed0   :  { %v6407_v0 = vadd.f32 %v3278_v17, %v5145_v50 }
 0xed1   :  { %v3164_v55 = vmul.f32 1.442695, %v3160_v13 }
 0xed2   :  { %v3286_v30 = vsel %vm514_vm7, %v6407_v0, -inf }
 0xed3   :  { %3287 = vmax.xlane.f32.xlu2 %v3286_v30  ;;  %4539 = vpow2.f32 %v3164_v55 }
 0xed5   :  { %v3274_v52 = vpop.f32.mrf.mxu1 }
 0xed6   :  { %v3279_v7 = vmul.f32 0.25, %v3274_v52  ;;  %4145 = vmatmul.msk.f32.gmra.mxu2 %vm514_vm7, %v2746_v59 }
 0xed8   :  { %v6414_v45 = vadd.f32 %v3279_v7, %v5145_v50  ;;  %v2612_v50 = vmul.f32 %v4538_v20, %v6310_v37 }
 0xed9   :  { %v6420_v32 = vpop.eup %4539 }
 0xeda   :  { %v3289_v4 = vsel %vm514_vm7, %v6414_v45, -inf  ;;  %v3171_v31 = vsel %vm514_vm7, %v6420_v32, 0.0 }
 0xedb   :  { %3290 = vmax.xlane.f32.xlu2 %v3289_v4 }
 0xee1   :  { %v4304_v21 = vpop.permute.xlu0 %4303 }
 0xee2   :  { %v4305_v43 = vunpack.i.l.bf16 %v4304_v21  ;;  %v4306_v57 = vunpack.i.h.bf16 %v4304_v21 }
 0xee4   :  { %2646 = vmatpush.msrb.mxu0 %v4305_v43  ;;  %v2605_v35 = vpop.xlane.xlu1 %2604 }
 0xee5   :  { %4541 = vrcp.f32 %v2605_v35 }
 0xee6   :  { %2647 = vmatpush.msrb.mxu0 %v4306_v57 }
 0xee9   :  { %v2616_v38 = vpop.permute.xlu0 %2615 }
 0xeea   :  { %2648 = vmatpush.msrb.mxu0 %v2616_v38 }
 0xeeb   :  { %4135 = vmatmul.msk.f32.vlgmr.msrb.gmra.mxu0 %vm514_vm7, %v2612_v50  ;;  %v4542_v14 = vpop.eup %4541 }
 0xeec   :  { %2945 = vmatpush.msra.mxu0 %v6116_v47  ;;  %v2613_v37 = vmul.f32 %v4542_v14, %v6330_v63  ;;  %v3034_v47 = vpop.xlane.xlu1 %3033 }
 0xeee   :  { %2946 = vmatpush.msra.mxu0 %v6119_v28 }
 0xeef   :  { %3172 = vadd.xlane.f32.xlu0 %v3171_v31 }
 0xef0   :  { %2947 = vmatpush.msra.mxu0 %v6129_v49 }
 0xef2   :  { %3214 = vmatpush.msrb.mxu0 %v4285_v39 }
 0xef3   :  { %3316 = vrot.lane.b32.xlu2 %v6129_v49, %s6878_s6  ;;  %4136 = vmatmul.msk.f32.gmra.mxu0 %vm514_vm7, %v2613_v37 }
 0xef4   :  { %3215 = vmatpush.msrb.mxu0 %v4286_v8 }
 0xef6   :  { %3216 = vmatpush.msrb.mxu0 %v6176_v24 }
 0xeff   :  { %v2608_v28 = vpop.xlane.xlu2 %2607 }
 0xf00   :  { %4543 = vrcp.f32 %v2608_v28 }
 0xf01   :  { %v2517_v40 = vpop.f32.mrf.mxu2 }
 0xf02   :  { %2795 = vrot.lane.b32.xlu1 %v2517_v40, %s4616_s19 }
 0xf04   :  { %v4309_v22 = vpop.permute.xlu1 %4308 }
 0xf05   :  { %v4310_v39 = vunpack.i.l.bf16 %v4309_v22  ;;  %v4311_v63 = vunpack.i.h.bf16 %v4309_v22 }
 0xf06   :  { %v4544_v56 = vpop.eup %4543 }
 0xf07   :  { %v2910_v1 = vpop.xlane.xlu2 %2909  ;;  %3082 = vmatpush.msra.mxu2 %v4310_v39  ;;  %v2614_v12 = vmul.f32 %v4544_v56, %v6351_v60 }
 0xf08   :  { %4545 = vrcp.f32 %v2910_v1 }
 0xf09   :  { %4137 = vmatmul.msk.f32.gmra.mxu0 %vm514_vm7, %v2614_v12  ;;  %3083 = vmatpush.msra.mxu2 %v4311_v63  ;;  %v2520_v13 = vpop.f32.mrf.mxu2 }
 0xf0e   :  { %v4546_v49 = vpop.eup %4545 }
 0xf0f   :  { %v2920_v8 = vmul.f32 %v4546_v49, %v6359_v18  ;;  %v3037_v34 = vpop.xlane.xlu2 %3036 }
 0xf11   :  { %4153 = vmatmul.msk.f32.vlgmr.msra.gmra.mxu0 %vm514_vm7, %v2920_v8  ;;  %v2523_v20 = vpop.f32.mrf.mxu2 }
 0xf14   :  { %v2741_v24 = vpop.xlane.xlu0 %2740 }
 0xf15   :  { %4547 = vrcp.f32 %v2741_v24 }
 0xf16   :  { %4549 = vrcp.f32 %v3034_v47 }
 0xf17   :  { %v3040_v53 = vpop.xlane.xlu2 %3039 }
 0xf1b   :  { %v4548_v41 = vpop.eup %4547 }
 0xf1c   :  { %v2913_v27 = vpop.xlane.xlu0 %2912  ;;  %v2747_v58 = vmul.f32 %v4548_v41, %v6372_v16  ;;  %v4550_v60 = vpop.eup %4549  ;;  %v4190_v41 = vld [vmem:[%s6859_s7 + $0x78] sm:$0xff] }
 0xf1d   :  { %4551 = vrcp.f32 %v2913_v27  ;;  %v3044_v51 = vmul.f32 %v4550_v60, %v6336_v11  ;;  %3445 = vmatpush.msra.mxu3 %v4190_v41  ;;  %v4189_v27 = vld [vmem:[%s6859_s7 + $0x70] sm:$0xff]  ;;  %v4187_v60 = vld [vmem:[%s6859_s7 + $0x60] sm:$0xff] }
 0xf1e   :  { %4146 = vmatmul.msk.f32.gmra.mxu2 %vm514_vm7, %v2747_v58  ;;  %4553 = vrcp.f32 %v3037_v34  ;;  %v4188_v34 = vld [vmem:[%s6859_s7 + $0x68] sm:$0xff] }
 0xf1f   :  { %3446 = vmatpush.msra.mxu3 %v4189_v27 }
 0xf21   :  { %3447 = vmatpush.msra.mxu3 %v4188_v34 }
 0xf23   :  { %v4552_v46 = vpop.eup %4551  ;;  %3448 = vmatpush.msra.mxu3 %v4187_v60 }
 0xf24   :  { %v2916_v15 = vpop.xlane.xlu0 %2915  ;;  %v2921_v18 = vmul.f32 %v4552_v46, %v6381_v54  ;;  %v4554_v17 = vpop.eup %4553 }
 0xf25   :  { %4555 = vrcp.f32 %v2916_v15  ;;  %v3045_v30 = vmul.f32 %v4554_v17, %v6368_v44  ;;  %v4185_v15 = vld [vmem:[%s6859_s7 + $0x50] sm:$0xff]  ;;  %v4183_v17 = vld [vmem:[%s6859_s7 + $0x40] sm:$0xff] }
 0xf26   :  { %4154 = vmatmul.msk.f32.gmra.mxu0 %vm514_vm7, %v2921_v18  ;;  %4162 = vmatmul.msk.f32.vlgmr.msra.gmra.mxu2 %vm514_vm7, %v3044_v51  ;;  %4557 = vrcp.f32 %v3040_v53  ;;  %v4186_v51 = vld [vmem:[%s6859_s7 + $0x58] sm:$0xff]  ;;  %v4184_v53 = vld [vmem:[%s6859_s7 + $0x48] sm:$0xff] }
 0xf27   :  { %3449 = vmatpush.msra.mxu3 %v4186_v51 }
 0xf29   :  { %3450 = vmatpush.msra.mxu3 %v4185_v15 }
 0xf2b   :  { %v4556_v16 = vpop.eup %4555  ;;  %3451 = vmatpush.msra.mxu3 %v4184_v53 }
 0xf2c   :  { %v2922_v6 = vmul.f32 %v4556_v16, %v6386_v61  ;;  %v4558_v54 = vpop.eup %4557 }
 0xf2d   :  { %v3046_v59 = vmul.f32 %v4558_v54, %v6374_v62  ;;  %3452 = vmatpush.msra.mxu3 %v4183_v17 }
 0xf2e   :  { %4155 = vmatmul.msk.f32.gmra.mxu0 %vm514_vm7, %v2922_v6  ;;  %4163 = vmatmul.msk.f32.gmra.mxu2 %vm514_vm7, %v3045_v30 }
 0xf2f   :  { %v3170_v11 = vpop.xlane.xlu1 %3169 }
 0xf30   :  { %4559 = vrcp.f32 %v3170_v11 }
 0xf36   :  { %v4560_v52 = vpop.eup %4559  ;;  %4164 = vmatmul.msk.f32.gmra.mxu2 %vm514_vm7, %v3046_v59 }
 0xf37   :  { %v3180_v7 = vmul.f32 %v4560_v52, %v6390_v29  ;;  %v4314_v48 = vpop.permute.xlu0 %4313 }
 0xf38   :  { %v4315_v4 = vunpack.i.l.bf16 %v4314_v48  ;;  %v4316_v61 = vunpack.i.h.bf16 %v4314_v48 }
 0xf39   :  { %4171 = vmatmul.msk.f32.vlgmr.msrb.gmra.mxu0 %vm514_vm7, %v3180_v7 }
 0xf3a   :  { %3347 = vmatpush.msrb.mxu2 %v4315_v4 }
 0xf3c   :  { %3348 = vmatpush.msrb.mxu2 %v4316_v61 }
 0xf3e   :  { %v3285_v44 = vpop.xlane.xlu2 %3284 }
 0xf3f   :  { %v3292_v55 = vsub.f32 %v6399_v9, %v3285_v44 }
 0xf41   :  { %v3295_v21 = vmul.f32 1.442695, %v3292_v55 }
 0xf43   :  { %4561 = vpow2.f32 %v3295_v21 }
 0xf46   :  { %v3288_v43 = vpop.xlane.xlu2 %3287 }
 0xf47   :  { %v3293_v62 = vsub.f32 %v6407_v0, %v3288_v43 }
 0xf49   :  { %v6458_v57 = vpop.eup %4561  ;;  %v3297_v29 = vmul.f32 1.442695, %v3293_v62 }
 0xf4a   :  { %v3301_v35 = vsel %vm514_vm7, %v6458_v57, 0.0 }
 0xf4b   :  { %4563 = vpow2.f32 %v3297_v29  ;;  %3302 = vadd.xlane.f32.xlu2 %v3301_v35 }
 0xf4e   :  { %v3291_v50 = vpop.xlane.xlu2 %3290 }
 0xf4f   :  { %v3294_v38 = vsub.f32 %v6414_v45, %v3291_v50 }
 0xf51   :  { %v6463_v31 = vpop.eup %4563  ;;  %v3299_v9 = vmul.f32 1.442695, %v3294_v38  ;;  %v2783_v14 = vpop.f32.mrf.mxu2 }
 0xf52   :  { %2819 = vrot.lane.b32.xlu1 %v2783_v14, %s4612_s30  ;;  %v3304_v0 = vsel %vm514_vm7, %v6463_v31, 0.0 }
 0xf53   :  { %4565 = vpow2.f32 %v3299_v9  ;;  %3305 = vadd.xlane.f32.xlu2 %v3304_v0 }
 0xf56   :  { %v3317_v37 = vpop.permute.xlu2 %3316 }
 0xf57   :  { %3349 = vmatpush.msrb.mxu2 %v3317_v37 }
 0xf59   :  { %v4566_v47 = vpop.eup %4565  ;;  %v2786_v56 = vpop.f32.mrf.mxu2 }
 0xf5a   :  { %2797 = vrot.lane.b32.xlu1 %v2520_v13, %s4616_s19  ;;  %v3307_v28 = vsel %vm514_vm7, %v4566_v47, 0.0 }
 0xf5b   :  { %3308 = vadd.xlane.f32.xlu2 %v3307_v28 }
 0xf62   :  { %v3173_v45 = vpop.xlane.xlu0 %3172  ;;  %2799 = vrot.lane.b32.xlu1 %v2523_v20, %s4616_s19 }
 0xf63   :  { %4567 = vrcp.f32 %v3173_v45 }
 0xf68   :  { %v2650_v40 = vpop.f32.mrf.mxu0 }
 0xf69   :  { %v4568_v22 = vpop.eup %4567  ;;  %2807 = vrot.lane.b32.xlu0 %v2650_v40, %s4613_s18 }
 0xf6a   :  { %v3181_v39 = vmul.f32 %v4568_v22, %v6420_v32 }
 0xf6c   :  { %4172 = vmatmul.msk.f32.gmra.mxu0 %vm514_vm7, %v3181_v39 }
 0xf70   :  { %v2653_v63 = vpop.f32.mrf.mxu0 }
 0xf71   :  { %2821 = vrot.lane.b32.xlu0 %v2786_v56, %s4612_s30 }
 0xf73   :  { %2809 = vrot.lane.b32.xlu2 %v2653_v63, %s4613_s18 }
 0xf74   :  { %v2796_v59 = vpop.permute.xlu1 %2795 }
 0xf75   :  { %v2828_v44 = vsel %vm469_vm5, %v6182_v25, %v2796_v59 }
 0xf86   :  { %v2656_v1 = vpop.f32.mrf.mxu0 }
 0xf87   :  { %2811 = vrot.lane.b32.xlu0 %v2656_v1, %s4613_s18 }
 0xf8e   :  { %v6477_v12 = vpop.f32.mrf.mxu0 }
 0xfa1   :  { %v2789_v49 = vpop.f32.mrf.mxu2 }
 0xfa2   :  { %2823 = vrot.lane.b32.xlu1 %v2789_v49, %s4612_s30 }
 0xfa3   :  { %v6480_v8 = vpop.f32.mrf.mxu0 }
 0xfa9   :  { %v3085_v24 = vpop.f32.mrf.mxu2 }
 0xfaa   :  { %3363 = vrot.lane.b32.xlu0 %v3085_v24, %s4616_s19 }
 0xfab   :  { %v6483_v32 = vpop.f32.mrf.mxu0 }
 0xfb1   :  { %v3088_v58 = vpop.f32.mrf.mxu2 }
 0xfb2   :  { %3365 = vrot.lane.b32.xlu0 %v3088_v58, %s4616_s19 }
 0xfb6   :  { %v3218_v46 = vpop.f32.mrf.mxu0 }
 0xfb7   :  { %3375 = vrot.lane.b32.xlu1 %v3218_v46, %s4613_s18 }
 0xfb9   :  { %v3091_v18 = vpop.f32.mrf.mxu2 }
 0xfba   :  { %3367 = vrot.lane.b32.xlu0 %v3091_v18, %s4616_s19 }
 0xfbe   :  { %v3303_v16 = vpop.xlane.xlu2 %3302 }
 0xfbf   :  { %4569 = vrcp.f32 %v3303_v16 }
 0xfc4   :  { %v2820_v4 = vpop.permute.xlu1 %2819 }
 0xfc5   :  { %v4570_v6 = vpop.eup %4569 }
 0xfc6   :  { %v3313_v30 = vmul.f32 %v4570_v6, %v6458_v57  ;;  %v3306_v11 = vpop.xlane.xlu2 %3305 }
 0xfc7   :  { %4571 = vrcp.f32 %v3306_v11 }
 0xfc8   :  { %4180 = vmatmul.msk.f32.vlgmr.msrb.gmra.mxu2 %vm514_vm7, %v3313_v30 }
 0xfcc   :  { %v2798_v43 = vpop.permute.xlu1 %2797 }
 0xfcd   :  { %v4572_v54 = vpop.eup %4571  ;;  %v2829_v57 = vsel %vm469_vm5, %v6187_v33, %v2798_v43 }
 0xfce   :  { %v3309_v52 = vpop.xlane.xlu2 %3308  ;;  %v3314_v7 = vmul.f32 %v4572_v54, %v6463_v31 }
 0xfcf   :  { %4573 = vrcp.f32 %v3309_v52 }
 0xfd0   :  { %4181 = vmatmul.msk.f32.gmra.mxu2 %vm514_vm7, %v3314_v7 }
 0xfd4   :  { %v2800_v50 = vpop.permute.xlu1 %2799 }
 0xfd5   :  { %v4574_v48 = vpop.eup %4573  ;;  %v2830_v31 = vsel %vm469_vm5, %v6190_v23, %v2800_v50  ;;  %v4326_v23 = vld [vmem:[%s6860_s8 + $0x1] ss:$0 sm:$0xff] }
 0xfd6   :  { %v3315_v61 = vmul.f32 %v4574_v48, %v4566_v47  ;;  %v2810_v62 = vpop.permute.xlu2 %2809 }
 0xfd7   :  { %v2832_v20 = vsel %vm1024_vm8, %v2829_v57, %v2810_v62 }
 0xfd8   :  { %4182 = vmatmul.msk.f32.gmra.mxu2 %vm514_vm7, %v3315_v61 }
 0xfdb   :  { %v2808_v13 = vpop.permute.xlu0 %2807 }
 0xfdc   :  { %v2831_v55 = vsel %vm1024_vm8, %v2828_v44, %v2808_v13 }
 0xfdd   :  { %v2834_v21 = vsel %vm1028_vm9, %v2831_v55, %v2820_v4 }
 0xfde   :  { %4192 = vmatmul.msk.f32.vlgmr.msra.gmra.mxu3 %vm98_vm0, %v2834_v21 }
 0xfe3   :  { %v2822_v29 = vpop.permute.xlu0 %2821 }
 0xfe4   :  { %v2835_v35 = vsel %vm1028_vm9, %v2832_v20, %v2822_v29 }
 0xfe6   :  { %4193 = vmatmul.msk.f32.gmra.mxu3 %vm98_vm0, %v2835_v35 }
 0xfe9   :  { %v3221_v25 = vpop.f32.mrf.mxu0 }
 0xfea   :  { %3377 = vrot.lane.b32.xlu1 %v3221_v25, %s4613_s18 }
 0xff2   :  { %3379 = vrot.lane.b32.xlu1 %v6394_v36, %s4613_s18 }
 0xff9   :  { %v2812_v38 = vpop.permute.xlu0 %2811 }
 0xffa   :  { %v2833_v33 = vsel %vm1024_vm8, %v2830_v31, %v2812_v38 }
0x1014   :  { %v2824_v9 = vpop.permute.xlu1 %2823 }
0x1015   :  { %v2836_v14 = vsel %vm1028_vm9, %v2833_v33, %v2824_v9 }
0x1016   :  { %4194 = vmatmul.msk.f32.gmra.mxu3 %vm98_vm0, %v2836_v14  ;;  %v4206_v14 = vld [vmem:[%s6864_s11 + $0x70] sm:$0xff] }
0x1029   :  { %v3376_v27 = vpop.permute.xlu1 %3375 }
0x104b   :  { %v3351_v0 = vpop.f32.mrf.mxu2 }
0x104c   :  { %3387 = vrot.lane.b32.xlu2 %v3351_v0, %s4612_s30  ;;  %v4205_v0 = vld [vmem:[%s6864_s11 + $0x68] sm:$0xff] }
0x1053   :  { %v3354_v37 = vpop.f32.mrf.mxu2 }
0x1054   :  { %3389 = vrot.lane.b32.xlu2 %v3354_v37, %s4612_s30  ;;  %v4204_v37 = vld [vmem:[%s6864_s11 + $0x60] sm:$0xff] }
0x105b   :  { %v3357_v47 = vpop.f32.mrf.mxu2 }
0x105c   :  { %3391 = vrot.lane.b32.xlu2 %v3357_v47, %s4612_s30  ;;  %v3378_v51 = vpop.permute.xlu1 %3377  ;;  %v4203_v47 = vld [vmem:[%s6864_s11 + $0x58] sm:$0xff] }
0x1061   :  { %v3454_v36 = vpop.f32.mrf.mxu3 }
0x1062   :  { %v3455_v28 = vadd.f32 %v4326_v23, %v3454_v36 }
0x1064   :  { %v6542_v45 = vadd.f32 %v3455_v28, %v5774_v26  ;;  %v3364_v26 = vpop.permute.xlu0 %3363  ;;  %v3380_v17 = vpop.permute.xlu1 %3379  ;;  %v4202_v28 = vld [vmem:[%s6864_s11 + $0x50] sm:$0xff] }
0x1065   :  { %v3396_v58 = vsel %vm469_vm5, %v6477_v12, %v3364_v26 }
0x1066   :  { %v3482_v40 = vsel %vm98_vm0, %v6542_v45, 0.0 }
0x1067   :  { %3483 = vadd.xlane.f32.xlu0 %v3482_v40 }
0x1069   :  { %v3457_v22 = vpop.f32.mrf.mxu3 }
0x106a   :  { %v3458_v39 = vadd.f32 %v4326_v23, %v3457_v22  ;;  %v4201_v22 = vld [vmem:[%s6864_s11 + $0x48] sm:$0xff] }
0x106c   :  { %v6547_v56 = vadd.f32 %v3458_v39, %v5787_v19  ;;  %v3399_v19 = vsel %vm1024_vm8, %v3396_v58, %v3376_v27  ;;  %v3366_v46 = vpop.permute.xlu0 %3365 }
0x106e   :  { %v3485_v63 = vsel %vm98_vm0, %v6547_v56, 0.0 }
0x106f   :  { %3486 = vadd.xlane.f32.xlu1 %v3485_v63  ;;  %v4200_v63 = vld [vmem:[%s6864_s11 + $0x40] sm:$0xff] }
0x1074   :  { %v3368_v12 = vpop.permute.xlu0 %3367 }
0x1075   :  { %v3398_v16 = vsel %vm469_vm5, %v6483_v32, %v3368_v12 }
0x1076   :  { %v3401_v6 = vsel %vm1024_vm8, %v3398_v16, %v3380_v17 }
0x1099   :  { %v3460_v1 = vpop.f32.mrf.mxu3 }
0x109a   :  { %v3461_v49 = vadd.f32 %v4326_v23, %v3460_v1 }
0x109c   :  { %v6552_v24 = vadd.f32 %v3461_v49, %v5799_v10  ;;  %v3397_v10 = vsel %vm469_vm5, %v6480_v8, %v3366_v46 }
0x109d   :  { %v3400_v15 = vsel %vm1024_vm8, %v3397_v10, %v3378_v51 }
0x109e   :  { %v3488_v41 = vsel %vm98_vm0, %v6552_v24, 0.0 }
0x109f   :  { %3489 = vadd.xlane.f32.xlu2 %v3488_v41 }
0x10a6   :  { %v3388_v34 = vpop.permute.xlu2 %3387 }
0x10a7   :  { %v3402_v60 = vsel %vm1028_vm9, %v3399_v19, %v3388_v34 }
0x10a8   :  { %4195 = vmatmul.msk.f32.gmra.mxu3 %vm98_vm0, %v3402_v60 }
0x10ae   :  { %v3390_v18 = vpop.permute.xlu2 %3389 }
0x10af   :  { %v3403_v53 = vsel %vm1028_vm9, %v3400_v15, %v3390_v18 }
0x10b0   :  { %4196 = vmatmul.msk.f32.gmra.mxu3 %vm98_vm0, %v3403_v53 }
0x10b6   :  { %v3392_v30 = vpop.permute.xlu2 %3391 }
0x10b7   :  { %v3404_v11 = vsel %vm1028_vm9, %v3401_v6, %v3392_v30 }
0x10b8   :  { %4197 = vmatmul.msk.f32.gmra.mxu3 %vm98_vm0, %v3404_v11 }
0x10da   :  { %v3484_v8 = vpop.xlane.xlu0 %3483 }
0x10db   :  { %v3500_v59 = vmul.f32 %v3484_v8, %v4852_v2 }
0x10dd   :  { %v6576_v48 = vsub.f32 %v6542_v45, %v3500_v59 }
0x10df   :  { %v3512_v55 = vmul.f32 %v6576_v48, %v6576_v48 }
0x10e1   :  { %v3518_v43 = vsel %vm98_vm0, %v3512_v55, 0.0 }
0x10e2   :  { %v3487_v4 = vpop.xlane.xlu1 %3486 }
0x10e3   :  { %v3501_v44 = vmul.f32 %v3487_v4, %v4852_v2 }
0x1112   :  { %v3490_v57 = vpop.xlane.xlu2 %3489 }
0x1113   :  { %v3502_v29 = vmul.f32 %v3490_v57, %v4852_v2 }
0x1115   :  { %v6599_v50 = vsub.f32 %v6552_v24, %v3502_v29 }
0x1117   :  { %v3514_v33 = vmul.f32 %v6599_v50, %v6599_v50 }
0x1119   :  { %v3524_v9 = vsel %vm98_vm0, %v3514_v33, 0.0 }
0x112b   :  { %v3463_v54 = vpop.f32.mrf.mxu3 }
0x112c   :  { %v3464_v52 = vadd.f32 %v4326_v23, %v3463_v54 }
0x112e   :  { %v6573_v7 = vadd.f32 %v3464_v52, %v5962_v3  ;;  %v6587_v3 = vsub.f32 %v6547_v56, %v3501_v44  ;;  %v6658_v44 = vld [vmem:[%s6861_s9 + $0x1] ss:$0 sm:$0xff] }
0x1130   :  { %v3491_v32 = vsel %vm98_vm0, %v6573_v7, 0.0  ;;  %v3513_v25 = vmul.f32 %v6587_v3, %v6587_v3 }
0x1131   :  { %3492 = vadd.xlane.f32.xlu0 %v3491_v32 }
0x1132   :  { %v3521_v31 = vsel %vm98_vm0, %v3513_v25, 0.0 }
0x1133   :  { %v3466_v61 = vpop.f32.mrf.mxu3 }
0x1134   :  { %v3467_v13 = vadd.f32 %v4326_v23, %v3466_v61 }
0x1136   :  { %v6584_v21 = vadd.f32 %v3467_v13, %v5950_v5 }
0x1138   :  { %v3494_v62 = vsel %vm98_vm0, %v6584_v21, 0.0 }
0x1139   :  { %3519 = vadd.xlane.f32.xlu0 %v3518_v43  ;;  %3495 = vadd.xlane.f32.xlu1 %v3494_v62  ;;  %v6663_v43 = vld [vmem:[%s6862_s10 + $0x1] ss:$0 sm:$0xff] }
0x113b   :  { %v3469_v20 = vpop.f32.mrf.mxu3 }
0x113c   :  { %v3470_v35 = vadd.f32 %v4326_v23, %v3469_v20 }
0x113e   :  { %v6596_v5 = vadd.f32 %v3470_v35, %v5954_v42  ;;  %v4207_v42 = vld [vmem:[%s6864_s11 + $0x78] sm:$0xff] }
0x113f   :  { %3672 = vmatpush.msra.mxu0 %v4207_v42 }
0x1140   :  { %v3497_v38 = vsel %vm98_vm0, %v6596_v5, 0.0 }
0x1141   :  { %3498 = vadd.xlane.f32.xlu2 %v3497_v38  ;;  %3522 = vadd.xlane.f32.xlu1 %v3521_v31 }
0x1142   :  { %3673 = vmatpush.msra.mxu0 %v4206_v14 }
0x1144   :  { %3674 = vmatpush.msra.mxu0 %v4205_v0 }
0x1146   :  { %3675 = vmatpush.msra.mxu0 %v4204_v37 }
0x1148   :  { %3676 = vmatpush.msra.mxu0 %v4203_v47 }
0x1149   :  { %3525 = vadd.xlane.f32.xlu2 %v3524_v9 }
0x114a   :  { %3677 = vmatpush.msra.mxu0 %v4202_v28 }
0x114c   :  { %3678 = vmatpush.msra.mxu0 %v4201_v22 }
0x114e   :  { %3679 = vmatpush.msra.mxu0 %v4200_v63 }
0x11a4   :  { %v3493_v23 = vpop.xlane.xlu0 %3492 }
0x11a5   :  { %v3503_v36 = vmul.f32 %v3493_v23, %v4852_v2 }
0x11a7   :  { %v6627_v40 = vsub.f32 %v6573_v7, %v3503_v36 }
0x11a9   :  { %v3515_v39 = vmul.f32 %v6627_v40, %v6627_v40 }
0x11ab   :  { %v3527_v1 = vsel %vm98_vm0, %v3515_v39, 0.0 }
0x11ac   :  { %3528 = vadd.xlane.f32.xlu0 %v3527_v1  ;;  %v3520_v49 = vpop.xlane.xlu0 %3519  ;;  %v3496_v26 = vpop.xlane.xlu1 %3495  ;;  %v4230_v1 = vld [vmem:[%s6865_s13 + $0xf8] sm:$0xff] }
0x11ad   :  { %v3536_v41 = vmul.f32 %v3520_v49, %v4852_v2  ;;  %v3504_v27 = vmul.f32 %v3496_v26, %v4852_v2  ;;  %3775 = vmatpush.msrb.mxu1 %v4230_v1  ;;  %v4228_v49 = vld [vmem:[%s6865_s13 + $0xe8] sm:$0xff] }
0x11af   :  { %v3542_v58 = vadd.f32 1e-12, %v3536_v41  ;;  %v6641_v19 = vsub.f32 %v6584_v21, %v3504_v27  ;;  %v4227_v27 = vld [vmem:[%s6865_s13 + $0xe0] sm:$0xff] }
0x11b1   :  { %4575 = vrsqrt.f32 %v3542_v58  ;;  %v3516_v34 = vmul.f32 %v6641_v19, %v6641_v19  ;;  %vm3554_vm7 = vweird.f32 %v3542_v58 }
0x11b3   :  { %v3530_v60 = vsel %vm98_vm0, %v3516_v34, 0.0 }
0x11b4   :  { %v3499_v46 = vpop.xlane.xlu2 %3498  ;;  %3531 = vadd.xlane.f32.xlu1 %v3530_v60  ;;  %v3523_v51 = vpop.xlane.xlu1 %3522  ;;  %v4226_v60 = vld [vmem:[%s6865_s13 + $0xd8] sm:$0xff] }
0x11b5   :  { %v3505_v10 = vmul.f32 %v3499_v46, %v4852_v2  ;;  %v3537_v15 = vmul.f32 %v3523_v51, %v4852_v2  ;;  %v4225_v51 = vld [vmem:[%s6865_s13 + $0xd0] sm:$0xff] }
0x11b7   :  { %v4576_v18 = vpop.eup %4575  ;;  %v6649_v53 = vsub.f32 %v6596_v5, %v3505_v10  ;;  %v3543_v12 = vadd.f32 1e-12, %v3537_v15  ;;  %v4224_v15 = vld [vmem:[%s6865_s13 + $0xc8] sm:$0xff] }
0x11b8   :  { %v3549_v17 = vmul.f32 %v4576_v18, %v3542_v58  ;;  %vm3555_vm5 = vweird.f32 %v4576_v18 }
0x11b9   :  { %4577 = vrsqrt.f32 %v3543_v12  ;;  %v3517_v16 = vmul.f32 %v6649_v53, %v6649_v53  ;;  %vm3556_vm8 = vmor %vm3554_vm7, %vm3555_vm5  ;;  %vm3564_vm13 = vweird.f32 %v3543_v12 }
0x11ba   :  { %v3550_v6 = vmul.f32 %v4576_v18, %v3549_v17 }
0x11bb   :  { %v3533_v30 = vsel %vm98_vm0, %v3517_v16, 0.0  ;;  %v4223_v16 = vld [vmem:[%s6865_s13 + $0xc0] sm:$0xff] }
0x11bc   :  { %v3551_v11 = vmul.f32 0.5, %v3550_v6  ;;  %3534 = vadd.xlane.f32.xlu2 %v3533_v30  ;;  %v3526_v8 = vpop.xlane.xlu2 %3525 }
0x11bd   :  { %v3538_v54 = vmul.f32 %v3526_v8, %v4852_v2  ;;  %v4222_v8 = vld [vmem:[%s6865_s13 + $0xb8] sm:$0xff] }
0x11be   :  { %v3552_v59 = vsub.f32 1.5, %v3551_v11 }
0x11bf   :  { %v4578_v52 = vpop.eup %4577  ;;  %v3544_v32 = vadd.f32 1e-12, %v3538_v54 }
0x11c0   :  { %v3553_v4 = vmul.f32 %v4576_v18, %v3552_v59  ;;  %v3559_v61 = vmul.f32 %v4578_v52, %v3543_v12  ;;  %vm3565_vm9 = vweird.f32 %v4578_v52 }
0x11c1   :  { %4579 = vrsqrt.f32 %v3544_v32  ;;  %vm3566_vm14 = vmor %vm3564_vm13, %vm3565_vm9  ;;  %vm3574_vm1 = vweird.f32 %v3544_v32 }
0x11c2   :  { %v3557_v13 = vsel %vm3556_vm8, %v4576_v18, %v3553_v4  ;;  %v3560_v55 = vmul.f32 %v4578_v52, %v3559_v61 }
0x11c3   :  { %v3608_v62 = vmul.f32 %v3557_v13, %v6576_v48  ;;  %v4220_v13 = vld [vmem:[%s6865_s13 + $0xa8] sm:$0xff] }
0x11c4   :  { %v3561_v57 = vmul.f32 0.5, %v3560_v55 }
0x11c5   :  { %v3617_v20 = vmul.f32 %v6658_v44, %v3608_v62 }
0x11c6   :  { %v3562_v29 = vsub.f32 1.5, %v3561_v57  ;;  %v4219_v57 = vld [vmem:[%s6865_s13 + $0xa0] sm:$0xff] }
0x11c7   :  { %v4580_v35 = vpop.eup %4579  ;;  %v3626_v25 = vadd.f32 %v6663_v43, %v3617_v20 }
0x11c8   :  { %v3563_v38 = vmul.f32 %v4578_v52, %v3562_v29  ;;  %v3569_v31 = vmul.f32 %v4580_v35, %v3544_v32  ;;  %vm3575_vm15 = vweird.f32 %v4580_v35 }
0x11c9   :  { %4209 = vmatmul.msk.f32.vlgmr.msra.gmra.mxu0 %vm98_vm0, %v3626_v25  ;;  %vm3576_vm2 = vmor %vm3574_vm1, %vm3575_vm15 }
0x11ca   :  { %v3567_v33 = vsel %vm3566_vm14, %v4578_v52, %v3563_v38  ;;  %v3570_v9 = vmul.f32 %v4580_v35, %v3569_v31  ;;  %v4221_v52 = vld [vmem:[%s6865_s13 + $0xb0] sm:$0xff] }
0x11cb   :  { %v3609_v42 = vmul.f32 %v3567_v33, %v6587_v3  ;;  %v4217_v31 = vld [vmem:[%s6865_s13 + $0x90] sm:$0xff] }
0x11cc   :  { %v3571_v14 = vmul.f32 0.5, %v3570_v9 }
0x11cd   :  { %v3618_v48 = vmul.f32 %v6658_v44, %v3609_v42 }
0x11ce   :  { %v3572_v0 = vsub.f32 1.5, %v3571_v14  ;;  %v4216_v14 = vld [vmem:[%s6865_s13 + $0x88] sm:$0xff] }
0x11cf   :  { %v3627_v37 = vadd.f32 %v6663_v43, %v3618_v48 }
0x11d0   :  { %v3573_v47 = vmul.f32 %v4580_v35, %v3572_v0  ;;  %v4215_v0 = vld [vmem:[%s6865_s13 + $0x80] sm:$0xff] }
0x11d1   :  { %4210 = vmatmul.msk.f32.gmra.mxu0 %vm98_vm0, %v3627_v37 }
0x11d2   :  { %v3577_v23 = vsel %vm3576_vm2, %v4580_v35, %v3573_v47 }
0x11d3   :  { %v3610_v36 = vmul.f32 %v3577_v23, %v6599_v50  ;;  %v4229_v50 = vld [vmem:[%s6865_s13 + $0xf0] sm:$0xff] }
0x11d4   :  { %3776 = vmatpush.msrb.mxu1 %v4229_v50 }
0x11d5   :  { %v3619_v28 = vmul.f32 %v6658_v44, %v3610_v36 }
0x11d6   :  { %3777 = vmatpush.msrb.mxu1 %v4228_v49 }
0x11d7   :  { %v3628_v22 = vadd.f32 %v6663_v43, %v3619_v28 }
0x11d8   :  { %3778 = vmatpush.msrb.mxu1 %v4227_v27 }
0x11d9   :  { %4211 = vmatmul.msk.f32.gmra.mxu0 %vm98_vm0, %v3628_v22 }
0x11da   :  { %3779 = vmatpush.msrb.mxu1 %v4226_v60 }
0x11dc   :  { %3780 = vmatpush.msrb.mxu1 %v4225_v51 }
0x11de   :  { %3781 = vmatpush.msrb.mxu1 %v4224_v15 }
0x11e0   :  { %3782 = vmatpush.msrb.mxu1 %v4223_v16 }
0x11e2   :  { %3783 = vmatpush.msrb.mxu1 %v4222_v8 }
0x11e4   :  { %3784 = vmatpush.msrb.mxu1 %v4221_v52 }
0x11e6   :  { %3785 = vmatpush.msrb.mxu1 %v4220_v13 }
0x11e8   :  { %3786 = vmatpush.msrb.mxu1 %v4219_v57 }
0x121f   :  { %v3529_v3 = vpop.xlane.xlu0 %3528 }
0x1220   :  { %v3539_v39 = vmul.f32 %v3529_v3, %v4852_v2 }
0x1222   :  { %v3545_v63 = vadd.f32 1e-12, %v3539_v39 }
0x1224   :  { %4581 = vrsqrt.f32 %v3545_v63  ;;  %vm3584_vm4 = vweird.f32 %v3545_v63 }
0x1227   :  { %v3532_v26 = vpop.xlane.xlu1 %3531 }
0x1228   :  { %v3540_v41 = vmul.f32 %v3532_v26, %v4852_v2 }
0x122a   :  { %v4582_v58 = vpop.eup %4581  ;;  %v3546_v34 = vadd.f32 1e-12, %v3540_v41 }
0x122b   :  { %v3579_v46 = vmul.f32 %v4582_v58, %v3545_v63  ;;  %vm3585_vm3 = vweird.f32 %v4582_v58 }
0x122c   :  { %4583 = vrsqrt.f32 %v3546_v34  ;;  %vm3586_vm6 = vmor %vm3584_vm4, %vm3585_vm3  ;;  %vm3594_vm11 = vweird.f32 %v3546_v34 }
0x122d   :  { %v3580_v10 = vmul.f32 %v4582_v58, %v3579_v46 }
0x122f   :  { %v3581_v18 = vmul.f32 0.5, %v3580_v10  ;;  %v3535_v12 = vpop.xlane.xlu2 %3534 }
0x1230   :  { %v3541_v17 = vmul.f32 %v3535_v12, %v4852_v2 }
0x1231   :  { %v3582_v6 = vsub.f32 1.5, %v3581_v18 }
0x1232   :  { %v4584_v30 = vpop.eup %4583  ;;  %v3547_v11 = vadd.f32 1e-12, %v3541_v17 }
0x1233   :  { %v3583_v54 = vmul.f32 %v4582_v58, %v3582_v6  ;;  %v3589_v59 = vmul.f32 %v4584_v30, %v3546_v34  ;;  %vm3595_vm10 = vweird.f32 %v4584_v30 }
0x1234   :  { %4585 = vrsqrt.f32 %v3547_v11  ;;  %vm3596_vm12 = vmor %vm3594_vm11, %vm3595_vm10  ;;  %vm3604_vm7 = vweird.f32 %v3547_v11 }
0x1235   :  { %v3587_v32 = vsel %vm3586_vm6, %v4582_v58, %v3583_v54  ;;  %v3590_v4 = vmul.f32 %v4584_v30, %v3589_v59 }
0x1236   :  { %v3611_v61 = vmul.f32 %v3587_v32, %v6627_v40  ;;  %v4218_v40 = vld [vmem:[%s6865_s13 + $0x98] sm:$0xff] }
0x1237   :  { %v3591_v55 = vmul.f32 0.5, %v3590_v4  ;;  %3787 = vmatpush.msrb.mxu1 %v4218_v40 }
0x1238   :  { %v3620_v62 = vmul.f32 %v6658_v44, %v3611_v61 }
0x1239   :  { %v3592_v20 = vsub.f32 1.5, %v3591_v55  ;;  %3788 = vmatpush.msrb.mxu1 %v4217_v31 }
0x123a   :  { %v4586_v29 = vpop.eup %4585  ;;  %v3629_v35 = vadd.f32 %v6663_v43, %v3620_v62 }
0x123b   :  { %v3593_v25 = vmul.f32 %v4584_v30, %v3592_v20  ;;  %v3599_v38 = vmul.f32 %v4586_v29, %v3547_v11  ;;  %3789 = vmatpush.msrb.mxu1 %v4216_v14  ;;  %vm3605_vm5 = vweird.f32 %v4586_v29 }
0x123c   :  { %4212 = vmatmul.msk.f32.gmra.mxu0 %vm98_vm0, %v3629_v35  ;;  %vm3606_vm8 = vmor %vm3604_vm7, %vm3605_vm5 }
0x123d   :  { %v3597_v33 = vsel %vm3596_vm12, %v4584_v30, %v3593_v25  ;;  %v3600_v9 = vmul.f32 %v4586_v29, %v3599_v38  ;;  %3790 = vmatpush.msrb.mxu1 %v4215_v0 }
0x123e   :  { %v3612_v42 = vmul.f32 %v3597_v33, %v6641_v19  ;;  %v4329_v19 = vld [vmem:[%s6863_s12 + $0x1] ss:$0 sm:$0xff] }
0x123f   :  { %v3601_v48 = vmul.f32 0.5, %v3600_v9 }
0x1240   :  { %v3621_v37 = vmul.f32 %v6658_v44, %v3612_v42 }
0x1241   :  { %v3602_v47 = vsub.f32 1.5, %v3601_v48 }
0x1242   :  { %v3630_v23 = vadd.f32 %v6663_v43, %v3621_v37 }
0x1243   :  { %v3603_v36 = vmul.f32 %v4586_v29, %v3602_v47 }
0x1244   :  { %4213 = vmatmul.msk.f32.gmra.mxu0 %vm98_vm0, %v3630_v23 }
0x1245   :  { %v3607_v28 = vsel %vm3606_vm8, %v4586_v29, %v3603_v36 }
0x1246   :  { %v3613_v22 = vmul.f32 %v3607_v28, %v6649_v53  ;;  %v3681_v3 = vpop.f32.mrf.mxu0 }
0x1247   :  { %v3682_v39 = vadd.f32 %v4329_v19, %v3681_v3 }
0x1248   :  { %v3622_v63 = vmul.f32 %v6658_v44, %v3613_v22 }
0x1249   :  { %v3699_v1 = vmul.f32 %v3682_v39, %v3682_v39 }
0x124a   :  { %v3631_v50 = vadd.f32 %v6663_v43, %v3622_v63 }
0x124b   :  { %v3705_v49 = vmul.f32 %v3699_v1, %v3682_v39 }
0x124c   :  { %4214 = vmatmul.msk.f32.gmra.mxu0 %vm98_vm0, %v3631_v50 }
0x124d   :  { %v3711_v26 = vmul.f32 0.044715, %v3705_v49 }
0x124e   :  { %v3684_v41 = vpop.f32.mrf.mxu0 }
0x124f   :  { %v3717_v27 = vadd.f32 %v3711_v26, %v3682_v39  ;;  %v3685_v58 = vadd.f32 %v4329_v19, %v3684_v41 }
0x1251   :  { %v3723_v34 = vmul.f32 0.7978846, %v3717_v27  ;;  %v3700_v60 = vmul.f32 %v3685_v58, %v3685_v58 }
0x1253   :  { %4587 = vtanh.f32 %v3723_v34  ;;  %v3706_v46 = vmul.f32 %v3700_v60, %v3685_v58 }
0x1255   :  { %v3712_v51 = vmul.f32 0.044715, %v3706_v46 }
0x1256   :  { %v3687_v53 = vpop.f32.mrf.mxu0 }
0x1257   :  { %v3718_v10 = vadd.f32 %v3712_v51, %v3685_v58  ;;  %v3688_v15 = vadd.f32 %v4329_v19, %v3687_v53 }
0x1259   :  { %v4588_v18 = vpop.eup %4587  ;;  %v3701_v44 = vmul.f32 %v3688_v15, %v3688_v15  ;;  %v3724_v12 = vmul.f32 0.7978846, %v3718_v10 }
0x125a   :  { %v3735_v17 = vadd.f32 1.0, %v4588_v18 }
0x125b   :  { %v3707_v43 = vmul.f32 %v3701_v44, %v3688_v15  ;;  %4589 = vtanh.f32 %v3724_v12 }
0x125c   :  { %v3741_v16 = vmul.f32 0.5, %v3735_v17 }
0x125d   :  { %v3713_v6 = vmul.f32 0.044715, %v3707_v43 }
0x125e   :  { %v3747_v30 = vmul.f32 %v3741_v16, %v3682_v39 }
0x125f   :  { %v3719_v11 = vadd.f32 %v3713_v6, %v3688_v15 }
0x1260   :  { %3791 = vmatmul.f32.vlgmr.msrb.gmra.mxu1 %v3747_v30 }
0x1261   :  { %v4590_v8 = vpop.eup %4589  ;;  %v3725_v54 = vmul.f32 0.7978846, %v3719_v11 }
0x1262   :  { %v3736_v59 = vadd.f32 1.0, %v4590_v8 }
0x1263   :  { %4591 = vtanh.f32 %v3725_v54 }
0x1264   :  { %v3742_v52 = vmul.f32 0.5, %v3736_v59 }
0x1266   :  { %v3748_v32 = vmul.f32 %v3742_v52, %v3685_v58 }
0x1268   :  { %3794 = vmatmul.f32.gmra.mxu1 %v3748_v32 }
0x1269   :  { %v4592_v4 = vpop.eup %4591 }
0x126a   :  { %v3737_v61 = vadd.f32 1.0, %v4592_v4 }
0x126c   :  { %v3743_v13 = vmul.f32 0.5, %v3737_v61 }
0x126e   :  { %v3749_v55 = vmul.f32 %v3743_v13, %v3688_v15 }
0x1270   :  { %3797 = vmatmul.f32.gmra.mxu1 %v3749_v55 }
0x12b9   :  { %v3690_v62 = vpop.f32.mrf.mxu0 }
0x12ba   :  { %v3691_v57 = vadd.f32 %v4329_v19, %v3690_v62 }
0x12bc   :  { %v3702_v20 = vmul.f32 %v3691_v57, %v3691_v57 }
0x12be   :  { %v3708_v29 = vmul.f32 %v3702_v20, %v3691_v57 }
0x12c0   :  { %v3714_v35 = vmul.f32 0.044715, %v3708_v29 }
0x12c1   :  { %v3693_v40 = vpop.f32.mrf.mxu0 }
0x12c2   :  { %v3720_v25 = vadd.f32 %v3714_v35, %v3691_v57  ;;  %v3694_v38 = vadd.f32 %v4329_v19, %v3693_v40 }
0x12c4   :  { %v3703_v31 = vmul.f32 %v3694_v38, %v3694_v38  ;;  %v3726_v33 = vmul.f32 0.7978846, %v3720_v25 }
0x12c6   :  { %v3709_v9 = vmul.f32 %v3703_v31, %v3694_v38  ;;  %4593 = vtanh.f32 %v3726_v33 }
0x12c8   :  { %v3715_v42 = vmul.f32 0.044715, %v3709_v9 }
0x12c9   :  { %v3696_v14 = vpop.f32.mrf.mxu0 }
0x12ca   :  { %v3721_v48 = vadd.f32 %v3715_v42, %v3694_v38  ;;  %v3697_v0 = vadd.f32 %v4329_v19, %v3696_v14  ;;  %v4330_v19 = vld [vmem:[%s6866_s14 + $0x1] ss:$0 sm:$0xff] }
0x12cc   :  { %v4594_v37 = vpop.eup %4593  ;;  %v3704_v47 = vmul.f32 %v3697_v0, %v3697_v0  ;;  %v3727_v23 = vmul.f32 0.7978846, %v3721_v48 }
0x12cd   :  { %v3738_v36 = vadd.f32 1.0, %v4594_v37 }
0x12ce   :  { %v3710_v28 = vmul.f32 %v3704_v47, %v3697_v0  ;;  %4595 = vtanh.f32 %v3727_v23 }
0x12cf   :  { %v3744_v22 = vmul.f32 0.5, %v3738_v36 }
0x12d0   :  { %v3716_v3 = vmul.f32 0.044715, %v3710_v28 }
0x12d1   :  { %v3750_v39 = vmul.f32 %v3744_v22, %v3691_v57 }
0x12d2   :  { %v3722_v63 = vadd.f32 %v3716_v3, %v3697_v0 }
0x12d3   :  { %3800 = vmatmul.f32.gmra.mxu1 %v3750_v39 }
0x12d4   :  { %v4596_v1 = vpop.eup %4595  ;;  %v3728_v50 = vmul.f32 0.7978846, %v3722_v63 }
0x12d5   :  { %v3739_v49 = vadd.f32 1.0, %v4596_v1 }
0x12d6   :  { %4597 = vtanh.f32 %v3728_v50 }
0x12d7   :  { %v3745_v26 = vmul.f32 0.5, %v3739_v49 }
0x12d9   :  { %v3751_v41 = vmul.f32 %v3745_v26, %v3694_v38 }
0x12db   :  { %3803 = vmatmul.f32.gmra.mxu1 %v3751_v41 }
0x12dc   :  { %v4598_v27 = vpop.eup %4597 }
0x12dd   :  { %v3792_v58 = vpop.f32.mrf.mxu1  ;;  %v3740_v34 = vadd.f32 1.0, %v4598_v27 }
0x12de   :  { %v3793_v60 = vadd.f32 %v4330_v19, %v3792_v58 }
0x12df   :  { %v3746_v46 = vmul.f32 0.5, %v3740_v34 }
0x12e0   :  { %v3810_v51 = vadd.f32 %v3793_v60, %v6542_v45 }
0x12e1   :  { %v3752_v53 = vmul.f32 %v3746_v46, %v3697_v0 }
0x12e2   :  { %v3818_v10 = vsel %vm98_vm0, %v3810_v51, 0.0 }
0x12e3   :  { %3806 = vmatmul.f32.gmra.mxu1 %v3752_v53  ;;  %3819 = vadd.xlane.f32.xlu0 %v3818_v10 }
0x12e5   :  { %v3795_v15 = vpop.f32.mrf.mxu1 }
0x12e6   :  { %v3796_v18 = vadd.f32 %v4330_v19, %v3795_v15 }
0x12e8   :  { %v3811_v44 = vadd.f32 %v3796_v18, %v6547_v56 }
0x12ea   :  { %v3821_v12 = vsel %vm98_vm0, %v3811_v44, 0.0 }
0x12eb   :  { %3822 = vadd.xlane.f32.xlu1 %v3821_v12 }
0x12ed   :  { %v3798_v17 = vpop.f32.mrf.mxu1 }
0x12ee   :  { %v3799_v43 = vadd.f32 %v4330_v19, %v3798_v17  ;;  %v6800_v17 = vld [vmem:[%s6867_s15] ss:$0 sm:$0xff] }
0x12f0   :  { %v3812_v16 = vadd.f32 %v3799_v43, %v6552_v24 }
0x12f2   :  { %v3824_v6 = vsel %vm98_vm0, %v3812_v16, 0.0 }
0x12f3   :  { %3825 = vadd.xlane.f32.xlu2 %v3824_v6  ;;  %v6805_v6 = vld [vmem:[%s6868_s16] ss:$0 sm:$0xff] }
0x1350   :  { %v3801_v45 = vpop.f32.mrf.mxu1 }
0x1351   :  { %v3802_v30 = vadd.f32 %v4330_v19, %v3801_v45 }
0x1353   :  { %v3813_v11 = vadd.f32 %v3802_v30, %v6573_v7 }
0x1355   :  { %v3827_v8 = vsel %vm98_vm0, %v3813_v11, 0.0 }
0x1356   :  { %3828 = vadd.xlane.f32.xlu0 %v3827_v8  ;;  %v3820_v54 = vpop.xlane.xlu0 %3819 }
0x1357   :  { %v3836_v56 = vmul.f32 %v3820_v54, %v4852_v2 }
0x1358   :  { %v3804_v59 = vpop.f32.mrf.mxu1 }
0x1359   :  { %v6755_v52 = vsub.f32 %v3810_v51, %v3836_v56  ;;  %v3805_v32 = vadd.f32 %v4330_v19, %v3804_v59 }
0x135b   :  { %v3814_v4 = vadd.f32 %v3805_v32, %v6584_v21  ;;  %v3848_v24 = vmul.f32 %v6755_v52, %v6755_v52 }
0x135d   :  { %v3830_v61 = vsel %vm98_vm0, %v3814_v4, 0.0  ;;  %v3854_v13 = vsel %vm98_vm0, %v3848_v24, 0.0 }
0x135e   :  { %3831 = vadd.xlane.f32.xlu1 %v3830_v61  ;;  %v3823_v7 = vpop.xlane.xlu1 %3822  ;;  %3855 = vadd.xlane.f32.xlu0 %v3854_v13 }
0x135f   :  { %v3837_v55 = vmul.f32 %v3823_v7, %v4852_v2 }
0x1360   :  { %v3807_v62 = vpop.f32.mrf.mxu1 }
0x1361   :  { %v6763_v57 = vsub.f32 %v3811_v44, %v3837_v55  ;;  %v3808_v20 = vadd.f32 %v4330_v19, %v3807_v62 }
0x1363   :  { %v3815_v29 = vadd.f32 %v3808_v20, %v6596_v5  ;;  %v3849_v21 = vmul.f32 %v6763_v57, %v6763_v57 }
0x1365   :  { %v3833_v35 = vsel %vm98_vm0, %v3815_v29, 0.0  ;;  %v3857_v40 = vsel %vm98_vm0, %v3849_v21, 0.0 }
0x1366   :  { %3834 = vadd.xlane.f32.xlu2 %v3833_v35  ;;  %v3826_v25 = vpop.xlane.xlu2 %3825  ;;  %3858 = vadd.xlane.f32.xlu1 %v3857_v40 }
0x1367   :  { %v3838_v38 = vmul.f32 %v3826_v25, %v4852_v2 }
0x1369   :  { %v6771_v31 = vsub.f32 %v3812_v16, %v3838_v38 }
0x136b   :  { %v3850_v33 = vmul.f32 %v6771_v31, %v6771_v31 }
0x136d   :  { %v3860_v9 = vsel %vm98_vm0, %v3850_v33, 0.0 }
0x136e   :  { %3861 = vadd.xlane.f32.xlu2 %v3860_v9 }
0x13c9   :  { %v3829_v5 = vpop.xlane.xlu0 %3828 }
0x13ca   :  { %v3839_v42 = vmul.f32 %v3829_v5, %v4852_v2 }
0x13cc   :  { %v6777_v14 = vsub.f32 %v3813_v11, %v3839_v42 }
0x13ce   :  { %v3851_v48 = vmul.f32 %v6777_v14, %v6777_v14 }
0x13d0   :  { %v3863_v0 = vsel %vm98_vm0, %v3851_v48, 0.0 }
0x13d1   :  { %v3832_v37 = vpop.xlane.xlu1 %3831  ;;  %3864 = vadd.xlane.f32.xlu0 %v3863_v0  ;;  %v3856_v47 = vpop.xlane.xlu0 %3855 }
0x13d2   :  { %v3840_v23 = vmul.f32 %v3832_v37, %v4852_v2  ;;  %v3872_v36 = vmul.f32 %v3856_v47, %v4852_v2 }
0x13d4   :  { %v6784_v28 = vsub.f32 %v3814_v4, %v3840_v23  ;;  %v3878_v22 = vadd.f32 1e-12, %v3872_v36 }
0x13d6   :  { %4599 = vrsqrt.f32 %v3878_v22  ;;  %v3852_v3 = vmul.f32 %v6784_v28, %v6784_v28  ;;  %vm3890_vm13 = vweird.f32 %v3878_v22 }
0x13d8   :  { %v3866_v39 = vsel %vm98_vm0, %v3852_v3, 0.0 }
0x13d9   :  { %v3835_v63 = vpop.xlane.xlu2 %3834  ;;  %3867 = vadd.xlane.f32.xlu1 %v3866_v39  ;;  %v3859_v1 = vpop.xlane.xlu1 %3858 }
0x13da   :  { %v3841_v50 = vmul.f32 %v3835_v63, %v4852_v2  ;;  %v3873_v49 = vmul.f32 %v3859_v1, %v4852_v2 }
0x13dc   :  { %v4600_v26 = vpop.eup %4599  ;;  %v6791_v41 = vsub.f32 %v3815_v29, %v3841_v50  ;;  %v3879_v19 = vadd.f32 1e-12, %v3873_v49 }
0x13dd   :  { %v3885_v27 = vmul.f32 %v4600_v26, %v3878_v22  ;;  %vm3891_vm9 = vweird.f32 %v4600_v26 }
0x13de   :  { %4601 = vrsqrt.f32 %v3879_v19  ;;  %v3853_v58 = vmul.f32 %v6791_v41, %v6791_v41  ;;  %vm3892_vm14 = vmor %vm3890_vm13, %vm3891_vm9  ;;  %vm3900_vm1 = vweird.f32 %v3879_v19 }
0x13df   :  { %v3886_v34 = vmul.f32 %v4600_v26, %v3885_v27 }
0x13e0   :  { %v3869_v60 = vsel %vm98_vm0, %v3853_v58, 0.0 }
0x13e1   :  { %v3887_v46 = vmul.f32 0.5, %v3886_v34  ;;  %3870 = vadd.xlane.f32.xlu2 %v3869_v60  ;;  %v3862_v51 = vpop.xlane.xlu2 %3861 }
0x13e2   :  { %v3874_v53 = vmul.f32 %v3862_v51, %v4852_v2 }
0x13e3   :  { %v3888_v10 = vsub.f32 1.5, %v3887_v46 }
0x13e4   :  { %v4602_v15 = vpop.eup %4601  ;;  %v3880_v18 = vadd.f32 1e-12, %v3874_v53 }
0x13e5   :  { %v3889_v44 = vmul.f32 %v4600_v26, %v3888_v10  ;;  %v3895_v12 = vmul.f32 %v4602_v15, %v3879_v19  ;;  %vm3901_vm15 = vweird.f32 %v4602_v15 }
0x13e6   :  { %4603 = vrsqrt.f32 %v3880_v18  ;;  %vm3902_vm2 = vmor %vm3900_vm1, %vm3901_vm15  ;;  %vm3910_vm4 = vweird.f32 %v3880_v18 }
0x13e7   :  { %v3893_v43 = vsel %vm3892_vm14, %v4600_v26, %v3889_v44  ;;  %v3896_v16 = vmul.f32 %v4602_v15, %v3895_v12 }
0x13e8   :  { %v3944_v45 = vmul.f32 %v3893_v43, %v6755_v52 }
0x13e9   :  { %v3897_v30 = vmul.f32 0.5, %v3896_v16 }
0x13ea   :  { %v3953_v11 = vmul.f32 %v6800_v17, %v3944_v45 }
0x13eb   :  { %v3898_v8 = vsub.f32 1.5, %v3897_v30 }
0x13ec   :  { %v4604_v54 = vpop.eup %4603  ;;  %v3962_v56 = vadd.f32 %v6805_v6, %v3953_v11 }
0x13ed   :  { %v3899_v59 = vmul.f32 %v4602_v15, %v3898_v8  ;;  %v3905_v32 = vmul.f32 %v4604_v54, %v3880_v18  ;;  %vm3911_vm3 = vweird.f32 %v4604_v54 }
0x13ee   :  { %3968 = vst.msk [vmem:[%s6869_s17] sm:$0xff] %vm98_vm0, %v3962_v56  ;;  %vm3912_vm6 = vmor %vm3910_vm4, %vm3911_vm3 }
0x13ef   :  { %v3903_v4 = vsel %vm3902_vm2, %v4602_v15, %v3899_v59  ;;  %v3906_v24 = vmul.f32 %v4604_v54, %v3905_v32 }
0x13f0   :  { %v3945_v52 = vmul.f32 %v3903_v4, %v6763_v57 }
0x13f1   :  { %v3907_v61 = vmul.f32 0.5, %v3906_v24 }
0x13f2   :  { %v3954_v13 = vmul.f32 %v6800_v17, %v3945_v52 }
0x13f3   :  { %v3908_v7 = vsub.f32 1.5, %v3907_v61 }
0x13f4   :  { %v3963_v55 = vadd.f32 %v6805_v6, %v3954_v13 }
0x13f5   :  { %v3909_v62 = vmul.f32 %v4604_v54, %v3908_v7 }
0x13f6   :  { %3969 = vst.msk [vmem:[%s6869_s17 + $0x8] sm:$0xff] %vm98_vm0, %v3963_v55 }
0x13f7   :  { %v3913_v20 = vsel %vm3912_vm6, %v4604_v54, %v3909_v62 }
0x13f8   :  { %v3946_v29 = vmul.f32 %v3913_v20, %v6771_v31 }
0x13fa   :  { %v3955_v57 = vmul.f32 %v6800_v17, %v3946_v29 }
0x13fc   :  { %v3964_v21 = vadd.f32 %v6805_v6, %v3955_v57 }
0x13fe   :  { %3970 = vst.msk [vmem:[%s6869_s17 + $0x10] sm:$0xff] %vm98_vm0, %v3964_v21 }
0x1444   :  { %v3865_v35 = vpop.xlane.xlu0 %3864 }
0x1445   :  { %v3875_v40 = vmul.f32 %v3865_v35, %v4852_v2 }
0x1447   :  { %v3881_v25 = vadd.f32 1e-12, %v3875_v40 }
0x1449   :  { %4605 = vrsqrt.f32 %v3881_v25  ;;  %vm3920_vm11 = vweird.f32 %v3881_v25 }
0x144c   :  { %v3868_v38 = vpop.xlane.xlu1 %3867 }
0x144d   :  { %v3876_v33 = vmul.f32 %v3868_v38, %v4852_v2 }
0x144f   :  { %v4606_v9 = vpop.eup %4605  ;;  %v3882_v5 = vadd.f32 1e-12, %v3876_v33 }
0x1450   :  { %v3915_v31 = vmul.f32 %v4606_v9, %v3881_v25  ;;  %vm3921_vm10 = vweird.f32 %v4606_v9 }
0x1451   :  { %4607 = vrsqrt.f32 %v3882_v5  ;;  %vm3922_vm12 = vmor %vm3920_vm11, %vm3921_vm10  ;;  %vm3930_vm7 = vweird.f32 %v3882_v5 }
0x1452   :  { %v3916_v42 = vmul.f32 %v4606_v9, %v3915_v31 }
0x1454   :  { %v3917_v48 = vmul.f32 0.5, %v3916_v42  ;;  %v3871_v0 = vpop.xlane.xlu2 %3870 }
0x1455   :  { %v3877_v37 = vmul.f32 %v3871_v0, %v4852_v2 }
0x1456   :  { %v3918_v47 = vsub.f32 1.5, %v3917_v48 }
0x1457   :  { %v4608_v23 = vpop.eup %4607  ;;  %v3883_v36 = vadd.f32 1e-12, %v3877_v37 }
0x1458   :  { %v3919_v22 = vmul.f32 %v4606_v9, %v3918_v47  ;;  %v3925_v3 = vmul.f32 %v4608_v23, %v3882_v5  ;;  %vm3931_vm5 = vweird.f32 %v4608_v23 }
0x1459   :  { %4609 = vrsqrt.f32 %v3883_v36  ;;  %vm3932_vm8 = vmor %vm3930_vm7, %vm3931_vm5  ;;  %vm3940_vm13 = vweird.f32 %v3883_v36 }
0x145a   :  { %v3923_v39 = vsel %vm3922_vm12, %v4606_v9, %v3919_v22  ;;  %v3926_v63 = vmul.f32 %v4608_v23, %v3925_v3 }
0x145b   :  { %v3947_v1 = vmul.f32 %v3923_v39, %v6777_v14 }
0x145c   :  { %v3927_v50 = vmul.f32 0.5, %v3926_v63 }
0x145d   :  { %v3956_v49 = vmul.f32 %v6800_v17, %v3947_v1 }
0x145e   :  { %v3928_v26 = vsub.f32 1.5, %v3927_v50 }
0x145f   :  { %v4610_v19 = vpop.eup %4609  ;;  %v3965_v2 = vadd.f32 %v6805_v6, %v3956_v49 }
0x1460   :  { %v3929_v27 = vmul.f32 %v4608_v23, %v3928_v26  ;;  %v3935_v58 = vmul.f32 %v4610_v19, %v3883_v36  ;;  %vm3941_vm9 = vweird.f32 %v4610_v19 }
0x1461   :  { %3971 = vst.msk [vmem:[%s6869_s17 + $0x18] sm:$0xff] %vm98_vm0, %v3965_v2  ;;  %vm3942_vm14 = vmor %vm3940_vm13, %vm3941_vm9 }
0x1462   :  { %v3933_v34 = vsel %vm3932_vm8, %v4608_v23, %v3929_v27  ;;  %v3936_v60 = vmul.f32 %v4610_v19, %v3935_v58 }
0x1463   :  { %v3948_v14 = vmul.f32 %v3933_v34, %v6784_v28 }
0x1464   :  { %v3937_v46 = vmul.f32 0.5, %v3936_v60 }
0x1465   :  { %v3957_v51 = vmul.f32 %v6800_v17, %v3948_v14 }
0x1466   :  { %v3938_v53 = vsub.f32 1.5, %v3937_v46 }
0x1467   :  { %v3966_v10 = vadd.f32 %v6805_v6, %v3957_v51 }
0x1468   :  { %v3939_v15 = vmul.f32 %v4610_v19, %v3938_v53 }
0x1469   :  { %3972 = vst.msk [vmem:[%s6869_s17 + $0x20] sm:$0xff] %vm98_vm0, %v3966_v10 }
0x146a   :  { %v3943_v18 = vsel %vm3942_vm14, %v4610_v19, %v3939_v15 }
0x146b   :  { %v3949_v44 = vmul.f32 %v3943_v18, %v6791_v41 }
0x146d   :  { %v3958_v28 = vmul.f32 %v6800_v17, %v3949_v44 }
0x146f   :  { %v3967_v12 = vadd.f32 %v6805_v6, %v3958_v28 }
0x1471   :  { %3973 = vst.msk [vmem:[%s6869_s17 + $0x28] sm:$0xff] %vm98_vm0, %v3967_v12 }

// kernel: vit_wheat_forward.5
= control target key start
LH: loop header
LB: loop body
LE: loop exit
PB: predicated region body
PF: predicated region fallthrough
CT: control target
= control target key end

     0   :  { %vm286_vm0 = vcmask 1040384   ;;  %vm93_vm1 = vcmask 72704   ;;  %vm2342_vm2 = vcmask 130048   ;;  %s4266_s4 = inlined_call_operand.vmem [shape: f32[9,16], index: 4, kind: input, shape index: {}]   ;;  %s4267_s2 = inlined_call_operand.vmem [shape: f32[512,9], index: 2, kind: input, shape index: {}]   ;;  %s4268_s3 = inlined_call_operand.vmem [shape: f32[512,9], index: 3, kind: input, shape index: {}]   ;;  %s4269_s0 = inlined_call_operand.vmem [shape: f32[512,9], index: 0, kind: input, shape index: {}]   ;;  %s4270_s1 = inlined_call_operand.vmem [shape: f32[512,9], index: 1, kind: input, shape index: {}]   ;;  %s4271_s5 = inlined_call_operand.vmem [shape: f32[1,16], index: 5, kind: input, shape index: {}]   ;;  %s4272_s6 = inlined_call_operand.vmem [shape: f32[512,16], index: 6, kind: output, shape index: {}]  }
   0x1   :  { %v24_v0 = vld [vmem:[%s4266_s4 + $0x8] sm:$0x1]  ;;  %v23_v1 = vld [vmem:[%s4266_s4] sm:$0xff]  ;;  %v1158_v10 = vld [vmem:[%s4267_s2 + $0x10] sm:$0xff] }
   0x2   :  { %2541 = vmatpush.msk.msra.mxu2 %vm286_vm0, %v24_v0  ;;  %2606 = vmatpush.msk.msra.mxu3 %vm286_vm0, %v24_v0  ;;  %v1156_v2 = vld [vmem:[%s4267_s2] sm:$0xff]  ;;  %v1157_v6 = vld [vmem:[%s4267_s2 + $0x8] sm:$0xff]  ;;  %v1687_v11 = vld [vmem:[%s4268_s3 + $0x10] sm:$0xff] }
   0x3   :  { %v1685_v3 = vld [vmem:[%s4268_s3] sm:$0xff]  ;;  %2411 = vmatpush.msk.msra.mxu0 %vm286_vm0, %v24_v0  ;;  %2476 = vmatpush.msk.msra.mxu1 %vm286_vm0, %v24_v0  ;;  %v1686_v7 = vld [vmem:[%s4268_s3 + $0x8] sm:$0xff]  ;;  %v28_v12 = vld [vmem:[%s4269_s0 + $0x10] sm:$0xff] }
   0x4   :  { %1427 = vmatpush.msra.mxu2 %v23_v1  ;;  %1956 = vmatpush.msra.mxu3 %v23_v1  ;;  %v26_v4 = vld [vmem:[%s4269_s0] sm:$0xff]  ;;  %v27_v8 = vld [vmem:[%s4269_s0 + $0x8] sm:$0xff]  ;;  %v565_v13 = vld [vmem:[%s4270_s1 + $0x10] sm:$0xff] }
   0x5   :  { %v563_v5 = vld [vmem:[%s4270_s1] sm:$0xff]  ;;  %2542 = vmatmul.msk.f32.vlgmr.msra.gmra.mxu2 %vm93_vm1, %v1156_v2  ;;  %2607 = vmatmul.msk.f32.vlgmr.msra.gmra.mxu3 %vm93_vm1, %v1685_v3  ;;  %v564_v9 = vld [vmem:[%s4270_s1 + $0x8] sm:$0xff]  ;;  %v1159_v14 = vld [vmem:[%s4267_s2 + $0x18] sm:$0xff] }
   0x6   :  { %305 = vmatpush.msra.mxu0 %v23_v1  ;;  %834 = vmatpush.msra.mxu1 %v23_v1  ;;  %v1688_v15 = vld [vmem:[%s4268_s3 + $0x18] sm:$0xff]  ;;  %v1160_v18 = vld [vmem:[%s4267_s2 + $0x20] sm:$0xff]  ;;  %v1161_v22 = vld [vmem:[%s4267_s2 + $0x28] sm:$0xff] }
   0x7   :  { %2412 = vmatmul.msk.f32.vlgmr.msra.gmra.mxu0 %vm93_vm1, %v26_v4  ;;  %2477 = vmatmul.msk.f32.vlgmr.msra.gmra.mxu1 %vm93_vm1, %v563_v5  ;;  %v29_v16 = vld [vmem:[%s4269_s0 + $0x18] sm:$0xff]  ;;  %v1689_v19 = vld [vmem:[%s4268_s3 + $0x20] sm:$0xff]  ;;  %v1690_v23 = vld [vmem:[%s4268_s3 + $0x28] sm:$0xff] }
   0x8   :  { %v566_v17 = vld [vmem:[%s4270_s1 + $0x18] sm:$0xff]  ;;  %v30_v20 = vld [vmem:[%s4269_s0 + $0x20] sm:$0xff]  ;;  %v31_v24 = vld [vmem:[%s4269_s0 + $0x28] sm:$0xff] }
   0x9   :  { %v567_v21 = vld [vmem:[%s4270_s1 + $0x20] sm:$0xff]  ;;  %v568_v25 = vld [vmem:[%s4270_s1 + $0x28] sm:$0xff]  ;;  %v1162_v26 = vld [vmem:[%s4267_s2 + $0x30] sm:$0xff] }
   0xa   :  { %v1691_v27 = vld [vmem:[%s4268_s3 + $0x30] sm:$0xff]  ;;  %v1163_v30 = vld [vmem:[%s4267_s2 + $0x38] sm:$0xff]  ;;  %v1164_v34 = vld [vmem:[%s4267_s2 + $0x40] sm:$0xff] }
   0xb   :  { %v32_v28 = vld [vmem:[%s4269_s0 + $0x30] sm:$0xff]  ;;  %v1692_v31 = vld [vmem:[%s4268_s3 + $0x38] sm:$0xff]  ;;  %v1693_v35 = vld [vmem:[%s4268_s3 + $0x40] sm:$0xff] }
   0xc   :  { %v569_v29 = vld [vmem:[%s4270_s1 + $0x30] sm:$0xff]  ;;  %v33_v32 = vld [vmem:[%s4269_s0 + $0x38] sm:$0xff]  ;;  %v34_v36 = vld [vmem:[%s4269_s0 + $0x40] sm:$0xff] }
   0xd   :  { %2543 = vmatmul.msk.f32.gmra.mxu2 %vm93_vm1, %v1157_v6  ;;  %2608 = vmatmul.msk.f32.gmra.mxu3 %vm93_vm1, %v1686_v7  ;;  %v570_v33 = vld [vmem:[%s4270_s1 + $0x38] sm:$0xff]  ;;  %v571_v37 = vld [vmem:[%s4270_s1 + $0x40] sm:$0xff]  ;;  %v1165_v38 = vld [vmem:[%s4267_s2 + $0x48] sm:$0xff] }
   0xe   :  { %v1694_v39 = vld [vmem:[%s4268_s3 + $0x48] sm:$0xff]  ;;  %v1166_v42 = vld [vmem:[%s4267_s2 + $0x50] sm:$0xff]  ;;  %v1167_v46 = vld [vmem:[%s4267_s2 + $0x58] sm:$0xff] }
   0xf   :  { %2413 = vmatmul.msk.f32.gmra.mxu0 %vm93_vm1, %v27_v8  ;;  %2478 = vmatmul.msk.f32.gmra.mxu1 %vm93_vm1, %v564_v9  ;;  %v35_v40 = vld [vmem:[%s4269_s0 + $0x48] sm:$0xff]  ;;  %v1695_v43 = vld [vmem:[%s4268_s3 + $0x50] sm:$0xff]  ;;  %v1696_v47 = vld [vmem:[%s4268_s3 + $0x58] sm:$0xff] }
  0x10   :  { %v572_v41 = vld [vmem:[%s4270_s1 + $0x48] sm:$0xff]  ;;  %v36_v44 = vld [vmem:[%s4269_s0 + $0x50] sm:$0xff]  ;;  %v37_v48 = vld [vmem:[%s4269_s0 + $0x58] sm:$0xff] }
  0x11   :  { %v573_v45 = vld [vmem:[%s4270_s1 + $0x50] sm:$0xff]  ;;  %v574_v49 = vld [vmem:[%s4270_s1 + $0x58] sm:$0xff]  ;;  %v1168_v50 = vld [vmem:[%s4267_s2 + $0x60] sm:$0xff] }
  0x12   :  { %v1697_v51 = vld [vmem:[%s4268_s3 + $0x60] sm:$0xff]  ;;  %v1169_v54 = vld [vmem:[%s4267_s2 + $0x68] sm:$0xff]  ;;  %v1170_v58 = vld [vmem:[%s4267_s2 + $0x70] sm:$0xff] }
  0x13   :  { %v38_v52 = vld [vmem:[%s4269_s0 + $0x60] sm:$0xff]  ;;  %v1698_v55 = vld [vmem:[%s4268_s3 + $0x68] sm:$0xff]  ;;  %v1699_v59 = vld [vmem:[%s4268_s3 + $0x70] sm:$0xff] }
  0x14   :  { %v575_v53 = vld [vmem:[%s4270_s1 + $0x60] sm:$0xff]  ;;  %v39_v56 = vld [vmem:[%s4269_s0 + $0x68] sm:$0xff]  ;;  %v40_v60 = vld [vmem:[%s4269_s0 + $0x70] sm:$0xff] }
  0x15   :  { %2544 = vmatmul.msk.f32.gmra.mxu2 %vm93_vm1, %v1158_v10  ;;  %2609 = vmatmul.msk.f32.gmra.mxu3 %vm93_vm1, %v1687_v11  ;;  %v576_v57 = vld [vmem:[%s4270_s1 + $0x68] sm:$0xff]  ;;  %v577_v61 = vld [vmem:[%s4270_s1 + $0x70] sm:$0xff]  ;;  %v1171_v62 = vld [vmem:[%s4267_s2 + $0x78] sm:$0xff] }
  0x16   :  { %v1700_v63 = vld [vmem:[%s4268_s3 + $0x78] sm:$0xff]  ;;  %v2974_v2 = vld [vmem:[%s4271_s5] ss:$0 sm:$0xff] }
  0x17   :  { %2414 = vmatmul.msk.f32.gmra.mxu0 %vm93_vm1, %v28_v12  ;;  %2479 = vmatmul.msk.f32.gmra.mxu1 %vm93_vm1, %v565_v13  ;;  %v41_v0 = vld [vmem:[%s4269_s0 + $0x78] sm:$0xff]  ;;  %v1172_v3 = vld [vmem:[%s4267_s2 + $0x80] sm:$0xff] }
  0x18   :  { %v578_v1 = vld [vmem:[%s4270_s1 + $0x78] sm:$0xff]  ;;  %v1701_v4 = vld [vmem:[%s4268_s3 + $0x80] sm:$0xff] }
  0x19   :  { %v42_v7 = vld [vmem:[%s4269_s0 + $0x80] sm:$0xff] }
  0x1a   :  { %v579_v8 = vld [vmem:[%s4270_s1 + $0x80] sm:$0xff] }
  0x1d   :  { %2545 = vmatmul.msk.f32.gmra.mxu2 %vm93_vm1, %v1159_v14  ;;  %2610 = vmatmul.msk.f32.gmra.mxu3 %vm93_vm1, %v1688_v15 }
  0x1f   :  { %2415 = vmatmul.msk.f32.gmra.mxu0 %vm93_vm1, %v29_v16  ;;  %2480 = vmatmul.msk.f32.gmra.mxu1 %vm93_vm1, %v566_v17  ;;  %v1173_v17 = vld [vmem:[%s4267_s2 + $0x88] sm:$0xff] }
  0x25   :  { %2546 = vmatmul.msk.f32.gmra.mxu2 %vm93_vm1, %v1160_v18  ;;  %2611 = vmatmul.msk.f32.gmra.mxu3 %vm93_vm1, %v1689_v19  ;;  %v1702_v18 = vld [vmem:[%s4268_s3 + $0x88] sm:$0xff] }
  0x27   :  { %2416 = vmatmul.msk.f32.gmra.mxu0 %vm93_vm1, %v30_v20  ;;  %2481 = vmatmul.msk.f32.gmra.mxu1 %vm93_vm1, %v567_v21 }
  0x2d   :  { %2547 = vmatmul.msk.f32.gmra.mxu2 %vm93_vm1, %v1161_v22  ;;  %2612 = vmatmul.msk.f32.gmra.mxu3 %vm93_vm1, %v1690_v23 }
  0x2f   :  { %2417 = vmatmul.msk.f32.gmra.mxu0 %vm93_vm1, %v31_v24  ;;  %2482 = vmatmul.msk.f32.gmra.mxu1 %vm93_vm1, %v568_v25  ;;  %v43_v24 = vld [vmem:[%s4269_s0 + $0x88] sm:$0xff] }
  0x30   :  { %v580_v25 = vld [vmem:[%s4270_s1 + $0x88] sm:$0xff] }
  0x35   :  { %2548 = vmatmul.msk.f32.gmra.mxu2 %vm93_vm1, %v1162_v26  ;;  %2613 = vmatmul.msk.f32.gmra.mxu3 %vm93_vm1, %v1691_v27 }
  0x37   :  { %2418 = vmatmul.msk.f32.gmra.mxu0 %vm93_vm1, %v32_v28  ;;  %2483 = vmatmul.msk.f32.gmra.mxu1 %vm93_vm1, %v569_v29 }
  0x3d   :  { %2549 = vmatmul.msk.f32.gmra.mxu2 %vm93_vm1, %v1163_v30  ;;  %2614 = vmatmul.msk.f32.gmra.mxu3 %vm93_vm1, %v1692_v31 }
  0x3f   :  { %2419 = vmatmul.msk.f32.gmra.mxu0 %vm93_vm1, %v33_v32  ;;  %2484 = vmatmul.msk.f32.gmra.mxu1 %vm93_vm1, %v570_v33 }
  0x45   :  { %2550 = vmatmul.msk.f32.gmra.mxu2 %vm93_vm1, %v1164_v34  ;;  %2615 = vmatmul.msk.f32.gmra.mxu3 %vm93_vm1, %v1693_v35 }
  0x47   :  { %2420 = vmatmul.msk.f32.gmra.mxu0 %vm93_vm1, %v34_v36  ;;  %2485 = vmatmul.msk.f32.gmra.mxu1 %vm93_vm1, %v571_v37  ;;  %v1174_v36 = vld [vmem:[%s4267_s2 + $0x90] sm:$0xff] }
  0x48   :  { %v1703_v37 = vld [vmem:[%s4268_s3 + $0x90] sm:$0xff] }
  0x4d   :  { %2551 = vmatmul.msk.f32.gmra.mxu2 %vm93_vm1, %v1165_v38  ;;  %2616 = vmatmul.msk.f32.gmra.mxu3 %vm93_vm1, %v1694_v39 }
  0x4f   :  { %2421 = vmatmul.msk.f32.gmra.mxu0 %vm93_vm1, %v35_v40  ;;  %2486 = vmatmul.msk.f32.gmra.mxu1 %vm93_vm1, %v572_v41 }
  0x55   :  { %2552 = vmatmul.msk.f32.gmra.mxu2 %vm93_vm1, %v1166_v42  ;;  %2617 = vmatmul.msk.f32.gmra.mxu3 %vm93_vm1, %v1695_v43  ;;  %v44_v43 = vld [vmem:[%s4269_s0 + $0x90] sm:$0xff] }
  0x57   :  { %2422 = vmatmul.msk.f32.gmra.mxu0 %vm93_vm1, %v36_v44  ;;  %2487 = vmatmul.msk.f32.gmra.mxu1 %vm93_vm1, %v573_v45  ;;  %v581_v44 = vld [vmem:[%s4270_s1 + $0x90] sm:$0xff] }
  0x5d   :  { %2553 = vmatmul.msk.f32.gmra.mxu2 %vm93_vm1, %v1167_v46  ;;  %2618 = vmatmul.msk.f32.gmra.mxu3 %vm93_vm1, %v1696_v47 }
  0x5f   :  { %2423 = vmatmul.msk.f32.gmra.mxu0 %vm93_vm1, %v37_v48  ;;  %2488 = vmatmul.msk.f32.gmra.mxu1 %vm93_vm1, %v574_v49 }
  0x65   :  { %2554 = vmatmul.msk.f32.gmra.mxu2 %vm93_vm1, %v1168_v50  ;;  %2619 = vmatmul.msk.f32.gmra.mxu3 %vm93_vm1, %v1697_v51 }
  0x67   :  { %2424 = vmatmul.msk.f32.gmra.mxu0 %vm93_vm1, %v38_v52  ;;  %2489 = vmatmul.msk.f32.gmra.mxu1 %vm93_vm1, %v575_v53 }
  0x6d   :  { %2555 = vmatmul.msk.f32.gmra.mxu2 %vm93_vm1, %v1169_v54  ;;  %2620 = vmatmul.msk.f32.gmra.mxu3 %vm93_vm1, %v1698_v55  ;;  %v1175_v55 = vld [vmem:[%s4267_s2 + $0x98] sm:$0xff] }
  0x6f   :  { %2425 = vmatmul.msk.f32.gmra.mxu0 %vm93_vm1, %v39_v56  ;;  %2490 = vmatmul.msk.f32.gmra.mxu1 %vm93_vm1, %v576_v57  ;;  %v1704_v56 = vld [vmem:[%s4268_s3 + $0x98] sm:$0xff] }
  0x75   :  { %2556 = vmatmul.msk.f32.gmra.mxu2 %vm93_vm1, %v1170_v58  ;;  %2621 = vmatmul.msk.f32.gmra.mxu3 %vm93_vm1, %v1699_v59 }
  0x77   :  { %2426 = vmatmul.msk.f32.gmra.mxu0 %vm93_vm1, %v40_v60  ;;  %2491 = vmatmul.msk.f32.gmra.mxu1 %vm93_vm1, %v577_v61 }
  0x7d   :  { %2557 = vmatmul.msk.f32.gmra.mxu2 %vm93_vm1, %v1171_v62  ;;  %2622 = vmatmul.msk.f32.gmra.mxu3 %vm93_vm1, %v1700_v63  ;;  %v45_v62 = vld [vmem:[%s4269_s0 + $0x98] sm:$0xff] }
  0x7e   :  { %v582_v63 = vld [vmem:[%s4270_s1 + $0x98] sm:$0xff] }
  0x7f   :  { %2427 = vmatmul.msk.f32.gmra.mxu0 %vm93_vm1, %v41_v0  ;;  %2492 = vmatmul.msk.f32.gmra.mxu1 %vm93_vm1, %v578_v1 }
  0x84   :  { %v307_v5 = vpop.f32.mrf.mxu0  ;;  %v836_v6 = vpop.f32.mrf.mxu1 }
  0x85   :  { %2558 = vmatmul.msk.f32.gmra.mxu2 %vm93_vm1, %v1172_v3  ;;  %2623 = vmatmul.msk.f32.gmra.mxu3 %vm93_vm1, %v1701_v4  ;;  %v308_v9 = vadd.f32 %v2974_v2, %v307_v5  ;;  %v837_v10 = vadd.f32 %v2974_v2, %v836_v6 }
  0x87   :  { %v499_v11 = vmax.f32 %v308_v9, 0.0  ;;  %v1028_v12 = vmax.f32 %v837_v10, 0.0  ;;  %2428 = vmatmul.msk.f32.gmra.mxu0 %vm93_vm1, %v42_v7  ;;  %2493 = vmatmul.msk.f32.gmra.mxu1 %vm93_vm1, %v579_v8 }
  0x88   :  { %v1429_v13 = vpop.f32.mrf.mxu2  ;;  %v1958_v14 = vpop.f32.mrf.mxu3 }
  0x89   :  { %v1430_v15 = vadd.f32 %v2974_v2, %v1429_v13  ;;  %v1959_v16 = vadd.f32 %v2974_v2, %v1958_v14  ;;  %v1092_v19 = vmax.f32 %v499_v11, %v1028_v12  ;;  %v1176_v11 = vld [vmem:[%s4267_s2 + $0xa0] sm:$0xff] }
  0x8a   :  { %v1705_v12 = vld [vmem:[%s4268_s3 + $0xa0] sm:$0xff] }
  0x8b   :  { %v1621_v20 = vmax.f32 %v1430_v15, 0.0  ;;  %v2150_v21 = vmax.f32 %v1959_v16, 0.0 }
  0x8c   :  { %v310_v22 = vpop.f32.mrf.mxu0  ;;  %v839_v23 = vpop.f32.mrf.mxu1 }
  0x8d   :  { %v2214_v26 = vmax.f32 %v1621_v20, %v2150_v21  ;;  %2559 = vmatmul.msk.f32.gmra.mxu2 %vm93_vm1, %v1173_v17  ;;  %2624 = vmatmul.msk.f32.gmra.mxu3 %vm93_vm1, %v1702_v18  ;;  %v311_v27 = vadd.f32 %v2974_v2, %v310_v22  ;;  %v840_v28 = vadd.f32 %v2974_v2, %v839_v23  ;;  %v46_v18 = vld [vmem:[%s4269_s0 + $0xa0] sm:$0xff] }
  0x8f   :  { %v2278_v29 = vmax.f32 %v1092_v19, %v2214_v26  ;;  %v500_v30 = vmax.f32 %v311_v27, 0.0  ;;  %v1029_v31 = vmax.f32 %v840_v28, 0.0  ;;  %2429 = vmatmul.msk.f32.gmra.mxu0 %vm93_vm1, %v43_v24  ;;  %2494 = vmatmul.msk.f32.gmra.mxu1 %vm93_vm1, %v580_v25  ;;  %v583_v19 = vld [vmem:[%s4270_s1 + $0xa0] sm:$0xff] }
  0x90   :  { %v1432_v32 = vpop.f32.mrf.mxu2  ;;  %v1961_v33 = vpop.f32.mrf.mxu3 }
  0x91   :  { %2343 = vst.msk [vmem:[%s4272_s6] sm:$0xff] %vm2342_vm2, %v2278_v29  ;;  %v1433_v34 = vadd.f32 %v2974_v2, %v1432_v32  ;;  %v1962_v35 = vadd.f32 %v2974_v2, %v1961_v33  ;;  %v1093_v38 = vmax.f32 %v500_v30, %v1029_v31  ;;  %v1177_v30 = vld [vmem:[%s4267_s2 + $0xa8] sm:$0xff] }
  0x92   :  { %v1706_v31 = vld [vmem:[%s4268_s3 + $0xa8] sm:$0xff] }
  0x93   :  { %v1622_v39 = vmax.f32 %v1433_v34, 0.0  ;;  %v2151_v40 = vmax.f32 %v1962_v35, 0.0 }
  0x94   :  { %v313_v41 = vpop.f32.mrf.mxu0  ;;  %v842_v42 = vpop.f32.mrf.mxu1 }
  0x95   :  { %v2215_v45 = vmax.f32 %v1622_v39, %v2151_v40  ;;  %2560 = vmatmul.msk.f32.gmra.mxu2 %vm93_vm1, %v1174_v36  ;;  %2625 = vmatmul.msk.f32.gmra.mxu3 %vm93_vm1, %v1703_v37  ;;  %v314_v46 = vadd.f32 %v2974_v2, %v313_v41  ;;  %v843_v47 = vadd.f32 %v2974_v2, %v842_v42  ;;  %v47_v37 = vld [vmem:[%s4269_s0 + $0xa8] sm:$0xff] }
  0x97   :  { %v2279_v48 = vmax.f32 %v1093_v38, %v2215_v45  ;;  %v501_v49 = vmax.f32 %v314_v46, 0.0  ;;  %v1030_v50 = vmax.f32 %v843_v47, 0.0  ;;  %2430 = vmatmul.msk.f32.gmra.mxu0 %vm93_vm1, %v44_v43  ;;  %2495 = vmatmul.msk.f32.gmra.mxu1 %vm93_vm1, %v581_v44  ;;  %v584_v38 = vld [vmem:[%s4270_s1 + $0xa8] sm:$0xff] }
  0x98   :  { %v1435_v51 = vpop.f32.mrf.mxu2  ;;  %v1964_v52 = vpop.f32.mrf.mxu3 }
  0x99   :  { %2344 = vst.msk [vmem:[%s4272_s6 + $0x8] sm:$0xff] %vm2342_vm2, %v2279_v48  ;;  %v1436_v53 = vadd.f32 %v2974_v2, %v1435_v51  ;;  %v1965_v54 = vadd.f32 %v2974_v2, %v1964_v52  ;;  %v1094_v57 = vmax.f32 %v501_v49, %v1030_v50  ;;  %v1178_v49 = vld [vmem:[%s4267_s2 + $0xb0] sm:$0xff] }
  0x9a   :  { %v1707_v50 = vld [vmem:[%s4268_s3 + $0xb0] sm:$0xff] }
  0x9b   :  { %v1623_v58 = vmax.f32 %v1436_v53, 0.0  ;;  %v2152_v59 = vmax.f32 %v1965_v54, 0.0 }
  0x9c   :  { %v316_v60 = vpop.f32.mrf.mxu0  ;;  %v845_v61 = vpop.f32.mrf.mxu1 }
  0x9d   :  { %v2216_v0 = vmax.f32 %v1623_v58, %v2152_v59  ;;  %2561 = vmatmul.msk.f32.gmra.mxu2 %vm93_vm1, %v1175_v55  ;;  %2626 = vmatmul.msk.f32.gmra.mxu3 %vm93_vm1, %v1704_v56  ;;  %v317_v1 = vadd.f32 %v2974_v2, %v316_v60  ;;  %v846_v3 = vadd.f32 %v2974_v2, %v845_v61  ;;  %v48_v56 = vld [vmem:[%s4269_s0 + $0xb0] sm:$0xff] }
  0x9f   :  { %v2280_v4 = vmax.f32 %v1094_v57, %v2216_v0  ;;  %v502_v5 = vmax.f32 %v317_v1, 0.0  ;;  %v1031_v6 = vmax.f32 %v846_v3, 0.0  ;;  %2431 = vmatmul.msk.f32.gmra.mxu0 %vm93_vm1, %v45_v62  ;;  %2496 = vmatmul.msk.f32.gmra.mxu1 %vm93_vm1, %v582_v63  ;;  %v585_v57 = vld [vmem:[%s4270_s1 + $0xb0] sm:$0xff] }
  0xa0   :  { %v1438_v7 = vpop.f32.mrf.mxu2  ;;  %v1967_v8 = vpop.f32.mrf.mxu3 }
  0xa1   :  { %2345 = vst.msk [vmem:[%s4272_s6 + $0x10] sm:$0xff] %vm2342_vm2, %v2280_v4  ;;  %v1439_v9 = vadd.f32 %v2974_v2, %v1438_v7  ;;  %v1968_v10 = vadd.f32 %v2974_v2, %v1967_v8  ;;  %v1095_v13 = vmax.f32 %v502_v5, %v1031_v6  ;;  %v1179_v5 = vld [vmem:[%s4267_s2 + $0xb8] sm:$0xff] }
  0xa2   :  { %v1708_v6 = vld [vmem:[%s4268_s3 + $0xb8] sm:$0xff] }
  0xa3   :  { %v1624_v14 = vmax.f32 %v1439_v9, 0.0  ;;  %v2153_v15 = vmax.f32 %v1968_v10, 0.0 }
  0xa4   :  { %v319_v16 = vpop.f32.mrf.mxu0  ;;  %v848_v17 = vpop.f32.mrf.mxu1 }
  0xa5   :  { %v2217_v20 = vmax.f32 %v1624_v14, %v2153_v15  ;;  %2562 = vmatmul.msk.f32.gmra.mxu2 %vm93_vm1, %v1176_v11  ;;  %2627 = vmatmul.msk.f32.gmra.mxu3 %vm93_vm1, %v1705_v12  ;;  %v320_v21 = vadd.f32 %v2974_v2, %v319_v16  ;;  %v849_v22 = vadd.f32 %v2974_v2, %v848_v17  ;;  %v49_v12 = vld [vmem:[%s4269_s0 + $0xb8] sm:$0xff] }
  0xa7   :  { %v2281_v23 = vmax.f32 %v1095_v13, %v2217_v20  ;;  %v503_v24 = vmax.f32 %v320_v21, 0.0  ;;  %v1032_v25 = vmax.f32 %v849_v22, 0.0  ;;  %2432 = vmatmul.msk.f32.gmra.mxu0 %vm93_vm1, %v46_v18  ;;  %2497 = vmatmul.msk.f32.gmra.mxu1 %vm93_vm1, %v583_v19  ;;  %v586_v13 = vld [vmem:[%s4270_s1 + $0xb8] sm:$0xff] }
  0xa8   :  { %v1441_v26 = vpop.f32.mrf.mxu2  ;;  %v1970_v27 = vpop.f32.mrf.mxu3 }
  0xa9   :  { %2346 = vst.msk [vmem:[%s4272_s6 + $0x18] sm:$0xff] %vm2342_vm2, %v2281_v23  ;;  %v1442_v28 = vadd.f32 %v2974_v2, %v1441_v26  ;;  %v1971_v29 = vadd.f32 %v2974_v2, %v1970_v27  ;;  %v1096_v32 = vmax.f32 %v503_v24, %v1032_v25  ;;  %v1180_v24 = vld [vmem:[%s4267_s2 + $0xc0] sm:$0xff] }
  0xaa   :  { %v1709_v25 = vld [vmem:[%s4268_s3 + $0xc0] sm:$0xff] }
  0xab   :  { %v1625_v33 = vmax.f32 %v1442_v28, 0.0  ;;  %v2154_v34 = vmax.f32 %v1971_v29, 0.0 }
  0xac   :  { %v322_v35 = vpop.f32.mrf.mxu0  ;;  %v851_v36 = vpop.f32.mrf.mxu1 }
  0xad   :  { %v2218_v39 = vmax.f32 %v1625_v33, %v2154_v34  ;;  %2563 = vmatmul.msk.f32.gmra.mxu2 %vm93_vm1, %v1177_v30  ;;  %2628 = vmatmul.msk.f32.gmra.mxu3 %vm93_vm1, %v1706_v31  ;;  %v323_v40 = vadd.f32 %v2974_v2, %v322_v35  ;;  %v852_v41 = vadd.f32 %v2974_v2, %v851_v36  ;;  %v50_v31 = vld [vmem:[%s4269_s0 + $0xc0] sm:$0xff] }
  0xaf   :  { %v2282_v42 = vmax.f32 %v1096_v32, %v2218_v39  ;;  %v504_v43 = vmax.f32 %v323_v40, 0.0  ;;  %v1033_v44 = vmax.f32 %v852_v41, 0.0  ;;  %2433 = vmatmul.msk.f32.gmra.mxu0 %vm93_vm1, %v47_v37  ;;  %2498 = vmatmul.msk.f32.gmra.mxu1 %vm93_vm1, %v584_v38  ;;  %v587_v32 = vld [vmem:[%s4270_s1 + $0xc0] sm:$0xff] }
  0xb0   :  { %v1444_v45 = vpop.f32.mrf.mxu2  ;;  %v1973_v46 = vpop.f32.mrf.mxu3 }
  0xb1   :  { %2347 = vst.msk [vmem:[%s4272_s6 + $0x20] sm:$0xff] %vm2342_vm2, %v2282_v42  ;;  %v1445_v47 = vadd.f32 %v2974_v2, %v1444_v45  ;;  %v1974_v48 = vadd.f32 %v2974_v2, %v1973_v46  ;;  %v1097_v51 = vmax.f32 %v504_v43, %v1033_v44  ;;  %v1181_v43 = vld [vmem:[%s4267_s2 + $0xc8] sm:$0xff] }
  0xb2   :  { %v1710_v44 = vld [vmem:[%s4268_s3 + $0xc8] sm:$0xff] }
  0xb3   :  { %v1626_v52 = vmax.f32 %v1445_v47, 0.0  ;;  %v2155_v53 = vmax.f32 %v1974_v48, 0.0 }
  0xb4   :  { %v325_v54 = vpop.f32.mrf.mxu0  ;;  %v854_v55 = vpop.f32.mrf.mxu1 }
  0xb5   :  { %v2219_v58 = vmax.f32 %v1626_v52, %v2155_v53  ;;  %2564 = vmatmul.msk.f32.gmra.mxu2 %vm93_vm1, %v1178_v49  ;;  %2629 = vmatmul.msk.f32.gmra.mxu3 %vm93_vm1, %v1707_v50  ;;  %v326_v59 = vadd.f32 %v2974_v2, %v325_v54  ;;  %v855_v60 = vadd.f32 %v2974_v2, %v854_v55  ;;  %v51_v50 = vld [vmem:[%s4269_s0 + $0xc8] sm:$0xff] }
  0xb7   :  { %v2283_v61 = vmax.f32 %v1097_v51, %v2219_v58  ;;  %v505_v62 = vmax.f32 %v326_v59, 0.0  ;;  %v1034_v63 = vmax.f32 %v855_v60, 0.0  ;;  %2434 = vmatmul.msk.f32.gmra.mxu0 %vm93_vm1, %v48_v56  ;;  %2499 = vmatmul.msk.f32.gmra.mxu1 %vm93_vm1, %v585_v57  ;;  %v588_v51 = vld [vmem:[%s4270_s1 + $0xc8] sm:$0xff] }
  0xb8   :  { %v1447_v0 = vpop.f32.mrf.mxu2  ;;  %v1976_v1 = vpop.f32.mrf.mxu3 }
  0xb9   :  { %2348 = vst.msk [vmem:[%s4272_s6 + $0x28] sm:$0xff] %vm2342_vm2, %v2283_v61  ;;  %v1448_v3 = vadd.f32 %v2974_v2, %v1447_v0  ;;  %v1977_v4 = vadd.f32 %v2974_v2, %v1976_v1  ;;  %v1098_v7 = vmax.f32 %v505_v62, %v1034_v63  ;;  %v1182_v62 = vld [vmem:[%s4267_s2 + $0xd0] sm:$0xff] }
  0xba   :  { %v1711_v63 = vld [vmem:[%s4268_s3 + $0xd0] sm:$0xff] }
  0xbb   :  { %v1627_v8 = vmax.f32 %v1448_v3, 0.0  ;;  %v2156_v9 = vmax.f32 %v1977_v4, 0.0 }
  0xbc   :  { %v328_v10 = vpop.f32.mrf.mxu0  ;;  %v857_v11 = vpop.f32.mrf.mxu1 }
  0xbd   :  { %v2220_v14 = vmax.f32 %v1627_v8, %v2156_v9  ;;  %2565 = vmatmul.msk.f32.gmra.mxu2 %vm93_vm1, %v1179_v5  ;;  %2630 = vmatmul.msk.f32.gmra.mxu3 %vm93_vm1, %v1708_v6  ;;  %v329_v15 = vadd.f32 %v2974_v2, %v328_v10  ;;  %v858_v16 = vadd.f32 %v2974_v2, %v857_v11  ;;  %v52_v6 = vld [vmem:[%s4269_s0 + $0xd0] sm:$0xff] }
  0xbf   :  { %v2284_v17 = vmax.f32 %v1098_v7, %v2220_v14  ;;  %v506_v18 = vmax.f32 %v329_v15, 0.0  ;;  %v1035_v19 = vmax.f32 %v858_v16, 0.0  ;;  %2435 = vmatmul.msk.f32.gmra.mxu0 %vm93_vm1, %v49_v12  ;;  %2500 = vmatmul.msk.f32.gmra.mxu1 %vm93_vm1, %v586_v13  ;;  %v589_v7 = vld [vmem:[%s4270_s1 + $0xd0] sm:$0xff] }
  0xc0   :  { %v1450_v20 = vpop.f32.mrf.mxu2  ;;  %v1979_v21 = vpop.f32.mrf.mxu3 }
  0xc1   :  { %2349 = vst.msk [vmem:[%s4272_s6 + $0x30] sm:$0xff] %vm2342_vm2, %v2284_v17  ;;  %v1451_v22 = vadd.f32 %v2974_v2, %v1450_v20  ;;  %v1980_v23 = vadd.f32 %v2974_v2, %v1979_v21  ;;  %v1099_v26 = vmax.f32 %v506_v18, %v1035_v19  ;;  %v1183_v18 = vld [vmem:[%s4267_s2 + $0xd8] sm:$0xff] }
  0xc2   :  { %v1712_v19 = vld [vmem:[%s4268_s3 + $0xd8] sm:$0xff] }
  0xc3   :  { %v1628_v27 = vmax.f32 %v1451_v22, 0.0  ;;  %v2157_v28 = vmax.f32 %v1980_v23, 0.0 }
  0xc4   :  { %v331_v29 = vpop.f32.mrf.mxu0  ;;  %v860_v30 = vpop.f32.mrf.mxu1 }
  0xc5   :  { %v2221_v33 = vmax.f32 %v1628_v27, %v2157_v28  ;;  %2566 = vmatmul.msk.f32.gmra.mxu2 %vm93_vm1, %v1180_v24  ;;  %2631 = vmatmul.msk.f32.gmra.mxu3 %vm93_vm1, %v1709_v25  ;;  %v332_v34 = vadd.f32 %v2974_v2, %v331_v29  ;;  %v861_v35 = vadd.f32 %v2974_v2, %v860_v30  ;;  %v53_v25 = vld [vmem:[%s4269_s0 + $0xd8] sm:$0xff] }
  0xc7   :  { %v2285_v36 = vmax.f32 %v1099_v26, %v2221_v33  ;;  %v507_v37 = vmax.f32 %v332_v34, 0.0  ;;  %v1036_v38 = vmax.f32 %v861_v35, 0.0  ;;  %2436 = vmatmul.msk.f32.gmra.mxu0 %vm93_vm1, %v50_v31  ;;  %2501 = vmatmul.msk.f32.gmra.mxu1 %vm93_vm1, %v587_v32  ;;  %v590_v26 = vld [vmem:[%s4270_s1 + $0xd8] sm:$0xff] }
  0xc8   :  { %v1453_v39 = vpop.f32.mrf.mxu2  ;;  %v1982_v40 = vpop.f32.mrf.mxu3 }
  0xc9   :  { %2350 = vst.msk [vmem:[%s4272_s6 + $0x38] sm:$0xff] %vm2342_vm2, %v2285_v36  ;;  %v1454_v41 = vadd.f32 %v2974_v2, %v1453_v39  ;;  %v1983_v42 = vadd.f32 %v2974_v2, %v1982_v40  ;;  %v1100_v45 = vmax.f32 %v507_v37, %v1036_v38  ;;  %v1184_v37 = vld [vmem:[%s4267_s2 + $0xe0] sm:$0xff] }
  0xca   :  { %v1713_v38 = vld [vmem:[%s4268_s3 + $0xe0] sm:$0xff] }
  0xcb   :  { %v1629_v46 = vmax.f32 %v1454_v41, 0.0  ;;  %v2158_v47 = vmax.f32 %v1983_v42, 0.0 }
  0xcc   :  { %v334_v48 = vpop.f32.mrf.mxu0  ;;  %v863_v49 = vpop.f32.mrf.mxu1 }
  0xcd   :  { %v2222_v52 = vmax.f32 %v1629_v46, %v2158_v47  ;;  %2567 = vmatmul.msk.f32.gmra.mxu2 %vm93_vm1, %v1181_v43  ;;  %2632 = vmatmul.msk.f32.gmra.mxu3 %vm93_vm1, %v1710_v44  ;;  %v335_v53 = vadd.f32 %v2974_v2, %v334_v48  ;;  %v864_v54 = vadd.f32 %v2974_v2, %v863_v49  ;;  %v54_v44 = vld [vmem:[%s4269_s0 + $0xe0] sm:$0xff] }
  0xcf   :  { %v2286_v55 = vmax.f32 %v1100_v45, %v2222_v52  ;;  %v508_v56 = vmax.f32 %v335_v53, 0.0  ;;  %v1037_v57 = vmax.f32 %v864_v54, 0.0  ;;  %2437 = vmatmul.msk.f32.gmra.mxu0 %vm93_vm1, %v51_v50  ;;  %2502 = vmatmul.msk.f32.gmra.mxu1 %vm93_vm1, %v588_v51  ;;  %v591_v45 = vld [vmem:[%s4270_s1 + $0xe0] sm:$0xff] }
  0xd0   :  { %v1456_v58 = vpop.f32.mrf.mxu2  ;;  %v1985_v59 = vpop.f32.mrf.mxu3 }
  0xd1   :  { %2351 = vst.msk [vmem:[%s4272_s6 + $0x40] sm:$0xff] %vm2342_vm2, %v2286_v55  ;;  %v1457_v60 = vadd.f32 %v2974_v2, %v1456_v58  ;;  %v1986_v61 = vadd.f32 %v2974_v2, %v1985_v59  ;;  %v1101_v0 = vmax.f32 %v508_v56, %v1037_v57  ;;  %v1185_v56 = vld [vmem:[%s4267_s2 + $0xe8] sm:$0xff] }
  0xd2   :  { %v1714_v57 = vld [vmem:[%s4268_s3 + $0xe8] sm:$0xff] }
  0xd3   :  { %v1630_v1 = vmax.f32 %v1457_v60, 0.0  ;;  %v2159_v3 = vmax.f32 %v1986_v61, 0.0 }
  0xd4   :  { %v337_v4 = vpop.f32.mrf.mxu0  ;;  %v866_v5 = vpop.f32.mrf.mxu1 }
  0xd5   :  { %v2223_v8 = vmax.f32 %v1630_v1, %v2159_v3  ;;  %2568 = vmatmul.msk.f32.gmra.mxu2 %vm93_vm1, %v1182_v62  ;;  %2633 = vmatmul.msk.f32.gmra.mxu3 %vm93_vm1, %v1711_v63  ;;  %v338_v9 = vadd.f32 %v2974_v2, %v337_v4  ;;  %v867_v10 = vadd.f32 %v2974_v2, %v866_v5  ;;  %v55_v63 = vld [vmem:[%s4269_s0 + $0xe8] sm:$0xff] }
  0xd7   :  { %v2287_v11 = vmax.f32 %v1101_v0, %v2223_v8  ;;  %v509_v12 = vmax.f32 %v338_v9, 0.0  ;;  %v1038_v13 = vmax.f32 %v867_v10, 0.0  ;;  %2438 = vmatmul.msk.f32.gmra.mxu0 %vm93_vm1, %v52_v6  ;;  %2503 = vmatmul.msk.f32.gmra.mxu1 %vm93_vm1, %v589_v7  ;;  %v592_v0 = vld [vmem:[%s4270_s1 + $0xe8] sm:$0xff] }
  0xd8   :  { %v1459_v14 = vpop.f32.mrf.mxu2  ;;  %v1988_v15 = vpop.f32.mrf.mxu3 }
  0xd9   :  { %2352 = vst.msk [vmem:[%s4272_s6 + $0x48] sm:$0xff] %vm2342_vm2, %v2287_v11  ;;  %v1460_v16 = vadd.f32 %v2974_v2, %v1459_v14  ;;  %v1989_v17 = vadd.f32 %v2974_v2, %v1988_v15  ;;  %v1102_v20 = vmax.f32 %v509_v12, %v1038_v13  ;;  %v1186_v12 = vld [vmem:[%s4267_s2 + $0xf0] sm:$0xff] }
  0xda   :  { %v1715_v13 = vld [vmem:[%s4268_s3 + $0xf0] sm:$0xff] }
  0xdb   :  { %v1631_v21 = vmax.f32 %v1460_v16, 0.0  ;;  %v2160_v22 = vmax.f32 %v1989_v17, 0.0 }
  0xdc   :  { %v340_v23 = vpop.f32.mrf.mxu0  ;;  %v869_v24 = vpop.f32.mrf.mxu1 }
  0xdd   :  { %v2224_v27 = vmax.f32 %v1631_v21, %v2160_v22  ;;  %2569 = vmatmul.msk.f32.gmra.mxu2 %vm93_vm1, %v1183_v18  ;;  %2634 = vmatmul.msk.f32.gmra.mxu3 %vm93_vm1, %v1712_v19  ;;  %v341_v28 = vadd.f32 %v2974_v2, %v340_v23  ;;  %v870_v29 = vadd.f32 %v2974_v2, %v869_v24  ;;  %v56_v19 = vld [vmem:[%s4269_s0 + $0xf0] sm:$0xff] }
  0xdf   :  { %v2288_v30 = vmax.f32 %v1102_v20, %v2224_v27  ;;  %v510_v31 = vmax.f32 %v341_v28, 0.0  ;;  %v1039_v32 = vmax.f32 %v870_v29, 0.0  ;;  %2439 = vmatmul.msk.f32.gmra.mxu0 %vm93_vm1, %v53_v25  ;;  %2504 = vmatmul.msk.f32.gmra.mxu1 %vm93_vm1, %v590_v26  ;;  %v593_v20 = vld [vmem:[%s4270_s1 + $0xf0] sm:$0xff] }
  0xe0   :  { %v1462_v33 = vpop.f32.mrf.mxu2  ;;  %v1991_v34 = vpop.f32.mrf.mxu3 }
  0xe1   :  { %2353 = vst.msk [vmem:[%s4272_s6 + $0x50] sm:$0xff] %vm2342_vm2, %v2288_v30  ;;  %v1463_v35 = vadd.f32 %v2974_v2, %v1462_v33  ;;  %v1992_v36 = vadd.f32 %v2974_v2, %v1991_v34  ;;  %v1103_v39 = vmax.f32 %v510_v31, %v1039_v32  ;;  %v1187_v31 = vld [vmem:[%s4267_s2 + $0xf8] sm:$0xff] }
  0xe2   :  { %v1716_v32 = vld [vmem:[%s4268_s3 + $0xf8] sm:$0xff] }
  0xe3   :  { %v1632_v40 = vmax.f32 %v1463_v35, 0.0  ;;  %v2161_v41 = vmax.f32 %v1992_v36, 0.0 }
  0xe4   :  { %v343_v42 = vpop.f32.mrf.mxu0  ;;  %v872_v43 = vpop.f32.mrf.mxu1 }
  0xe5   :  { %v2225_v46 = vmax.f32 %v1632_v40, %v2161_v41  ;;  %2570 = vmatmul.msk.f32.gmra.mxu2 %vm93_vm1, %v1184_v37  ;;  %2635 = vmatmul.msk.f32.gmra.mxu3 %vm93_vm1, %v1713_v38  ;;  %v344_v47 = vadd.f32 %v2974_v2, %v343_v42  ;;  %v873_v48 = vadd.f32 %v2974_v2, %v872_v43  ;;  %v57_v38 = vld [vmem:[%s4269_s0 + $0xf8] sm:$0xff] }
  0xe7   :  { %v2289_v49 = vmax.f32 %v1103_v39, %v2225_v46  ;;  %v511_v50 = vmax.f32 %v344_v47, 0.0  ;;  %v1040_v51 = vmax.f32 %v873_v48, 0.0  ;;  %2440 = vmatmul.msk.f32.gmra.mxu0 %vm93_vm1, %v54_v44  ;;  %2505 = vmatmul.msk.f32.gmra.mxu1 %vm93_vm1, %v591_v45  ;;  %v594_v39 = vld [vmem:[%s4270_s1 + $0xf8] sm:$0xff] }
  0xe8   :  { %v1465_v52 = vpop.f32.mrf.mxu2  ;;  %v1994_v53 = vpop.f32.mrf.mxu3 }
  0xe9   :  { %2354 = vst.msk [vmem:[%s4272_s6 + $0x58] sm:$0xff] %vm2342_vm2, %v2289_v49  ;;  %v1466_v54 = vadd.f32 %v2974_v2, %v1465_v52  ;;  %v1995_v55 = vadd.f32 %v2974_v2, %v1994_v53  ;;  %v1104_v58 = vmax.f32 %v511_v50, %v1040_v51  ;;  %v1188_v50 = vld [vmem:[%s4267_s2 + $0x100] sm:$0xff] }
  0xea   :  { %v1717_v51 = vld [vmem:[%s4268_s3 + $0x100] sm:$0xff] }
  0xeb   :  { %v1633_v59 = vmax.f32 %v1466_v54, 0.0  ;;  %v2162_v60 = vmax.f32 %v1995_v55, 0.0 }
  0xec   :  { %v346_v61 = vpop.f32.mrf.mxu0  ;;  %v875_v62 = vpop.f32.mrf.mxu1 }
  0xed   :  { %v2226_v1 = vmax.f32 %v1633_v59, %v2162_v60  ;;  %2571 = vmatmul.msk.f32.gmra.mxu2 %vm93_vm1, %v1185_v56  ;;  %2636 = vmatmul.msk.f32.gmra.mxu3 %vm93_vm1, %v1714_v57  ;;  %v347_v3 = vadd.f32 %v2974_v2, %v346_v61  ;;  %v876_v4 = vadd.f32 %v2974_v2, %v875_v62  ;;  %v58_v57 = vld [vmem:[%s4269_s0 + $0x100] sm:$0xff] }
  0xef   :  { %v2290_v5 = vmax.f32 %v1104_v58, %v2226_v1  ;;  %v512_v6 = vmax.f32 %v347_v3, 0.0  ;;  %v1041_v7 = vmax.f32 %v876_v4, 0.0  ;;  %2441 = vmatmul.msk.f32.gmra.mxu0 %vm93_vm1, %v55_v63  ;;  %2506 = vmatmul.msk.f32.gmra.mxu1 %vm93_vm1, %v592_v0  ;;  %v595_v58 = vld [vmem:[%s4270_s1 + $0x100] sm:$0xff] }
  0xf0   :  { %v1468_v8 = vpop.f32.mrf.mxu2  ;;  %v1997_v9 = vpop.f32.mrf.mxu3 }
  0xf1   :  { %2355 = vst.msk [vmem:[%s4272_s6 + $0x60] sm:$0xff] %vm2342_vm2, %v2290_v5  ;;  %v1469_v10 = vadd.f32 %v2974_v2, %v1468_v8  ;;  %v1998_v11 = vadd.f32 %v2974_v2, %v1997_v9  ;;  %v1105_v14 = vmax.f32 %v512_v6, %v1041_v7  ;;  %v1189_v6 = vld [vmem:[%s4267_s2 + $0x108] sm:$0xff] }
  0xf2   :  { %v1718_v7 = vld [vmem:[%s4268_s3 + $0x108] sm:$0xff] }
  0xf3   :  { %v1634_v15 = vmax.f32 %v1469_v10, 0.0  ;;  %v2163_v16 = vmax.f32 %v1998_v11, 0.0 }
  0xf4   :  { %v349_v17 = vpop.f32.mrf.mxu0  ;;  %v878_v18 = vpop.f32.mrf.mxu1 }
  0xf5   :  { %v2227_v21 = vmax.f32 %v1634_v15, %v2163_v16  ;;  %2572 = vmatmul.msk.f32.gmra.mxu2 %vm93_vm1, %v1186_v12  ;;  %2637 = vmatmul.msk.f32.gmra.mxu3 %vm93_vm1, %v1715_v13  ;;  %v350_v22 = vadd.f32 %v2974_v2, %v349_v17  ;;  %v879_v23 = vadd.f32 %v2974_v2, %v878_v18  ;;  %v59_v13 = vld [vmem:[%s4269_s0 + $0x108] sm:$0xff] }
  0xf7   :  { %v2291_v24 = vmax.f32 %v1105_v14, %v2227_v21  ;;  %v513_v25 = vmax.f32 %v350_v22, 0.0  ;;  %v1042_v26 = vmax.f32 %v879_v23, 0.0  ;;  %2442 = vmatmul.msk.f32.gmra.mxu0 %vm93_vm1, %v56_v19  ;;  %2507 = vmatmul.msk.f32.gmra.mxu1 %vm93_vm1, %v593_v20  ;;  %v596_v14 = vld [vmem:[%s4270_s1 + $0x108] sm:$0xff] }
  0xf8   :  { %v1471_v27 = vpop.f32.mrf.mxu2  ;;  %v2000_v28 = vpop.f32.mrf.mxu3 }
  0xf9   :  { %2356 = vst.msk [vmem:[%s4272_s6 + $0x68] sm:$0xff] %vm2342_vm2, %v2291_v24  ;;  %v1472_v29 = vadd.f32 %v2974_v2, %v1471_v27  ;;  %v2001_v30 = vadd.f32 %v2974_v2, %v2000_v28  ;;  %v1106_v33 = vmax.f32 %v513_v25, %v1042_v26  ;;  %v1190_v25 = vld [vmem:[%s4267_s2 + $0x110] sm:$0xff] }
  0xfa   :  { %v1719_v26 = vld [vmem:[%s4268_s3 + $0x110] sm:$0xff] }
  0xfb   :  { %v1635_v34 = vmax.f32 %v1472_v29, 0.0  ;;  %v2164_v35 = vmax.f32 %v2001_v30, 0.0 }
  0xfc   :  { %v352_v36 = vpop.f32.mrf.mxu0  ;;  %v881_v37 = vpop.f32.mrf.mxu1 }
  0xfd   :  { %v2228_v40 = vmax.f32 %v1635_v34, %v2164_v35  ;;  %2573 = vmatmul.msk.f32.gmra.mxu2 %vm93_vm1, %v1187_v31  ;;  %2638 = vmatmul.msk.f32.gmra.mxu3 %vm93_vm1, %v1716_v32  ;;  %v353_v41 = vadd.f32 %v2974_v2, %v352_v36  ;;  %v882_v42 = vadd.f32 %v2974_v2, %v881_v37  ;;  %v60_v32 = vld [vmem:[%s4269_s0 + $0x110] sm:$0xff] }
  0xff   :  { %v2292_v43 = vmax.f32 %v1106_v33, %v2228_v40  ;;  %v514_v44 = vmax.f32 %v353_v41, 0.0  ;;  %v1043_v45 = vmax.f32 %v882_v42, 0.0  ;;  %2443 = vmatmul.msk.f32.gmra.mxu0 %vm93_vm1, %v57_v38  ;;  %2508 = vmatmul.msk.f32.gmra.mxu1 %vm93_vm1, %v594_v39  ;;  %v597_v33 = vld [vmem:[%s4270_s1 + $0x110] sm:$0xff] }
 0x100   :  { %v1474_v46 = vpop.f32.mrf.mxu2  ;;  %v2003_v47 = vpop.f32.mrf.mxu3 }
 0x101   :  { %2357 = vst.msk [vmem:[%s4272_s6 + $0x70] sm:$0xff] %vm2342_vm2, %v2292_v43  ;;  %v1475_v48 = vadd.f32 %v2974_v2, %v1474_v46  ;;  %v2004_v49 = vadd.f32 %v2974_v2, %v2003_v47  ;;  %v1107_v52 = vmax.f32 %v514_v44, %v1043_v45  ;;  %v1191_v44 = vld [vmem:[%s4267_s2 + $0x118] sm:$0xff] }
 0x102   :  { %v1720_v45 = vld [vmem:[%s4268_s3 + $0x118] sm:$0xff] }
 0x103   :  { %v1636_v53 = vmax.f32 %v1475_v48, 0.0  ;;  %v2165_v54 = vmax.f32 %v2004_v49, 0.0 }
 0x104   :  { %v355_v55 = vpop.f32.mrf.mxu0  ;;  %v884_v56 = vpop.f32.mrf.mxu1 }
 0x105   :  { %v2229_v59 = vmax.f32 %v1636_v53, %v2165_v54  ;;  %2574 = vmatmul.msk.f32.gmra.mxu2 %vm93_vm1, %v1188_v50  ;;  %2639 = vmatmul.msk.f32.gmra.mxu3 %vm93_vm1, %v1717_v51  ;;  %v356_v60 = vadd.f32 %v2974_v2, %v355_v55  ;;  %v885_v61 = vadd.f32 %v2974_v2, %v884_v56  ;;  %v61_v51 = vld [vmem:[%s4269_s0 + $0x118] sm:$0xff] }
 0x107   :  { %v2293_v62 = vmax.f32 %v1107_v52, %v2229_v59  ;;  %v515_v63 = vmax.f32 %v356_v60, 0.0  ;;  %v1044_v0 = vmax.f32 %v885_v61, 0.0  ;;  %2444 = vmatmul.msk.f32.gmra.mxu0 %vm93_vm1, %v58_v57  ;;  %2509 = vmatmul.msk.f32.gmra.mxu1 %vm93_vm1, %v595_v58  ;;  %v598_v52 = vld [vmem:[%s4270_s1 + $0x118] sm:$0xff] }
 0x108   :  { %v1477_v1 = vpop.f32.mrf.mxu2  ;;  %v2006_v3 = vpop.f32.mrf.mxu3 }
 0x109   :  { %2358 = vst.msk [vmem:[%s4272_s6 + $0x78] sm:$0xff] %vm2342_vm2, %v2293_v62  ;;  %v1478_v4 = vadd.f32 %v2974_v2, %v1477_v1  ;;  %v2007_v5 = vadd.f32 %v2974_v2, %v2006_v3  ;;  %v1108_v8 = vmax.f32 %v515_v63, %v1044_v0  ;;  %v1192_v63 = vld [vmem:[%s4267_s2 + $0x120] sm:$0xff] }
 0x10a   :  { %v1721_v0 = vld [vmem:[%s4268_s3 + $0x120] sm:$0xff] }
 0x10b   :  { %v1637_v9 = vmax.f32 %v1478_v4, 0.0  ;;  %v2166_v10 = vmax.f32 %v2007_v5, 0.0 }
 0x10c   :  { %v358_v11 = vpop.f32.mrf.mxu0  ;;  %v887_v12 = vpop.f32.mrf.mxu1 }
 0x10d   :  { %v2230_v15 = vmax.f32 %v1637_v9, %v2166_v10  ;;  %2575 = vmatmul.msk.f32.gmra.mxu2 %vm93_vm1, %v1189_v6  ;;  %2640 = vmatmul.msk.f32.gmra.mxu3 %vm93_vm1, %v1718_v7  ;;  %v359_v16 = vadd.f32 %v2974_v2, %v358_v11  ;;  %v888_v17 = vadd.f32 %v2974_v2, %v887_v12  ;;  %v62_v7 = vld [vmem:[%s4269_s0 + $0x120] sm:$0xff] }
 0x10f   :  { %v2294_v18 = vmax.f32 %v1108_v8, %v2230_v15  ;;  %v516_v19 = vmax.f32 %v359_v16, 0.0  ;;  %v1045_v20 = vmax.f32 %v888_v17, 0.0  ;;  %2445 = vmatmul.msk.f32.gmra.mxu0 %vm93_vm1, %v59_v13  ;;  %2510 = vmatmul.msk.f32.gmra.mxu1 %vm93_vm1, %v596_v14  ;;  %v599_v8 = vld [vmem:[%s4270_s1 + $0x120] sm:$0xff] }
 0x110   :  { %v1480_v21 = vpop.f32.mrf.mxu2  ;;  %v2009_v22 = vpop.f32.mrf.mxu3 }
 0x111   :  { %2359 = vst.msk [vmem:[%s4272_s6 + $0x80] sm:$0xff] %vm2342_vm2, %v2294_v18  ;;  %v1481_v23 = vadd.f32 %v2974_v2, %v1480_v21  ;;  %v2010_v24 = vadd.f32 %v2974_v2, %v2009_v22  ;;  %v1109_v27 = vmax.f32 %v516_v19, %v1045_v20  ;;  %v1193_v19 = vld [vmem:[%s4267_s2 + $0x128] sm:$0xff] }
 0x112   :  { %v1722_v20 = vld [vmem:[%s4268_s3 + $0x128] sm:$0xff] }
 0x113   :  { %v1638_v28 = vmax.f32 %v1481_v23, 0.0  ;;  %v2167_v29 = vmax.f32 %v2010_v24, 0.0 }
 0x114   :  { %v361_v30 = vpop.f32.mrf.mxu0  ;;  %v890_v31 = vpop.f32.mrf.mxu1 }
 0x115   :  { %v2231_v34 = vmax.f32 %v1638_v28, %v2167_v29  ;;  %2576 = vmatmul.msk.f32.gmra.mxu2 %vm93_vm1, %v1190_v25  ;;  %2641 = vmatmul.msk.f32.gmra.mxu3 %vm93_vm1, %v1719_v26  ;;  %v362_v35 = vadd.f32 %v2974_v2, %v361_v30  ;;  %v891_v36 = vadd.f32 %v2974_v2, %v890_v31  ;;  %v63_v26 = vld [vmem:[%s4269_s0 + $0x128] sm:$0xff]  ;;  %v3493_v28 = vld [vmem:[%s4271_s5] ss:$0 sm:$0xff] }
 0x117   :  { %v2295_v37 = vmax.f32 %v1109_v27, %v2231_v34  ;;  %v517_v38 = vmax.f32 %v362_v35, 0.0  ;;  %v1046_v39 = vmax.f32 %v891_v36, 0.0  ;;  %2446 = vmatmul.msk.f32.gmra.mxu0 %vm93_vm1, %v60_v32  ;;  %2511 = vmatmul.msk.f32.gmra.mxu1 %vm93_vm1, %v597_v33 }
 0x118   :  { %v1483_v40 = vpop.f32.mrf.mxu2  ;;  %v2012_v41 = vpop.f32.mrf.mxu3 }
 0x119   :  { %2360 = vst.msk [vmem:[%s4272_s6 + $0x88] sm:$0xff] %vm2342_vm2, %v2295_v37  ;;  %v1484_v42 = vadd.f32 %v2974_v2, %v1483_v40  ;;  %v2013_v43 = vadd.f32 %v2974_v2, %v2012_v41  ;;  %v1110_v46 = vmax.f32 %v517_v38, %v1046_v39  ;;  %v1194_v38 = vld [vmem:[%s4267_s2 + $0x130] sm:$0xff] }
 0x11a   :  { %v1723_v39 = vld [vmem:[%s4268_s3 + $0x130] sm:$0xff] }
 0x11b   :  { %v1639_v47 = vmax.f32 %v1484_v42, 0.0  ;;  %v2168_v48 = vmax.f32 %v2013_v43, 0.0 }
 0x11c   :  { %v364_v49 = vpop.f32.mrf.mxu0  ;;  %v893_v50 = vpop.f32.mrf.mxu1 }
 0x11d   :  { %v2232_v53 = vmax.f32 %v1639_v47, %v2168_v48  ;;  %2577 = vmatmul.msk.f32.gmra.mxu2 %vm93_vm1, %v1191_v44  ;;  %2642 = vmatmul.msk.f32.gmra.mxu3 %vm93_vm1, %v1720_v45  ;;  %v365_v54 = vadd.f32 %v2974_v2, %v364_v49  ;;  %v894_v55 = vadd.f32 %v2974_v2, %v893_v50  ;;  %v64_v45 = vld [vmem:[%s4269_s0 + $0x130] sm:$0xff] }
 0x11f   :  { %v2296_v56 = vmax.f32 %v1110_v46, %v2232_v53  ;;  %v518_v57 = vmax.f32 %v365_v54, 0.0  ;;  %v1047_v58 = vmax.f32 %v894_v55, 0.0  ;;  %2447 = vmatmul.msk.f32.gmra.mxu0 %vm93_vm1, %v61_v51  ;;  %2512 = vmatmul.msk.f32.gmra.mxu1 %vm93_vm1, %v598_v52  ;;  %v601_v46 = vld [vmem:[%s4270_s1 + $0x130] sm:$0xff] }
 0x120   :  { %v1486_v59 = vpop.f32.mrf.mxu2  ;;  %v2015_v60 = vpop.f32.mrf.mxu3 }
 0x121   :  { %2361 = vst.msk [vmem:[%s4272_s6 + $0x90] sm:$0xff] %vm2342_vm2, %v2296_v56  ;;  %v1487_v61 = vadd.f32 %v2974_v2, %v1486_v59  ;;  %v2016_v62 = vadd.f32 %v2974_v2, %v2015_v60  ;;  %v1111_v1 = vmax.f32 %v518_v57, %v1047_v58  ;;  %v1195_v57 = vld [vmem:[%s4267_s2 + $0x138] sm:$0xff] }
 0x122   :  { %v1724_v58 = vld [vmem:[%s4268_s3 + $0x138] sm:$0xff] }
 0x123   :  { %v1640_v3 = vmax.f32 %v1487_v61, 0.0  ;;  %v2169_v4 = vmax.f32 %v2016_v62, 0.0 }
 0x124   :  { %v367_v5 = vpop.f32.mrf.mxu0  ;;  %v896_v6 = vpop.f32.mrf.mxu1 }
 0x125   :  { %v2233_v9 = vmax.f32 %v1640_v3, %v2169_v4  ;;  %2578 = vmatmul.msk.f32.gmra.mxu2 %vm93_vm1, %v1192_v63  ;;  %2643 = vmatmul.msk.f32.gmra.mxu3 %vm93_vm1, %v1721_v0  ;;  %v368_v10 = vadd.f32 %v2974_v2, %v367_v5  ;;  %v897_v11 = vadd.f32 %v2974_v2, %v896_v6  ;;  %v65_v0 = vld [vmem:[%s4269_s0 + $0x138] sm:$0xff] }
 0x127   :  { %v2297_v12 = vmax.f32 %v1111_v1, %v2233_v9  ;;  %v519_v13 = vmax.f32 %v368_v10, 0.0  ;;  %v1048_v14 = vmax.f32 %v897_v11, 0.0  ;;  %2448 = vmatmul.msk.f32.gmra.mxu0 %vm93_vm1, %v62_v7  ;;  %2513 = vmatmul.msk.f32.gmra.mxu1 %vm93_vm1, %v599_v8  ;;  %v602_v1 = vld [vmem:[%s4270_s1 + $0x138] sm:$0xff] }
 0x128   :  { %v1489_v15 = vpop.f32.mrf.mxu2  ;;  %v2018_v16 = vpop.f32.mrf.mxu3 }
 0x129   :  { %2362 = vst.msk [vmem:[%s4272_s6 + $0x98] sm:$0xff] %vm2342_vm2, %v2297_v12  ;;  %v1490_v17 = vadd.f32 %v2974_v2, %v1489_v15  ;;  %v2019_v18 = vadd.f32 %v2974_v2, %v2018_v16  ;;  %v1112_v21 = vmax.f32 %v519_v13, %v1048_v14  ;;  %v600_v2 = vld [vmem:[%s4270_s1 + $0x128] sm:$0xff]  ;;  %v1196_v13 = vld [vmem:[%s4267_s2 + $0x140] sm:$0xff] }
 0x12a   :  { %v1725_v14 = vld [vmem:[%s4268_s3 + $0x140] sm:$0xff] }
 0x12b   :  { %v1641_v22 = vmax.f32 %v1490_v17, 0.0  ;;  %v2170_v23 = vmax.f32 %v2019_v18, 0.0 }
 0x12c   :  { %v370_v24 = vpop.f32.mrf.mxu0  ;;  %v899_v25 = vpop.f32.mrf.mxu1 }
 0x12d   :  { %v2234_v27 = vmax.f32 %v1641_v22, %v2170_v23  ;;  %2579 = vmatmul.msk.f32.gmra.mxu2 %vm93_vm1, %v1193_v19  ;;  %2644 = vmatmul.msk.f32.gmra.mxu3 %vm93_vm1, %v1722_v20  ;;  %v371_v29 = vadd.f32 %v3493_v28, %v370_v24  ;;  %v900_v30 = vadd.f32 %v3493_v28, %v899_v25  ;;  %v66_v20 = vld [vmem:[%s4269_s0 + $0x140] sm:$0xff] }
 0x12f   :  { %v2298_v31 = vmax.f32 %v1112_v21, %v2234_v27  ;;  %v520_v32 = vmax.f32 %v371_v29, 0.0  ;;  %v1049_v33 = vmax.f32 %v900_v30, 0.0  ;;  %2449 = vmatmul.msk.f32.gmra.mxu0 %vm93_vm1, %v63_v26  ;;  %2514 = vmatmul.msk.f32.gmra.mxu1 %vm93_vm1, %v600_v2  ;;  %v603_v21 = vld [vmem:[%s4270_s1 + $0x140] sm:$0xff] }
 0x130   :  { %v1492_v34 = vpop.f32.mrf.mxu2  ;;  %v2021_v35 = vpop.f32.mrf.mxu3 }
 0x131   :  { %2363 = vst.msk [vmem:[%s4272_s6 + $0xa0] sm:$0xff] %vm2342_vm2, %v2298_v31  ;;  %v1493_v36 = vadd.f32 %v3493_v28, %v1492_v34  ;;  %v2022_v37 = vadd.f32 %v3493_v28, %v2021_v35  ;;  %v1113_v40 = vmax.f32 %v520_v32, %v1049_v33  ;;  %v1197_v32 = vld [vmem:[%s4267_s2 + $0x148] sm:$0xff] }
 0x132   :  { %v1726_v33 = vld [vmem:[%s4268_s3 + $0x148] sm:$0xff] }
 0x133   :  { %v1642_v41 = vmax.f32 %v1493_v36, 0.0  ;;  %v2171_v42 = vmax.f32 %v2022_v37, 0.0 }
 0x134   :  { %v373_v43 = vpop.f32.mrf.mxu0  ;;  %v902_v44 = vpop.f32.mrf.mxu1 }
 0x135   :  { %v2235_v47 = vmax.f32 %v1642_v41, %v2171_v42  ;;  %2580 = vmatmul.msk.f32.gmra.mxu2 %vm93_vm1, %v1194_v38  ;;  %2645 = vmatmul.msk.f32.gmra.mxu3 %vm93_vm1, %v1723_v39  ;;  %v374_v48 = vadd.f32 %v3493_v28, %v373_v43  ;;  %v903_v49 = vadd.f32 %v3493_v28, %v902_v44  ;;  %v67_v39 = vld [vmem:[%s4269_s0 + $0x148] sm:$0xff] }
 0x137   :  { %v2299_v50 = vmax.f32 %v1113_v40, %v2235_v47  ;;  %v521_v51 = vmax.f32 %v374_v48, 0.0  ;;  %v1050_v52 = vmax.f32 %v903_v49, 0.0  ;;  %2450 = vmatmul.msk.f32.gmra.mxu0 %vm93_vm1, %v64_v45  ;;  %2515 = vmatmul.msk.f32.gmra.mxu1 %vm93_vm1, %v601_v46  ;;  %v604_v40 = vld [vmem:[%s4270_s1 + $0x148] sm:$0xff] }
 0x138   :  { %v1495_v53 = vpop.f32.mrf.mxu2  ;;  %v2024_v54 = vpop.f32.mrf.mxu3 }
 0x139   :  { %2364 = vst.msk [vmem:[%s4272_s6 + $0xa8] sm:$0xff] %vm2342_vm2, %v2299_v50  ;;  %v1496_v55 = vadd.f32 %v3493_v28, %v1495_v53  ;;  %v2025_v56 = vadd.f32 %v3493_v28, %v2024_v54  ;;  %v1114_v59 = vmax.f32 %v521_v51, %v1050_v52  ;;  %v1198_v51 = vld [vmem:[%s4267_s2 + $0x150] sm:$0xff] }
 0x13a   :  { %v1727_v52 = vld [vmem:[%s4268_s3 + $0x150] sm:$0xff] }
 0x13b   :  { %v1643_v60 = vmax.f32 %v1496_v55, 0.0  ;;  %v2172_v61 = vmax.f32 %v2025_v56, 0.0 }
 0x13c   :  { %v376_v62 = vpop.f32.mrf.mxu0  ;;  %v905_v63 = vpop.f32.mrf.mxu1 }
 0x13d   :  { %v2236_v3 = vmax.f32 %v1643_v60, %v2172_v61  ;;  %2581 = vmatmul.msk.f32.gmra.mxu2 %vm93_vm1, %v1195_v57  ;;  %2646 = vmatmul.msk.f32.gmra.mxu3 %vm93_vm1, %v1724_v58  ;;  %v377_v4 = vadd.f32 %v3493_v28, %v376_v62  ;;  %v906_v5 = vadd.f32 %v3493_v28, %v905_v63  ;;  %v68_v58 = vld [vmem:[%s4269_s0 + $0x150] sm:$0xff] }
 0x13f   :  { %v2300_v6 = vmax.f32 %v1114_v59, %v2236_v3  ;;  %v522_v7 = vmax.f32 %v377_v4, 0.0  ;;  %v1051_v8 = vmax.f32 %v906_v5, 0.0  ;;  %2451 = vmatmul.msk.f32.gmra.mxu0 %vm93_vm1, %v65_v0  ;;  %2516 = vmatmul.msk.f32.gmra.mxu1 %vm93_vm1, %v602_v1  ;;  %v605_v59 = vld [vmem:[%s4270_s1 + $0x150] sm:$0xff] }
 0x140   :  { %v1498_v9 = vpop.f32.mrf.mxu2  ;;  %v2027_v10 = vpop.f32.mrf.mxu3 }
 0x141   :  { %2365 = vst.msk [vmem:[%s4272_s6 + $0xb0] sm:$0xff] %vm2342_vm2, %v2300_v6  ;;  %v1499_v11 = vadd.f32 %v3493_v28, %v1498_v9  ;;  %v2028_v12 = vadd.f32 %v3493_v28, %v2027_v10  ;;  %v1115_v15 = vmax.f32 %v522_v7, %v1051_v8  ;;  %v1199_v7 = vld [vmem:[%s4267_s2 + $0x158] sm:$0xff] }
 0x142   :  { %v1728_v8 = vld [vmem:[%s4268_s3 + $0x158] sm:$0xff] }
 0x143   :  { %v1644_v16 = vmax.f32 %v1499_v11, 0.0  ;;  %v2173_v17 = vmax.f32 %v2028_v12, 0.0 }
 0x144   :  { %v379_v18 = vpop.f32.mrf.mxu0  ;;  %v908_v19 = vpop.f32.mrf.mxu1 }
 0x145   :  { %v2237_v22 = vmax.f32 %v1644_v16, %v2173_v17  ;;  %2582 = vmatmul.msk.f32.gmra.mxu2 %vm93_vm1, %v1196_v13  ;;  %2647 = vmatmul.msk.f32.gmra.mxu3 %vm93_vm1, %v1725_v14  ;;  %v380_v23 = vadd.f32 %v3493_v28, %v379_v18  ;;  %v909_v24 = vadd.f32 %v3493_v28, %v908_v19  ;;  %v69_v14 = vld [vmem:[%s4269_s0 + $0x158] sm:$0xff] }
 0x147   :  { %v2301_v25 = vmax.f32 %v1115_v15, %v2237_v22  ;;  %v523_v26 = vmax.f32 %v380_v23, 0.0  ;;  %v1052_v2 = vmax.f32 %v909_v24, 0.0  ;;  %2452 = vmatmul.msk.f32.gmra.mxu0 %vm93_vm1, %v66_v20  ;;  %2517 = vmatmul.msk.f32.gmra.mxu1 %vm93_vm1, %v603_v21  ;;  %v606_v15 = vld [vmem:[%s4270_s1 + $0x158] sm:$0xff] }
 0x148   :  { %v1501_v27 = vpop.f32.mrf.mxu2  ;;  %v2030_v29 = vpop.f32.mrf.mxu3 }
 0x149   :  { %2366 = vst.msk [vmem:[%s4272_s6 + $0xb8] sm:$0xff] %vm2342_vm2, %v2301_v25  ;;  %v1502_v30 = vadd.f32 %v3493_v28, %v1501_v27  ;;  %v2031_v31 = vadd.f32 %v3493_v28, %v2030_v29  ;;  %v1116_v34 = vmax.f32 %v523_v26, %v1052_v2  ;;  %v1200_v26 = vld [vmem:[%s4267_s2 + $0x160] sm:$0xff] }
 0x14a   :  { %v1729_v2 = vld [vmem:[%s4268_s3 + $0x160] sm:$0xff] }
 0x14b   :  { %v1645_v35 = vmax.f32 %v1502_v30, 0.0  ;;  %v2174_v36 = vmax.f32 %v2031_v31, 0.0 }
 0x14c   :  { %v382_v37 = vpop.f32.mrf.mxu0  ;;  %v911_v38 = vpop.f32.mrf.mxu1 }
 0x14d   :  { %v2238_v41 = vmax.f32 %v1645_v35, %v2174_v36  ;;  %2583 = vmatmul.msk.f32.gmra.mxu2 %vm93_vm1, %v1197_v32  ;;  %2648 = vmatmul.msk.f32.gmra.mxu3 %vm93_vm1, %v1726_v33  ;;  %v383_v42 = vadd.f32 %v3493_v28, %v382_v37  ;;  %v912_v43 = vadd.f32 %v3493_v28, %v911_v38  ;;  %v70_v33 = vld [vmem:[%s4269_s0 + $0x160] sm:$0xff] }
 0x14f   :  { %v2302_v44 = vmax.f32 %v1116_v34, %v2238_v41  ;;  %v524_v45 = vmax.f32 %v383_v42, 0.0  ;;  %v1053_v46 = vmax.f32 %v912_v43, 0.0  ;;  %2453 = vmatmul.msk.f32.gmra.mxu0 %vm93_vm1, %v67_v39  ;;  %2518 = vmatmul.msk.f32.gmra.mxu1 %vm93_vm1, %v604_v40  ;;  %v607_v34 = vld [vmem:[%s4270_s1 + $0x160] sm:$0xff] }
 0x150   :  { %v1504_v47 = vpop.f32.mrf.mxu2  ;;  %v2033_v48 = vpop.f32.mrf.mxu3 }
 0x151   :  { %2367 = vst.msk [vmem:[%s4272_s6 + $0xc0] sm:$0xff] %vm2342_vm2, %v2302_v44  ;;  %v1505_v49 = vadd.f32 %v3493_v28, %v1504_v47  ;;  %v2034_v50 = vadd.f32 %v3493_v28, %v2033_v48  ;;  %v1117_v53 = vmax.f32 %v524_v45, %v1053_v46  ;;  %v1201_v45 = vld [vmem:[%s4267_s2 + $0x168] sm:$0xff] }
 0x152   :  { %v1730_v46 = vld [vmem:[%s4268_s3 + $0x168] sm:$0xff] }
 0x153   :  { %v1646_v54 = vmax.f32 %v1505_v49, 0.0  ;;  %v2175_v55 = vmax.f32 %v2034_v50, 0.0 }
 0x154   :  { %v385_v56 = vpop.f32.mrf.mxu0  ;;  %v914_v57 = vpop.f32.mrf.mxu1 }
 0x155   :  { %v2239_v60 = vmax.f32 %v1646_v54, %v2175_v55  ;;  %2584 = vmatmul.msk.f32.gmra.mxu2 %vm93_vm1, %v1198_v51  ;;  %2649 = vmatmul.msk.f32.gmra.mxu3 %vm93_vm1, %v1727_v52  ;;  %v386_v61 = vadd.f32 %v3493_v28, %v385_v56  ;;  %v915_v62 = vadd.f32 %v3493_v28, %v914_v57  ;;  %v71_v52 = vld [vmem:[%s4269_s0 + $0x168] sm:$0xff] }
 0x157   :  { %v2303_v63 = vmax.f32 %v1117_v53, %v2239_v60  ;;  %v525_v0 = vmax.f32 %v386_v61, 0.0  ;;  %v1054_v1 = vmax.f32 %v915_v62, 0.0  ;;  %2454 = vmatmul.msk.f32.gmra.mxu0 %vm93_vm1, %v68_v58  ;;  %2519 = vmatmul.msk.f32.gmra.mxu1 %vm93_vm1, %v605_v59  ;;  %v608_v53 = vld [vmem:[%s4270_s1 + $0x168] sm:$0xff] }
 0x158   :  { %v1507_v3 = vpop.f32.mrf.mxu2  ;;  %v2036_v4 = vpop.f32.mrf.mxu3 }
 0x159   :  { %2368 = vst.msk [vmem:[%s4272_s6 + $0xc8] sm:$0xff] %vm2342_vm2, %v2303_v63  ;;  %v1508_v5 = vadd.f32 %v3493_v28, %v1507_v3  ;;  %v2037_v6 = vadd.f32 %v3493_v28, %v2036_v4  ;;  %v1118_v9 = vmax.f32 %v525_v0, %v1054_v1  ;;  %v1202_v0 = vld [vmem:[%s4267_s2 + $0x170] sm:$0xff] }
 0x15a   :  { %v1731_v1 = vld [vmem:[%s4268_s3 + $0x170] sm:$0xff] }
 0x15b   :  { %v1647_v10 = vmax.f32 %v1508_v5, 0.0  ;;  %v2176_v11 = vmax.f32 %v2037_v6, 0.0 }
 0x15c   :  { %v388_v12 = vpop.f32.mrf.mxu0  ;;  %v917_v13 = vpop.f32.mrf.mxu1 }
 0x15d   :  { %v2240_v16 = vmax.f32 %v1647_v10, %v2176_v11  ;;  %2585 = vmatmul.msk.f32.gmra.mxu2 %vm93_vm1, %v1199_v7  ;;  %2650 = vmatmul.msk.f32.gmra.mxu3 %vm93_vm1, %v1728_v8  ;;  %v389_v17 = vadd.f32 %v3493_v28, %v388_v12  ;;  %v918_v18 = vadd.f32 %v3493_v28, %v917_v13  ;;  %v72_v8 = vld [vmem:[%s4269_s0 + $0x170] sm:$0xff] }
 0x15f   :  { %v2304_v19 = vmax.f32 %v1118_v9, %v2240_v16  ;;  %v526_v20 = vmax.f32 %v389_v17, 0.0  ;;  %v1055_v21 = vmax.f32 %v918_v18, 0.0  ;;  %2455 = vmatmul.msk.f32.gmra.mxu0 %vm93_vm1, %v69_v14  ;;  %2520 = vmatmul.msk.f32.gmra.mxu1 %vm93_vm1, %v606_v15  ;;  %v609_v9 = vld [vmem:[%s4270_s1 + $0x170] sm:$0xff] }
 0x160   :  { %v1510_v22 = vpop.f32.mrf.mxu2  ;;  %v2039_v23 = vpop.f32.mrf.mxu3 }
 0x161   :  { %2369 = vst.msk [vmem:[%s4272_s6 + $0xd0] sm:$0xff] %vm2342_vm2, %v2304_v19  ;;  %v1511_v24 = vadd.f32 %v3493_v28, %v1510_v22  ;;  %v2040_v25 = vadd.f32 %v3493_v28, %v2039_v23  ;;  %v1119_v27 = vmax.f32 %v526_v20, %v1055_v21  ;;  %v1203_v20 = vld [vmem:[%s4267_s2 + $0x178] sm:$0xff] }
 0x162   :  { %v1732_v21 = vld [vmem:[%s4268_s3 + $0x178] sm:$0xff] }
 0x163   :  { %v1648_v29 = vmax.f32 %v1511_v24, 0.0  ;;  %v2177_v30 = vmax.f32 %v2040_v25, 0.0 }
 0x164   :  { %v391_v31 = vpop.f32.mrf.mxu0  ;;  %v920_v32 = vpop.f32.mrf.mxu1 }
 0x165   :  { %v2241_v35 = vmax.f32 %v1648_v29, %v2177_v30  ;;  %2586 = vmatmul.msk.f32.gmra.mxu2 %vm93_vm1, %v1200_v26  ;;  %2651 = vmatmul.msk.f32.gmra.mxu3 %vm93_vm1, %v1729_v2  ;;  %v392_v36 = vadd.f32 %v3493_v28, %v391_v31  ;;  %v921_v37 = vadd.f32 %v3493_v28, %v920_v32  ;;  %v73_v2 = vld [vmem:[%s4269_s0 + $0x178] sm:$0xff] }
 0x167   :  { %v2305_v38 = vmax.f32 %v1119_v27, %v2241_v35  ;;  %v527_v39 = vmax.f32 %v392_v36, 0.0  ;;  %v1056_v40 = vmax.f32 %v921_v37, 0.0  ;;  %2456 = vmatmul.msk.f32.gmra.mxu0 %vm93_vm1, %v70_v33  ;;  %2521 = vmatmul.msk.f32.gmra.mxu1 %vm93_vm1, %v607_v34  ;;  %v610_v27 = vld [vmem:[%s4270_s1 + $0x178] sm:$0xff] }
 0x168   :  { %v1513_v41 = vpop.f32.mrf.mxu2  ;;  %v2042_v42 = vpop.f32.mrf.mxu3 }
 0x169   :  { %2370 = vst.msk [vmem:[%s4272_s6 + $0xd8] sm:$0xff] %vm2342_vm2, %v2305_v38  ;;  %v1514_v43 = vadd.f32 %v3493_v28, %v1513_v41  ;;  %v2043_v44 = vadd.f32 %v3493_v28, %v2042_v42  ;;  %v1120_v47 = vmax.f32 %v527_v39, %v1056_v40  ;;  %v1204_v39 = vld [vmem:[%s4267_s2 + $0x180] sm:$0xff] }
 0x16a   :  { %v1733_v40 = vld [vmem:[%s4268_s3 + $0x180] sm:$0xff] }
 0x16b   :  { %v1649_v48 = vmax.f32 %v1514_v43, 0.0  ;;  %v2178_v49 = vmax.f32 %v2043_v44, 0.0 }
 0x16c   :  { %v394_v50 = vpop.f32.mrf.mxu0  ;;  %v923_v51 = vpop.f32.mrf.mxu1 }
 0x16d   :  { %v2242_v54 = vmax.f32 %v1649_v48, %v2178_v49  ;;  %2587 = vmatmul.msk.f32.gmra.mxu2 %vm93_vm1, %v1201_v45  ;;  %2652 = vmatmul.msk.f32.gmra.mxu3 %vm93_vm1, %v1730_v46  ;;  %v395_v55 = vadd.f32 %v3493_v28, %v394_v50  ;;  %v924_v56 = vadd.f32 %v3493_v28, %v923_v51  ;;  %v74_v46 = vld [vmem:[%s4269_s0 + $0x180] sm:$0xff] }
 0x16f   :  { %v2306_v57 = vmax.f32 %v1120_v47, %v2242_v54  ;;  %v528_v58 = vmax.f32 %v395_v55, 0.0  ;;  %v1057_v59 = vmax.f32 %v924_v56, 0.0  ;;  %2457 = vmatmul.msk.f32.gmra.mxu0 %vm93_vm1, %v71_v52  ;;  %2522 = vmatmul.msk.f32.gmra.mxu1 %vm93_vm1, %v608_v53  ;;  %v611_v47 = vld [vmem:[%s4270_s1 + $0x180] sm:$0xff] }
 0x170   :  { %v1516_v60 = vpop.f32.mrf.mxu2  ;;  %v2045_v61 = vpop.f32.mrf.mxu3 }
 0x171   :  { %2371 = vst.msk [vmem:[%s4272_s6 + $0xe0] sm:$0xff] %vm2342_vm2, %v2306_v57  ;;  %v1517_v62 = vadd.f32 %v3493_v28, %v1516_v60  ;;  %v2046_v63 = vadd.f32 %v3493_v28, %v2045_v61  ;;  %v1121_v3 = vmax.f32 %v528_v58, %v1057_v59  ;;  %v1205_v58 = vld [vmem:[%s4267_s2 + $0x188] sm:$0xff] }
 0x172   :  { %v1734_v59 = vld [vmem:[%s4268_s3 + $0x188] sm:$0xff] }
 0x173   :  { %v1650_v4 = vmax.f32 %v1517_v62, 0.0  ;;  %v2179_v5 = vmax.f32 %v2046_v63, 0.0 }
 0x174   :  { %v397_v6 = vpop.f32.mrf.mxu0  ;;  %v926_v7 = vpop.f32.mrf.mxu1 }
 0x175   :  { %v2243_v10 = vmax.f32 %v1650_v4, %v2179_v5  ;;  %2588 = vmatmul.msk.f32.gmra.mxu2 %vm93_vm1, %v1202_v0  ;;  %2653 = vmatmul.msk.f32.gmra.mxu3 %vm93_vm1, %v1731_v1  ;;  %v398_v11 = vadd.f32 %v3493_v28, %v397_v6  ;;  %v927_v12 = vadd.f32 %v3493_v28, %v926_v7  ;;  %v75_v1 = vld [vmem:[%s4269_s0 + $0x188] sm:$0xff] }
 0x177   :  { %v2307_v13 = vmax.f32 %v1121_v3, %v2243_v10  ;;  %v529_v14 = vmax.f32 %v398_v11, 0.0  ;;  %v1058_v15 = vmax.f32 %v927_v12, 0.0  ;;  %2458 = vmatmul.msk.f32.gmra.mxu0 %vm93_vm1, %v72_v8  ;;  %2523 = vmatmul.msk.f32.gmra.mxu1 %vm93_vm1, %v609_v9  ;;  %v612_v3 = vld [vmem:[%s4270_s1 + $0x188] sm:$0xff] }
 0x178   :  { %v1519_v16 = vpop.f32.mrf.mxu2  ;;  %v2048_v17 = vpop.f32.mrf.mxu3 }
 0x179   :  { %2372 = vst.msk [vmem:[%s4272_s6 + $0xe8] sm:$0xff] %vm2342_vm2, %v2307_v13  ;;  %v1520_v18 = vadd.f32 %v3493_v28, %v1519_v16  ;;  %v2049_v19 = vadd.f32 %v3493_v28, %v2048_v17  ;;  %v1122_v22 = vmax.f32 %v529_v14, %v1058_v15  ;;  %v1206_v14 = vld [vmem:[%s4267_s2 + $0x190] sm:$0xff] }
 0x17a   :  { %v1735_v15 = vld [vmem:[%s4268_s3 + $0x190] sm:$0xff] }
 0x17b   :  { %v1651_v23 = vmax.f32 %v1520_v18, 0.0  ;;  %v2180_v24 = vmax.f32 %v2049_v19, 0.0 }
 0x17c   :  { %v400_v25 = vpop.f32.mrf.mxu0  ;;  %v929_v26 = vpop.f32.mrf.mxu1 }
 0x17d   :  { %v2244_v29 = vmax.f32 %v1651_v23, %v2180_v24  ;;  %2589 = vmatmul.msk.f32.gmra.mxu2 %vm93_vm1, %v1203_v20  ;;  %2654 = vmatmul.msk.f32.gmra.mxu3 %vm93_vm1, %v1732_v21  ;;  %v401_v30 = vadd.f32 %v3493_v28, %v400_v25  ;;  %v930_v31 = vadd.f32 %v3493_v28, %v929_v26  ;;  %v76_v21 = vld [vmem:[%s4269_s0 + $0x190] sm:$0xff] }
 0x17f   :  { %v2308_v32 = vmax.f32 %v1122_v22, %v2244_v29  ;;  %v530_v33 = vmax.f32 %v401_v30, 0.0  ;;  %v1059_v34 = vmax.f32 %v930_v31, 0.0  ;;  %2459 = vmatmul.msk.f32.gmra.mxu0 %vm93_vm1, %v73_v2  ;;  %2524 = vmatmul.msk.f32.gmra.mxu1 %vm93_vm1, %v610_v27  ;;  %v613_v22 = vld [vmem:[%s4270_s1 + $0x190] sm:$0xff] }
 0x180   :  { %v1522_v35 = vpop.f32.mrf.mxu2  ;;  %v2051_v36 = vpop.f32.mrf.mxu3 }
 0x181   :  { %2373 = vst.msk [vmem:[%s4272_s6 + $0xf0] sm:$0xff] %vm2342_vm2, %v2308_v32  ;;  %v1523_v37 = vadd.f32 %v3493_v28, %v1522_v35  ;;  %v2052_v38 = vadd.f32 %v3493_v28, %v2051_v36  ;;  %v1123_v41 = vmax.f32 %v530_v33, %v1059_v34  ;;  %v1207_v33 = vld [vmem:[%s4267_s2 + $0x198] sm:$0xff] }
 0x182   :  { %v1736_v34 = vld [vmem:[%s4268_s3 + $0x198] sm:$0xff] }
 0x183   :  { %v1652_v42 = vmax.f32 %v1523_v37, 0.0  ;;  %v2181_v43 = vmax.f32 %v2052_v38, 0.0 }
 0x184   :  { %v403_v44 = vpop.f32.mrf.mxu0  ;;  %v932_v45 = vpop.f32.mrf.mxu1 }
 0x185   :  { %v2245_v48 = vmax.f32 %v1652_v42, %v2181_v43  ;;  %2590 = vmatmul.msk.f32.gmra.mxu2 %vm93_vm1, %v1204_v39  ;;  %2655 = vmatmul.msk.f32.gmra.mxu3 %vm93_vm1, %v1733_v40  ;;  %v404_v49 = vadd.f32 %v3493_v28, %v403_v44  ;;  %v933_v50 = vadd.f32 %v3493_v28, %v932_v45  ;;  %v77_v40 = vld [vmem:[%s4269_s0 + $0x198] sm:$0xff] }
 0x187   :  { %v2309_v51 = vmax.f32 %v1123_v41, %v2245_v48  ;;  %v531_v52 = vmax.f32 %v404_v49, 0.0  ;;  %v1060_v53 = vmax.f32 %v933_v50, 0.0  ;;  %2460 = vmatmul.msk.f32.gmra.mxu0 %vm93_vm1, %v74_v46  ;;  %2525 = vmatmul.msk.f32.gmra.mxu1 %vm93_vm1, %v611_v47  ;;  %v614_v41 = vld [vmem:[%s4270_s1 + $0x198] sm:$0xff] }
 0x188   :  { %v1525_v54 = vpop.f32.mrf.mxu2  ;;  %v2054_v55 = vpop.f32.mrf.mxu3 }
 0x189   :  { %2374 = vst.msk [vmem:[%s4272_s6 + $0xf8] sm:$0xff] %vm2342_vm2, %v2309_v51  ;;  %v1526_v56 = vadd.f32 %v3493_v28, %v1525_v54  ;;  %v2055_v57 = vadd.f32 %v3493_v28, %v2054_v55  ;;  %v1124_v60 = vmax.f32 %v531_v52, %v1060_v53  ;;  %v1208_v52 = vld [vmem:[%s4267_s2 + $0x1a0] sm:$0xff] }
 0x18a   :  { %v1737_v53 = vld [vmem:[%s4268_s3 + $0x1a0] sm:$0xff] }
 0x18b   :  { %v1653_v61 = vmax.f32 %v1526_v56, 0.0  ;;  %v2182_v62 = vmax.f32 %v2055_v57, 0.0 }
 0x18c   :  { %v406_v63 = vpop.f32.mrf.mxu0  ;;  %v935_v0 = vpop.f32.mrf.mxu1 }
 0x18d   :  { %v2246_v4 = vmax.f32 %v1653_v61, %v2182_v62  ;;  %2591 = vmatmul.msk.f32.gmra.mxu2 %vm93_vm1, %v1205_v58  ;;  %2656 = vmatmul.msk.f32.gmra.mxu3 %vm93_vm1, %v1734_v59  ;;  %v407_v5 = vadd.f32 %v3493_v28, %v406_v63  ;;  %v936_v6 = vadd.f32 %v3493_v28, %v935_v0  ;;  %v78_v59 = vld [vmem:[%s4269_s0 + $0x1a0] sm:$0xff] }
 0x18f   :  { %v2310_v7 = vmax.f32 %v1124_v60, %v2246_v4  ;;  %v532_v8 = vmax.f32 %v407_v5, 0.0  ;;  %v1061_v9 = vmax.f32 %v936_v6, 0.0  ;;  %2461 = vmatmul.msk.f32.gmra.mxu0 %vm93_vm1, %v75_v1  ;;  %2526 = vmatmul.msk.f32.gmra.mxu1 %vm93_vm1, %v612_v3  ;;  %v615_v60 = vld [vmem:[%s4270_s1 + $0x1a0] sm:$0xff] }
 0x190   :  { %v1528_v10 = vpop.f32.mrf.mxu2  ;;  %v2057_v11 = vpop.f32.mrf.mxu3 }
 0x191   :  { %2375 = vst.msk [vmem:[%s4272_s6 + $0x100] sm:$0xff] %vm2342_vm2, %v2310_v7  ;;  %v1529_v12 = vadd.f32 %v3493_v28, %v1528_v10  ;;  %v2058_v13 = vadd.f32 %v3493_v28, %v2057_v11  ;;  %v1125_v16 = vmax.f32 %v532_v8, %v1061_v9  ;;  %v1209_v8 = vld [vmem:[%s4267_s2 + $0x1a8] sm:$0xff] }
 0x192   :  { %v1738_v9 = vld [vmem:[%s4268_s3 + $0x1a8] sm:$0xff] }
 0x193   :  { %v1654_v17 = vmax.f32 %v1529_v12, 0.0  ;;  %v2183_v18 = vmax.f32 %v2058_v13, 0.0 }
 0x194   :  { %v409_v19 = vpop.f32.mrf.mxu0  ;;  %v938_v20 = vpop.f32.mrf.mxu1 }
 0x195   :  { %v2247_v23 = vmax.f32 %v1654_v17, %v2183_v18  ;;  %2592 = vmatmul.msk.f32.gmra.mxu2 %vm93_vm1, %v1206_v14  ;;  %2657 = vmatmul.msk.f32.gmra.mxu3 %vm93_vm1, %v1735_v15  ;;  %v410_v24 = vadd.f32 %v3493_v28, %v409_v19  ;;  %v939_v25 = vadd.f32 %v3493_v28, %v938_v20  ;;  %v79_v15 = vld [vmem:[%s4269_s0 + $0x1a8] sm:$0xff] }
 0x197   :  { %v2311_v26 = vmax.f32 %v1125_v16, %v2247_v23  ;;  %v533_v2 = vmax.f32 %v410_v24, 0.0  ;;  %v1062_v27 = vmax.f32 %v939_v25, 0.0  ;;  %2462 = vmatmul.msk.f32.gmra.mxu0 %vm93_vm1, %v76_v21  ;;  %2527 = vmatmul.msk.f32.gmra.mxu1 %vm93_vm1, %v613_v22  ;;  %v616_v16 = vld [vmem:[%s4270_s1 + $0x1a8] sm:$0xff] }
 0x198   :  { %v1531_v29 = vpop.f32.mrf.mxu2  ;;  %v2060_v30 = vpop.f32.mrf.mxu3 }
 0x199   :  { %2376 = vst.msk [vmem:[%s4272_s6 + $0x108] sm:$0xff] %vm2342_vm2, %v2311_v26  ;;  %v1532_v31 = vadd.f32 %v3493_v28, %v1531_v29  ;;  %v2061_v32 = vadd.f32 %v3493_v28, %v2060_v30  ;;  %v1126_v35 = vmax.f32 %v533_v2, %v1062_v27  ;;  %v1210_v2 = vld [vmem:[%s4267_s2 + $0x1b0] sm:$0xff] }
 0x19a   :  { %v1739_v27 = vld [vmem:[%s4268_s3 + $0x1b0] sm:$0xff] }
 0x19b   :  { %v1655_v36 = vmax.f32 %v1532_v31, 0.0  ;;  %v2184_v37 = vmax.f32 %v2061_v32, 0.0 }
 0x19c   :  { %v412_v38 = vpop.f32.mrf.mxu0  ;;  %v941_v39 = vpop.f32.mrf.mxu1 }
 0x19d   :  { %v2248_v42 = vmax.f32 %v1655_v36, %v2184_v37  ;;  %2593 = vmatmul.msk.f32.gmra.mxu2 %vm93_vm1, %v1207_v33  ;;  %2658 = vmatmul.msk.f32.gmra.mxu3 %vm93_vm1, %v1736_v34  ;;  %v413_v43 = vadd.f32 %v3493_v28, %v412_v38  ;;  %v942_v44 = vadd.f32 %v3493_v28, %v941_v39  ;;  %v80_v34 = vld [vmem:[%s4269_s0 + $0x1b0] sm:$0xff] }
 0x19f   :  { %v2312_v45 = vmax.f32 %v1126_v35, %v2248_v42  ;;  %v534_v46 = vmax.f32 %v413_v43, 0.0  ;;  %v1063_v47 = vmax.f32 %v942_v44, 0.0  ;;  %2463 = vmatmul.msk.f32.gmra.mxu0 %vm93_vm1, %v77_v40  ;;  %2528 = vmatmul.msk.f32.gmra.mxu1 %vm93_vm1, %v614_v41  ;;  %v617_v35 = vld [vmem:[%s4270_s1 + $0x1b0] sm:$0xff] }
 0x1a0   :  { %v1534_v48 = vpop.f32.mrf.mxu2  ;;  %v2063_v49 = vpop.f32.mrf.mxu3 }
 0x1a1   :  { %2377 = vst.msk [vmem:[%s4272_s6 + $0x110] sm:$0xff] %vm2342_vm2, %v2312_v45  ;;  %v1535_v50 = vadd.f32 %v3493_v28, %v1534_v48  ;;  %v2064_v51 = vadd.f32 %v3493_v28, %v2063_v49  ;;  %v1127_v54 = vmax.f32 %v534_v46, %v1063_v47  ;;  %v1211_v46 = vld [vmem:[%s4267_s2 + $0x1b8] sm:$0xff] }
 0x1a2   :  { %v1740_v47 = vld [vmem:[%s4268_s3 + $0x1b8] sm:$0xff] }
 0x1a3   :  { %v1656_v55 = vmax.f32 %v1535_v50, 0.0  ;;  %v2185_v56 = vmax.f32 %v2064_v51, 0.0 }
 0x1a4   :  { %v415_v57 = vpop.f32.mrf.mxu0  ;;  %v944_v58 = vpop.f32.mrf.mxu1 }
 0x1a5   :  { %v2249_v61 = vmax.f32 %v1656_v55, %v2185_v56  ;;  %2594 = vmatmul.msk.f32.gmra.mxu2 %vm93_vm1, %v1208_v52  ;;  %2659 = vmatmul.msk.f32.gmra.mxu3 %vm93_vm1, %v1737_v53  ;;  %v416_v62 = vadd.f32 %v3493_v28, %v415_v57  ;;  %v945_v63 = vadd.f32 %v3493_v28, %v944_v58  ;;  %v81_v53 = vld [vmem:[%s4269_s0 + $0x1b8] sm:$0xff] }
 0x1a7   :  { %v2313_v0 = vmax.f32 %v1127_v54, %v2249_v61  ;;  %v535_v1 = vmax.f32 %v416_v62, 0.0  ;;  %v1064_v3 = vmax.f32 %v945_v63, 0.0  ;;  %2464 = vmatmul.msk.f32.gmra.mxu0 %vm93_vm1, %v78_v59  ;;  %2529 = vmatmul.msk.f32.gmra.mxu1 %vm93_vm1, %v615_v60  ;;  %v618_v54 = vld [vmem:[%s4270_s1 + $0x1b8] sm:$0xff] }
 0x1a8   :  { %v1537_v4 = vpop.f32.mrf.mxu2  ;;  %v2066_v5 = vpop.f32.mrf.mxu3 }
 0x1a9   :  { %2378 = vst.msk [vmem:[%s4272_s6 + $0x118] sm:$0xff] %vm2342_vm2, %v2313_v0  ;;  %v1538_v6 = vadd.f32 %v3493_v28, %v1537_v4  ;;  %v2067_v7 = vadd.f32 %v3493_v28, %v2066_v5  ;;  %v1128_v10 = vmax.f32 %v535_v1, %v1064_v3  ;;  %v1212_v1 = vld [vmem:[%s4267_s2 + $0x1c0] sm:$0xff] }
 0x1aa   :  { %v1741_v3 = vld [vmem:[%s4268_s3 + $0x1c0] sm:$0xff] }
 0x1ab   :  { %v1657_v11 = vmax.f32 %v1538_v6, 0.0  ;;  %v2186_v12 = vmax.f32 %v2067_v7, 0.0 }
 0x1ac   :  { %v418_v13 = vpop.f32.mrf.mxu0  ;;  %v947_v14 = vpop.f32.mrf.mxu1 }
 0x1ad   :  { %v2250_v17 = vmax.f32 %v1657_v11, %v2186_v12  ;;  %2595 = vmatmul.msk.f32.gmra.mxu2 %vm93_vm1, %v1209_v8  ;;  %2660 = vmatmul.msk.f32.gmra.mxu3 %vm93_vm1, %v1738_v9  ;;  %v419_v18 = vadd.f32 %v3493_v28, %v418_v13  ;;  %v948_v19 = vadd.f32 %v3493_v28, %v947_v14  ;;  %v82_v9 = vld [vmem:[%s4269_s0 + $0x1c0] sm:$0xff] }
 0x1af   :  { %v2314_v20 = vmax.f32 %v1128_v10, %v2250_v17  ;;  %v536_v21 = vmax.f32 %v419_v18, 0.0  ;;  %v1065_v22 = vmax.f32 %v948_v19, 0.0  ;;  %2465 = vmatmul.msk.f32.gmra.mxu0 %vm93_vm1, %v79_v15  ;;  %2530 = vmatmul.msk.f32.gmra.mxu1 %vm93_vm1, %v616_v16  ;;  %v619_v10 = vld [vmem:[%s4270_s1 + $0x1c0] sm:$0xff] }
 0x1b0   :  { %v1540_v23 = vpop.f32.mrf.mxu2  ;;  %v2069_v24 = vpop.f32.mrf.mxu3 }
 0x1b1   :  { %2379 = vst.msk [vmem:[%s4272_s6 + $0x120] sm:$0xff] %vm2342_vm2, %v2314_v20  ;;  %v1541_v25 = vadd.f32 %v3493_v28, %v1540_v23  ;;  %v2070_v26 = vadd.f32 %v3493_v28, %v2069_v24  ;;  %v1129_v29 = vmax.f32 %v536_v21, %v1065_v22  ;;  %v1213_v21 = vld [vmem:[%s4267_s2 + $0x1c8] sm:$0xff] }
 0x1b2   :  { %v1742_v22 = vld [vmem:[%s4268_s3 + $0x1c8] sm:$0xff] }
 0x1b3   :  { %v1658_v30 = vmax.f32 %v1541_v25, 0.0  ;;  %v2187_v31 = vmax.f32 %v2070_v26, 0.0 }
 0x1b4   :  { %v421_v32 = vpop.f32.mrf.mxu0  ;;  %v950_v33 = vpop.f32.mrf.mxu1 }
 0x1b5   :  { %v2251_v36 = vmax.f32 %v1658_v30, %v2187_v31  ;;  %2596 = vmatmul.msk.f32.gmra.mxu2 %vm93_vm1, %v1210_v2  ;;  %2661 = vmatmul.msk.f32.gmra.mxu3 %vm93_vm1, %v1739_v27  ;;  %v422_v37 = vadd.f32 %v3493_v28, %v421_v32  ;;  %v951_v38 = vadd.f32 %v3493_v28, %v950_v33  ;;  %v83_v27 = vld [vmem:[%s4269_s0 + $0x1c8] sm:$0xff] }
 0x1b7   :  { %v2315_v39 = vmax.f32 %v1129_v29, %v2251_v36  ;;  %v537_v40 = vmax.f32 %v422_v37, 0.0  ;;  %v1066_v41 = vmax.f32 %v951_v38, 0.0  ;;  %2466 = vmatmul.msk.f32.gmra.mxu0 %vm93_vm1, %v80_v34  ;;  %2531 = vmatmul.msk.f32.gmra.mxu1 %vm93_vm1, %v617_v35  ;;  %v620_v29 = vld [vmem:[%s4270_s1 + $0x1c8] sm:$0xff] }
 0x1b8   :  { %v1543_v42 = vpop.f32.mrf.mxu2  ;;  %v2072_v43 = vpop.f32.mrf.mxu3 }
 0x1b9   :  { %2380 = vst.msk [vmem:[%s4272_s6 + $0x128] sm:$0xff] %vm2342_vm2, %v2315_v39  ;;  %v1544_v44 = vadd.f32 %v3493_v28, %v1543_v42  ;;  %v2073_v45 = vadd.f32 %v3493_v28, %v2072_v43  ;;  %v1130_v48 = vmax.f32 %v537_v40, %v1066_v41  ;;  %v1214_v40 = vld [vmem:[%s4267_s2 + $0x1d0] sm:$0xff] }
 0x1ba   :  { %v1743_v41 = vld [vmem:[%s4268_s3 + $0x1d0] sm:$0xff] }
 0x1bb   :  { %v1659_v49 = vmax.f32 %v1544_v44, 0.0  ;;  %v2188_v50 = vmax.f32 %v2073_v45, 0.0 }
 0x1bc   :  { %v424_v51 = vpop.f32.mrf.mxu0  ;;  %v953_v52 = vpop.f32.mrf.mxu1 }
 0x1bd   :  { %v2252_v55 = vmax.f32 %v1659_v49, %v2188_v50  ;;  %2597 = vmatmul.msk.f32.gmra.mxu2 %vm93_vm1, %v1211_v46  ;;  %2662 = vmatmul.msk.f32.gmra.mxu3 %vm93_vm1, %v1740_v47  ;;  %v425_v56 = vadd.f32 %v3493_v28, %v424_v51  ;;  %v954_v57 = vadd.f32 %v3493_v28, %v953_v52  ;;  %v84_v47 = vld [vmem:[%s4269_s0 + $0x1d0] sm:$0xff] }
 0x1bf   :  { %v2316_v58 = vmax.f32 %v1130_v48, %v2252_v55  ;;  %v538_v59 = vmax.f32 %v425_v56, 0.0  ;;  %v1067_v60 = vmax.f32 %v954_v57, 0.0  ;;  %2467 = vmatmul.msk.f32.gmra.mxu0 %vm93_vm1, %v81_v53  ;;  %2532 = vmatmul.msk.f32.gmra.mxu1 %vm93_vm1, %v618_v54  ;;  %v621_v48 = vld [vmem:[%s4270_s1 + $0x1d0] sm:$0xff]  ;;  %v4010_v57 = vld [vmem:[%s4271_s5] ss:$0 sm:$0xff] }
 0x1c0   :  { %v1546_v61 = vpop.f32.mrf.mxu2  ;;  %v2075_v62 = vpop.f32.mrf.mxu3 }
 0x1c1   :  { %2381 = vst.msk [vmem:[%s4272_s6 + $0x130] sm:$0xff] %vm2342_vm2, %v2316_v58  ;;  %v1547_v63 = vadd.f32 %v3493_v28, %v1546_v61  ;;  %v2076_v0 = vadd.f32 %v3493_v28, %v2075_v62  ;;  %v1131_v4 = vmax.f32 %v538_v59, %v1067_v60  ;;  %v1215_v59 = vld [vmem:[%s4267_s2 + $0x1d8] sm:$0xff] }
 0x1c2   :  { %v1744_v60 = vld [vmem:[%s4268_s3 + $0x1d8] sm:$0xff] }
 0x1c3   :  { %v1660_v5 = vmax.f32 %v1547_v63, 0.0  ;;  %v2189_v6 = vmax.f32 %v2076_v0, 0.0 }
 0x1c4   :  { %v427_v7 = vpop.f32.mrf.mxu0  ;;  %v956_v8 = vpop.f32.mrf.mxu1 }
 0x1c5   :  { %v2253_v11 = vmax.f32 %v1660_v5, %v2189_v6  ;;  %2598 = vmatmul.msk.f32.gmra.mxu2 %vm93_vm1, %v1212_v1  ;;  %2663 = vmatmul.msk.f32.gmra.mxu3 %vm93_vm1, %v1741_v3  ;;  %v428_v12 = vadd.f32 %v3493_v28, %v427_v7  ;;  %v957_v13 = vadd.f32 %v3493_v28, %v956_v8  ;;  %v85_v3 = vld [vmem:[%s4269_s0 + $0x1d8] sm:$0xff] }
 0x1c7   :  { %v2317_v14 = vmax.f32 %v1131_v4, %v2253_v11  ;;  %v539_v15 = vmax.f32 %v428_v12, 0.0  ;;  %v1068_v16 = vmax.f32 %v957_v13, 0.0  ;;  %2468 = vmatmul.msk.f32.gmra.mxu0 %vm93_vm1, %v82_v9  ;;  %2533 = vmatmul.msk.f32.gmra.mxu1 %vm93_vm1, %v619_v10  ;;  %v622_v4 = vld [vmem:[%s4270_s1 + $0x1d8] sm:$0xff] }
 0x1c8   :  { %v1549_v17 = vpop.f32.mrf.mxu2  ;;  %v2078_v18 = vpop.f32.mrf.mxu3 }
 0x1c9   :  { %2382 = vst.msk [vmem:[%s4272_s6 + $0x138] sm:$0xff] %vm2342_vm2, %v2317_v14  ;;  %v1550_v19 = vadd.f32 %v3493_v28, %v1549_v17  ;;  %v2079_v20 = vadd.f32 %v3493_v28, %v2078_v18  ;;  %v1132_v23 = vmax.f32 %v539_v15, %v1068_v16  ;;  %v1216_v15 = vld [vmem:[%s4267_s2 + $0x1e0] sm:$0xff] }
 0x1ca   :  { %v1745_v16 = vld [vmem:[%s4268_s3 + $0x1e0] sm:$0xff] }
 0x1cb   :  { %v1661_v24 = vmax.f32 %v1550_v19, 0.0  ;;  %v2190_v25 = vmax.f32 %v2079_v20, 0.0 }
 0x1cc   :  { %v430_v26 = vpop.f32.mrf.mxu0  ;;  %v959_v2 = vpop.f32.mrf.mxu1 }
 0x1cd   :  { %v2254_v30 = vmax.f32 %v1661_v24, %v2190_v25  ;;  %2599 = vmatmul.msk.f32.gmra.mxu2 %vm93_vm1, %v1213_v21  ;;  %2664 = vmatmul.msk.f32.gmra.mxu3 %vm93_vm1, %v1742_v22  ;;  %v431_v31 = vadd.f32 %v3493_v28, %v430_v26  ;;  %v960_v32 = vadd.f32 %v3493_v28, %v959_v2  ;;  %v86_v22 = vld [vmem:[%s4269_s0 + $0x1e0] sm:$0xff] }
 0x1cf   :  { %v2318_v33 = vmax.f32 %v1132_v23, %v2254_v30  ;;  %v540_v34 = vmax.f32 %v431_v31, 0.0  ;;  %v1069_v35 = vmax.f32 %v960_v32, 0.0  ;;  %2469 = vmatmul.msk.f32.gmra.mxu0 %vm93_vm1, %v83_v27  ;;  %2534 = vmatmul.msk.f32.gmra.mxu1 %vm93_vm1, %v620_v29  ;;  %v623_v23 = vld [vmem:[%s4270_s1 + $0x1e0] sm:$0xff] }
 0x1d0   :  { %v1552_v36 = vpop.f32.mrf.mxu2  ;;  %v2081_v37 = vpop.f32.mrf.mxu3 }
 0x1d1   :  { %2383 = vst.msk [vmem:[%s4272_s6 + $0x140] sm:$0xff] %vm2342_vm2, %v2318_v33  ;;  %v1553_v38 = vadd.f32 %v3493_v28, %v1552_v36  ;;  %v2082_v39 = vadd.f32 %v3493_v28, %v2081_v37  ;;  %v1133_v42 = vmax.f32 %v540_v34, %v1069_v35  ;;  %v1217_v34 = vld [vmem:[%s4267_s2 + $0x1e8] sm:$0xff] }
 0x1d2   :  { %v1746_v35 = vld [vmem:[%s4268_s3 + $0x1e8] sm:$0xff] }
 0x1d3   :  { %v1662_v43 = vmax.f32 %v1553_v38, 0.0  ;;  %v2191_v44 = vmax.f32 %v2082_v39, 0.0 }
 0x1d4   :  { %v433_v45 = vpop.f32.mrf.mxu0  ;;  %v962_v46 = vpop.f32.mrf.mxu1 }
 0x1d5   :  { %v2255_v49 = vmax.f32 %v1662_v43, %v2191_v44  ;;  %2600 = vmatmul.msk.f32.gmra.mxu2 %vm93_vm1, %v1214_v40  ;;  %2665 = vmatmul.msk.f32.gmra.mxu3 %vm93_vm1, %v1743_v41  ;;  %v434_v50 = vadd.f32 %v3493_v28, %v433_v45  ;;  %v963_v51 = vadd.f32 %v3493_v28, %v962_v46  ;;  %v87_v41 = vld [vmem:[%s4269_s0 + $0x1e8] sm:$0xff] }
 0x1d7   :  { %v2319_v52 = vmax.f32 %v1133_v42, %v2255_v49  ;;  %v541_v53 = vmax.f32 %v434_v50, 0.0  ;;  %v1070_v54 = vmax.f32 %v963_v51, 0.0  ;;  %2470 = vmatmul.msk.f32.gmra.mxu0 %vm93_vm1, %v84_v47  ;;  %2535 = vmatmul.msk.f32.gmra.mxu1 %vm93_vm1, %v621_v48  ;;  %v624_v42 = vld [vmem:[%s4270_s1 + $0x1e8] sm:$0xff] }
 0x1d8   :  { %v1555_v55 = vpop.f32.mrf.mxu2  ;;  %v2084_v56 = vpop.f32.mrf.mxu3 }
 0x1d9   :  { %2384 = vst.msk [vmem:[%s4272_s6 + $0x148] sm:$0xff] %vm2342_vm2, %v2319_v52  ;;  %v1556_v28 = vadd.f32 %v4010_v57, %v1555_v55  ;;  %v2085_v58 = vadd.f32 %v4010_v57, %v2084_v56  ;;  %v1134_v61 = vmax.f32 %v541_v53, %v1070_v54  ;;  %v1218_v53 = vld [vmem:[%s4267_s2 + $0x1f0] sm:$0xff] }
 0x1da   :  { %v1747_v54 = vld [vmem:[%s4268_s3 + $0x1f0] sm:$0xff] }
 0x1db   :  { %v1663_v62 = vmax.f32 %v1556_v28, 0.0  ;;  %v2192_v63 = vmax.f32 %v2085_v58, 0.0 }
 0x1dc   :  { %v436_v0 = vpop.f32.mrf.mxu0  ;;  %v965_v1 = vpop.f32.mrf.mxu1 }
 0x1dd   :  { %v2256_v5 = vmax.f32 %v1663_v62, %v2192_v63  ;;  %2601 = vmatmul.msk.f32.gmra.mxu2 %vm93_vm1, %v1215_v59  ;;  %2666 = vmatmul.msk.f32.gmra.mxu3 %vm93_vm1, %v1744_v60  ;;  %v437_v6 = vadd.f32 %v4010_v57, %v436_v0  ;;  %v966_v7 = vadd.f32 %v4010_v57, %v965_v1  ;;  %v88_v60 = vld [vmem:[%s4269_s0 + $0x1f0] sm:$0xff] }
 0x1df   :  { %v2320_v8 = vmax.f32 %v1134_v61, %v2256_v5  ;;  %v542_v9 = vmax.f32 %v437_v6, 0.0  ;;  %v1071_v10 = vmax.f32 %v966_v7, 0.0  ;;  %2471 = vmatmul.msk.f32.gmra.mxu0 %vm93_vm1, %v85_v3  ;;  %2536 = vmatmul.msk.f32.gmra.mxu1 %vm93_vm1, %v622_v4  ;;  %v625_v61 = vld [vmem:[%s4270_s1 + $0x1f0] sm:$0xff] }
 0x1e0   :  { %v1558_v11 = vpop.f32.mrf.mxu2  ;;  %v2087_v12 = vpop.f32.mrf.mxu3 }
 0x1e1   :  { %2385 = vst.msk [vmem:[%s4272_s6 + $0x150] sm:$0xff] %vm2342_vm2, %v2320_v8  ;;  %v1559_v13 = vadd.f32 %v4010_v57, %v1558_v11  ;;  %v2088_v14 = vadd.f32 %v4010_v57, %v2087_v12  ;;  %v1135_v17 = vmax.f32 %v542_v9, %v1071_v10  ;;  %v1219_v9 = vld [vmem:[%s4267_s2 + $0x1f8] sm:$0xff] }
 0x1e2   :  { %v1748_v10 = vld [vmem:[%s4268_s3 + $0x1f8] sm:$0xff] }
 0x1e3   :  { %v1664_v18 = vmax.f32 %v1559_v13, 0.0  ;;  %v2193_v19 = vmax.f32 %v2088_v14, 0.0 }
 0x1e4   :  { %v439_v20 = vpop.f32.mrf.mxu0  ;;  %v968_v21 = vpop.f32.mrf.mxu1 }
 0x1e5   :  { %v2257_v24 = vmax.f32 %v1664_v18, %v2193_v19  ;;  %2602 = vmatmul.msk.f32.gmra.mxu2 %vm93_vm1, %v1216_v15  ;;  %2667 = vmatmul.msk.f32.gmra.mxu3 %vm93_vm1, %v1745_v16  ;;  %v440_v25 = vadd.f32 %v4010_v57, %v439_v20  ;;  %v969_v26 = vadd.f32 %v4010_v57, %v968_v21  ;;  %v89_v16 = vld [vmem:[%s4269_s0 + $0x1f8] sm:$0xff] }
 0x1e7   :  { %v2321_v2 = vmax.f32 %v1135_v17, %v2257_v24  ;;  %v543_v27 = vmax.f32 %v440_v25, 0.0  ;;  %v1072_v29 = vmax.f32 %v969_v26, 0.0  ;;  %2472 = vmatmul.msk.f32.gmra.mxu0 %vm93_vm1, %v86_v22  ;;  %2537 = vmatmul.msk.f32.gmra.mxu1 %vm93_vm1, %v623_v23  ;;  %v626_v17 = vld [vmem:[%s4270_s1 + $0x1f8] sm:$0xff] }
 0x1e8   :  { %v1561_v30 = vpop.f32.mrf.mxu2  ;;  %v2090_v31 = vpop.f32.mrf.mxu3 }
 0x1e9   :  { %2386 = vst.msk [vmem:[%s4272_s6 + $0x158] sm:$0xff] %vm2342_vm2, %v2321_v2  ;;  %v1562_v32 = vadd.f32 %v4010_v57, %v1561_v30  ;;  %v2091_v33 = vadd.f32 %v4010_v57, %v2090_v31  ;;  %v1136_v36 = vmax.f32 %v543_v27, %v1072_v29 }
 0x1eb   :  { %v1665_v37 = vmax.f32 %v1562_v32, 0.0  ;;  %v2194_v38 = vmax.f32 %v2091_v33, 0.0 }
 0x1ec   :  { %v442_v39 = vpop.f32.mrf.mxu0  ;;  %v971_v40 = vpop.f32.mrf.mxu1 }
 0x1ed   :  { %v2258_v43 = vmax.f32 %v1665_v37, %v2194_v38  ;;  %2603 = vmatmul.msk.f32.gmra.mxu2 %vm93_vm1, %v1217_v34  ;;  %2668 = vmatmul.msk.f32.gmra.mxu3 %vm93_vm1, %v1746_v35  ;;  %v443_v44 = vadd.f32 %v4010_v57, %v442_v39  ;;  %v972_v45 = vadd.f32 %v4010_v57, %v971_v40 }
 0x1ef   :  { %v2322_v46 = vmax.f32 %v1136_v36, %v2258_v43  ;;  %v544_v47 = vmax.f32 %v443_v44, 0.0  ;;  %v1073_v48 = vmax.f32 %v972_v45, 0.0  ;;  %2473 = vmatmul.msk.f32.gmra.mxu0 %vm93_vm1, %v87_v41  ;;  %2538 = vmatmul.msk.f32.gmra.mxu1 %vm93_vm1, %v624_v42 }
 0x1f0   :  { %v1564_v49 = vpop.f32.mrf.mxu2  ;;  %v2093_v50 = vpop.f32.mrf.mxu3 }
 0x1f1   :  { %2387 = vst.msk [vmem:[%s4272_s6 + $0x160] sm:$0xff] %vm2342_vm2, %v2322_v46  ;;  %v1565_v51 = vadd.f32 %v4010_v57, %v1564_v49  ;;  %v2094_v52 = vadd.f32 %v4010_v57, %v2093_v50  ;;  %v1137_v55 = vmax.f32 %v544_v47, %v1073_v48 }
 0x1f3   :  { %v1666_v56 = vmax.f32 %v1565_v51, 0.0  ;;  %v2195_v28 = vmax.f32 %v2094_v52, 0.0 }
 0x1f4   :  { %v445_v58 = vpop.f32.mrf.mxu0  ;;  %v974_v59 = vpop.f32.mrf.mxu1 }
 0x1f5   :  { %v2259_v62 = vmax.f32 %v1666_v56, %v2195_v28  ;;  %2604 = vmatmul.msk.f32.gmra.mxu2 %vm93_vm1, %v1218_v53  ;;  %2669 = vmatmul.msk.f32.gmra.mxu3 %vm93_vm1, %v1747_v54  ;;  %v446_v63 = vadd.f32 %v4010_v57, %v445_v58  ;;  %v975_v0 = vadd.f32 %v4010_v57, %v974_v59 }
 0x1f7   :  { %v2323_v1 = vmax.f32 %v1137_v55, %v2259_v62  ;;  %v545_v3 = vmax.f32 %v446_v63, 0.0  ;;  %v1074_v4 = vmax.f32 %v975_v0, 0.0  ;;  %2474 = vmatmul.msk.f32.gmra.mxu0 %vm93_vm1, %v88_v60  ;;  %2539 = vmatmul.msk.f32.gmra.mxu1 %vm93_vm1, %v625_v61 }
 0x1f8   :  { %v1567_v5 = vpop.f32.mrf.mxu2  ;;  %v2096_v6 = vpop.f32.mrf.mxu3 }
 0x1f9   :  { %2388 = vst.msk [vmem:[%s4272_s6 + $0x168] sm:$0xff] %vm2342_vm2, %v2323_v1  ;;  %v1568_v7 = vadd.f32 %v4010_v57, %v1567_v5  ;;  %v2097_v8 = vadd.f32 %v4010_v57, %v2096_v6  ;;  %v1138_v11 = vmax.f32 %v545_v3, %v1074_v4 }
 0x1fb   :  { %v1667_v12 = vmax.f32 %v1568_v7, 0.0  ;;  %v2196_v13 = vmax.f32 %v2097_v8, 0.0 }
 0x1fc   :  { %v448_v14 = vpop.f32.mrf.mxu0  ;;  %v977_v15 = vpop.f32.mrf.mxu1 }
 0x1fd   :  { %v2260_v18 = vmax.f32 %v1667_v12, %v2196_v13  ;;  %2605 = vmatmul.msk.f32.gmra.mxu2 %vm93_vm1, %v1219_v9  ;;  %2670 = vmatmul.msk.f32.gmra.mxu3 %vm93_vm1, %v1748_v10  ;;  %v449_v19 = vadd.f32 %v4010_v57, %v448_v14  ;;  %v978_v20 = vadd.f32 %v4010_v57, %v977_v15 }
 0x1ff   :  { %v2324_v21 = vmax.f32 %v1138_v11, %v2260_v18  ;;  %v546_v22 = vmax.f32 %v449_v19, 0.0  ;;  %v1075_v23 = vmax.f32 %v978_v20, 0.0  ;;  %2475 = vmatmul.msk.f32.gmra.mxu0 %vm93_vm1, %v89_v16  ;;  %2540 = vmatmul.msk.f32.gmra.mxu1 %vm93_vm1, %v626_v17 }
 0x200   :  { %v1570_v24 = vpop.f32.mrf.mxu2  ;;  %v2099_v25 = vpop.f32.mrf.mxu3 }
 0x201   :  { %2389 = vst.msk [vmem:[%s4272_s6 + $0x170] sm:$0xff] %vm2342_vm2, %v2324_v21  ;;  %v1571_v26 = vadd.f32 %v4010_v57, %v1570_v24  ;;  %v2100_v2 = vadd.f32 %v4010_v57, %v2099_v25  ;;  %v1139_v27 = vmax.f32 %v546_v22, %v1075_v23 }
 0x203   :  { %v1668_v29 = vmax.f32 %v1571_v26, 0.0  ;;  %v2197_v30 = vmax.f32 %v2100_v2, 0.0 }
 0x204   :  { %v451_v31 = vpop.f32.mrf.mxu0  ;;  %v980_v32 = vpop.f32.mrf.mxu1 }
 0x205   :  { %v2261_v33 = vmax.f32 %v1668_v29, %v2197_v30  ;;  %v452_v34 = vadd.f32 %v4010_v57, %v451_v31  ;;  %v981_v35 = vadd.f32 %v4010_v57, %v980_v32 }
 0x207   :  { %v2325_v36 = vmax.f32 %v1139_v27, %v2261_v33  ;;  %v547_v37 = vmax.f32 %v452_v34, 0.0  ;;  %v1076_v38 = vmax.f32 %v981_v35, 0.0 }
 0x208   :  { %v1573_v39 = vpop.f32.mrf.mxu2  ;;  %v2102_v40 = vpop.f32.mrf.mxu3 }
 0x209   :  { %2390 = vst.msk [vmem:[%s4272_s6 + $0x178] sm:$0xff] %vm2342_vm2, %v2325_v36  ;;  %v1574_v41 = vadd.f32 %v4010_v57, %v1573_v39  ;;  %v2103_v42 = vadd.f32 %v4010_v57, %v2102_v40  ;;  %v1140_v43 = vmax.f32 %v547_v37, %v1076_v38 }
 0x20b   :  { %v1669_v44 = vmax.f32 %v1574_v41, 0.0  ;;  %v2198_v45 = vmax.f32 %v2103_v42, 0.0 }
 0x20c   :  { %v454_v46 = vpop.f32.mrf.mxu0  ;;  %v983_v47 = vpop.f32.mrf.mxu1 }
 0x20d   :  { %v2262_v48 = vmax.f32 %v1669_v44, %v2198_v45  ;;  %v455_v49 = vadd.f32 %v4010_v57, %v454_v46  ;;  %v984_v50 = vadd.f32 %v4010_v57, %v983_v47 }
 0x20f   :  { %v2326_v51 = vmax.f32 %v1140_v43, %v2262_v48  ;;  %v548_v52 = vmax.f32 %v455_v49, 0.0  ;;  %v1077_v53 = vmax.f32 %v984_v50, 0.0 }
 0x210   :  { %v1576_v54 = vpop.f32.mrf.mxu2  ;;  %v2105_v55 = vpop.f32.mrf.mxu3 }
 0x211   :  { %2391 = vst.msk [vmem:[%s4272_s6 + $0x180] sm:$0xff] %vm2342_vm2, %v2326_v51  ;;  %v1577_v56 = vadd.f32 %v4010_v57, %v1576_v54  ;;  %v2106_v28 = vadd.f32 %v4010_v57, %v2105_v55  ;;  %v1141_v58 = vmax.f32 %v548_v52, %v1077_v53 }
 0x213   :  { %v1670_v59 = vmax.f32 %v1577_v56, 0.0  ;;  %v2199_v60 = vmax.f32 %v2106_v28, 0.0 }
 0x214   :  { %v457_v61 = vpop.f32.mrf.mxu0  ;;  %v986_v62 = vpop.f32.mrf.mxu1 }
 0x215   :  { %v2263_v63 = vmax.f32 %v1670_v59, %v2199_v60  ;;  %v458_v0 = vadd.f32 %v4010_v57, %v457_v61  ;;  %v987_v1 = vadd.f32 %v4010_v57, %v986_v62 }
 0x217   :  { %v2327_v3 = vmax.f32 %v1141_v58, %v2263_v63  ;;  %v549_v4 = vmax.f32 %v458_v0, 0.0  ;;  %v1078_v5 = vmax.f32 %v987_v1, 0.0 }
 0x218   :  { %v1579_v6 = vpop.f32.mrf.mxu2  ;;  %v2108_v7 = vpop.f32.mrf.mxu3 }
 0x219   :  { %2392 = vst.msk [vmem:[%s4272_s6 + $0x188] sm:$0xff] %vm2342_vm2, %v2327_v3  ;;  %v1580_v8 = vadd.f32 %v4010_v57, %v1579_v6  ;;  %v2109_v9 = vadd.f32 %v4010_v57, %v2108_v7  ;;  %v1142_v10 = vmax.f32 %v549_v4, %v1078_v5 }
 0x21b   :  { %v1671_v11 = vmax.f32 %v1580_v8, 0.0  ;;  %v2200_v12 = vmax.f32 %v2109_v9, 0.0 }
 0x21c   :  { %v460_v13 = vpop.f32.mrf.mxu0  ;;  %v989_v14 = vpop.f32.mrf.mxu1 }
 0x21d   :  { %v2264_v15 = vmax.f32 %v1671_v11, %v2200_v12  ;;  %v461_v16 = vadd.f32 %v4010_v57, %v460_v13  ;;  %v990_v17 = vadd.f32 %v4010_v57, %v989_v14 }
 0x21f   :  { %v2328_v18 = vmax.f32 %v1142_v10, %v2264_v15  ;;  %v550_v19 = vmax.f32 %v461_v16, 0.0  ;;  %v1079_v20 = vmax.f32 %v990_v17, 0.0 }
 0x220   :  { %v1582_v21 = vpop.f32.mrf.mxu2  ;;  %v2111_v22 = vpop.f32.mrf.mxu3 }
 0x221   :  { %2393 = vst.msk [vmem:[%s4272_s6 + $0x190] sm:$0xff] %vm2342_vm2, %v2328_v18  ;;  %v1583_v23 = vadd.f32 %v4010_v57, %v1582_v21  ;;  %v2112_v24 = vadd.f32 %v4010_v57, %v2111_v22  ;;  %v1143_v25 = vmax.f32 %v550_v19, %v1079_v20 }
 0x223   :  { %v1672_v26 = vmax.f32 %v1583_v23, 0.0  ;;  %v2201_v2 = vmax.f32 %v2112_v24, 0.0 }
 0x224   :  { %v463_v27 = vpop.f32.mrf.mxu0  ;;  %v992_v29 = vpop.f32.mrf.mxu1 }
 0x225   :  { %v2265_v30 = vmax.f32 %v1672_v26, %v2201_v2  ;;  %v464_v31 = vadd.f32 %v4010_v57, %v463_v27  ;;  %v993_v32 = vadd.f32 %v4010_v57, %v992_v29 }
 0x227   :  { %v2329_v33 = vmax.f32 %v1143_v25, %v2265_v30  ;;  %v551_v34 = vmax.f32 %v464_v31, 0.0  ;;  %v1080_v35 = vmax.f32 %v993_v32, 0.0 }
 0x228   :  { %v1585_v36 = vpop.f32.mrf.mxu2  ;;  %v2114_v37 = vpop.f32.mrf.mxu3 }
 0x229   :  { %2394 = vst.msk [vmem:[%s4272_s6 + $0x198] sm:$0xff] %vm2342_vm2, %v2329_v33  ;;  %v1586_v38 = vadd.f32 %v4010_v57, %v1585_v36  ;;  %v2115_v39 = vadd.f32 %v4010_v57, %v2114_v37  ;;  %v1144_v40 = vmax.f32 %v551_v34, %v1080_v35 }
 0x22b   :  { %v1673_v41 = vmax.f32 %v1586_v38, 0.0  ;;  %v2202_v42 = vmax.f32 %v2115_v39, 0.0 }
 0x22c   :  { %v466_v43 = vpop.f32.mrf.mxu0  ;;  %v995_v44 = vpop.f32.mrf.mxu1 }
 0x22d   :  { %v2266_v45 = vmax.f32 %v1673_v41, %v2202_v42  ;;  %v467_v46 = vadd.f32 %v4010_v57, %v466_v43  ;;  %v996_v47 = vadd.f32 %v4010_v57, %v995_v44 }
 0x22f   :  { %v2330_v48 = vmax.f32 %v1144_v40, %v2266_v45  ;;  %v552_v49 = vmax.f32 %v467_v46, 0.0  ;;  %v1081_v50 = vmax.f32 %v996_v47, 0.0 }
 0x230   :  { %v1588_v51 = vpop.f32.mrf.mxu2  ;;  %v2117_v52 = vpop.f32.mrf.mxu3 }
 0x231   :  { %2395 = vst.msk [vmem:[%s4272_s6 + $0x1a0] sm:$0xff] %vm2342_vm2, %v2330_v48  ;;  %v1589_v53 = vadd.f32 %v4010_v57, %v1588_v51  ;;  %v2118_v54 = vadd.f32 %v4010_v57, %v2117_v52  ;;  %v1145_v55 = vmax.f32 %v552_v49, %v1081_v50 }
 0x233   :  { %v1674_v56 = vmax.f32 %v1589_v53, 0.0  ;;  %v2203_v28 = vmax.f32 %v2118_v54, 0.0 }
 0x234   :  { %v469_v58 = vpop.f32.mrf.mxu0  ;;  %v998_v59 = vpop.f32.mrf.mxu1 }
 0x235   :  { %v2267_v60 = vmax.f32 %v1674_v56, %v2203_v28  ;;  %v470_v61 = vadd.f32 %v4010_v57, %v469_v58  ;;  %v999_v62 = vadd.f32 %v4010_v57, %v998_v59 }
 0x237   :  { %v2331_v63 = vmax.f32 %v1145_v55, %v2267_v60  ;;  %v553_v0 = vmax.f32 %v470_v61, 0.0  ;;  %v1082_v1 = vmax.f32 %v999_v62, 0.0 }
 0x238   :  { %v1591_v3 = vpop.f32.mrf.mxu2  ;;  %v2120_v4 = vpop.f32.mrf.mxu3 }
 0x239   :  { %2396 = vst.msk [vmem:[%s4272_s6 + $0x1a8] sm:$0xff] %vm2342_vm2, %v2331_v63  ;;  %v1592_v5 = vadd.f32 %v4010_v57, %v1591_v3  ;;  %v2121_v6 = vadd.f32 %v4010_v57, %v2120_v4  ;;  %v1146_v7 = vmax.f32 %v553_v0, %v1082_v1 }
 0x23b   :  { %v1675_v8 = vmax.f32 %v1592_v5, 0.0  ;;  %v2204_v9 = vmax.f32 %v2121_v6, 0.0 }
 0x23c   :  { %v472_v10 = vpop.f32.mrf.mxu0  ;;  %v1001_v11 = vpop.f32.mrf.mxu1 }
 0x23d   :  { %v2268_v12 = vmax.f32 %v1675_v8, %v2204_v9  ;;  %v473_v13 = vadd.f32 %v4010_v57, %v472_v10  ;;  %v1002_v14 = vadd.f32 %v4010_v57, %v1001_v11 }
 0x23f   :  { %v2332_v15 = vmax.f32 %v1146_v7, %v2268_v12  ;;  %v554_v16 = vmax.f32 %v473_v13, 0.0  ;;  %v1083_v17 = vmax.f32 %v1002_v14, 0.0 }
 0x240   :  { %v1594_v18 = vpop.f32.mrf.mxu2  ;;  %v2123_v19 = vpop.f32.mrf.mxu3 }
 0x241   :  { %2397 = vst.msk [vmem:[%s4272_s6 + $0x1b0] sm:$0xff] %vm2342_vm2, %v2332_v15  ;;  %v1595_v20 = vadd.f32 %v4010_v57, %v1594_v18  ;;  %v2124_v21 = vadd.f32 %v4010_v57, %v2123_v19  ;;  %v1147_v22 = vmax.f32 %v554_v16, %v1083_v17 }
 0x243   :  { %v1676_v23 = vmax.f32 %v1595_v20, 0.0  ;;  %v2205_v24 = vmax.f32 %v2124_v21, 0.0 }
 0x244   :  { %v475_v25 = vpop.f32.mrf.mxu0  ;;  %v1004_v26 = vpop.f32.mrf.mxu1 }
 0x245   :  { %v2269_v2 = vmax.f32 %v1676_v23, %v2205_v24  ;;  %v476_v27 = vadd.f32 %v4010_v57, %v475_v25  ;;  %v1005_v29 = vadd.f32 %v4010_v57, %v1004_v26 }
 0x247   :  { %v2333_v30 = vmax.f32 %v1147_v22, %v2269_v2  ;;  %v555_v31 = vmax.f32 %v476_v27, 0.0  ;;  %v1084_v32 = vmax.f32 %v1005_v29, 0.0 }
 0x248   :  { %v1597_v33 = vpop.f32.mrf.mxu2  ;;  %v2126_v34 = vpop.f32.mrf.mxu3 }
 0x249   :  { %2398 = vst.msk [vmem:[%s4272_s6 + $0x1b8] sm:$0xff] %vm2342_vm2, %v2333_v30  ;;  %v1598_v35 = vadd.f32 %v4010_v57, %v1597_v33  ;;  %v2127_v36 = vadd.f32 %v4010_v57, %v2126_v34  ;;  %v1148_v37 = vmax.f32 %v555_v31, %v1084_v32 }
 0x24b   :  { %v1677_v38 = vmax.f32 %v1598_v35, 0.0  ;;  %v2206_v39 = vmax.f32 %v2127_v36, 0.0 }
 0x24c   :  { %v478_v40 = vpop.f32.mrf.mxu0  ;;  %v1007_v41 = vpop.f32.mrf.mxu1 }
 0x24d   :  { %v2270_v42 = vmax.f32 %v1677_v38, %v2206_v39  ;;  %v479_v43 = vadd.f32 %v4010_v57, %v478_v40  ;;  %v1008_v44 = vadd.f32 %v4010_v57, %v1007_v41 }
 0x24f   :  { %v2334_v45 = vmax.f32 %v1148_v37, %v2270_v42  ;;  %v556_v46 = vmax.f32 %v479_v43, 0.0  ;;  %v1085_v47 = vmax.f32 %v1008_v44, 0.0 }
 0x250   :  { %v1600_v48 = vpop.f32.mrf.mxu2  ;;  %v2129_v49 = vpop.f32.mrf.mxu3 }
 0x251   :  { %2399 = vst.msk [vmem:[%s4272_s6 + $0x1c0] sm:$0xff] %vm2342_vm2, %v2334_v45  ;;  %v1601_v50 = vadd.f32 %v4010_v57, %v1600_v48  ;;  %v2130_v51 = vadd.f32 %v4010_v57, %v2129_v49  ;;  %v1149_v52 = vmax.f32 %v556_v46, %v1085_v47 }
 0x253   :  { %v1678_v53 = vmax.f32 %v1601_v50, 0.0  ;;  %v2207_v54 = vmax.f32 %v2130_v51, 0.0 }
 0x254   :  { %v481_v55 = vpop.f32.mrf.mxu0  ;;  %v1010_v56 = vpop.f32.mrf.mxu1 }
 0x255   :  { %v2271_v28 = vmax.f32 %v1678_v53, %v2207_v54  ;;  %v482_v58 = vadd.f32 %v4010_v57, %v481_v55  ;;  %v1011_v59 = vadd.f32 %v4010_v57, %v1010_v56 }
 0x257   :  { %v2335_v60 = vmax.f32 %v1149_v52, %v2271_v28  ;;  %v557_v61 = vmax.f32 %v482_v58, 0.0  ;;  %v1086_v62 = vmax.f32 %v1011_v59, 0.0 }
 0x258   :  { %v1603_v63 = vpop.f32.mrf.mxu2  ;;  %v2132_v0 = vpop.f32.mrf.mxu3 }
 0x259   :  { %2400 = vst.msk [vmem:[%s4272_s6 + $0x1c8] sm:$0xff] %vm2342_vm2, %v2335_v60  ;;  %v1604_v1 = vadd.f32 %v4010_v57, %v1603_v63  ;;  %v2133_v3 = vadd.f32 %v4010_v57, %v2132_v0  ;;  %v1150_v4 = vmax.f32 %v557_v61, %v1086_v62 }
 0x25b   :  { %v1679_v5 = vmax.f32 %v1604_v1, 0.0  ;;  %v2208_v6 = vmax.f32 %v2133_v3, 0.0 }
 0x25c   :  { %v484_v7 = vpop.f32.mrf.mxu0  ;;  %v1013_v8 = vpop.f32.mrf.mxu1 }
 0x25d   :  { %v2272_v9 = vmax.f32 %v1679_v5, %v2208_v6  ;;  %v485_v10 = vadd.f32 %v4010_v57, %v484_v7  ;;  %v1014_v11 = vadd.f32 %v4010_v57, %v1013_v8 }
 0x25f   :  { %v2336_v12 = vmax.f32 %v1150_v4, %v2272_v9  ;;  %v558_v13 = vmax.f32 %v485_v10, 0.0  ;;  %v1087_v14 = vmax.f32 %v1014_v11, 0.0 }
 0x260   :  { %v1606_v15 = vpop.f32.mrf.mxu2  ;;  %v2135_v16 = vpop.f32.mrf.mxu3 }
 0x261   :  { %2401 = vst.msk [vmem:[%s4272_s6 + $0x1d0] sm:$0xff] %vm2342_vm2, %v2336_v12  ;;  %v1607_v17 = vadd.f32 %v4010_v57, %v1606_v15  ;;  %v2136_v18 = vadd.f32 %v4010_v57, %v2135_v16  ;;  %v1151_v19 = vmax.f32 %v558_v13, %v1087_v14 }
 0x263   :  { %v1680_v20 = vmax.f32 %v1607_v17, 0.0  ;;  %v2209_v21 = vmax.f32 %v2136_v18, 0.0 }
 0x264   :  { %v487_v22 = vpop.f32.mrf.mxu0  ;;  %v1016_v23 = vpop.f32.mrf.mxu1 }
 0x265   :  { %v2273_v24 = vmax.f32 %v1680_v20, %v2209_v21  ;;  %v488_v25 = vadd.f32 %v4010_v57, %v487_v22  ;;  %v1017_v26 = vadd.f32 %v4010_v57, %v1016_v23 }
 0x267   :  { %v2337_v2 = vmax.f32 %v1151_v19, %v2273_v24  ;;  %v559_v27 = vmax.f32 %v488_v25, 0.0  ;;  %v1088_v29 = vmax.f32 %v1017_v26, 0.0 }
 0x268   :  { %v1609_v30 = vpop.f32.mrf.mxu2  ;;  %v2138_v31 = vpop.f32.mrf.mxu3 }
 0x269   :  { %2402 = vst.msk [vmem:[%s4272_s6 + $0x1d8] sm:$0xff] %vm2342_vm2, %v2337_v2  ;;  %v1610_v32 = vadd.f32 %v4010_v57, %v1609_v30  ;;  %v2139_v33 = vadd.f32 %v4010_v57, %v2138_v31  ;;  %v1152_v34 = vmax.f32 %v559_v27, %v1088_v29 }
 0x26b   :  { %v1681_v35 = vmax.f32 %v1610_v32, 0.0  ;;  %v2210_v36 = vmax.f32 %v2139_v33, 0.0 }
 0x26c   :  { %v490_v37 = vpop.f32.mrf.mxu0  ;;  %v1019_v38 = vpop.f32.mrf.mxu1 }
 0x26d   :  { %v2274_v39 = vmax.f32 %v1681_v35, %v2210_v36  ;;  %v491_v40 = vadd.f32 %v4010_v57, %v490_v37  ;;  %v1020_v41 = vadd.f32 %v4010_v57, %v1019_v38 }
 0x26f   :  { %v2338_v42 = vmax.f32 %v1152_v34, %v2274_v39  ;;  %v560_v43 = vmax.f32 %v491_v40, 0.0  ;;  %v1089_v44 = vmax.f32 %v1020_v41, 0.0 }
 0x270   :  { %v1612_v45 = vpop.f32.mrf.mxu2  ;;  %v2141_v46 = vpop.f32.mrf.mxu3 }
 0x271   :  { %2403 = vst.msk [vmem:[%s4272_s6 + $0x1e0] sm:$0xff] %vm2342_vm2, %v2338_v42  ;;  %v1613_v47 = vadd.f32 %v4010_v57, %v1612_v45  ;;  %v2142_v48 = vadd.f32 %v4010_v57, %v2141_v46  ;;  %v1153_v49 = vmax.f32 %v560_v43, %v1089_v44 }
 0x273   :  { %v1682_v50 = vmax.f32 %v1613_v47, 0.0  ;;  %v2211_v51 = vmax.f32 %v2142_v48, 0.0 }
 0x274   :  { %v493_v52 = vpop.f32.mrf.mxu0  ;;  %v1022_v53 = vpop.f32.mrf.mxu1 }
 0x275   :  { %v2275_v54 = vmax.f32 %v1682_v50, %v2211_v51  ;;  %v494_v55 = vadd.f32 %v4010_v57, %v493_v52  ;;  %v1023_v56 = vadd.f32 %v4010_v57, %v1022_v53 }
 0x277   :  { %v2339_v28 = vmax.f32 %v1153_v49, %v2275_v54  ;;  %v561_v58 = vmax.f32 %v494_v55, 0.0  ;;  %v1090_v59 = vmax.f32 %v1023_v56, 0.0 }
 0x278   :  { %v1615_v60 = vpop.f32.mrf.mxu2  ;;  %v2144_v61 = vpop.f32.mrf.mxu3 }
 0x279   :  { %2404 = vst.msk [vmem:[%s4272_s6 + $0x1e8] sm:$0xff] %vm2342_vm2, %v2339_v28  ;;  %v1616_v62 = vadd.f32 %v4010_v57, %v1615_v60  ;;  %v2145_v63 = vadd.f32 %v4010_v57, %v2144_v61  ;;  %v1154_v0 = vmax.f32 %v561_v58, %v1090_v59 }
 0x27b   :  { %v1683_v1 = vmax.f32 %v1616_v62, 0.0  ;;  %v2212_v3 = vmax.f32 %v2145_v63, 0.0 }
 0x27c   :  { %v496_v4 = vpop.f32.mrf.mxu0  ;;  %v1025_v5 = vpop.f32.mrf.mxu1 }
 0x27d   :  { %v2276_v6 = vmax.f32 %v1683_v1, %v2212_v3  ;;  %v497_v7 = vadd.f32 %v4010_v57, %v496_v4  ;;  %v1026_v8 = vadd.f32 %v4010_v57, %v1025_v5 }
 0x27f   :  { %v2340_v9 = vmax.f32 %v1154_v0, %v2276_v6  ;;  %v562_v10 = vmax.f32 %v497_v7, 0.0  ;;  %v1091_v11 = vmax.f32 %v1026_v8, 0.0 }
 0x280   :  { %v1618_v12 = vpop.f32.mrf.mxu2  ;;  %v2147_v13 = vpop.f32.mrf.mxu3 }
 0x281   :  { %2405 = vst.msk [vmem:[%s4272_s6 + $0x1f0] sm:$0xff] %vm2342_vm2, %v2340_v9  ;;  %v1619_v14 = vadd.f32 %v4010_v57, %v1618_v12  ;;  %v2148_v15 = vadd.f32 %v4010_v57, %v2147_v13  ;;  %v1155_v16 = vmax.f32 %v562_v10, %v1091_v11 }
 0x283   :  { %v1684_v17 = vmax.f32 %v1619_v14, 0.0  ;;  %v2213_v18 = vmax.f32 %v2148_v15, 0.0 }
 0x285   :  { %v2277_v19 = vmax.f32 %v1684_v17, %v2213_v18 }
 0x287   :  { %v2341_v20 = vmax.f32 %v1155_v16, %v2277_v19 }
 0x289   :  { %2406 = vst.msk [vmem:[%s4272_s6 + $0x1f8] sm:$0xff] %vm2342_vm2, %v2341_v20 }

// kernel: vit_wheat_forward.6
= control target key start
LH: loop header
LB: loop body
LE: loop exit
PB: predicated region body
PF: predicated region fallthrough
CT: control target
= control target key end

     0   :  { %vm77_vm0 = vcmask 130048   ;;  %vm998_vm1 = vcmask 261120   ;;  %s2024_s4 = inlined_call_operand.vmem [shape: f32[144,32], index: 4, kind: input, shape index: {}]   ;;  %s2025_s1 = inlined_call_operand.vmem [shape: f32[128,144], index: 1, kind: input, shape index: {}]   ;;  %s2026_s0 = inlined_call_operand.vmem [shape: f32[128,144], index: 0, kind: input, shape index: {}]   ;;  %s2027_s5 = inlined_call_operand.vmem [shape: f32[1,32], index: 5, kind: input, shape index: {}]   ;;  %s2028_s2 = inlined_call_operand.vmem [shape: f32[128,144], index: 2, kind: input, shape index: {}]   ;;  %s2029_s3 = inlined_call_operand.vmem [shape: f32[128,144], index: 3, kind: input, shape index: {}]   ;;  %s2030_s6 = inlined_call_operand.vmem [shape: f32[128,32], index: 6, kind: output, shape index: {}]  }
   0x1   :  { %v1140_v0 = vld [vmem:[%s2024_s4 + $0x78] sm:$0xff]  ;;  %v1145_v1 = vld [vmem:[%s2024_s4 + $0x88] sm:$0xff]  ;;  %v1150_v2 = vld [vmem:[%s2024_s4 + $0x70] sm:$0xff] }
   0x2   :  { %126 = vmatpush.msra.mxu0 %v1140_v0  ;;  %352 = vmatpush.msra.mxu2 %v1140_v0  ;;  %v1157_v3 = vld [vmem:[%s2024_s4 + $0x80] sm:$0xff]  ;;  %v273_v4 = vld [vmem:[%s2025_s1 + $0x8] sm:$0xff]  ;;  %v1188_v8 = vld [vmem:[%s2024_s4 + $0x58] sm:$0xff] }
   0x3   :  { %431 = vmatpush.msra.mxu3 %v1145_v1  ;;  %v1166_v5 = vld [vmem:[%s2024_s4 + $0x68] sm:$0xff]  ;;  %205 = vmatpush.msra.mxu1 %v1145_v1  ;;  %v1178_v7 = vld [vmem:[%s2024_s4 + $0x60] sm:$0xff]  ;;  %v1196_v9 = vld [vmem:[%s2024_s4 + $0x50] sm:$0xff] }
   0x4   :  { %127 = vmatpush.msra.mxu0 %v1150_v2  ;;  %353 = vmatpush.msra.mxu2 %v1150_v2  ;;  %v43_v6 = vld [vmem:[%s2026_s0 + $0x8] sm:$0xff]  ;;  %v275_v10 = vld [vmem:[%s2025_s1 + $0x18] sm:$0xff]  ;;  %v1220_v13 = vld [vmem:[%s2024_s4 + $0x40] sm:$0xff] }
   0x5   :  { %432 = vmatpush.msra.mxu3 %v1157_v3  ;;  %206 = vmatpush.msra.mxu1 %v1157_v3  ;;  %v1208_v11 = vld [vmem:[%s2024_s4 + $0x48] sm:$0xff]  ;;  %v45_v12 = vld [vmem:[%s2026_s0 + $0x18] sm:$0xff]  ;;  %v1238_v15 = vld [vmem:[%s2024_s4 + $0x30] sm:$0xff] }
   0x6   :  { %1035 = vmatmul.msk.f32.vlgmr.msra.gmra.mxu3 %vm77_vm0, %v273_v4  ;;  %128 = vmatpush.msra.mxu0 %v1166_v5  ;;  %v1230_v14 = vld [vmem:[%s2024_s4 + $0x38] sm:$0xff]  ;;  %v277_v16 = vld [vmem:[%s2025_s1 + $0x28] sm:$0xff]  ;;  %v1261_v19 = vld [vmem:[%s2024_s4 + $0x20] sm:$0xff] }
   0x7   :  { %354 = vmatpush.msra.mxu2 %v1166_v5  ;;  %1019 = vmatmul.msk.f32.vlgmr.msra.gmra.mxu1 %vm77_vm0, %v43_v6  ;;  %v1250_v17 = vld [vmem:[%s2024_s4 + $0x28] sm:$0xff]  ;;  %v1270_v20 = vld [vmem:[%s2024_s4 + $0x18] sm:$0xff]  ;;  %v1278_v21 = vld [vmem:[%s2024_s4 + $0x10] sm:$0xff] }
   0x8   :  { %129 = vmatpush.msra.mxu0 %v1178_v7  ;;  %673 = vmatpush.msrb.mxu3 %v1145_v1  ;;  %v47_v18 = vld [vmem:[%s2026_s0 + $0x28] sm:$0xff]  ;;  %v279_v22 = vld [vmem:[%s2025_s1 + $0x38] sm:$0xff]  ;;  %v1300_v25 = vld [vmem:[%s2024_s4] sm:$0xff] }
   0x9   :  { %355 = vmatpush.msra.mxu2 %v1178_v7  ;;  %594 = vmatpush.msrb.mxu1 %v1140_v0  ;;  %v1289_v23 = vld [vmem:[%s2024_s4 + $0x8] sm:$0xff]  ;;  %v49_v24 = vld [vmem:[%s2026_s0 + $0x38] sm:$0xff]  ;;  %v42_v26 = vld [vmem:[%s2026_s0] sm:$0xff] }
   0xa   :  { %130 = vmatpush.msra.mxu0 %v1188_v8  ;;  %674 = vmatpush.msrb.mxu3 %v1157_v3  ;;  %v272_v27 = vld [vmem:[%s2025_s1] sm:$0xff]  ;;  %v281_v28 = vld [vmem:[%s2025_s1 + $0x48] sm:$0xff]  ;;  %v44_v30 = vld [vmem:[%s2026_s0 + $0x10] sm:$0xff] }
   0xb   :  { %356 = vmatpush.msra.mxu2 %v1188_v8  ;;  %595 = vmatpush.msrb.mxu1 %v1150_v2  ;;  %v51_v29 = vld [vmem:[%s2026_s0 + $0x48] sm:$0xff]  ;;  %v274_v31 = vld [vmem:[%s2025_s1 + $0x10] sm:$0xff]  ;;  %v283_v32 = vld [vmem:[%s2025_s1 + $0x58] sm:$0xff] }
   0xc   :  { %131 = vmatpush.msra.mxu0 %v1196_v9  ;;  %1099 = vmatpush.msra.mxu3 %v1145_v1  ;;  %v53_v33 = vld [vmem:[%s2026_s0 + $0x58] sm:$0xff]  ;;  %v46_v34 = vld [vmem:[%s2026_s0 + $0x20] sm:$0xff]  ;;  %v285_v36 = vld [vmem:[%s2025_s1 + $0x68] sm:$0xff] }
   0xd   :  { %357 = vmatpush.msra.mxu2 %v1196_v9  ;;  %596 = vmatpush.msrb.mxu1 %v1166_v5  ;;  %v276_v35 = vld [vmem:[%s2025_s1 + $0x20] sm:$0xff]  ;;  %v55_v37 = vld [vmem:[%s2026_s0 + $0x68] sm:$0xff]  ;;  %v48_v38 = vld [vmem:[%s2026_s0 + $0x30] sm:$0xff] }
   0xe   :  { %1036 = vmatmul.msk.f32.gmra.mxu3 %vm77_vm0, %v275_v10  ;;  %132 = vmatpush.msra.mxu0 %v1208_v11  ;;  %v278_v39 = vld [vmem:[%s2025_s1 + $0x30] sm:$0xff]  ;;  %v287_v40 = vld [vmem:[%s2025_s1 + $0x78] sm:$0xff]  ;;  %v50_v42 = vld [vmem:[%s2026_s0 + $0x40] sm:$0xff] }
   0xf   :  { %358 = vmatpush.msra.mxu2 %v1208_v11  ;;  %1020 = vmatmul.msk.f32.gmra.mxu1 %vm77_vm0, %v45_v12  ;;  %v57_v41 = vld [vmem:[%s2026_s0 + $0x78] sm:$0xff]  ;;  %v280_v43 = vld [vmem:[%s2025_s1 + $0x40] sm:$0xff]  ;;  %v289_v44 = vld [vmem:[%s2025_s1 + $0x88] sm:$0xff] }
  0x10   :  { %133 = vmatpush.msra.mxu0 %v1220_v13  ;;  %597 = vmatpush.msrb.mxu1 %v1178_v7  ;;  %v59_v45 = vld [vmem:[%s2026_s0 + $0x88] sm:$0xff]  ;;  %v52_v46 = vld [vmem:[%s2026_s0 + $0x50] sm:$0xff]  ;;  %v291_v48 = vld [vmem:[%s2025_s1 + $0x98] sm:$0xff] }
  0x11   :  { %359 = vmatpush.msra.mxu2 %v1220_v13  ;;  %1100 = vmatpush.msra.mxu3 %v1157_v3  ;;  %v282_v47 = vld [vmem:[%s2025_s1 + $0x50] sm:$0xff]  ;;  %v61_v49 = vld [vmem:[%s2026_s0 + $0x98] sm:$0xff]  ;;  %v54_v50 = vld [vmem:[%s2026_s0 + $0x60] sm:$0xff] }
  0x12   :  { %134 = vmatpush.msra.mxu0 %v1230_v14  ;;  %598 = vmatpush.msrb.mxu1 %v1188_v8  ;;  %v284_v51 = vld [vmem:[%s2025_s1 + $0x60] sm:$0xff]  ;;  %v293_v52 = vld [vmem:[%s2025_s1 + $0xa8] sm:$0xff]  ;;  %v56_v54 = vld [vmem:[%s2026_s0 + $0x70] sm:$0xff] }
  0x13   :  { %360 = vmatpush.msra.mxu2 %v1230_v14  ;;  %v63_v53 = vld [vmem:[%s2026_s0 + $0xa8] sm:$0xff]  ;;  %v286_v55 = vld [vmem:[%s2025_s1 + $0x70] sm:$0xff]  ;;  %v295_v56 = vld [vmem:[%s2025_s1 + $0xb8] sm:$0xff] }
  0x14   :  { %135 = vmatpush.msra.mxu0 %v1238_v15  ;;  %599 = vmatpush.msrb.mxu1 %v1196_v9  ;;  %v65_v57 = vld [vmem:[%s2026_s0 + $0xb8] sm:$0xff]  ;;  %v58_v58 = vld [vmem:[%s2026_s0 + $0x80] sm:$0xff]  ;;  %v297_v60 = vld [vmem:[%s2025_s1 + $0xc8] sm:$0xff] }
  0x15   :  { %361 = vmatpush.msra.mxu2 %v1238_v15  ;;  %v288_v59 = vld [vmem:[%s2025_s1 + $0x80] sm:$0xff]  ;;  %v67_v61 = vld [vmem:[%s2026_s0 + $0xc8] sm:$0xff]  ;;  %v60_v62 = vld [vmem:[%s2026_s0 + $0x90] sm:$0xff] }
  0x16   :  { %1037 = vmatmul.msk.f32.gmra.mxu3 %vm77_vm0, %v277_v16  ;;  %136 = vmatpush.msra.mxu0 %v1250_v17  ;;  %v290_v63 = vld [vmem:[%s2025_s1 + $0x90] sm:$0xff]  ;;  %v301_v4 = vld [vmem:[%s2025_s1 + $0xe8] sm:$0xff]  ;;  %v66_v10 = vld [vmem:[%s2026_s0 + $0xc0] sm:$0xff] }
  0x17   :  { %362 = vmatpush.msra.mxu2 %v1250_v17  ;;  %1021 = vmatmul.msk.f32.gmra.mxu1 %vm77_vm0, %v47_v18  ;;  %v64_v6 = vld [vmem:[%s2026_s0 + $0xb0] sm:$0xff]  ;;  %v515_v12 = vld [vmem:[%s2028_s2 + $0x8] sm:$0xff]  ;;  %v517_v18 = vld [vmem:[%s2028_s2 + $0x18] sm:$0xff] }
  0x18   :  { %137 = vmatpush.msra.mxu0 %v1261_v19  ;;  %600 = vmatpush.msrb.mxu1 %v1208_v11  ;;  %v298_v16 = vld [vmem:[%s2025_s1 + $0xd0] sm:$0xff] }
  0x19   :  { %363 = vmatpush.msra.mxu2 %v1261_v19 }
  0x1a   :  { %138 = vmatpush.msra.mxu0 %v1270_v20  ;;  %601 = vmatpush.msrb.mxu1 %v1220_v13 }
  0x1b   :  { %364 = vmatpush.msra.mxu2 %v1270_v20 }
  0x1c   :  { %139 = vmatpush.msra.mxu0 %v1278_v21  ;;  %602 = vmatpush.msrb.mxu1 %v1230_v14 }
  0x1d   :  { %365 = vmatpush.msra.mxu2 %v1278_v21 }
  0x1e   :  { %1038 = vmatmul.msk.f32.gmra.mxu3 %vm77_vm0, %v279_v22  ;;  %140 = vmatpush.msra.mxu0 %v1289_v23  ;;  %v300_v22 = vld [vmem:[%s2025_s1 + $0xe0] sm:$0xff] }
  0x1f   :  { %366 = vmatpush.msra.mxu2 %v1289_v23  ;;  %1022 = vmatmul.msk.f32.gmra.mxu1 %vm77_vm0, %v49_v24  ;;  %v519_v24 = vld [vmem:[%s2028_s2 + $0x28] sm:$0xff] }
  0x20   :  { %141 = vmatpush.msra.mxu0 %v1300_v25  ;;  %603 = vmatpush.msrb.mxu1 %v1238_v15 }
  0x21   :  { %367 = vmatpush.msra.mxu2 %v1300_v25  ;;  %142 = vmatmul.f32.vlgmr.msra.gmra.mxu0 %v42_v26  ;;  %v518_v26 = vld [vmem:[%s2028_s2 + $0x20] sm:$0xff] }
  0x22   :  { %368 = vmatmul.f32.vlgmr.msra.gmra.mxu2 %v272_v27  ;;  %820 = vmatpush.msrb.mxu0 %v1140_v0  ;;  %v72_v27 = vld [vmem:[%s2026_s0 + $0xf0] sm:$0xff] }
  0x23   :  { %899 = vmatpush.msrb.mxu2 %v1145_v1  ;;  %604 = vmatpush.msrb.mxu1 %v1250_v17  ;;  %v69_v1 = vld [vmem:[%s2026_s0 + $0xd8] sm:$0xff] }
  0x24   :  { %821 = vmatpush.msrb.mxu0 %v1150_v2 }
  0x25   :  { %900 = vmatpush.msrb.mxu2 %v1157_v3  ;;  %605 = vmatpush.msrb.mxu1 %v1261_v19  ;;  %v292_v3 = vld [vmem:[%s2025_s1 + $0xa0] sm:$0xff] }
  0x26   :  { %1039 = vmatmul.msk.f32.gmra.mxu3 %vm77_vm0, %v281_v28  ;;  %822 = vmatpush.msrb.mxu0 %v1166_v5  ;;  %v302_v28 = vld [vmem:[%s2025_s1 + $0xf0] sm:$0xff] }
  0x27   :  { %1023 = vmatmul.msk.f32.gmra.mxu1 %vm77_vm0, %v51_v29 }
  0x28   :  { %823 = vmatpush.msrb.mxu0 %v1178_v7  ;;  %606 = vmatpush.msrb.mxu1 %v1270_v20 }
  0x29   :  { %145 = vmatmul.f32.gmra.mxu0 %v44_v30  ;;  %v521_v30 = vld [vmem:[%s2028_s2 + $0x38] sm:$0xff] }
  0x2a   :  { %371 = vmatmul.f32.gmra.mxu2 %v274_v31  ;;  %824 = vmatpush.msrb.mxu0 %v1188_v8 }
  0x2b   :  { %607 = vmatpush.msrb.mxu1 %v1278_v21 }
  0x2c   :  { %825 = vmatpush.msrb.mxu0 %v1196_v9 }
  0x2d   :  { %608 = vmatpush.msrb.mxu1 %v1289_v23 }
  0x2e   :  { %1040 = vmatmul.msk.f32.gmra.mxu3 %vm77_vm0, %v283_v32  ;;  %826 = vmatpush.msrb.mxu0 %v1208_v11  ;;  %v520_v32 = vld [vmem:[%s2028_s2 + $0x30] sm:$0xff] }
  0x2f   :  { %1024 = vmatmul.msk.f32.gmra.mxu1 %vm77_vm0, %v53_v33  ;;  %v1578_v33 = vld [vmem:[%s2027_s5] ss:$0 sm:$0xff] }
  0x30   :  { %827 = vmatpush.msrb.mxu0 %v1220_v13  ;;  %609 = vmatpush.msrb.mxu1 %v1300_v25 }
  0x31   :  { %148 = vmatmul.f32.gmra.mxu0 %v46_v34 }
  0x32   :  { %1083 = vmatpush.msra.mxu1 %v1140_v0  ;;  %374 = vmatmul.f32.gmra.mxu2 %v276_v35  ;;  %v299_v0 = vld [vmem:[%s2025_s1 + $0xd8] sm:$0xff]  ;;  %v740_v35 = vld [vmem:[%s2029_s3] sm:$0xff] }
  0x33   :  { %828 = vmatpush.msrb.mxu0 %v1230_v14 }
  0x34   :  { %1084 = vmatpush.msra.mxu1 %v1150_v2  ;;  %v62_v2 = vld [vmem:[%s2026_s0 + $0xa0] sm:$0xff] }
  0x35   :  { %829 = vmatpush.msrb.mxu0 %v1238_v15 }
  0x36   :  { %1085 = vmatpush.msra.mxu1 %v1166_v5  ;;  %1041 = vmatmul.msk.f32.gmra.mxu3 %vm77_vm0, %v285_v36  ;;  %v71_v5 = vld [vmem:[%s2026_s0 + $0xe8] sm:$0xff] }
  0x37   :  { %830 = vmatpush.msrb.mxu0 %v1250_v17  ;;  %1025 = vmatmul.msk.f32.gmra.mxu1 %vm77_vm0, %v55_v37  ;;  %v741_v36 = vld [vmem:[%s2029_s3 + $0x8] sm:$0xff] }
  0x38   :  { %1086 = vmatpush.msra.mxu1 %v1178_v7  ;;  %v294_v7 = vld [vmem:[%s2025_s1 + $0xb0] sm:$0xff] }
  0x39   :  { %831 = vmatpush.msrb.mxu0 %v1261_v19 }
  0x3a   :  { %151 = vmatmul.f32.gmra.mxu0 %v48_v38  ;;  %377 = vmatmul.f32.gmra.mxu2 %v278_v39  ;;  %v523_v39 = vld [vmem:[%s2028_s2 + $0x48] sm:$0xff] }
  0x3b   :  { %832 = vmatpush.msrb.mxu0 %v1270_v20  ;;  %1087 = vmatpush.msra.mxu1 %v1188_v8  ;;  %v303_v8 = vld [vmem:[%s2025_s1 + $0xf8] sm:$0xff] }
  0x3d   :  { %833 = vmatpush.msrb.mxu0 %v1278_v21  ;;  %1088 = vmatpush.msra.mxu1 %v1196_v9  ;;  %v73_v9 = vld [vmem:[%s2026_s0 + $0xf8] sm:$0xff] }
  0x3e   :  { %1042 = vmatmul.msk.f32.gmra.mxu3 %vm77_vm0, %v287_v40 }
  0x3f   :  { %834 = vmatpush.msrb.mxu0 %v1289_v23  ;;  %1026 = vmatmul.msk.f32.gmra.mxu1 %vm77_vm0, %v57_v41  ;;  %v522_v41 = vld [vmem:[%s2028_s2 + $0x40] sm:$0xff] }
  0x40   :  { %1089 = vmatpush.msra.mxu1 %v1208_v11  ;;  %v296_v11 = vld [vmem:[%s2025_s1 + $0xc0] sm:$0xff] }
  0x41   :  { %835 = vmatpush.msrb.mxu0 %v1300_v25 }
  0x42   :  { %154 = vmatmul.f32.gmra.mxu0 %v50_v42  ;;  %380 = vmatmul.f32.gmra.mxu2 %v280_v43 }
  0x43   :  { %1090 = vmatpush.msra.mxu1 %v1220_v13 }
  0x45   :  { %1091 = vmatpush.msra.mxu1 %v1230_v14  ;;  %v514_v14 = vld [vmem:[%s2028_s2] sm:$0xff] }
  0x46   :  { %1043 = vmatmul.msk.f32.gmra.mxu3 %vm77_vm0, %v289_v44 }
  0x47   :  { %1092 = vmatpush.msra.mxu1 %v1238_v15  ;;  %v68_v15 = vld [vmem:[%s2026_s0 + $0xd0] sm:$0xff] }
  0x48   :  { %1027 = vmatmul.msk.f32.gmra.mxu1 %vm77_vm0, %v59_v45 }
  0x49   :  { %1093 = vmatpush.msra.mxu1 %v1250_v17 }
  0x4a   :  { %157 = vmatmul.f32.gmra.mxu0 %v52_v46  ;;  %383 = vmatmul.f32.gmra.mxu2 %v282_v47  ;;  %v742_v46 = vld [vmem:[%s2029_s3 + $0x10] sm:$0xff]  ;;  %v743_v47 = vld [vmem:[%s2029_s3 + $0x18] sm:$0xff] }
  0x4b   :  { %1094 = vmatpush.msra.mxu1 %v1261_v19 }
  0x4d   :  { %1095 = vmatpush.msra.mxu1 %v1270_v20  ;;  %v516_v20 = vld [vmem:[%s2028_s2 + $0x10] sm:$0xff] }
  0x4e   :  { %1044 = vmatmul.msk.f32.gmra.mxu3 %vm77_vm0, %v291_v48 }
  0x4f   :  { %1096 = vmatpush.msra.mxu1 %v1278_v21  ;;  %v70_v21 = vld [vmem:[%s2026_s0 + $0xe0] sm:$0xff] }
  0x50   :  { %1028 = vmatmul.msk.f32.gmra.mxu1 %vm77_vm0, %v61_v49 }
  0x51   :  { %1097 = vmatpush.msra.mxu1 %v1289_v23 }
  0x52   :  { %160 = vmatmul.f32.gmra.mxu0 %v54_v50  ;;  %386 = vmatmul.f32.gmra.mxu2 %v284_v51 }
  0x53   :  { %1098 = vmatpush.msra.mxu1 %v1300_v25 }
  0x56   :  { %1045 = vmatmul.msk.f32.gmra.mxu3 %vm77_vm0, %v293_v52 }
  0x58   :  { %1029 = vmatmul.msk.f32.gmra.mxu1 %vm77_vm0, %v63_v53  ;;  %v525_v53 = vld [vmem:[%s2028_s2 + $0x58] sm:$0xff] }
  0x5a   :  { %163 = vmatmul.f32.gmra.mxu0 %v56_v54  ;;  %389 = vmatmul.f32.gmra.mxu2 %v286_v55 }
  0x5e   :  { %1046 = vmatmul.msk.f32.gmra.mxu3 %vm77_vm0, %v295_v56  ;;  %v524_v56 = vld [vmem:[%s2028_s2 + $0x50] sm:$0xff] }
  0x60   :  { %1030 = vmatmul.msk.f32.gmra.mxu1 %vm77_vm0, %v65_v57 }
  0x62   :  { %166 = vmatmul.f32.gmra.mxu0 %v58_v58  ;;  %392 = vmatmul.f32.gmra.mxu2 %v288_v59 }
  0x66   :  { %1047 = vmatmul.msk.f32.gmra.mxu3 %vm77_vm0, %v297_v60 }
  0x68   :  { %1031 = vmatmul.msk.f32.gmra.mxu1 %vm77_vm0, %v67_v61  ;;  %v744_v61 = vld [vmem:[%s2029_s3 + $0x20] sm:$0xff] }
  0x6a   :  { %169 = vmatmul.f32.gmra.mxu0 %v60_v62  ;;  %395 = vmatmul.f32.gmra.mxu2 %v290_v63  ;;  %v745_v62 = vld [vmem:[%s2029_s3 + $0x28] sm:$0xff] }
  0x6e   :  { %1048 = vmatmul.msk.f32.gmra.mxu3 %vm77_vm0, %v299_v0 }
  0x70   :  { %1032 = vmatmul.msk.f32.gmra.mxu1 %vm77_vm0, %v69_v1 }
  0x72   :  { %172 = vmatmul.f32.gmra.mxu0 %v62_v2  ;;  %398 = vmatmul.f32.gmra.mxu2 %v292_v3 }
  0x76   :  { %1049 = vmatmul.msk.f32.gmra.mxu3 %vm77_vm0, %v301_v4  ;;  %v527_v4 = vld [vmem:[%s2028_s2 + $0x68] sm:$0xff] }
  0x78   :  { %1033 = vmatmul.msk.f32.gmra.mxu1 %vm77_vm0, %v71_v5 }
  0x7a   :  { %175 = vmatmul.f32.gmra.mxu0 %v64_v6  ;;  %401 = vmatmul.f32.gmra.mxu2 %v294_v7  ;;  %v526_v7 = vld [vmem:[%s2028_s2 + $0x60] sm:$0xff] }
  0x7e   :  { %1050 = vmatmul.msk.f32.gmra.mxu3 %vm77_vm0, %v303_v8 }
  0x80   :  { %1034 = vmatmul.msk.f32.gmra.mxu1 %vm77_vm0, %v73_v9 }
  0x82   :  { %178 = vmatmul.f32.gmra.mxu0 %v66_v10  ;;  %404 = vmatmul.f32.gmra.mxu2 %v296_v11 }
  0x84   :  { %v208_v13 = vpop.f32.mrf.mxu1 }
  0x86   :  { %1051 = vmatmul.msk.f32.vlgmr.msrb.gmra.mxu3 %vm77_vm0, %v515_v12  ;;  %v746_v12 = vld [vmem:[%s2029_s3 + $0x30] sm:$0xff] }
  0x88   :  { %610 = vmatmul.f32.vlgmr.msrb.gmra.mxu1 %v514_v14 }
  0x89   :  { %v434_v17 = vpop.f32.mrf.mxu3 }
  0x8a   :  { %181 = vmatmul.f32.gmra.mxu0 %v68_v15  ;;  %407 = vmatmul.f32.gmra.mxu2 %v298_v16 }
  0x8c   :  { %v211_v19 = vpop.f32.mrf.mxu1 }
  0x8e   :  { %1052 = vmatmul.msk.f32.gmra.mxu3 %vm77_vm0, %v517_v18 }
  0x90   :  { %613 = vmatmul.f32.gmra.mxu1 %v516_v20 }
  0x91   :  { %v437_v23 = vpop.f32.mrf.mxu3 }
  0x92   :  { %184 = vmatmul.f32.gmra.mxu0 %v70_v21  ;;  %410 = vmatmul.f32.gmra.mxu2 %v300_v22  ;;  %v528_v22 = vld [vmem:[%s2028_s2 + $0x70] sm:$0xff] }
  0x94   :  { %v1552_v25 = vpop.f32.mrf.mxu1 }
  0x96   :  { %1053 = vmatmul.msk.f32.gmra.mxu3 %vm77_vm0, %v519_v24 }
  0x98   :  { %616 = vmatmul.f32.gmra.mxu1 %v518_v26 }
  0x99   :  { %v1564_v29 = vpop.f32.mrf.mxu3 }
  0x9a   :  { %187 = vmatmul.f32.gmra.mxu0 %v72_v27  ;;  %413 = vmatmul.f32.gmra.mxu2 %v302_v28  ;;  %v748_v27 = vld [vmem:[%s2029_s3 + $0x40] sm:$0xff]  ;;  %v749_v28 = vld [vmem:[%s2029_s3 + $0x48] sm:$0xff] }
  0x9c   :  { %v1569_v31 = vpop.f32.mrf.mxu1 }
  0x9e   :  { %1054 = vmatmul.msk.f32.gmra.mxu3 %vm77_vm0, %v521_v30  ;;  %v143_v34 = vpop.f32.mrf.mxu0 }
  0x9f   :  { %v144_v38 = vadd.f32 %v1578_v33, %v143_v34 }
  0xa0   :  { %619 = vmatmul.f32.gmra.mxu1 %v520_v32 }
  0xa1   :  { %v1586_v37 = vpop.f32.mrf.mxu3  ;;  %v209_v43 = vadd.f32 %v208_v13, %v144_v38  ;;  %v747_v13 = vld [vmem:[%s2029_s3 + $0x38] sm:$0xff] }
  0xa2   :  { %836 = vmatmul.f32.vlgmr.msrb.gmra.mxu0 %v740_v35  ;;  %1067 = vmatmul.msk.f32.vlgmr.msrb.gmra.mxu2 %vm77_vm0, %v741_v36  ;;  %v531_v35 = vld [vmem:[%s2028_s2 + $0x88] sm:$0xff] }
  0xa3   :  { %v256_v50 = vmax.f32 %v209_v43, 0.0 }
  0xa4   :  { %v1593_v40 = vpop.f32.mrf.mxu1 }
  0xa5   :  { %v369_v42 = vpop.f32.mrf.mxu2 }
  0xa6   :  { %v370_v44 = vadd.f32 %v1578_v33, %v369_v42  ;;  %1055 = vmatmul.msk.f32.gmra.mxu3 %vm77_vm0, %v523_v39  ;;  %v146_v45 = vpop.f32.mrf.mxu0 }
  0xa7   :  { %v147_v52 = vadd.f32 %v1578_v33, %v146_v45  ;;  %v751_v45 = vld [vmem:[%s2029_s3 + $0x58] sm:$0xff] }
  0xa8   :  { %622 = vmatmul.f32.gmra.mxu1 %v522_v41  ;;  %v435_v48 = vadd.f32 %v434_v17, %v370_v44  ;;  %v750_v44 = vld [vmem:[%s2029_s3 + $0x50] sm:$0xff] }
  0xa9   :  { %v1606_v49 = vpop.f32.mrf.mxu3  ;;  %v212_v58 = vadd.f32 %v211_v19, %v147_v52  ;;  %v529_v19 = vld [vmem:[%s2028_s2 + $0x78] sm:$0xff] }
  0xaa   :  { %839 = vmatmul.f32.gmra.mxu0 %v742_v46  ;;  %v482_v51 = vmax.f32 %v435_v48, 0.0  ;;  %1068 = vmatmul.msk.f32.gmra.mxu2 %vm77_vm0, %v743_v47 }
  0xab   :  { %v257_v1 = vmax.f32 %v212_v58, 0.0 }
  0xac   :  { %v1613_v54 = vmax.f32 %v256_v50, %v482_v51  ;;  %v1615_v55 = vpop.f32.mrf.mxu1  ;;  %v533_v51 = vld [vmem:[%s2028_s2 + $0x98] sm:$0xff] }
  0xad   :  { %v372_v57 = vpop.f32.mrf.mxu2 }
  0xae   :  { %v373_v59 = vadd.f32 %v1578_v33, %v372_v57  ;;  %1056 = vmatmul.msk.f32.gmra.mxu3 %vm77_vm0, %v525_v53  ;;  %v149_v60 = vpop.f32.mrf.mxu0 }
  0xaf   :  { %v150_v3 = vadd.f32 %v1578_v33, %v149_v60  ;;  %v752_v60 = vld [vmem:[%s2029_s3 + $0x60] sm:$0xff] }
  0xb0   :  { %625 = vmatmul.f32.gmra.mxu1 %v524_v56  ;;  %v438_v63 = vadd.f32 %v437_v23, %v373_v59 }
  0xb1   :  { %v1628_v0 = vpop.f32.mrf.mxu3  ;;  %v215_v9 = vadd.f32 %v1552_v25, %v150_v3  ;;  %v535_v3 = vld [vmem:[%s2028_s2 + $0xa8] sm:$0xff] }
  0xb2   :  { %842 = vmatmul.f32.gmra.mxu0 %v744_v61  ;;  %v483_v2 = vmax.f32 %v438_v63, 0.0  ;;  %1069 = vmatmul.msk.f32.gmra.mxu2 %vm77_vm0, %v745_v62  ;;  %v753_v61 = vld [vmem:[%s2029_s3 + $0x68] sm:$0xff] }
  0xb3   :  { %v258_v16 = vmax.f32 %v215_v9, 0.0 }
  0xb4   :  { %v1635_v5 = vmax.f32 %v257_v1, %v483_v2  ;;  %v1637_v6 = vpop.f32.mrf.mxu1 }
  0xb5   :  { %v375_v8 = vpop.f32.mrf.mxu2 }
  0xb6   :  { %v376_v10 = vadd.f32 %v1578_v33, %v375_v8  ;;  %1057 = vmatmul.msk.f32.gmra.mxu3 %vm77_vm0, %v527_v4 }
  0xb7   :  { %v152_v11 = vpop.f32.mrf.mxu0 }
  0xb8   :  { %628 = vmatmul.f32.gmra.mxu1 %v526_v7  ;;  %v441_v14 = vadd.f32 %v1564_v29, %v376_v10  ;;  %v153_v18 = vadd.f32 %v1578_v33, %v152_v11 }
  0xb9   :  { %v1652_v15 = vpop.f32.mrf.mxu3 }
  0xba   :  { %845 = vmatmul.f32.gmra.mxu0 %v746_v12  ;;  %v484_v17 = vmax.f32 %v441_v14, 0.0  ;;  %1070 = vmatmul.msk.f32.gmra.mxu2 %vm77_vm0, %v747_v13  ;;  %v218_v24 = vadd.f32 %v1569_v31, %v153_v18  ;;  %v754_v12 = vld [vmem:[%s2029_s3 + $0x70] sm:$0xff]  ;;  %v755_v14 = vld [vmem:[%s2029_s3 + $0x78] sm:$0xff] }
  0xbc   :  { %v1659_v20 = vmax.f32 %v258_v16, %v484_v17  ;;  %v1661_v21 = vpop.f32.mrf.mxu1  ;;  %v259_v31 = vmax.f32 %v218_v24, 0.0 }
  0xbd   :  { %v378_v23 = vpop.f32.mrf.mxu2 }
  0xbe   :  { %v379_v25 = vadd.f32 %v1578_v33, %v378_v23  ;;  %1058 = vmatmul.msk.f32.gmra.mxu3 %vm77_vm0, %v529_v19 }
  0xbf   :  { %v155_v26 = vpop.f32.mrf.mxu0 }
  0xc0   :  { %631 = vmatmul.f32.gmra.mxu1 %v528_v22  ;;  %v444_v29 = vadd.f32 %v1586_v37, %v379_v25  ;;  %v156_v34 = vadd.f32 %v1578_v33, %v155_v26  ;;  %v530_v37 = vld [vmem:[%s2028_s2 + $0x80] sm:$0xff]  ;;  %v537_v22 = vld [vmem:[%s2028_s2 + $0xb8] sm:$0xff] }
  0xc1   :  { %v1676_v30 = vpop.f32.mrf.mxu3 }
  0xc2   :  { %848 = vmatmul.f32.gmra.mxu0 %v748_v27  ;;  %v485_v32 = vmax.f32 %v444_v29, 0.0  ;;  %1071 = vmatmul.msk.f32.gmra.mxu2 %vm77_vm0, %v749_v28  ;;  %v221_v41 = vadd.f32 %v1593_v40, %v156_v34  ;;  %v756_v27 = vld [vmem:[%s2029_s3 + $0x80] sm:$0xff]  ;;  %v757_v29 = vld [vmem:[%s2029_s3 + $0x88] sm:$0xff] }
  0xc4   :  { %v1683_v36 = vmax.f32 %v259_v31, %v485_v32  ;;  %v260_v40 = vmax.f32 %v221_v41, 0.0 }
  0xc5   :  { %v1685_v38 = vpop.f32.mrf.mxu1  ;;  %v381_v39 = vpop.f32.mrf.mxu2 }
  0xc6   :  { %v382_v42 = vadd.f32 %v1578_v33, %v381_v39  ;;  %1059 = vmatmul.msk.f32.gmra.mxu3 %vm77_vm0, %v531_v35  ;;  %v539_v39 = vld [vmem:[%s2028_s2 + $0xc8] sm:$0xff] }
  0xc7   :  { %v158_v43 = vpop.f32.mrf.mxu0 }
  0xc8   :  { %634 = vmatmul.f32.gmra.mxu1 %v530_v37  ;;  %v447_v46 = vadd.f32 %v1606_v49, %v382_v42  ;;  %v159_v50 = vadd.f32 %v1578_v33, %v158_v43  ;;  %v532_v49 = vld [vmem:[%s2028_s2 + $0x90] sm:$0xff] }
  0xc9   :  { %v1700_v47 = vpop.f32.mrf.mxu3 }
  0xca   :  { %851 = vmatmul.f32.gmra.mxu0 %v750_v44  ;;  %v486_v48 = vmax.f32 %v447_v46, 0.0  ;;  %1072 = vmatmul.msk.f32.gmra.mxu2 %vm77_vm0, %v751_v45  ;;  %v224_v57 = vadd.f32 %v1615_v55, %v159_v50  ;;  %v758_v45 = vld [vmem:[%s2029_s3 + $0x90] sm:$0xff] }
  0xcc   :  { %v1707_v52 = vmax.f32 %v260_v40, %v486_v48  ;;  %v261_v55 = vmax.f32 %v224_v57, 0.0  ;;  %v759_v40 = vld [vmem:[%s2029_s3 + $0x98] sm:$0xff] }
  0xcd   :  { %v1709_v53 = vpop.f32.mrf.mxu1  ;;  %v384_v56 = vpop.f32.mrf.mxu2  ;;  %v541_v57 = vld [vmem:[%s2028_s2 + $0xd8] sm:$0xff] }
  0xce   :  { %v385_v58 = vadd.f32 %v1578_v33, %v384_v56  ;;  %1060 = vmatmul.msk.f32.gmra.mxu3 %vm77_vm0, %v533_v51 }
  0xcf   :  { %v161_v59 = vpop.f32.mrf.mxu0 }
  0xd0   :  { %637 = vmatmul.f32.gmra.mxu1 %v532_v49  ;;  %v450_v62 = vadd.f32 %v1628_v0, %v385_v58  ;;  %v162_v2 = vadd.f32 %v1578_v33, %v161_v59  ;;  %v534_v0 = vld [vmem:[%s2028_s2 + $0xa0] sm:$0xff] }
  0xd1   :  { %v1724_v63 = vpop.f32.mrf.mxu3 }
  0xd2   :  { %854 = vmatmul.f32.gmra.mxu0 %v752_v60  ;;  %v487_v1 = vmax.f32 %v450_v62, 0.0  ;;  %1073 = vmatmul.msk.f32.gmra.mxu2 %vm77_vm0, %v753_v61  ;;  %v227_v9 = vadd.f32 %v1637_v6, %v162_v2  ;;  %v760_v62 = vld [vmem:[%s2029_s3 + $0xa0] sm:$0xff] }
  0xd4   :  { %v1731_v4 = vmax.f32 %v261_v55, %v487_v1  ;;  %v262_v18 = vmax.f32 %v227_v9, 0.0  ;;  %v761_v1 = vld [vmem:[%s2029_s3 + $0xa8] sm:$0xff] }
  0xd5   :  { %v1733_v7 = vpop.f32.mrf.mxu1  ;;  %v387_v8 = vpop.f32.mrf.mxu2 }
  0xd6   :  { %v388_v10 = vadd.f32 %v1578_v33, %v387_v8  ;;  %1061 = vmatmul.msk.f32.gmra.mxu3 %vm77_vm0, %v535_v3 }
  0xd7   :  { %v164_v11 = vpop.f32.mrf.mxu0 }
  0xd8   :  { %v165_v13 = vadd.f32 %v1578_v33, %v164_v11  ;;  %640 = vmatmul.f32.gmra.mxu1 %v534_v0  ;;  %v453_v16 = vadd.f32 %v1652_v15, %v388_v10  ;;  %v536_v15 = vld [vmem:[%s2028_s2 + $0xb0] sm:$0xff]  ;;  %v543_v10 = vld [vmem:[%s2028_s2 + $0xe8] sm:$0xff] }
  0xd9   :  { %v1750_v17 = vpop.f32.mrf.mxu3 }
  0xda   :  { %v230_v6 = vadd.f32 %v1661_v21, %v165_v13  ;;  %857 = vmatmul.f32.gmra.mxu0 %v754_v12  ;;  %v488_v19 = vmax.f32 %v453_v16, 0.0  ;;  %1074 = vmatmul.msk.f32.gmra.mxu2 %vm77_vm0, %v755_v14  ;;  %v762_v16 = vld [vmem:[%s2029_s3 + $0xb0] sm:$0xff] }
  0xdc   :  { %v1756_v23 = vmax.f32 %v262_v18, %v488_v19  ;;  %v263_v35 = vmax.f32 %v230_v6, 0.0  ;;  %v763_v18 = vld [vmem:[%s2029_s3 + $0xb8] sm:$0xff] }
  0xdd   :  { %v1758_v24 = vpop.f32.mrf.mxu1  ;;  %v390_v21 = vpop.f32.mrf.mxu2 }
  0xde   :  { %v391_v25 = vadd.f32 %v1578_v33, %v390_v21  ;;  %1062 = vmatmul.msk.f32.gmra.mxu3 %vm77_vm0, %v537_v22 }
  0xdf   :  { %v167_v26 = vpop.f32.mrf.mxu0 }
  0xe0   :  { %v168_v28 = vadd.f32 %v1578_v33, %v167_v26  ;;  %643 = vmatmul.f32.gmra.mxu1 %v536_v15  ;;  %v456_v31 = vadd.f32 %v1676_v30, %v391_v25  ;;  %v538_v30 = vld [vmem:[%s2028_s2 + $0xc0] sm:$0xff]  ;;  %v545_v26 = vld [vmem:[%s2028_s2 + $0xf8] sm:$0xff] }
  0xe1   :  { %v1774_v34 = vpop.f32.mrf.mxu3 }
  0xe2   :  { %v233_v32 = vadd.f32 %v1685_v38, %v168_v28  ;;  %860 = vmatmul.f32.gmra.mxu0 %v756_v27  ;;  %v489_v37 = vmax.f32 %v456_v31, 0.0  ;;  %1075 = vmatmul.msk.f32.gmra.mxu2 %vm77_vm0, %v757_v29 }
  0xe4   :  { %v1780_v41 = vmax.f32 %v263_v35, %v489_v37  ;;  %v264_v49 = vmax.f32 %v233_v32, 0.0  ;;  %v764_v32 = vld [vmem:[%s2029_s3 + $0xc0] sm:$0xff]  ;;  %v765_v37 = vld [vmem:[%s2029_s3 + $0xc8] sm:$0xff] }
  0xe5   :  { %v1782_v42 = vpop.f32.mrf.mxu1  ;;  %v393_v38 = vpop.f32.mrf.mxu2 }
  0xe6   :  { %v394_v43 = vadd.f32 %v1578_v33, %v393_v38  ;;  %1063 = vmatmul.msk.f32.gmra.mxu3 %vm77_vm0, %v539_v39 }
  0xe7   :  { %v170_v44 = vpop.f32.mrf.mxu0 }
  0xe8   :  { %v171_v46 = vadd.f32 %v1578_v33, %v170_v44  ;;  %646 = vmatmul.f32.gmra.mxu1 %v538_v30  ;;  %v459_v48 = vadd.f32 %v1700_v47, %v394_v43  ;;  %v540_v47 = vld [vmem:[%s2028_s2 + $0xd0] sm:$0xff] }
  0xe9   :  { %v1798_v51 = vpop.f32.mrf.mxu3 }
  0xea   :  { %v236_v50 = vadd.f32 %v1709_v53, %v171_v46  ;;  %863 = vmatmul.f32.gmra.mxu0 %v758_v45  ;;  %v490_v56 = vmax.f32 %v459_v48, 0.0  ;;  %1076 = vmatmul.msk.f32.gmra.mxu2 %vm77_vm0, %v759_v40  ;;  %v771_v45 = vld [vmem:[%s2029_s3 + $0xf8] sm:$0xff]  ;;  %v770_v48 = vld [vmem:[%s2029_s3 + $0xf0] sm:$0xff] }
  0xec   :  { %v1804_v58 = vmax.f32 %v264_v49, %v490_v56  ;;  %v265_v8 = vmax.f32 %v236_v50, 0.0  ;;  %v766_v49 = vld [vmem:[%s2029_s3 + $0xd0] sm:$0xff] }
  0xed   :  { %v1806_v59 = vpop.f32.mrf.mxu1  ;;  %v396_v53 = vpop.f32.mrf.mxu2 }
  0xee   :  { %v397_v60 = vadd.f32 %v1578_v33, %v396_v53  ;;  %1064 = vmatmul.msk.f32.gmra.mxu3 %vm77_vm0, %v541_v57  ;;  %v767_v57 = vld [vmem:[%s2029_s3 + $0xd8] sm:$0xff] }
  0xef   :  { %v173_v61 = vpop.f32.mrf.mxu0 }
  0xf0   :  { %v174_v55 = vadd.f32 %v1578_v33, %v173_v61  ;;  %649 = vmatmul.f32.gmra.mxu1 %v540_v47  ;;  %v462_v2 = vadd.f32 %v1724_v63, %v397_v60  ;;  %v542_v63 = vld [vmem:[%s2028_s2 + $0xe0] sm:$0xff] }
  0xf1   :  { %v1822_v0 = vpop.f32.mrf.mxu3 }
  0xf2   :  { %v239_v3 = vadd.f32 %v1733_v7, %v174_v55  ;;  %866 = vmatmul.f32.gmra.mxu0 %v760_v62  ;;  %v491_v9 = vmax.f32 %v462_v2, 0.0  ;;  %1077 = vmatmul.msk.f32.gmra.mxu2 %vm77_vm0, %v761_v1 }
  0xf4   :  { %v1828_v11 = vmax.f32 %v265_v8, %v491_v9  ;;  %v266_v21 = vmax.f32 %v239_v3, 0.0  ;;  %v768_v9 = vld [vmem:[%s2029_s3 + $0xe0] sm:$0xff] }
  0xf5   :  { %v1830_v12 = vpop.f32.mrf.mxu1  ;;  %v399_v7 = vpop.f32.mrf.mxu2 }
  0xf6   :  { %v400_v13 = vadd.f32 %v1578_v33, %v399_v7  ;;  %1065 = vmatmul.msk.f32.gmra.mxu3 %vm77_vm0, %v543_v10 }
  0xf7   :  { %v176_v14 = vpop.f32.mrf.mxu0 }
  0xf8   :  { %v177_v6 = vadd.f32 %v1578_v33, %v176_v14  ;;  %652 = vmatmul.f32.gmra.mxu1 %v542_v63  ;;  %v465_v19 = vadd.f32 %v1750_v17, %v400_v13  ;;  %v544_v17 = vld [vmem:[%s2028_s2 + $0xf0] sm:$0xff] }
  0xf9   :  { %v1846_v15 = vpop.f32.mrf.mxu3 }
  0xfa   :  { %v242_v22 = vadd.f32 %v1758_v24, %v177_v6  ;;  %869 = vmatmul.f32.gmra.mxu0 %v762_v16  ;;  %v492_v25 = vmax.f32 %v465_v19, 0.0  ;;  %1078 = vmatmul.msk.f32.gmra.mxu2 %vm77_vm0, %v763_v18 }
  0xfc   :  { %v1852_v27 = vmax.f32 %v266_v21, %v492_v25  ;;  %v267_v43 = vmax.f32 %v242_v22, 0.0 }
  0xfd   :  { %v253_v28 = vpop.f32.mrf.mxu1  ;;  %v402_v29 = vpop.f32.mrf.mxu2 }
  0xfe   :  { %v403_v24 = vadd.f32 %v1578_v33, %v402_v29  ;;  %1066 = vmatmul.msk.f32.gmra.mxu3 %vm77_vm0, %v545_v26 }
  0xff   :  { %v179_v31 = vpop.f32.mrf.mxu0 }
 0x100   :  { %v180_v35 = vadd.f32 %v1578_v33, %v179_v31  ;;  %655 = vmatmul.f32.gmra.mxu1 %v544_v17  ;;  %v468_v39 = vadd.f32 %v1774_v34, %v403_v24 }
 0x101   :  { %v479_v38 = vpop.f32.mrf.mxu3 }
 0x102   :  { %v245_v30 = vadd.f32 %v1782_v42, %v180_v35  ;;  %872 = vmatmul.f32.gmra.mxu0 %v764_v32  ;;  %v493_v44 = vmax.f32 %v468_v39, 0.0  ;;  %1079 = vmatmul.msk.f32.gmra.mxu2 %vm77_vm0, %v765_v37 }
 0x104   :  { %v1872_v46 = vmax.f32 %v267_v43, %v493_v44  ;;  %v268_v61 = vmax.f32 %v245_v30, 0.0 }
 0x105   :  { %v611_v40 = vpop.f32.mrf.mxu1  ;;  %v405_v34 = vpop.f32.mrf.mxu2 }
 0x106   :  { %v406_v42 = vadd.f32 %v1578_v33, %v405_v34  ;;  %1082 = vmatmul.msk.f32.vlgmr.msra.gmra.mxu3 %vm77_vm0, %v771_v45  ;;  %v612_v37 = vadd.f32 %v1578_v33, %v611_v40 }
 0x107   :  { %v182_v50 = vpop.f32.mrf.mxu0 }
 0x108   :  { %v183_v56 = vadd.f32 %v1578_v33, %v182_v50  ;;  %881 = vmatmul.f32.vlgmr.msra.gmra.mxu1 %v770_v48  ;;  %v471_v47 = vadd.f32 %v1798_v51, %v406_v42 }
 0x109   :  { %v676_v60 = vpop.f32.mrf.mxu3 }
 0x10a   :  { %v248_v53 = vadd.f32 %v1806_v59, %v183_v56  ;;  %875 = vmatmul.f32.gmra.mxu0 %v766_v49  ;;  %v494_v62 = vmax.f32 %v471_v47, 0.0  ;;  %1080 = vmatmul.msk.f32.gmra.mxu2 %vm77_vm0, %v767_v57  ;;  %v769_v59 = vld [vmem:[%s2029_s3 + $0xe8] sm:$0xff] }
 0x10c   :  { %v1889_v55 = vmax.f32 %v268_v61, %v494_v62  ;;  %v269_v13 = vmax.f32 %v248_v53, 0.0 }
 0x10d   :  { %v614_v1 = vpop.f32.mrf.mxu1  ;;  %v408_v2 = vpop.f32.mrf.mxu2 }
 0x10e   :  { %v409_v3 = vadd.f32 %v1578_v33, %v408_v2  ;;  %v615_v56 = vadd.f32 %v1578_v33, %v614_v1 }
 0x10f   :  { %v185_v8 = vpop.f32.mrf.mxu0 }
 0x110   :  { %v186_v51 = vadd.f32 %v1578_v33, %v185_v8  ;;  %v474_v10 = vadd.f32 %v1822_v0, %v409_v3 }
 0x111   :  { %v679_v7 = vpop.f32.mrf.mxu3 }
 0x112   :  { %v251_v63 = vadd.f32 %v1830_v12, %v186_v51  ;;  %878 = vmatmul.f32.gmra.mxu0 %v768_v9  ;;  %v495_v14 = vmax.f32 %v474_v10, 0.0  ;;  %1081 = vmatmul.msk.f32.gmra.mxu2 %vm77_vm0, %v769_v59  ;;  %v680_v40 = vadd.f32 %v679_v7, %v615_v56 }
 0x114   :  { %v1902_v16 = vmax.f32 %v269_v13, %v495_v14  ;;  %v270_v12 = vmax.f32 %v251_v63, 0.0  ;;  %v725_v8 = vmax.f32 %v680_v40, 0.0 }
 0x115   :  { %v617_v6 = vpop.f32.mrf.mxu1  ;;  %v411_v18 = vpop.f32.mrf.mxu2 }
 0x116   :  { %v412_v19 = vadd.f32 %v1578_v33, %v411_v18  ;;  %v618_v1 = vadd.f32 %v1578_v33, %v617_v6 }
 0x117   :  { %v188_v22 = vpop.f32.mrf.mxu0 }
 0x118   :  { %v189_v21 = vadd.f32 %v1578_v33, %v188_v22  ;;  %v477_v25 = vadd.f32 %v1846_v15, %v412_v19  ;;  %v677_v15 = vadd.f32 %v676_v60, %v612_v37 }
 0x119   :  { %v682_v26 = vpop.f32.mrf.mxu3 }
 0x11a   :  { %v254_v0 = vadd.f32 %v253_v28, %v189_v21  ;;  %v496_v17 = vmax.f32 %v477_v25, 0.0  ;;  %v724_v49 = vmax.f32 %v677_v15, 0.0  ;;  %v683_v63 = vadd.f32 %v682_v26, %v618_v1 }
 0x11c   :  { %v1907_v29 = vmax.f32 %v270_v12, %v496_v17  ;;  %v271_v43 = vmax.f32 %v254_v0, 0.0  ;;  %v726_v19 = vmax.f32 %v683_v63, 0.0 }
 0x11d   :  { %v620_v24 = vpop.f32.mrf.mxu1  ;;  %v414_v31 = vpop.f32.mrf.mxu2 }
 0x11e   :  { %v415_v32 = vadd.f32 %v1578_v33, %v414_v31  ;;  %v621_v6 = vadd.f32 %v1578_v33, %v620_v24 }
 0x11f   :  { %v837_v35 = vpop.f32.mrf.mxu0 }
 0x120   :  { %v480_v39 = vadd.f32 %v479_v38, %v415_v32  ;;  %v838_v45 = vadd.f32 %v1578_v33, %v837_v35 }
 0x121   :  { %v685_v30 = vpop.f32.mrf.mxu3 }
 0x122   :  { %v497_v44 = vmax.f32 %v480_v39, 0.0  ;;  %v686_v26 = vadd.f32 %v685_v30, %v621_v6 }
 0x124   :  { %v1912_v28 = vmax.f32 %v271_v43, %v497_v44  ;;  %v727_v35 = vmax.f32 %v686_v26, 0.0 }
 0x125   :  { %v623_v48 = vpop.f32.mrf.mxu1  ;;  %v902_v34 = vpop.f32.mrf.mxu2 }
 0x126   :  { %v903_v42 = vadd.f32 %v902_v34, %v838_v45  ;;  %v624_v24 = vadd.f32 %v1578_v33, %v623_v48 }
 0x127   :  { %v840_v50 = vpop.f32.mrf.mxu0 }
 0x128   :  { %v950_v57 = vmax.f32 %v903_v42, 0.0  ;;  %v841_v38 = vadd.f32 %v1578_v33, %v840_v50 }
 0x129   :  { %v688_v47 = vpop.f32.mrf.mxu3 }
 0x12a   :  { %v966_v53 = vmax.f32 %v724_v49, %v950_v57  ;;  %v689_v30 = vadd.f32 %v688_v47, %v624_v24 }
 0x12c   :  { %v982_v61 = vmax.f32 %v1613_v54, %v966_v53  ;;  %v728_v50 = vmax.f32 %v689_v30, 0.0 }
 0x12d   :  { %v626_v62 = vpop.f32.mrf.mxu1  ;;  %v905_v60 = vpop.f32.mrf.mxu2 }
 0x12e   :  { %999 = vst.msk [vmem:[%s2030_s6] sm:$0xff] %vm998_vm1, %v982_v61  ;;  %v906_v2 = vadd.f32 %v905_v60, %v841_v38  ;;  %v627_v48 = vadd.f32 %v1578_v33, %v626_v62 }
 0x12f   :  { %v843_v3 = vpop.f32.mrf.mxu0 }
 0x130   :  { %v951_v9 = vmax.f32 %v906_v2, 0.0  ;;  %v844_v10 = vadd.f32 %v1578_v33, %v843_v3 }
 0x131   :  { %v691_v51 = vpop.f32.mrf.mxu3 }
 0x132   :  { %v967_v59 = vmax.f32 %v725_v8, %v951_v9  ;;  %v692_v47 = vadd.f32 %v691_v51, %v627_v48 }
 0x134   :  { %v983_v54 = vmax.f32 %v1635_v5, %v967_v59  ;;  %v729_v2 = vmax.f32 %v692_v47, 0.0 }
 0x135   :  { %v629_v7 = vpop.f32.mrf.mxu1  ;;  %v908_v13 = vpop.f32.mrf.mxu2 }
 0x136   :  { %1000 = vst.msk [vmem:[%s2030_s6 + $0x8] sm:$0xff] %vm998_vm1, %v983_v54  ;;  %v909_v14 = vadd.f32 %v908_v13, %v844_v10  ;;  %v630_v62 = vadd.f32 %v1578_v33, %v629_v7 }
 0x137   :  { %v846_v18 = vpop.f32.mrf.mxu0 }
 0x138   :  { %v952_v22 = vmax.f32 %v909_v14, 0.0  ;;  %v847_v0 = vadd.f32 %v1578_v33, %v846_v18 }
 0x139   :  { %v694_v21 = vpop.f32.mrf.mxu3 }
 0x13a   :  { %v968_v25 = vmax.f32 %v726_v19, %v952_v22  ;;  %v695_v51 = vadd.f32 %v694_v21, %v630_v62 }
 0x13c   :  { %v984_v5 = vmax.f32 %v1659_v20, %v968_v25  ;;  %v730_v13 = vmax.f32 %v695_v51, 0.0 }
 0x13d   :  { %v632_v12 = vpop.f32.mrf.mxu1  ;;  %v911_v17 = vpop.f32.mrf.mxu2 }
 0x13e   :  { %1001 = vst.msk [vmem:[%s2030_s6 + $0x10] sm:$0xff] %vm998_vm1, %v984_v5  ;;  %v912_v31 = vadd.f32 %v911_v17, %v847_v0  ;;  %v633_v7 = vadd.f32 %v1578_v33, %v632_v12 }
 0x13f   :  { %v849_v32 = vpop.f32.mrf.mxu0 }
 0x140   :  { %v953_v37 = vmax.f32 %v912_v31, 0.0  ;;  %v850_v44 = vadd.f32 %v1578_v33, %v849_v32 }
 0x141   :  { %v697_v39 = vpop.f32.mrf.mxu3 }
 0x142   :  { %v969_v43 = vmax.f32 %v727_v35, %v953_v37  ;;  %v698_v22 = vadd.f32 %v697_v39, %v633_v7 }
 0x144   :  { %v985_v20 = vmax.f32 %v1683_v36, %v969_v43  ;;  %v731_v5 = vmax.f32 %v698_v22, 0.0 }
 0x145   :  { %v635_v45 = vpop.f32.mrf.mxu1  ;;  %v914_v15 = vpop.f32.mrf.mxu2 }
 0x146   :  { %1002 = vst.msk [vmem:[%s2030_s6 + $0x18] sm:$0xff] %vm998_vm1, %v985_v20  ;;  %v915_v34 = vadd.f32 %v914_v15, %v850_v44  ;;  %v636_v12 = vadd.f32 %v1578_v33, %v635_v45 }
 0x147   :  { %v852_v42 = vpop.f32.mrf.mxu0 }
 0x148   :  { %v954_v49 = vmax.f32 %v915_v34, 0.0  ;;  %v853_v53 = vadd.f32 %v1578_v33, %v852_v42 }
 0x149   :  { %v700_v56 = vpop.f32.mrf.mxu3 }
 0x14a   :  { %v970_v57 = vmax.f32 %v728_v50, %v954_v49  ;;  %v701_v24 = vadd.f32 %v700_v56, %v636_v12 }
 0x14c   :  { %v986_v36 = vmax.f32 %v1707_v52, %v970_v57  ;;  %v732_v30 = vmax.f32 %v701_v24, 0.0 }
 0x14d   :  { %v638_v38 = vpop.f32.mrf.mxu1  ;;  %v917_v40 = vpop.f32.mrf.mxu2 }
 0x14e   :  { %1003 = vst.msk [vmem:[%s2030_s6 + $0x20] sm:$0xff] %vm998_vm1, %v986_v36  ;;  %v918_v61 = vadd.f32 %v917_v40, %v853_v53  ;;  %v639_v20 = vadd.f32 %v1578_v33, %v638_v38 }
 0x14f   :  { %v855_v60 = vpop.f32.mrf.mxu0 }
 0x150   :  { %v955_v3 = vmax.f32 %v918_v61, 0.0  ;;  %v856_v9 = vadd.f32 %v1578_v33, %v855_v60 }
 0x151   :  { %v703_v8 = vpop.f32.mrf.mxu3 }
 0x152   :  { %v971_v1 = vmax.f32 %v729_v2, %v955_v3  ;;  %v704_v50 = vadd.f32 %v703_v8, %v639_v20 }
 0x154   :  { %v987_v52 = vmax.f32 %v1731_v4, %v971_v1  ;;  %v733_v53 = vmax.f32 %v704_v50, 0.0 }
 0x155   :  { %v641_v59 = vpop.f32.mrf.mxu1  ;;  %v920_v10 = vpop.f32.mrf.mxu2 }
 0x156   :  { %1004 = vst.msk [vmem:[%s2030_s6 + $0x28] sm:$0xff] %vm998_vm1, %v987_v52  ;;  %v921_v63 = vadd.f32 %v920_v10, %v856_v9  ;;  %v642_v47 = vadd.f32 %v1578_v33, %v641_v59 }
 0x157   :  { %v858_v54 = vpop.f32.mrf.mxu0 }
 0x158   :  { %v956_v14 = vmax.f32 %v921_v63, 0.0  ;;  %v859_v6 = vadd.f32 %v1578_v33, %v858_v54 }
 0x159   :  { %v706_v18 = vpop.f32.mrf.mxu3 }
 0x15a   :  { %v972_v19 = vmax.f32 %v730_v13, %v956_v14  ;;  %v707_v60 = vadd.f32 %v706_v18, %v642_v47 }
 0x15c   :  { %v988_v4 = vmax.f32 %v1756_v23, %v972_v19  ;;  %v734_v1 = vmax.f32 %v707_v60, 0.0 }
 0x15d   :  { %v644_v21 = vpop.f32.mrf.mxu1  ;;  %v923_v25 = vpop.f32.mrf.mxu2 }
 0x15e   :  { %1005 = vst.msk [vmem:[%s2030_s6 + $0x30] sm:$0xff] %vm998_vm1, %v988_v4  ;;  %v924_v0 = vadd.f32 %v923_v25, %v859_v6  ;;  %v645_v9 = vadd.f32 %v1578_v33, %v644_v21 }
 0x15f   :  { %v861_v26 = vpop.f32.mrf.mxu0 }
 0x160   :  { %v957_v17 = vmax.f32 %v924_v0, 0.0  ;;  %v862_v35 = vadd.f32 %v1578_v33, %v861_v26 }
 0x161   :  { %v709_v31 = vpop.f32.mrf.mxu3 }
 0x162   :  { %v973_v32 = vmax.f32 %v731_v5, %v957_v17  ;;  %v710_v63 = vadd.f32 %v709_v31, %v645_v9 }
 0x164   :  { %v989_v23 = vmax.f32 %v1780_v41, %v973_v32  ;;  %v735_v18 = vmax.f32 %v710_v63, 0.0 }
 0x165   :  { %v647_v37 = vpop.f32.mrf.mxu1  ;;  %v926_v39 = vpop.f32.mrf.mxu2 }
 0x166   :  { %1006 = vst.msk [vmem:[%s2030_s6 + $0x38] sm:$0xff] %vm998_vm1, %v989_v23  ;;  %v927_v43 = vadd.f32 %v926_v39, %v862_v35  ;;  %v648_v19 = vadd.f32 %v1578_v33, %v647_v37 }
 0x167   :  { %v864_v44 = vpop.f32.mrf.mxu0 }
 0x168   :  { %v958_v45 = vmax.f32 %v927_v43, 0.0  ;;  %v865_v42 = vadd.f32 %v1578_v33, %v864_v44 }
 0x169   :  { %v712_v15 = vpop.f32.mrf.mxu3 }
 0x16a   :  { %v974_v34 = vmax.f32 %v732_v30, %v958_v45 }
 0x16c   :  { %v990_v41 = vmax.f32 %v1804_v58, %v974_v34 }
 0x16d   :  { %v650_v48 = vpop.f32.mrf.mxu1  ;;  %v929_v49 = vpop.f32.mrf.mxu2 }
 0x16e   :  { %1007 = vst.msk [vmem:[%s2030_s6 + $0x40] sm:$0xff] %vm998_vm1, %v990_v41  ;;  %v930_v56 = vadd.f32 %v929_v49, %v865_v42  ;;  %v651_v24 = vadd.f32 %v1578_v33, %v650_v48 }
 0x16f   :  { %v867_v57 = vpop.f32.mrf.mxu0 }
 0x170   :  { %v959_v36 = vmax.f32 %v930_v56, 0.0  ;;  %v868_v61 = vadd.f32 %v1578_v33, %v867_v57 }
 0x171   :  { %v715_v38 = vpop.f32.mrf.mxu3 }
 0x172   :  { %v975_v40 = vmax.f32 %v733_v53, %v959_v36  ;;  %v716_v30 = vadd.f32 %v715_v38, %v651_v24 }
 0x174   :  { %v991_v58 = vmax.f32 %v1828_v11, %v975_v40  ;;  %v737_v41 = vmax.f32 %v716_v30, 0.0 }
 0x175   :  { %v653_v2 = vpop.f32.mrf.mxu1  ;;  %v932_v62 = vpop.f32.mrf.mxu2 }
 0x176   :  { %1008 = vst.msk [vmem:[%s2030_s6 + $0x48] sm:$0xff] %vm998_vm1, %v991_v58  ;;  %v933_v3 = vadd.f32 %v932_v62, %v868_v61  ;;  %v654_v48 = vadd.f32 %v1578_v33, %v653_v2 }
 0x177   :  { %v870_v8 = vpop.f32.mrf.mxu0 }
 0x178   :  { %v960_v51 = vmax.f32 %v933_v3, 0.0  ;;  %v871_v10 = vadd.f32 %v1578_v33, %v870_v8 }
 0x179   :  { %v718_v52 = vpop.f32.mrf.mxu3 }
 0x17a   :  { %v976_v59 = vmax.f32 %v734_v1, %v960_v51  ;;  %v719_v53 = vadd.f32 %v718_v52, %v654_v48 }
 0x17c   :  { %v992_v11 = vmax.f32 %v1852_v27, %v976_v59  ;;  %v713_v27 = vadd.f32 %v712_v15, %v648_v19 }
 0x17d   :  { %v656_v54 = vpop.f32.mrf.mxu1  ;;  %v935_v13 = vpop.f32.mrf.mxu2 }
 0x17e   :  { %1009 = vst.msk [vmem:[%s2030_s6 + $0x50] sm:$0xff] %vm998_vm1, %v992_v11  ;;  %v936_v7 = vadd.f32 %v935_v13, %v871_v10  ;;  %v657_v21 = vadd.f32 %v1578_v33, %v656_v54  ;;  %v736_v35 = vmax.f32 %v713_v27, 0.0 }
 0x17f   :  { %v873_v14 = vpop.f32.mrf.mxu0 }
 0x180   :  { %v961_v6 = vmax.f32 %v936_v7, 0.0  ;;  %v874_v25 = vadd.f32 %v1578_v33, %v873_v14 }
 0x181   :  { %v721_v22 = vpop.f32.mrf.mxu3 }
 0x182   :  { %v977_v4 = vmax.f32 %v735_v18, %v961_v6  ;;  %v722_v12 = vadd.f32 %v721_v22, %v657_v21 }
 0x184   :  { %v993_v0 = vmax.f32 %v1872_v46, %v977_v4  ;;  %v739_v39 = vmax.f32 %v722_v12, 0.0 }
 0x185   :  { %v882_v26 = vpop.f32.mrf.mxu1  ;;  %v938_v5 = vpop.f32.mrf.mxu2 }
 0x186   :  { %1010 = vst.msk [vmem:[%s2030_s6 + $0x58] sm:$0xff] %vm998_vm1, %v993_v0  ;;  %v939_v17 = vadd.f32 %v938_v5, %v874_v25  ;;  %v883_v31 = vadd.f32 %v1578_v33, %v882_v26 }
 0x187   :  { %v876_v32 = vpop.f32.mrf.mxu0 }
 0x188   :  { %v962_v23 = vmax.f32 %v939_v17, 0.0  ;;  %v877_v44 = vadd.f32 %v1578_v33, %v876_v32 }
 0x189   :  { %v947_v37 = vpop.f32.mrf.mxu3 }
 0x18a   :  { %v978_v43 = vmax.f32 %v736_v35, %v962_v23  ;;  %v948_v46 = vadd.f32 %v947_v37, %v883_v31 }
 0x18c   :  { %v994_v20 = vmax.f32 %v1889_v55, %v978_v43  ;;  %v965_v45 = vmax.f32 %v948_v46, 0.0 }
 0x18d   :  { %v941_v15 = vpop.f32.mrf.mxu2 }
 0x18e   :  { %1011 = vst.msk [vmem:[%s2030_s6 + $0x60] sm:$0xff] %vm998_vm1, %v994_v20  ;;  %v981_v34 = vmax.f32 %v739_v39, %v965_v45  ;;  %v942_v42 = vadd.f32 %v941_v15, %v877_v44 }
 0x18f   :  { %v879_v50 = vpop.f32.mrf.mxu0 }
 0x190   :  { %v997_v49 = vmax.f32 %v1912_v28, %v981_v34  ;;  %v963_v56 = vmax.f32 %v942_v42, 0.0  ;;  %v880_v57 = vadd.f32 %v1578_v33, %v879_v50  ;;  %v738_v28 = vmax.f32 %v719_v53, 0.0 }
 0x192   :  { %1014 = vst.msk [vmem:[%s2030_s6 + $0x78] sm:$0xff] %vm998_vm1, %v997_v49  ;;  %v979_v55 = vmax.f32 %v737_v41, %v963_v56 }
 0x194   :  { %v995_v47 = vmax.f32 %v1902_v16, %v979_v55 }
 0x195   :  { %v944_v36 = vpop.f32.mrf.mxu2 }
 0x196   :  { %1012 = vst.msk [vmem:[%s2030_s6 + $0x68] sm:$0xff] %vm998_vm1, %v995_v47  ;;  %v945_v38 = vadd.f32 %v944_v36, %v880_v57 }
 0x198   :  { %v964_v40 = vmax.f32 %v945_v38, 0.0 }
 0x19a   :  { %v980_v61 = vmax.f32 %v738_v28, %v964_v40 }
 0x19c   :  { %v996_v60 = vmax.f32 %v1907_v29, %v980_v61 }
 0x19e   :  { %1013 = vst.msk [vmem:[%s2030_s6 + $0x70] sm:$0xff] %vm998_vm1, %v996_v60 }

// kernel: vit_wheat_forward.7
= control target key start
LH: loop header
LB: loop body
LE: loop exit
PB: predicated region body
PF: predicated region fallthrough
CT: control target
= control target key end

     0   :  { %vm56_vm0 = vcmask 523264   ;;  %s825_s14 = smov 32   ;;  %vm709_vm1 = vcmask 261120   ;;  %vm785_vm2 = vcmask 130048   ;;  %vm809_vm3 = vcmask 1024   ;;  %s1780_s2 = inlined_call_operand.vmem [shape: f32[64,32], index: 2, kind: input, shape index: {}]   ;;  %s1781_s4 = inlined_call_operand.vmem [shape: f32[2048,32], index: 4, kind: input, shape index: {}]   ;;  %s1782_s1 = inlined_call_operand.vmem [shape: f32[2,2048], index: 1, kind: input, shape index: {}]   ;;  %s1783_s0 = inlined_call_operand.vmem [shape: f32[2,64], index: 0, kind: input, shape index: {}]   ;;  %s1784_s3 = inlined_call_operand.vmem [shape: f32[1,32], index: 3, kind: input, shape index: {}]   ;;  %s1785_s5 = inlined_call_operand.vmem [shape: f32[1,32], index: 5, kind: input, shape index: {}]   ;;  %s1786_s6 = inlined_call_operand.vmem [shape: f32[64,32], index: 6, kind: input, shape index: {}]   ;;  %s1787_s7 = inlined_call_operand.vmem [shape: f32[1,32], index: 7, kind: input, shape index: {}]   ;;  %s1788_s8 = inlined_call_operand.vmem [shape: f32[32,16], index: 8, kind: input, shape index: {}]   ;;  %s1789_s9 = inlined_call_operand.vmem [shape: f32[1,16], index: 9, kind: input, shape index: {}]   ;;  %s1790_s10 = inlined_call_operand.vmem [shape: f32[16,1], index: 10, kind: input, shape index: {}]   ;;  %s1791_s11 = inlined_call_operand.<no memory space> [shape: f32[1,1], index: 11, kind: input, shape index: {}]   ;;  %s1792_s12 = inlined_call_operand.vmem [shape: f32[2,1], index: 12, kind: output, shape index: {}]  }
   0x1   :  { %v51_v0 = vld [vmem:[%s1780_s2 + $0x38] sm:$0xff]  ;;  %v50_v3 = vld [vmem:[%s1780_s2 + $0x30] sm:$0xff]  ;;  %v49_v7 = vld [vmem:[%s1780_s2 + $0x28] sm:$0xff] }
   0x2   :  { %v99_v1 = vld [vmem:[%s1781_s4 + $0x78] sm:$0xff]  ;;  %68 = vmatpush.msra.mxu0 %v51_v0  ;;  %v98_v4 = vld [vmem:[%s1781_s4 + $0x70] sm:$0xff]  ;;  %v97_v8 = vld [vmem:[%s1781_s4 + $0x68] sm:$0xff] }
   0x3   :  { %v115_v2 = vld [vmem:[%s1781_s4 + $0xf8] sm:$0xff]  ;;  %385 = vmatpush.msra.mxu1 %v99_v1  ;;  %v114_v5 = vld [vmem:[%s1781_s4 + $0xf0] sm:$0xff]  ;;  %v113_v9 = vld [vmem:[%s1781_s4 + $0xe8] sm:$0xff] }
   0x4   :  { %405 = vmatpush.msra.mxu2 %v115_v2  ;;  %v131_v6 = vld [vmem:[%s1781_s4 + $0x178] sm:$0xff]  ;;  %69 = vmatpush.msra.mxu0 %v50_v3  ;;  %v130_v10 = vld [vmem:[%s1781_s4 + $0x170] sm:$0xff]  ;;  %v48_v11 = vld [vmem:[%s1780_s2 + $0x20] sm:$0xff] }
   0x5   :  { %386 = vmatpush.msra.mxu1 %v98_v4  ;;  %425 = vmatpush.msra.mxu3 %v131_v6  ;;  %v96_v12 = vld [vmem:[%s1781_s4 + $0x60] sm:$0xff]  ;;  %v129_v14 = vld [vmem:[%s1781_s4 + $0x168] sm:$0xff]  ;;  %v47_v15 = vld [vmem:[%s1780_s2 + $0x18] sm:$0xff] }
   0x6   :  { %406 = vmatpush.msra.mxu2 %v114_v5  ;;  %70 = vmatpush.msra.mxu0 %v49_v7  ;;  %v112_v13 = vld [vmem:[%s1781_s4 + $0xe0] sm:$0xff]  ;;  %v95_v16 = vld [vmem:[%s1781_s4 + $0x58] sm:$0xff]  ;;  %v46_v19 = vld [vmem:[%s1780_s2 + $0x10] sm:$0xff] }
   0x7   :  { %387 = vmatpush.msra.mxu1 %v97_v8  ;;  %426 = vmatpush.msra.mxu3 %v130_v10  ;;  %v111_v17 = vld [vmem:[%s1781_s4 + $0xd8] sm:$0xff]  ;;  %v128_v18 = vld [vmem:[%s1781_s4 + $0x160] sm:$0xff]  ;;  %v94_v20 = vld [vmem:[%s1781_s4 + $0x50] sm:$0xff] }
   0x8   :  { %407 = vmatpush.msra.mxu2 %v113_v9  ;;  %71 = vmatpush.msra.mxu0 %v48_v11  ;;  %v110_v21 = vld [vmem:[%s1781_s4 + $0xd0] sm:$0xff]  ;;  %v127_v22 = vld [vmem:[%s1781_s4 + $0x158] sm:$0xff]  ;;  %v45_v23 = vld [vmem:[%s1780_s2 + $0x8] sm:$0xff] }
   0x9   :  { %388 = vmatpush.msra.mxu1 %v96_v12  ;;  %427 = vmatpush.msra.mxu3 %v129_v14  ;;  %v93_v24 = vld [vmem:[%s1781_s4 + $0x48] sm:$0xff]  ;;  %v126_v26 = vld [vmem:[%s1781_s4 + $0x150] sm:$0xff]  ;;  %v44_v27 = vld [vmem:[%s1780_s2] sm:$0xff] }
   0xa   :  { %408 = vmatpush.msra.mxu2 %v112_v13  ;;  %72 = vmatpush.msra.mxu0 %v47_v15  ;;  %v109_v25 = vld [vmem:[%s1781_s4 + $0xc8] sm:$0xff]  ;;  %v92_v28 = vld [vmem:[%s1781_s4 + $0x40] sm:$0xff]  ;;  %v147_v31 = vld [vmem:[%s1781_s4 + $0x1f8] sm:$0xff] }
   0xb   :  { %389 = vmatpush.msra.mxu1 %v95_v16  ;;  %428 = vmatpush.msra.mxu3 %v128_v18  ;;  %v108_v29 = vld [vmem:[%s1781_s4 + $0xc0] sm:$0xff]  ;;  %v125_v30 = vld [vmem:[%s1781_s4 + $0x148] sm:$0xff]  ;;  %v91_v32 = vld [vmem:[%s1781_s4 + $0x38] sm:$0xff] }
   0xc   :  { %409 = vmatpush.msra.mxu2 %v111_v17  ;;  %73 = vmatpush.msra.mxu0 %v46_v19  ;;  %v107_v33 = vld [vmem:[%s1781_s4 + $0xb8] sm:$0xff]  ;;  %v124_v34 = vld [vmem:[%s1781_s4 + $0x140] sm:$0xff]  ;;  %v146_v35 = vld [vmem:[%s1781_s4 + $0x1f0] sm:$0xff] }
   0xd   :  { %390 = vmatpush.msra.mxu1 %v94_v20  ;;  %429 = vmatpush.msra.mxu3 %v127_v22  ;;  %v90_v36 = vld [vmem:[%s1781_s4 + $0x30] sm:$0xff]  ;;  %v123_v38 = vld [vmem:[%s1781_s4 + $0x138] sm:$0xff]  ;;  %v145_v39 = vld [vmem:[%s1781_s4 + $0x1e8] sm:$0xff] }
   0xe   :  { %410 = vmatpush.msra.mxu2 %v110_v21  ;;  %74 = vmatpush.msra.mxu0 %v45_v23  ;;  %v106_v37 = vld [vmem:[%s1781_s4 + $0xb0] sm:$0xff]  ;;  %v89_v40 = vld [vmem:[%s1781_s4 + $0x28] sm:$0xff]  ;;  %v144_v43 = vld [vmem:[%s1781_s4 + $0x1e0] sm:$0xff] }
   0xf   :  { %391 = vmatpush.msra.mxu1 %v93_v24  ;;  %430 = vmatpush.msra.mxu3 %v126_v26  ;;  %v105_v41 = vld [vmem:[%s1781_s4 + $0xa8] sm:$0xff]  ;;  %v122_v42 = vld [vmem:[%s1781_s4 + $0x130] sm:$0xff]  ;;  %v88_v44 = vld [vmem:[%s1781_s4 + $0x20] sm:$0xff] }
  0x10   :  { %411 = vmatpush.msra.mxu2 %v109_v25  ;;  %75 = vmatpush.msra.mxu0 %v44_v27  ;;  %v104_v45 = vld [vmem:[%s1781_s4 + $0xa0] sm:$0xff]  ;;  %v121_v46 = vld [vmem:[%s1781_s4 + $0x128] sm:$0xff]  ;;  %v143_v47 = vld [vmem:[%s1781_s4 + $0x1d8] sm:$0xff] }
  0x11   :  { %392 = vmatpush.msra.mxu1 %v92_v28  ;;  %431 = vmatpush.msra.mxu3 %v125_v30  ;;  %v87_v48 = vld [vmem:[%s1781_s4 + $0x18] sm:$0xff]  ;;  %v120_v50 = vld [vmem:[%s1781_s4 + $0x120] sm:$0xff]  ;;  %v142_v51 = vld [vmem:[%s1781_s4 + $0x1d0] sm:$0xff] }
  0x12   :  { %412 = vmatpush.msra.mxu2 %v108_v29  ;;  %445 = vmatpush.msrb.mxu0 %v147_v31  ;;  %v103_v49 = vld [vmem:[%s1781_s4 + $0x98] sm:$0xff]  ;;  %v86_v52 = vld [vmem:[%s1781_s4 + $0x10] sm:$0xff]  ;;  %v141_v55 = vld [vmem:[%s1781_s4 + $0x1c8] sm:$0xff] }
  0x13   :  { %393 = vmatpush.msra.mxu1 %v91_v32  ;;  %432 = vmatpush.msra.mxu3 %v124_v34  ;;  %v102_v53 = vld [vmem:[%s1781_s4 + $0x90] sm:$0xff]  ;;  %v119_v54 = vld [vmem:[%s1781_s4 + $0x118] sm:$0xff]  ;;  %v85_v56 = vld [vmem:[%s1781_s4 + $0x8] sm:$0xff] }
  0x14   :  { %413 = vmatpush.msra.mxu2 %v107_v33  ;;  %446 = vmatpush.msrb.mxu0 %v146_v35  ;;  %v101_v57 = vld [vmem:[%s1781_s4 + $0x88] sm:$0xff]  ;;  %v118_v58 = vld [vmem:[%s1781_s4 + $0x110] sm:$0xff]  ;;  %v140_v59 = vld [vmem:[%s1781_s4 + $0x1c0] sm:$0xff] }
  0x15   :  { %394 = vmatpush.msra.mxu1 %v90_v36  ;;  %433 = vmatpush.msra.mxu3 %v123_v38  ;;  %v84_v60 = vld [vmem:[%s1781_s4] sm:$0xff]  ;;  %v117_v62 = vld [vmem:[%s1781_s4 + $0x108] sm:$0xff]  ;;  %v139_v63 = vld [vmem:[%s1781_s4 + $0x1b8] sm:$0xff] }
  0x16   :  { %414 = vmatpush.msra.mxu2 %v106_v37  ;;  %447 = vmatpush.msrb.mxu0 %v145_v39  ;;  %v100_v61 = vld [vmem:[%s1781_s4 + $0x80] sm:$0xff]  ;;  %v163_v0 = vld [vmem:[%s1781_s4 + $0x278] sm:$0xff]  ;;  %v138_v3 = vld [vmem:[%s1781_s4 + $0x1b0] sm:$0xff] }
  0x17   :  { %395 = vmatpush.msra.mxu1 %v89_v40  ;;  %434 = vmatpush.msra.mxu3 %v122_v42  ;;  %v179_v1 = vld [vmem:[%s1781_s4 + $0x2f8] sm:$0xff]  ;;  %v116_v2 = vld [vmem:[%s1781_s4 + $0x100] sm:$0xff]  ;;  %v162_v4 = vld [vmem:[%s1781_s4 + $0x270] sm:$0xff] }
  0x18   :  { %415 = vmatpush.msra.mxu2 %v105_v41  ;;  %448 = vmatpush.msrb.mxu0 %v144_v43  ;;  %v178_v5 = vld [vmem:[%s1781_s4 + $0x2f0] sm:$0xff]  ;;  %v195_v6 = vld [vmem:[%s1781_s4 + $0x378] sm:$0xff]  ;;  %v137_v7 = vld [vmem:[%s1781_s4 + $0x1a8] sm:$0xff] }
  0x19   :  { %396 = vmatpush.msra.mxu1 %v88_v44  ;;  %435 = vmatpush.msra.mxu3 %v121_v46  ;;  %v161_v8 = vld [vmem:[%s1781_s4 + $0x268] sm:$0xff]  ;;  %v194_v10 = vld [vmem:[%s1781_s4 + $0x370] sm:$0xff]  ;;  %v136_v11 = vld [vmem:[%s1781_s4 + $0x1a0] sm:$0xff] }
  0x1a   :  { %416 = vmatpush.msra.mxu2 %v104_v45  ;;  %449 = vmatpush.msrb.mxu0 %v143_v47  ;;  %v177_v9 = vld [vmem:[%s1781_s4 + $0x2e8] sm:$0xff]  ;;  %v160_v12 = vld [vmem:[%s1781_s4 + $0x260] sm:$0xff]  ;;  %v135_v15 = vld [vmem:[%s1781_s4 + $0x198] sm:$0xff] }
  0x1b   :  { %397 = vmatpush.msra.mxu1 %v87_v48  ;;  %436 = vmatpush.msra.mxu3 %v120_v50  ;;  %v176_v13 = vld [vmem:[%s1781_s4 + $0x2e0] sm:$0xff]  ;;  %v193_v14 = vld [vmem:[%s1781_s4 + $0x368] sm:$0xff]  ;;  %v159_v16 = vld [vmem:[%s1781_s4 + $0x258] sm:$0xff] }
  0x1c   :  { %417 = vmatpush.msra.mxu2 %v103_v49  ;;  %450 = vmatpush.msrb.mxu0 %v142_v51  ;;  %v175_v17 = vld [vmem:[%s1781_s4 + $0x2d8] sm:$0xff]  ;;  %v192_v18 = vld [vmem:[%s1781_s4 + $0x360] sm:$0xff]  ;;  %v134_v19 = vld [vmem:[%s1781_s4 + $0x190] sm:$0xff] }
  0x1d   :  { %398 = vmatpush.msra.mxu1 %v86_v52  ;;  %437 = vmatpush.msra.mxu3 %v119_v54  ;;  %v158_v20 = vld [vmem:[%s1781_s4 + $0x250] sm:$0xff]  ;;  %v191_v22 = vld [vmem:[%s1781_s4 + $0x358] sm:$0xff]  ;;  %v133_v23 = vld [vmem:[%s1781_s4 + $0x188] sm:$0xff] }
  0x1e   :  { %418 = vmatpush.msra.mxu2 %v102_v53  ;;  %451 = vmatpush.msrb.mxu0 %v141_v55  ;;  %v174_v21 = vld [vmem:[%s1781_s4 + $0x2d0] sm:$0xff]  ;;  %v157_v24 = vld [vmem:[%s1781_s4 + $0x248] sm:$0xff]  ;;  %v80_v25 = vld [vmem:[%s1782_s1] sm:$0xff] }
  0x1f   :  { %399 = vmatpush.msra.mxu1 %v85_v56  ;;  %438 = vmatpush.msra.mxu3 %v118_v58  ;;  %v173_v26 = vld [vmem:[%s1781_s4 + $0x2c8] sm:$0xff]  ;;  %v190_v27 = vld [vmem:[%s1781_s4 + $0x350] sm:$0xff]  ;;  %348 = vst [vmem:[#allocation1] ss:$4 sm:$0xff] %v80_v25  ;;  %v132_v28 = vld [vmem:[%s1781_s4 + $0x180] sm:$0xff] }
  0x20   :  { %419 = vmatpush.msra.mxu2 %v101_v57  ;;  %452 = vmatpush.msrb.mxu0 %v140_v59  ;;  %v156_v29 = vld [vmem:[%s1781_s4 + $0x240] sm:$0xff]  ;;  %v189_v31 = vld [vmem:[%s1781_s4 + $0x348] sm:$0xff]  ;;  %v155_v33 = vld [vmem:[%s1781_s4 + $0x238] sm:$0xff] }
  0x21   :  { %400 = vmatpush.msra.mxu1 %v84_v60  ;;  %439 = vmatpush.msra.mxu3 %v117_v62  ;;  %v172_v30 = vld [vmem:[%s1781_s4 + $0x2c0] sm:$0xff]  ;;  %v211_v34 = vld [vmem:[%s1781_s4 + $0x3f8] sm:$0xff]  ;;  %v154_v37 = vld [vmem:[%s1781_s4 + $0x230] sm:$0xff] }
  0x22   :  { %420 = vmatpush.msra.mxu2 %v100_v61  ;;  %453 = vmatpush.msrb.mxu0 %v139_v63  ;;  %v43_v32 = vld [vmem:[%s1783_s0] sm:$0x3]  ;;  %v171_v35 = vld [vmem:[%s1781_s4 + $0x2b8] sm:$0xff]  ;;  %v210_v38 = vld [vmem:[%s1781_s4 + $0x3f0] sm:$0xff] }
  0x23   :  { %465 = vmatpush.msrb.mxu1 %v163_v0  ;;  %440 = vmatpush.msra.mxu3 %v116_v2  ;;  %v188_v36 = vld [vmem:[%s1781_s4 + $0x340] sm:$0xff]  ;;  %v170_v39 = vld [vmem:[%s1781_s4 + $0x2b0] sm:$0xff]  ;;  %v187_v40 = vld [vmem:[%s1781_s4 + $0x338] sm:$0xff] }
  0x24   :  { %485 = vmatpush.msrb.mxu2 %v179_v1  ;;  %454 = vmatpush.msrb.mxu0 %v138_v3  ;;  %v209_v41 = vld [vmem:[%s1781_s4 + $0x3e8] sm:$0xff]  ;;  %v186_v44 = vld [vmem:[%s1781_s4 + $0x330] sm:$0xff]  ;;  %v208_v45 = vld [vmem:[%s1781_s4 + $0x3e0] sm:$0xff] }
  0x25   :  { %466 = vmatpush.msrb.mxu1 %v162_v4  ;;  %505 = vmatpush.msrb.mxu3 %v195_v6  ;;  %v153_v42 = vld [vmem:[%s1781_s4 + $0x228] sm:$0xff]  ;;  %v152_v46 = vld [vmem:[%s1781_s4 + $0x220] sm:$0xff]  ;;  %v207_v49 = vld [vmem:[%s1781_s4 + $0x3d8] sm:$0xff] }
  0x26   :  { %486 = vmatpush.msrb.mxu2 %v178_v5  ;;  %455 = vmatpush.msrb.mxu0 %v137_v7  ;;  %v169_v43 = vld [vmem:[%s1781_s4 + $0x2a8] sm:$0xff]  ;;  %v168_v47 = vld [vmem:[%s1781_s4 + $0x2a0] sm:$0xff]  ;;  %v151_v53 = vld [vmem:[%s1781_s4 + $0x218] sm:$0xff] }
  0x27   :  { %467 = vmatpush.msrb.mxu1 %v161_v8  ;;  %506 = vmatpush.msrb.mxu3 %v194_v10  ;;  %v185_v48 = vld [vmem:[%s1781_s4 + $0x328] sm:$0xff]  ;;  %v351_v50 = vld.sshfl [vmem:[#allocation1] sm:$0xff pattern:$0x73625140]  ;;  %v167_v55 = vld [vmem:[%s1781_s4 + $0x298] sm:$0xff] }
  0x28   :  { %487 = vmatpush.msrb.mxu2 %v177_v9  ;;  %456 = vmatpush.msrb.mxu0 %v136_v11  ;;  %v352_v51 = vld.sshfl [vmem:[#allocation1 + $0x8] sm:$0xff pattern:$0x73625140]  ;;  %v1240_v54 = vld.sshfl [vmem:[#allocation1 + $0x10] sm:$0xff pattern:$0x73625140] }
  0x29   :  { %468 = vmatpush.msrb.mxu1 %v160_v12  ;;  %507 = vmatpush.msrb.mxu3 %v193_v14  ;;  %v81_v52 = vld [vmem:[%s1782_s1 + $0x8] sm:$0xff]  ;;  %v82_v56 = vld [vmem:[%s1782_s1 + $0x10] sm:$0xff]  ;;  %v1248_v57 = vld.sshfl [vmem:[#allocation1 + $0x18] sm:$0xff pattern:$0x73625140] }
  0x2a   :  { %488 = vmatpush.msrb.mxu2 %v176_v13  ;;  %457 = vmatpush.msrb.mxu0 %v135_v15  ;;  %350 = vst [vmem:[#allocation1 + $0x20] ss:$4 sm:$0xff] %v81_v52  ;;  %v184_v58 = vld [vmem:[%s1781_s4 + $0x320] sm:$0xff]  ;;  %v150_v59 = vld [vmem:[%s1781_s4 + $0x210] sm:$0xff]  ;;  %v183_v62 = vld [vmem:[%s1781_s4 + $0x318] sm:$0xff] }
  0x2b   :  { %469 = vmatpush.msrb.mxu1 %v159_v16  ;;  %508 = vmatpush.msrb.mxu3 %v192_v18  ;;  %359 = vst [vmem:[#allocation1] ss:$4 sm:$0xff] %v82_v56  ;;  %v206_v60 = vld [vmem:[%s1781_s4 + $0x3d0] sm:$0xff]  ;;  %v149_v63 = vld [vmem:[%s1781_s4 + $0x208] sm:$0xff]  ;;  %v204_v3 = vld [vmem:[%s1781_s4 + $0x3c0] sm:$0xff] }
  0x2c   :  { %489 = vmatpush.msrb.mxu2 %v175_v17  ;;  %458 = vmatpush.msrb.mxu0 %v134_v19  ;;  %v166_v61 = vld [vmem:[%s1781_s4 + $0x290] sm:$0xff]  ;;  %v205_v0 = vld [vmem:[%s1781_s4 + $0x3c8] sm:$0xff]  ;;  %v148_v4 = vld [vmem:[%s1781_s4 + $0x200] sm:$0xff] }
  0x2d   :  { %470 = vmatpush.msrb.mxu1 %v158_v20  ;;  %509 = vmatpush.msrb.mxu3 %v191_v22  ;;  %v165_v1 = vld [vmem:[%s1781_s4 + $0x288] sm:$0xff]  ;;  %v182_v2 = vld [vmem:[%s1781_s4 + $0x310] sm:$0xff]  ;;  %v164_v5 = vld [vmem:[%s1781_s4 + $0x280] sm:$0xff] }
  0x2e   :  { %490 = vmatpush.msrb.mxu2 %v174_v21  ;;  %459 = vmatpush.msrb.mxu0 %v133_v23  ;;  %v181_v6 = vld [vmem:[%s1781_s4 + $0x308] sm:$0xff]  ;;  %v203_v8 = vld [vmem:[%s1781_s4 + $0x3b8] sm:$0xff]  ;;  %v180_v15 = vld [vmem:[%s1781_s4 + $0x300] sm:$0xff] }
  0x2f   :  { %471 = vmatpush.msrb.mxu1 %v157_v24  ;;  %510 = vmatpush.msrb.mxu3 %v190_v27  ;;  %v83_v10 = vld [vmem:[%s1782_s1 + $0x18] sm:$0xff]  ;;  %v202_v16 = vld [vmem:[%s1781_s4 + $0x3b0] sm:$0xff]  ;;  %v201_v20 = vld [vmem:[%s1781_s4 + $0x3a8] sm:$0xff] }
  0x30   :  { %491 = vmatpush.msrb.mxu2 %v173_v26  ;;  %460 = vmatpush.msrb.mxu0 %v132_v28  ;;  %v227_v13 = vld [vmem:[%s1781_s4 + $0x478] sm:$0xff]  ;;  %v226_v17 = vld [vmem:[%s1781_s4 + $0x470] sm:$0xff]  ;;  %v225_v21 = vld [vmem:[%s1781_s4 + $0x468] sm:$0xff] }
  0x31   :  { %472 = vmatpush.msrb.mxu1 %v156_v29  ;;  %511 = vmatpush.msrb.mxu3 %v189_v31  ;;  %v1289_v7 = vld.sshfl [vmem:[#allocation1 + $0x28] sm:$0xff pattern:$0x73625140]  ;;  %v1294_v9 = vld.sshfl [vmem:[#allocation1 + $0x30] sm:$0xff pattern:$0x73625140] }
  0x32   :  { %492 = vmatpush.msrb.mxu2 %v172_v30  ;;  %815 = vmatmul.msk.f32.vlgmr.msra.gmra.mxu0 %vm56_vm0, %v43_v32  ;;  %v1299_v11 = vld.sshfl [vmem:[#allocation1 + $0x20] sm:$0xff pattern:$0x73625140]  ;;  %v1301_v12 = vld.sshfl [vmem:[#allocation1 + $0x38] sm:$0xff pattern:$0x73625140] }
  0x33   :  { %473 = vmatpush.msrb.mxu1 %v155_v33  ;;  %525 = vmatpush.msra.mxu0 %v211_v34  ;;  %v243_v14 = vld [vmem:[%s1781_s4 + $0x4f8] sm:$0xff]  ;;  %360 = vst [vmem:[#allocation1 + $0x20] ss:$4 sm:$0xff] %v83_v10  ;;  %v242_v18 = vld [vmem:[%s1781_s4 + $0x4f0] sm:$0xff]  ;;  %v241_v22 = vld [vmem:[%s1781_s4 + $0x4e8] sm:$0xff] }
  0x34   :  { %493 = vmatpush.msrb.mxu2 %v171_v35  ;;  %512 = vmatpush.msrb.mxu3 %v188_v36  ;;  %v259_v19 = vld [vmem:[%s1781_s4 + $0x578] sm:$0xff]  ;;  %v258_v23 = vld [vmem:[%s1781_s4 + $0x570] sm:$0xff]  ;;  %v200_v24 = vld [vmem:[%s1781_s4 + $0x3a0] sm:$0xff] }
  0x35   :  { %474 = vmatpush.msrb.mxu1 %v154_v37  ;;  %526 = vmatpush.msra.mxu0 %v210_v38  ;;  %v224_v25 = vld [vmem:[%s1781_s4 + $0x460] sm:$0xff]  ;;  %v257_v27 = vld [vmem:[%s1781_s4 + $0x568] sm:$0xff]  ;;  %v199_v28 = vld [vmem:[%s1781_s4 + $0x398] sm:$0xff] }
  0x36   :  { %494 = vmatpush.msrb.mxu2 %v170_v39  ;;  %513 = vmatpush.msrb.mxu3 %v187_v40  ;;  %v240_v26 = vld [vmem:[%s1781_s4 + $0x4e0] sm:$0xff]  ;;  %v223_v29 = vld [vmem:[%s1781_s4 + $0x458] sm:$0xff]  ;;  %v198_v32 = vld [vmem:[%s1781_s4 + $0x390] sm:$0xff] }
  0x37   :  { %475 = vmatpush.msrb.mxu1 %v153_v42  ;;  %527 = vmatpush.msra.mxu0 %v209_v41  ;;  %v239_v30 = vld [vmem:[%s1781_s4 + $0x4d8] sm:$0xff]  ;;  %v256_v31 = vld [vmem:[%s1781_s4 + $0x560] sm:$0xff]  ;;  %v222_v33 = vld [vmem:[%s1781_s4 + $0x450] sm:$0xff] }
  0x38   :  { %495 = vmatpush.msrb.mxu2 %v169_v43  ;;  %514 = vmatpush.msrb.mxu3 %v186_v44  ;;  %v238_v34 = vld [vmem:[%s1781_s4 + $0x4d0] sm:$0xff]  ;;  %v255_v35 = vld [vmem:[%s1781_s4 + $0x558] sm:$0xff]  ;;  %v197_v36 = vld [vmem:[%s1781_s4 + $0x388] sm:$0xff] }
  0x39   :  { %476 = vmatpush.msrb.mxu1 %v152_v46  ;;  %528 = vmatpush.msra.mxu0 %v208_v45  ;;  %v221_v37 = vld [vmem:[%s1781_s4 + $0x448] sm:$0xff]  ;;  %v254_v39 = vld [vmem:[%s1781_s4 + $0x550] sm:$0xff]  ;;  %v196_v40 = vld [vmem:[%s1781_s4 + $0x380] sm:$0xff] }
  0x3a   :  { %496 = vmatpush.msrb.mxu2 %v168_v47  ;;  %515 = vmatpush.msrb.mxu3 %v185_v48  ;;  %v237_v38 = vld [vmem:[%s1781_s4 + $0x4c8] sm:$0xff]  ;;  %v220_v41 = vld [vmem:[%s1781_s4 + $0x440] sm:$0xff]  ;;  %v275_v44 = vld [vmem:[%s1781_s4 + $0x5f8] sm:$0xff] }
  0x3b   :  { %477 = vmatpush.msrb.mxu1 %v151_v53  ;;  %529 = vmatpush.msra.mxu0 %v207_v49  ;;  %v236_v42 = vld [vmem:[%s1781_s4 + $0x4c0] sm:$0xff]  ;;  %v253_v43 = vld [vmem:[%s1781_s4 + $0x548] sm:$0xff]  ;;  %v219_v45 = vld [vmem:[%s1781_s4 + $0x438] sm:$0xff] }
  0x3c   :  { %497 = vmatpush.msrb.mxu2 %v167_v55  ;;  %516 = vmatpush.msrb.mxu3 %v184_v58  ;;  %v235_v46 = vld [vmem:[%s1781_s4 + $0x4b8] sm:$0xff]  ;;  %v252_v47 = vld [vmem:[%s1781_s4 + $0x540] sm:$0xff]  ;;  %v274_v48 = vld [vmem:[%s1781_s4 + $0x5f0] sm:$0xff] }
  0x3d   :  { %478 = vmatpush.msrb.mxu1 %v150_v59  ;;  %530 = vmatpush.msra.mxu0 %v206_v60  ;;  %v218_v49 = vld [vmem:[%s1781_s4 + $0x430] sm:$0xff]  ;;  %v273_v52 = vld [vmem:[%s1781_s4 + $0x5e8] sm:$0xff]  ;;  %v272_v56 = vld [vmem:[%s1781_s4 + $0x5e0] sm:$0xff] }
  0x3e   :  { %498 = vmatpush.msrb.mxu2 %v166_v61  ;;  %517 = vmatpush.msrb.mxu3 %v183_v62  ;;  %v217_v53 = vld [vmem:[%s1781_s4 + $0x428] sm:$0xff]  ;;  %v250_v55 = vld [vmem:[%s1781_s4 + $0x530] sm:$0xff]  ;;  %v232_v58 = vld [vmem:[%s1781_s4 + $0x4a0] sm:$0xff] }
  0x3f   :  { %479 = vmatpush.msrb.mxu1 %v149_v63  ;;  %531 = vmatpush.msra.mxu0 %v205_v0  ;;  %v249_v59 = vld [vmem:[%s1781_s4 + $0x528] sm:$0xff]  ;;  %v215_v60 = vld [vmem:[%s1781_s4 + $0x418] sm:$0xff]  ;;  %v248_v63 = vld [vmem:[%s1781_s4 + $0x520] sm:$0xff] }
  0x40   :  { %499 = vmatpush.msrb.mxu2 %v165_v1  ;;  %518 = vmatpush.msrb.mxu3 %v182_v2  ;;  %v271_v61 = vld [vmem:[%s1781_s4 + $0x5d8] sm:$0xff]  ;;  %v214_v0 = vld [vmem:[%s1781_s4 + $0x410] sm:$0xff]  ;;  %v228_v10 = vld [vmem:[%s1781_s4 + $0x480] sm:$0xff] }
  0x41   :  { %480 = vmatpush.msrb.mxu1 %v148_v4  ;;  %532 = vmatpush.msra.mxu0 %v204_v3  ;;  %v231_v62 = vld [vmem:[%s1781_s4 + $0x498] sm:$0xff]  ;;  %v270_v1 = vld [vmem:[%s1781_s4 + $0x5d0] sm:$0xff]  ;;  %v213_v4 = vld [vmem:[%s1781_s4 + $0x408] sm:$0xff] }
  0x42   :  { %500 = vmatpush.msrb.mxu2 %v164_v5  ;;  %519 = vmatpush.msrb.mxu3 %v181_v6  ;;  %v230_v2 = vld [vmem:[%s1781_s4 + $0x490] sm:$0xff]  ;;  %v247_v3 = vld [vmem:[%s1781_s4 + $0x518] sm:$0xff]  ;;  %v269_v5 = vld [vmem:[%s1781_s4 + $0x5c8] sm:$0xff] }
  0x43   :  { %401 = vmatmul.f32.vlgmr.msra.gmra.mxu1 %v351_v50  ;;  %421 = vmatmul.f32.vlgmr.msra.gmra.mxu2 %v352_v51  ;;  %v234_v50 = vld [vmem:[%s1781_s4 + $0x4b0] sm:$0xff]  ;;  %v251_v51 = vld [vmem:[%s1781_s4 + $0x538] sm:$0xff]  ;;  %v229_v6 = vld [vmem:[%s1781_s4 + $0x488] sm:$0xff] }
  0x44   :  { %533 = vmatpush.msra.mxu0 %v203_v8  ;;  %545 = vmatpush.msra.mxu1 %v227_v13  ;;  %v212_v8 = vld [vmem:[%s1781_s4 + $0x400] sm:$0xff]  ;;  %v362_v13 = vld.sshfl [vmem:[#allocation1 + $0x8] sm:$0xff pattern:$0x73625140] }
  0x45   :  { %565 = vmatpush.msra.mxu2 %v243_v14  ;;  %520 = vmatpush.msrb.mxu3 %v180_v15  ;;  %v267_v14 = vld [vmem:[%s1781_s4 + $0x5b8] sm:$0xff] }
  0x46   :  { %534 = vmatpush.msra.mxu0 %v202_v16  ;;  %441 = vmatmul.f32.vlgmr.msra.gmra.mxu3 %v1240_v54  ;;  %v233_v54 = vld [vmem:[%s1781_s4 + $0x4a8] sm:$0xff]  ;;  %v291_v15 = vld [vmem:[%s1781_s4 + $0x678] sm:$0xff] }
  0x47   :  { %546 = vmatpush.msra.mxu1 %v226_v17  ;;  %566 = vmatpush.msra.mxu2 %v242_v18  ;;  %v307_v16 = vld [vmem:[%s1781_s4 + $0x6f8] sm:$0xff]  ;;  %v244_v17 = vld [vmem:[%s1781_s4 + $0x500] sm:$0xff]  ;;  %v266_v18 = vld [vmem:[%s1781_s4 + $0x5b0] sm:$0xff] }
  0x48   :  { %585 = vmatpush.msra.mxu3 %v259_v19  ;;  %535 = vmatpush.msra.mxu0 %v201_v20  ;;  %v363_v19 = vld.sshfl [vmem:[#allocation1 + $0x10] sm:$0xff pattern:$0x73625140] }
  0x49   :  { %547 = vmatpush.msra.mxu1 %v225_v21  ;;  %567 = vmatpush.msra.mxu2 %v241_v22  ;;  %v290_v20 = vld [vmem:[%s1781_s4 + $0x670] sm:$0xff]  ;;  %v323_v22 = vld [vmem:[%s1781_s4 + $0x778] sm:$0xff] }
  0x4a   :  { %586 = vmatpush.msra.mxu3 %v258_v23  ;;  %536 = vmatpush.msra.mxu0 %v200_v24  ;;  %v306_v21 = vld [vmem:[%s1781_s4 + $0x6f0] sm:$0xff]  ;;  %v265_v23 = vld [vmem:[%s1781_s4 + $0x5a8] sm:$0xff] }
  0x4b   :  { %548 = vmatpush.msra.mxu1 %v224_v25  ;;  %568 = vmatpush.msra.mxu2 %v240_v26  ;;  %v289_v24 = vld [vmem:[%s1781_s4 + $0x668] sm:$0xff]  ;;  %v322_v26 = vld [vmem:[%s1781_s4 + $0x770] sm:$0xff] }
  0x4c   :  { %587 = vmatpush.msra.mxu3 %v257_v27  ;;  %537 = vmatpush.msra.mxu0 %v199_v28  ;;  %v305_v25 = vld [vmem:[%s1781_s4 + $0x6e8] sm:$0xff]  ;;  %v264_v27 = vld [vmem:[%s1781_s4 + $0x5a0] sm:$0xff] }
  0x4d   :  { %549 = vmatpush.msra.mxu1 %v223_v29  ;;  %569 = vmatpush.msra.mxu2 %v239_v30  ;;  %v288_v28 = vld [vmem:[%s1781_s4 + $0x660] sm:$0xff]  ;;  %v321_v30 = vld [vmem:[%s1781_s4 + $0x768] sm:$0xff] }
  0x4e   :  { %588 = vmatpush.msra.mxu3 %v256_v31  ;;  %538 = vmatpush.msra.mxu0 %v198_v32  ;;  %v304_v29 = vld [vmem:[%s1781_s4 + $0x6e0] sm:$0xff]  ;;  %v263_v31 = vld [vmem:[%s1781_s4 + $0x598] sm:$0xff] }
  0x4f   :  { %550 = vmatpush.msra.mxu1 %v222_v33  ;;  %570 = vmatpush.msra.mxu2 %v238_v34  ;;  %v287_v32 = vld [vmem:[%s1781_s4 + $0x658] sm:$0xff]  ;;  %v320_v34 = vld [vmem:[%s1781_s4 + $0x760] sm:$0xff] }
  0x50   :  { %589 = vmatpush.msra.mxu3 %v255_v35  ;;  %539 = vmatpush.msra.mxu0 %v197_v36  ;;  %v303_v33 = vld [vmem:[%s1781_s4 + $0x6d8] sm:$0xff]  ;;  %v262_v35 = vld [vmem:[%s1781_s4 + $0x590] sm:$0xff] }
  0x51   :  { %551 = vmatpush.msra.mxu1 %v221_v37  ;;  %571 = vmatpush.msra.mxu2 %v237_v38  ;;  %v286_v36 = vld [vmem:[%s1781_s4 + $0x650] sm:$0xff]  ;;  %v319_v38 = vld [vmem:[%s1781_s4 + $0x758] sm:$0xff] }
  0x52   :  { %590 = vmatpush.msra.mxu3 %v254_v39  ;;  %501 = vmatmul.f32.vlgmr.msrb.gmra.mxu2 %v1289_v7  ;;  %v246_v7 = vld [vmem:[%s1781_s4 + $0x510] sm:$0xff]  ;;  %v261_v39 = vld [vmem:[%s1781_s4 + $0x588] sm:$0xff] }
  0x53   :  { %540 = vmatpush.msra.mxu0 %v196_v40  ;;  %552 = vmatpush.msra.mxu1 %v220_v41  ;;  %v302_v37 = vld [vmem:[%s1781_s4 + $0x6d0] sm:$0xff]  ;;  %v285_v40 = vld [vmem:[%s1781_s4 + $0x648] sm:$0xff] }
  0x54   :  { %572 = vmatpush.msra.mxu2 %v236_v42  ;;  %591 = vmatpush.msra.mxu3 %v253_v43  ;;  %v301_v41 = vld [vmem:[%s1781_s4 + $0x6c8] sm:$0xff]  ;;  %v318_v42 = vld [vmem:[%s1781_s4 + $0x750] sm:$0xff]  ;;  %v260_v43 = vld [vmem:[%s1781_s4 + $0x580] sm:$0xff] }
  0x55   :  { %461 = vmatmul.f32.vlgmr.msrb.gmra.mxu0 %v1248_v57  ;;  %521 = vmatmul.f32.vlgmr.msrb.gmra.mxu3 %v1294_v9  ;;  %v216_v57 = vld [vmem:[%s1781_s4 + $0x420] sm:$0xff] }
  0x56   :  { %605 = vmatpush.msrb.mxu0 %v275_v44  ;;  %553 = vmatpush.msra.mxu1 %v219_v45  ;;  %v268_v9 = vld [vmem:[%s1781_s4 + $0x5c0] sm:$0xff] }
  0x57   :  { %573 = vmatpush.msra.mxu2 %v235_v46  ;;  %592 = vmatpush.msra.mxu3 %v252_v47  ;;  %v284_v44 = vld [vmem:[%s1781_s4 + $0x640] sm:$0xff]  ;;  %v317_v46 = vld [vmem:[%s1781_s4 + $0x748] sm:$0xff]  ;;  %v364_v47 = vld.sshfl [vmem:[#allocation1 + $0x18] sm:$0xff pattern:$0x73625140] }
  0x58   :  { %481 = vmatmul.f32.vlgmr.msrb.gmra.mxu1 %v1299_v11  ;;  %606 = vmatpush.msrb.mxu0 %v274_v48  ;;  %v245_v11 = vld [vmem:[%s1781_s4 + $0x508] sm:$0xff]  ;;  %v300_v45 = vld [vmem:[%s1781_s4 + $0x6c0] sm:$0xff]  ;;  %v283_v48 = vld [vmem:[%s1781_s4 + $0x638] sm:$0xff] }
  0x59   :  { %554 = vmatpush.msra.mxu1 %v218_v49  ;;  %574 = vmatpush.msra.mxu2 %v234_v50  ;;  %v339_v49 = vld [vmem:[%s1781_s4 + $0x7f8] sm:$0xff] }
  0x5a   :  { %593 = vmatpush.msra.mxu3 %v251_v51  ;;  %607 = vmatpush.msrb.mxu0 %v273_v52  ;;  %v299_v50 = vld [vmem:[%s1781_s4 + $0x6b8] sm:$0xff]  ;;  %v316_v51 = vld [vmem:[%s1781_s4 + $0x740] sm:$0xff]  ;;  %v282_v52 = vld [vmem:[%s1781_s4 + $0x630] sm:$0xff] }
  0x5b   :  { %555 = vmatpush.msra.mxu1 %v217_v53  ;;  %575 = vmatpush.msra.mxu2 %v233_v54  ;;  %v338_v53 = vld [vmem:[%s1781_s4 + $0x7f0] sm:$0xff] }
  0x5c   :  { %594 = vmatpush.msra.mxu3 %v250_v55  ;;  %608 = vmatpush.msrb.mxu0 %v272_v56  ;;  %v298_v54 = vld [vmem:[%s1781_s4 + $0x6b0] sm:$0xff]  ;;  %v315_v55 = vld [vmem:[%s1781_s4 + $0x738] sm:$0xff]  ;;  %v281_v56 = vld [vmem:[%s1781_s4 + $0x628] sm:$0xff] }
  0x5d   :  { %556 = vmatpush.msra.mxu1 %v216_v57  ;;  %576 = vmatpush.msra.mxu2 %v232_v58  ;;  %v337_v57 = vld [vmem:[%s1781_s4 + $0x7e8] sm:$0xff] }
  0x5e   :  { %595 = vmatpush.msra.mxu3 %v249_v59  ;;  %541 = vmatmul.f32.vlgmr.msra.gmra.mxu0 %v1301_v12  ;;  %v361_v12 = vld.sshfl [vmem:[#allocation1] sm:$0xff pattern:$0x73625140]  ;;  %v297_v58 = vld [vmem:[%s1781_s4 + $0x6a8] sm:$0xff]  ;;  %v314_v59 = vld [vmem:[%s1781_s4 + $0x730] sm:$0xff] }
  0x5f   :  { %557 = vmatpush.msra.mxu1 %v215_v60  ;;  %609 = vmatpush.msrb.mxu0 %v271_v61  ;;  %v280_v60 = vld [vmem:[%s1781_s4 + $0x620] sm:$0xff] }
  0x60   :  { %577 = vmatpush.msra.mxu2 %v231_v62  ;;  %596 = vmatpush.msra.mxu3 %v248_v63  ;;  %v336_v61 = vld [vmem:[%s1781_s4 + $0x7e0] sm:$0xff]  ;;  %v313_v63 = vld [vmem:[%s1781_s4 + $0x728] sm:$0xff] }
  0x61   :  { %558 = vmatpush.msra.mxu1 %v214_v0  ;;  %610 = vmatpush.msrb.mxu0 %v270_v1  ;;  %v296_v62 = vld [vmem:[%s1781_s4 + $0x6a0] sm:$0xff]  ;;  %v279_v0 = vld [vmem:[%s1781_s4 + $0x618] sm:$0xff] }
  0x62   :  { %578 = vmatpush.msra.mxu2 %v230_v2  ;;  %597 = vmatpush.msra.mxu3 %v247_v3  ;;  %v335_v1 = vld [vmem:[%s1781_s4 + $0x7d8] sm:$0xff]  ;;  %v312_v3 = vld [vmem:[%s1781_s4 + $0x720] sm:$0xff] }
  0x63   :  { %559 = vmatpush.msra.mxu1 %v213_v4  ;;  %611 = vmatpush.msrb.mxu0 %v269_v5  ;;  %v295_v2 = vld [vmem:[%s1781_s4 + $0x698] sm:$0xff]  ;;  %v278_v4 = vld [vmem:[%s1781_s4 + $0x610] sm:$0xff] }
  0x64   :  { %579 = vmatpush.msra.mxu2 %v229_v6  ;;  %598 = vmatpush.msra.mxu3 %v246_v7  ;;  %v334_v5 = vld [vmem:[%s1781_s4 + $0x7d0] sm:$0xff]  ;;  %v311_v7 = vld [vmem:[%s1781_s4 + $0x718] sm:$0xff] }
  0x65   :  { %560 = vmatpush.msra.mxu1 %v212_v8  ;;  %612 = vmatpush.msrb.mxu0 %v268_v9  ;;  %v294_v6 = vld [vmem:[%s1781_s4 + $0x690] sm:$0xff]  ;;  %v277_v8 = vld [vmem:[%s1781_s4 + $0x608] sm:$0xff] }
  0x66   :  { %580 = vmatpush.msra.mxu2 %v228_v10  ;;  %599 = vmatpush.msra.mxu3 %v245_v11  ;;  %v333_v9 = vld [vmem:[%s1781_s4 + $0x7c8] sm:$0xff]  ;;  %v310_v11 = vld [vmem:[%s1781_s4 + $0x710] sm:$0xff] }
  0x67   :  { %561 = vmatmul.f32.vlgmr.msra.gmra.mxu1 %v361_v12  ;;  %581 = vmatmul.f32.vlgmr.msra.gmra.mxu2 %v362_v13  ;;  %v293_v10 = vld [vmem:[%s1781_s4 + $0x688] sm:$0xff]  ;;  %v276_v12 = vld [vmem:[%s1781_s4 + $0x600] sm:$0xff] }
  0x68   :  { %613 = vmatpush.msrb.mxu0 %v267_v14  ;;  %625 = vmatpush.msrb.mxu1 %v291_v15  ;;  %v332_v13 = vld [vmem:[%s1781_s4 + $0x7c0] sm:$0xff]  ;;  %v309_v15 = vld [vmem:[%s1781_s4 + $0x708] sm:$0xff] }
  0x69   :  { %645 = vmatpush.msrb.mxu2 %v307_v16  ;;  %600 = vmatpush.msra.mxu3 %v244_v17  ;;  %v292_v14 = vld [vmem:[%s1781_s4 + $0x680] sm:$0xff]  ;;  %v366_v17 = vld.sshfl [vmem:[#allocation1 + $0x28] sm:$0xff pattern:$0x73625140] }
  0x6a   :  { %614 = vmatpush.msrb.mxu0 %v266_v18  ;;  %601 = vmatmul.f32.vlgmr.msra.gmra.mxu3 %v363_v19  ;;  %v365_v16 = vld.sshfl [vmem:[#allocation1 + $0x20] sm:$0xff pattern:$0x73625140]  ;;  %v331_v18 = vld [vmem:[%s1781_s4 + $0x7b8] sm:$0xff] }
  0x6b   :  { %626 = vmatpush.msrb.mxu1 %v290_v20  ;;  %646 = vmatpush.msrb.mxu2 %v306_v21  ;;  %v308_v19 = vld [vmem:[%s1781_s4 + $0x700] sm:$0xff]  ;;  %v367_v20 = vld.sshfl [vmem:[#allocation1 + $0x30] sm:$0xff pattern:$0x73625140] }
  0x6c   :  { %665 = vmatpush.msrb.mxu3 %v323_v22  ;;  %615 = vmatpush.msrb.mxu0 %v265_v23  ;;  %v330_v21 = vld [vmem:[%s1781_s4 + $0x7b0] sm:$0xff]  ;;  %v329_v22 = vld [vmem:[%s1781_s4 + $0x7a8] sm:$0xff]  ;;  %v328_v23 = vld [vmem:[%s1781_s4 + $0x7a0] sm:$0xff] }
  0x6d   :  { %627 = vmatpush.msrb.mxu1 %v289_v24  ;;  %647 = vmatpush.msrb.mxu2 %v305_v25  ;;  %v327_v24 = vld [vmem:[%s1781_s4 + $0x798] sm:$0xff]  ;;  %v326_v25 = vld [vmem:[%s1781_s4 + $0x790] sm:$0xff] }
  0x6e   :  { %666 = vmatpush.msrb.mxu3 %v322_v26  ;;  %616 = vmatpush.msrb.mxu0 %v264_v27  ;;  %v325_v26 = vld [vmem:[%s1781_s4 + $0x788] sm:$0xff]  ;;  %v324_v27 = vld [vmem:[%s1781_s4 + $0x780] sm:$0xff] }
  0x6f   :  { %628 = vmatpush.msrb.mxu1 %v288_v28  ;;  %648 = vmatpush.msrb.mxu2 %v304_v29  ;;  %v368_v28 = vld.sshfl [vmem:[#allocation1 + $0x38] sm:$0xff pattern:$0x73625140]  ;;  %v820_v29 = vld [vmem:[%s1784_s3] ss:$0 sm:$0xff] }
  0x70   :  { %667 = vmatpush.msrb.mxu3 %v321_v30  ;;  %617 = vmatpush.msrb.mxu0 %v263_v31 }
  0x71   :  { %629 = vmatpush.msrb.mxu1 %v287_v32  ;;  %649 = vmatpush.msrb.mxu2 %v303_v33  ;;  %v821_v32 = vld [vmem:[%s1785_s5] ss:$0 sm:$0xff] }
  0x72   :  { %668 = vmatpush.msrb.mxu3 %v320_v34  ;;  %618 = vmatpush.msrb.mxu0 %v262_v35 }
  0x73   :  { %630 = vmatpush.msrb.mxu1 %v286_v36  ;;  %650 = vmatpush.msrb.mxu2 %v302_v37 }
  0x74   :  { %669 = vmatpush.msrb.mxu3 %v319_v38  ;;  %619 = vmatpush.msrb.mxu0 %v261_v39 }
  0x75   :  { %631 = vmatpush.msrb.mxu1 %v285_v40  ;;  %651 = vmatpush.msrb.mxu2 %v301_v41 }
  0x76   :  { %670 = vmatpush.msrb.mxu3 %v318_v42  ;;  %620 = vmatpush.msrb.mxu0 %v260_v43 }
  0x77   :  { %632 = vmatpush.msrb.mxu1 %v284_v44  ;;  %652 = vmatpush.msrb.mxu2 %v300_v45  ;;  %v718_v44 = vld [vmem:[%s1786_s6 + $0x38] sm:$0xff]  ;;  %v717_v45 = vld [vmem:[%s1786_s6 + $0x30] sm:$0xff] }
  0x78   :  { %671 = vmatpush.msrb.mxu3 %v317_v46  ;;  %621 = vmatmul.f32.vlgmr.msrb.gmra.mxu0 %v364_v47  ;;  %v716_v47 = vld [vmem:[%s1786_s6 + $0x28] sm:$0xff] }
  0x79   :  { %633 = vmatpush.msrb.mxu1 %v283_v48  ;;  %685 = vmatpush.msra.mxu0 %v339_v49  ;;  %v715_v49 = vld [vmem:[%s1786_s6 + $0x20] sm:$0xff] }
  0x7a   :  { %653 = vmatpush.msrb.mxu2 %v299_v50  ;;  %672 = vmatpush.msrb.mxu3 %v316_v51  ;;  %v714_v51 = vld [vmem:[%s1786_s6 + $0x18] sm:$0xff] }
  0x7b   :  { %634 = vmatpush.msrb.mxu1 %v282_v52  ;;  %686 = vmatpush.msra.mxu0 %v338_v53  ;;  %v713_v53 = vld [vmem:[%s1786_s6 + $0x10] sm:$0xff] }
  0x7c   :  { %654 = vmatpush.msrb.mxu2 %v298_v54  ;;  %673 = vmatpush.msrb.mxu3 %v315_v55 }
  0x7d   :  { %635 = vmatpush.msrb.mxu1 %v281_v56  ;;  %687 = vmatpush.msra.mxu0 %v337_v57  ;;  %v712_v56 = vld [vmem:[%s1786_s6 + $0x8] sm:$0xff] }
  0x7e   :  { %655 = vmatpush.msrb.mxu2 %v297_v58  ;;  %674 = vmatpush.msrb.mxu3 %v314_v59 }
  0x7f   :  { %636 = vmatpush.msrb.mxu1 %v280_v60  ;;  %688 = vmatpush.msra.mxu0 %v336_v61 }
  0x80   :  { %656 = vmatpush.msrb.mxu2 %v296_v62  ;;  %675 = vmatpush.msrb.mxu3 %v313_v63 }
  0x81   :  { %637 = vmatpush.msrb.mxu1 %v279_v0  ;;  %689 = vmatpush.msra.mxu0 %v335_v1 }
  0x82   :  { %657 = vmatpush.msrb.mxu2 %v295_v2  ;;  %676 = vmatpush.msrb.mxu3 %v312_v3 }
  0x83   :  { %638 = vmatpush.msrb.mxu1 %v278_v4  ;;  %690 = vmatpush.msra.mxu0 %v334_v5 }
  0x84   :  { %658 = vmatpush.msrb.mxu2 %v294_v6  ;;  %677 = vmatpush.msrb.mxu3 %v311_v7 }
  0x85   :  { %639 = vmatpush.msrb.mxu1 %v277_v8  ;;  %691 = vmatpush.msra.mxu0 %v333_v9  ;;  %v711_v8 = vld [vmem:[%s1786_s6] sm:$0xff]  ;;  %v750_v9 = vld [vmem:[%s1788_s8 + $0x18] sm:$0xff] }
  0x86   :  { %659 = vmatpush.msrb.mxu2 %v293_v10  ;;  %678 = vmatpush.msrb.mxu3 %v310_v11  ;;  %v749_v10 = vld [vmem:[%s1788_s8 + $0x10] sm:$0xff] }
  0x87   :  { %640 = vmatpush.msrb.mxu1 %v276_v12  ;;  %692 = vmatpush.msra.mxu0 %v332_v13  ;;  %v748_v13 = vld [vmem:[%s1788_s8 + $0x8] sm:$0xff] }
  0x88   :  { %660 = vmatpush.msrb.mxu2 %v292_v14  ;;  %679 = vmatpush.msrb.mxu3 %v309_v15  ;;  %v747_v14 = vld [vmem:[%s1788_s8] sm:$0xff]  ;;  %v780_v15 = vld [vmem:[%s1790_s10 + $0x8] sm:$0xff] }
  0x89   :  { %641 = vmatmul.f32.vlgmr.msrb.gmra.mxu1 %v365_v16  ;;  %661 = vmatmul.f32.vlgmr.msrb.gmra.mxu2 %v366_v17  ;;  %v822_v16 = vld [vmem:[%s1787_s7] ss:$0 sm:$0xff] }
  0x8a   :  { %693 = vmatpush.msra.mxu0 %v331_v18  ;;  %680 = vmatpush.msrb.mxu3 %v308_v19 }
  0x8b   :  { %681 = vmatmul.f32.vlgmr.msrb.gmra.mxu3 %v367_v20  ;;  %734 = vmatpush.msra.mxu1 %v718_v44  ;;  %v779_v20 = vld [vmem:[%s1790_s10] sm:$0xff] }
  0x8c   :  { %694 = vmatpush.msra.mxu0 %v330_v21  ;;  %770 = vmatpush.msra.mxu2 %v750_v9  ;;  %v17_v21 = vstv %s1791_s11 }
  0x8d   :  { %735 = vmatpush.msra.mxu1 %v717_v45  ;;  %803 = vmatpush.msra.mxu3 %v780_v15  ;;  %18 = vst [vmem:[#allocation2] sm:$0x1] %v17_v21 }
  0x8e   :  { %695 = vmatpush.msra.mxu0 %v329_v22  ;;  %771 = vmatpush.msra.mxu2 %v749_v10  ;;  %v823_v22 = vld [vmem:[%s1789_s9] ss:$0 sm:$0xff] }
  0x8f   :  { %736 = vmatpush.msra.mxu1 %v716_v47  ;;  %804 = vmatpush.msra.mxu3 %v779_v20 }
  0x90   :  { %696 = vmatpush.msra.mxu0 %v328_v23  ;;  %772 = vmatpush.msra.mxu2 %v748_v13 }
  0x91   :  { %737 = vmatpush.msra.mxu1 %v715_v49 }
  0x92   :  { %697 = vmatpush.msra.mxu0 %v327_v24  ;;  %773 = vmatpush.msra.mxu2 %v747_v14 }
  0x93   :  { %738 = vmatpush.msra.mxu1 %v714_v51 }
  0x94   :  { %698 = vmatpush.msra.mxu0 %v326_v25 }
  0x95   :  { %739 = vmatpush.msra.mxu1 %v713_v53 }
  0x96   :  { %699 = vmatpush.msra.mxu0 %v325_v26  ;;  %v824_v26 = vld [vmem:[#allocation2] ss:$0 sm:$0xff] }
  0x97   :  { %740 = vmatpush.msra.mxu1 %v712_v56 }
  0x98   :  { %700 = vmatpush.msra.mxu0 %v324_v27 }
  0x99   :  { %701 = vmatmul.f32.vlgmr.msra.gmra.mxu0 %v368_v28  ;;  %741 = vmatpush.msra.mxu1 %v711_v8 }
  0xaf   :  { %v77_v30 = vpop.f32.mrf.mxu0 }
  0xb0   :  { %v78_v31 = vadd.f32 %v820_v29, %v77_v30 }
  0xc0   :  { %v402_v33 = vpop.f32.mrf.mxu1 }
  0xc1   :  { %v403_v34 = vadd.f32 %v821_v32, %v402_v33 }
  0xc6   :  { %v422_v35 = vpop.f32.mrf.mxu2 }
  0xc7   :  { %v423_v36 = vadd.f32 %v422_v35, %v403_v34 }
  0xc9   :  { %v442_v37 = vpop.f32.mrf.mxu3 }
  0xca   :  { %v443_v38 = vadd.f32 %v442_v37, %v423_v36 }
  0xd2   :  { %v462_v39 = vpop.f32.mrf.mxu0 }
  0xd3   :  { %v463_v40 = vadd.f32 %v462_v39, %v443_v38 }
  0xd5   :  { %v482_v41 = vpop.f32.mrf.mxu1  ;;  %v502_v43 = vpop.f32.mrf.mxu2 }
  0xd6   :  { %v483_v42 = vadd.f32 %v482_v41, %v463_v40 }
  0xd8   :  { %v503_v46 = vadd.f32 %v502_v43, %v483_v42  ;;  %v522_v48 = vpop.f32.mrf.mxu3 }
  0xda   :  { %v523_v50 = vadd.f32 %v522_v48, %v503_v46 }
  0xdb   :  { %v542_v52 = vpop.f32.mrf.mxu0 }
  0xdc   :  { %v543_v55 = vadd.f32 %v542_v52, %v523_v50 }
  0xe4   :  { %v562_v54 = vpop.f32.mrf.mxu1 }
  0xe5   :  { %v563_v58 = vadd.f32 %v562_v54, %v543_v55 }
  0xea   :  { %v582_v57 = vpop.f32.mrf.mxu2 }
  0xeb   :  { %v583_v59 = vadd.f32 %v582_v57, %v563_v58 }
  0xed   :  { %v602_v60 = vpop.f32.mrf.mxu3 }
  0xee   :  { %v603_v62 = vadd.f32 %v602_v60, %v583_v59 }
  0xf5   :  { %v622_v61 = vpop.f32.mrf.mxu0 }
  0xf6   :  { %v623_v0 = vadd.f32 %v622_v61, %v603_v62 }
 0x106   :  { %v642_v63 = vpop.f32.mrf.mxu1 }
 0x107   :  { %v643_v2 = vadd.f32 %v642_v63, %v623_v0 }
 0x10c   :  { %v662_v1 = vpop.f32.mrf.mxu2 }
 0x10d   :  { %v663_v3 = vadd.f32 %v662_v1, %v643_v2 }
 0x10e   :  { %v682_v4 = vpop.f32.mrf.mxu3 }
 0x10f   :  { %v683_v5 = vadd.f32 %v682_v4, %v663_v3 }
 0x116   :  { %v702_v6 = vpop.f32.mrf.mxu0 }
 0x117   :  { %v703_v7 = vadd.f32 %v702_v6, %v683_v5 }
 0x119   :  { %706 = vrot.lane.b32.xlu0 %v703_v7, %s825_s14 }
 0x18b   :  { %v707_v11 = vpop.permute.xlu0 %706 }
 0x18c   :  { %v710_v12 = vsel %vm709_vm1, %v78_v31, %v707_v11 }
 0x18d   :  { %816 = vmatmul.msk.f32.vlgmr.msra.gmra.mxu1 %vm56_vm0, %v710_v12 }
 0x20a   :  { %v743_v17 = vpop.f32.mrf.mxu1 }
 0x20b   :  { %v744_v18 = vadd.f32 %v822_v16, %v743_v17 }
 0x20d   :  { %v746_v19 = vmax.f32 %v744_v18, 0.0 }
 0x20f   :  { %817 = vmatmul.msk.f32.vlgmr.msra.gmra.mxu2 %vm709_vm1, %v746_v19 }
 0x292   :  { %v775_v23 = vpop.f32.mrf.mxu2 }
 0x293   :  { %v776_v24 = vadd.f32 %v823_v22, %v775_v23 }
 0x295   :  { %v778_v25 = vmax.f32 %v776_v24, 0.0 }
 0x297   :  { %818 = vmatmul.msk.f32.vlgmr.msra.gmra.mxu3 %vm785_vm2, %v778_v25 }
 0x31a   :  { %v806_v27 = vpop.f32.mrf.mxu3 }
 0x31b   :  { %v807_v28 = vadd.f32 %v824_v26, %v806_v27 }
 0x31d   :  { %810 = vst.msk [vmem:[%s1792_s12] sm:$0x3] %vm809_vm3, %v807_v28 }

</bundles_post_ra>
